<compile_context>
chip_gen: v7x
topology: tpu7x:2x2x1
jax: 0.10.0
libtpu: 0.0.40
codegen_flags: <defaults>
</compile_context>

<pallas_src>
import functools

import jax
import jax.numpy as jnp
from jax.experimental import pallas as pl
from jax.experimental.pallas import tpu as pltpu


def _leaky_relu(x, slope=0.2):
    # For 0 < slope < 1, max(x, slope*x) == leaky_relu(x): mul+max on the VPU.
    return jnp.maximum(x, slope * x)


def _round_up(x, m):
    return ((x + m - 1) // m) * m


def _tensorcores_per_chip():
    """Best-effort detection of megacore chips (2 TCs sharded by 'parallel')."""
    try:
        kind = jax.devices()[0].device_kind.lower()
    except Exception:  # pragma: no cover - defensive; perf-only decision
        return 1
    if any(tag in kind for tag in ("v7", "7x", "v4", "v5p")):
        return 2
    return 1


def _choose_tiling(B, requested_tb=None, cap=512):
    """Pick (tb, Bp): tb a multiple of 16, Bp = grid_steps * tb >= B."""
    Bp16 = _round_up(max(B, 1), 16)
    if requested_tb is not None:
        tb = max(16, _round_up(min(requested_tb, Bp16), 16))
        return tb, _round_up(B, tb)
    min_steps = 2 if _tensorcores_per_chip() >= 2 else 1
    steps = max(min_steps, -(-Bp16 // cap))          # ceil(Bp16 / cap)
    tb = min(_round_up(-(-Bp16 // steps), 16), Bp16)  # balanced, 16-aligned
    return tb, steps * tb


def generator_kernel(lab_ref, table_ref,
                     w2_ref, b2_ref, w3_ref, b3_ref,
                     w4_ref, b4_ref, w5_ref, b5_ref, out_ref):
    # lab_ref:   (tb, 1) int32 labels in {0,1,2}
    # table_ref: (3, 128) folded leaky_relu(emb @ w1 + b1), compute dtype
    # wN_ref:    (in, out) compute dtype; bN_ref: (1, out) float32
    cdt = w2_ref.dtype
    lab = lab_ref[...]                               # (tb, 1) int32

    # Fused embedding + Linear(3,128) + LeakyReLU: exact 3-row gather via two
    # vectorized selects (broadcast (tb,1) label against (1,128) table rows).
    r0 = table_ref[0:1, :]
    r1 = table_ref[1:2, :]
    r2 = table_ref[2:3, :]
    h = jnp.where(lab == 0, r0, jnp.where(lab == 1, r1, r2))   # (tb, 128), cdt

    h = _leaky_relu(jnp.dot(h, w2_ref[...],
                            preferred_element_type=jnp.float32) + b2_ref[...])
    h = _leaky_relu(jnp.dot(h.astype(cdt), w3_ref[...],
                            preferred_element_type=jnp.float32) + b3_ref[...])
    h = _leaky_relu(jnp.dot(h.astype(cdt), w4_ref[...],
                            preferred_element_type=jnp.float32) + b4_ref[...])
    out = jnp.dot(h.astype(cdt), w5_ref[...],
                  preferred_element_type=jnp.float32) + b5_ref[...]
    out_ref[...] = out.astype(out_ref.dtype)


def init_generator_params(key, ht_dim=3, ecg_dim=128):
    """Deterministic init matching the PyTorch module's parameter shapes."""
    dims = [ht_dim, 128, 256, 512, 1024, ecg_dim]
    keys = jax.random.split(key, 11)
    params = {"emb": jax.random.normal(keys[0], (3, 3), jnp.float32)}
    for idx in range(5):
        fan_in = dims[idx]
        bound = 1.0 / float(fan_in) ** 0.5
        params[f"w{idx + 1}"] = jax.random.uniform(
            keys[1 + 2 * idx], (dims[idx], dims[idx + 1]), jnp.float32,
            -bound, bound)
        params[f"b{idx + 1}"] = jax.random.uniform(
            keys[2 + 2 * idx], (1, dims[idx + 1]), jnp.float32, -bound, bound)
    return params


@functools.partial(jax.jit,
                   static_argnames=("tb", "Bp", "use_bf16", "out_dtype"))
def _generator_forward_impl(labels, params, *, tb, Bp, use_bf16, out_dtype):
    B = labels.shape[0]
    ecg_dim = params["w5"].shape[1]
    cdt = jnp.bfloat16 if use_bf16 else jnp.float32

    # Fold embedding + Linear(3,128) + LeakyReLU into a (3,128) table.  The
    # embedding lookup is an exact row gather, so gathering from this table
    # (done in-kernel) is numerically identical to the original layers.
    table = _leaky_relu(params["emb"] @ params["w1"] + params["b1"])  # (3, 128)
    table = table.astype(cdt)

    # Labels as a tiny (Bp, 1) int32 VMEM input (pad rows use label 0; their
    # outputs are sliced off at the end).
    lab2d = labels.astype(jnp.int32).reshape(B, 1)
    if Bp != B:
        lab2d = jnp.pad(lab2d, ((0, Bp - B), (0, 0)))

    # Lane-dense output: pad ecg_dim to a multiple of 128 (no-op at 128).
    ecg_pad = _round_up(ecg_dim, 128)
    w5, b5 = params["w5"], params["b5"]
    if ecg_pad != ecg_dim:
        w5 = jnp.pad(w5, ((0, 0), (0, ecg_pad - ecg_dim)))
        b5 = jnp.pad(b5, ((0, 0), (0, ecg_pad - ecg_dim)))

    # Matmul operands in compute dtype; biases stay f32 (added to f32 acc).
    w2 = params["w2"].astype(cdt)
    w3 = params["w3"].astype(cdt)
    w4 = params["w4"].astype(cdt)
    w5 = w5.astype(cdt)
    b2, b3, b4 = params["b2"], params["b3"], params["b4"]

    grid = (Bp // tb,)

    def full_spec(arr):
        # Whole (small) parameter array as a single resident block.
        return pl.BlockSpec(arr.shape, lambda i: (0, 0))

    in_specs = [
        pl.BlockSpec((tb, 1), lambda i: (i, 0)),      # labels, tiled on batch
        full_spec(table),
        full_spec(w2), full_spec(b2),
        full_spec(w3), full_spec(b3),
        full_spec(w4), full_spec(b4),
        full_spec(w5), full_spec(b5),
    ]
    out_specs = pl.BlockSpec((tb, ecg_pad), lambda i: (i, 0))

    flops = 2 * Bp * (128 * 256 + 256 * 512 + 512 * 1024 + 1024 * ecg_pad)
    weight_bytes = sum(int(a.size) * a.dtype.itemsize
                       for a in (table, w2, b2, w3, b3, w4, b4, w5, b5))
    bytes_accessed = (weight_bytes
                      + Bp * 4                                   # labels in
                      + Bp * ecg_pad * jnp.dtype(out_dtype).itemsize)

    out = pl.pallas_call(
        generator_kernel,
        out_shape=jax.ShapeDtypeStruct((Bp, ecg_pad), out_dtype),
        grid=grid,
        in_specs=in_specs,
        out_specs=out_specs,
        compiler_params=pltpu.CompilerParams(
            dimension_semantics=("parallel",)),
        cost_estimate=pl.CostEstimate(
            flops=flops, transcendentals=0, bytes_accessed=bytes_accessed),
    )(lab2d, table, w2, b2, w3, b3, w4, b4, w5, b5)

    return out[:B, :ecg_dim]


def generator_forward(labels, params, *, tb=None, use_bf16=True,
                      out_dtype=None):
    """labels: (B,) int labels in [0, 3). Returns (B, ecg_dim).

    tb: batch tile override (default: device-aware -- one grid step on
        single-TC chips, two balanced steps on megacore chips, <=512 rows/step).
    use_bf16: bf16 MXU operands + f32 accumulation (f32 path for validation).
    out_dtype: kernel output dtype; defaults to bf16 on the fast path.
    """
    B = labels.shape[0]
    tb_eff, Bp = _choose_tiling(B, tb)
    if out_dtype is None:
        out_dtype = jnp.bfloat16 if use_bf16 else jnp.float32
    return _generator_forward_impl(labels, params, tb=tb_eff, Bp=Bp,
                                   use_bf16=use_bf16, out_dtype=out_dtype)


def generator_reference(labels, params):
    """Pure-JAX f32 reference (mirrors the PyTorch forward exactly)."""
    h = params["emb"][labels]                      # (B, 3) embedding lookup
    for idx in range(1, 5):
        h = h @ params[f"w{idx}"] + params[f"b{idx}"]
        h = jnp.where(h > 0, h, 0.2 * h)
    return h @ params["w5"] + params["b5"]


if __name__ == "__main__":
    key = jax.random.PRNGKey(0)
    k_params, k_labels = jax.random.split(key)

    ht_dim, ecg_dim = 3, 128   # ht_dim must be 3 (embedding output feeds MLP)
    batch = 256

    params = init_generator_params(k_params, ht_dim=ht_dim, ecg_dim=ecg_dim)
    labels = jax.random.randint(k_labels, (batch,), 0, 3, dtype=jnp.int32)

    ref = generator_reference(labels, params)

    # Exact-path check (f32 matmuls, f32 output): tight tolerance.
    out_f32 = jax.block_until_ready(
        generator_forward(labels, params, use_bf16=False))
    assert out_f32.shape == (batch, ecg_dim)
    assert out_f32.dtype == jnp.float32
    assert jnp.allclose(out_f32, ref, atol=1e-4, rtol=1e-4)

    # Fast path (bf16 operands + bf16 output, f32 accumulation): looser tol.
    out_bf16 = jax.block_until_ready(generator_forward(labels, params))
    assert out_bf16.shape == (batch, ecg_dim)
    assert jnp.allclose(out_bf16.astype(jnp.float32), ref,
                        atol=5e-2, rtol=5e-2)

    # Odd batch (exercises batch padding / multi-step balanced grid path).
    labels_small = labels[:40]
    out_small = jax.block_until_ready(generator_forward(labels_small, params))
    assert out_small.shape == (40, ecg_dim)
    assert jnp.allclose(out_small.astype(jnp.float32), ref[:40],
                        atol=5e-2, rtol=5e-2)

    print("KERNEL_OK")
</pallas_src>

<mosaic_0001>
module attributes {stable_mosaic.version = 11 : i64} {
  func.func @generator_kernel(%arg0: i32, %arg1: memref<256x1xi32, #tpu.memory_space<vmem>>, %arg2: memref<3x128xf32, #tpu.memory_space<vmem>>, %arg3: memref<128x256xf32, #tpu.memory_space<vmem>>, %arg4: memref<1x256xf32, #tpu.memory_space<vmem>>, %arg5: memref<256x512xf32, #tpu.memory_space<vmem>>, %arg6: memref<1x512xf32, #tpu.memory_space<vmem>>, %arg7: memref<512x1024xf32, #tpu.memory_space<vmem>>, %arg8: memref<1x1024xf32, #tpu.memory_space<vmem>>, %arg9: memref<1024x128xf32, #tpu.memory_space<vmem>>, %arg10: memref<1x128xf32, #tpu.memory_space<vmem>>, %arg11: memref<256x128xf32, #tpu.memory_space<vmem>>) attributes {dimension_semantics = [#tpu.dimension_semantics<parallel>], iteration_bounds = array<i64: 1>, scalar_prefetch = 0 : i64, scratch_operands = 0 : i64, tpu.core_type = #tpu.core_type<tc>, window_params = [{transform_indices = @transform_0, window_bounds = array<i64: 256, 1>}, {pipeline_mode = #tpu.pipeline_mode<synchronous>, transform_indices = @transform_1, window_bounds = array<i64: 3, 128>}, {pipeline_mode = #tpu.pipeline_mode<synchronous>, transform_indices = @transform_2, window_bounds = array<i64: 128, 256>}, {pipeline_mode = #tpu.pipeline_mode<synchronous>, transform_indices = @transform_3, window_bounds = array<i64: 1, 256>}, {pipeline_mode = #tpu.pipeline_mode<synchronous>, transform_indices = @transform_4, window_bounds = array<i64: 256, 512>}, {pipeline_mode = #tpu.pipeline_mode<synchronous>, transform_indices = @transform_5, window_bounds = array<i64: 1, 512>}, {pipeline_mode = #tpu.pipeline_mode<synchronous>, transform_indices = @transform_6, window_bounds = array<i64: 512, 1024>}, {pipeline_mode = #tpu.pipeline_mode<synchronous>, transform_indices = @transform_7, window_bounds = array<i64: 1, 1024>}, {pipeline_mode = #tpu.pipeline_mode<synchronous>, transform_indices = @transform_8, window_bounds = array<i64: 1024, 128>}, {pipeline_mode = #tpu.pipeline_mode<synchronous>, transform_indices = @transform_9, window_bounds = array<i64: 1, 128>}, {transform_indices = @transform_10, window_bounds = array<i64: 256, 128>}]} {
    %c0 = arith.constant 0 : index
    %c0_0 = arith.constant 0 : index
    %0 = vector.load %arg1[%c0, %c0_0] : memref<256x1xi32, #tpu.memory_space<vmem>>, vector<256x1xi32>
    %c0_1 = arith.constant 0 : index
    %c0_2 = arith.constant 0 : index
    %1 = vector.load %arg2[%c0_1, %c0_2] : memref<3x128xf32, #tpu.memory_space<vmem>>, vector<1x128xf32>
    %c1 = arith.constant 1 : index
    %c0_3 = arith.constant 0 : index
    %2 = vector.load %arg2[%c1, %c0_3] : memref<3x128xf32, #tpu.memory_space<vmem>>, vector<1x128xf32>
    %c2 = arith.constant 2 : index
    %c0_4 = arith.constant 0 : index
    %3 = vector.load %arg2[%c2, %c0_4] : memref<3x128xf32, #tpu.memory_space<vmem>>, vector<1x128xf32>
    %c0_i32 = arith.constant 0 : i32
    %4 = vector.broadcast %c0_i32 : i32 to vector<256x1xi32>
    %5 = arith.cmpi eq, %0, %4 : vector<256x1xi32>
    %c1_i32 = arith.constant 1 : i32
    %6 = vector.broadcast %c1_i32 : i32 to vector<256x1xi32>
    %7 = arith.cmpi eq, %0, %6 : vector<256x1xi32>
    %8 = vector.shape_cast %7 : vector<256x1xi1> to vector<256x1xi1>
    %9 = vector.broadcast %8 : vector<256x1xi1> to vector<256x128xi1>
    %10 = vector.shape_cast %2 : vector<1x128xf32> to vector<1x128xf32>
    %11 = vector.broadcast %10 : vector<1x128xf32> to vector<256x128xf32>
    %12 = vector.shape_cast %3 : vector<1x128xf32> to vector<1x128xf32>
    %13 = vector.broadcast %12 : vector<1x128xf32> to vector<256x128xf32>
    %14 = arith.select %9, %11, %13 : vector<256x128xi1>, vector<256x128xf32>
    %15 = vector.shape_cast %5 : vector<256x1xi1> to vector<256x1xi1>
    %16 = vector.broadcast %15 : vector<256x1xi1> to vector<256x128xi1>
    %17 = vector.shape_cast %1 : vector<1x128xf32> to vector<1x128xf32>
    %18 = vector.broadcast %17 : vector<1x128xf32> to vector<256x128xf32>
    %19 = arith.select %16, %18, %14 : vector<256x128xi1>, vector<256x128xf32>
    %c0_5 = arith.constant 0 : index
    %c0_6 = arith.constant 0 : index
    %20 = vector.load %arg3[%c0_5, %c0_6] : memref<128x256xf32, #tpu.memory_space<vmem>>, vector<128x256xf32>
    %cst = arith.constant dense<0.000000e+00> : vector<256x256xf32>
    %21 = tpu.matmul %19, %20, %cst {dimension_numbers = #tpu.dot_dimension_numbers<[1], [0], [0], [1], [0, 0, 1, 1], [], []>} : vector<256x128xf32>, vector<128x256xf32>, vector<256x256xf32> -> vector<256x256xf32>
    %c0_7 = arith.constant 0 : index
    %c0_8 = arith.constant 0 : index
    %22 = vector.load %arg4[%c0_7, %c0_8] : memref<1x256xf32, #tpu.memory_space<vmem>>, vector<1x256xf32>
    %23 = vector.broadcast %22 : vector<1x256xf32> to vector<256x256xf32>
    %24 = arith.addf %21, %23 : vector<256x256xf32>
    %cst_9 = arith.constant 2.000000e-01 : f32
    %25 = vector.broadcast %cst_9 : f32 to vector<256x256xf32>
    %26 = arith.mulf %25, %24 : vector<256x256xf32>
    %27 = arith.maximumf %24, %26 : vector<256x256xf32>
    %c0_10 = arith.constant 0 : index
    %c0_11 = arith.constant 0 : index
    %28 = vector.load %arg5[%c0_10, %c0_11] : memref<256x512xf32, #tpu.memory_space<vmem>>, vector<256x512xf32>
    %cst_12 = arith.constant dense<0.000000e+00> : vector<256x512xf32>
    %29 = tpu.matmul %27, %28, %cst_12 {dimension_numbers = #tpu.dot_dimension_numbers<[1], [0], [0], [1], [0, 0, 1, 1], [], []>} : vector<256x256xf32>, vector<256x512xf32>, vector<256x512xf32> -> vector<256x512xf32>
    %c0_13 = arith.constant 0 : index
    %c0_14 = arith.constant 0 : index
    %30 = vector.load %arg6[%c0_13, %c0_14] : memref<1x512xf32, #tpu.memory_space<vmem>>, vector<1x512xf32>
    %31 = vector.broadcast %30 : vector<1x512xf32> to vector<256x512xf32>
    %32 = arith.addf %29, %31 : vector<256x512xf32>
    %cst_15 = arith.constant 2.000000e-01 : f32
    %33 = vector.broadcast %cst_15 : f32 to vector<256x512xf32>
    %34 = arith.mulf %33, %32 : vector<256x512xf32>
    %35 = arith.maximumf %32, %34 : vector<256x512xf32>
    %c0_16 = arith.constant 0 : index
    %c0_17 = arith.constant 0 : index
    %36 = vector.load %arg7[%c0_16, %c0_17] : memref<512x1024xf32, #tpu.memory_space<vmem>>, vector<512x1024xf32>
    %cst_18 = arith.constant dense<0.000000e+00> : vector<256x1024xf32>
    %37 = tpu.matmul %35, %36, %cst_18 {dimension_numbers = #tpu.dot_dimension_numbers<[1], [0], [0], [1], [0, 0, 1, 1], [], []>} : vector<256x512xf32>, vector<512x1024xf32>, vector<256x1024xf32> -> vector<256x1024xf32>
    %c0_19 = arith.constant 0 : index
    %c0_20 = arith.constant 0 : index
    %38 = vector.load %arg8[%c0_19, %c0_20] : memref<1x1024xf32, #tpu.memory_space<vmem>>, vector<1x1024xf32>
    %39 = vector.broadcast %38 : vector<1x1024xf32> to vector<256x1024xf32>
    %40 = arith.addf %37, %39 : vector<256x1024xf32>
    %cst_21 = arith.constant 2.000000e-01 : f32
    %41 = vector.broadcast %cst_21 : f32 to vector<256x1024xf32>
    %42 = arith.mulf %41, %40 : vector<256x1024xf32>
    %43 = arith.maximumf %40, %42 : vector<256x1024xf32>
    %c0_22 = arith.constant 0 : index
    %c0_23 = arith.constant 0 : index
    %44 = vector.load %arg9[%c0_22, %c0_23] : memref<1024x128xf32, #tpu.memory_space<vmem>>, vector<1024x128xf32>
    %cst_24 = arith.constant dense<0.000000e+00> : vector<256x128xf32>
    %45 = tpu.matmul %43, %44, %cst_24 {dimension_numbers = #tpu.dot_dimension_numbers<[1], [0], [0], [1], [0, 0, 1, 1], [], []>} : vector<256x1024xf32>, vector<1024x128xf32>, vector<256x128xf32> -> vector<256x128xf32>
    %c0_25 = arith.constant 0 : index
    %c0_26 = arith.constant 0 : index
    %46 = vector.load %arg10[%c0_25, %c0_26] : memref<1x128xf32, #tpu.memory_space<vmem>>, vector<1x128xf32>
    %47 = vector.broadcast %46 : vector<1x128xf32> to vector<256x128xf32>
    %48 = arith.addf %45, %47 : vector<256x128xf32>
    %c0_27 = arith.constant 0 : index
    %c0_28 = arith.constant 0 : index
    %49 = vector.load %arg11[%c0_27, %c0_28] : memref<256x128xf32, #tpu.memory_space<vmem>>, vector<256x128xf32>
    tpu.vector_store %arg11[%c0_27, %c0_28], %48 {strides = array<i32>} : memref<256x128xf32, #tpu.memory_space<vmem>>, vector<256x128xf32>,
    return
  }
  func.func @transform_0(%arg0: i32) -> (i32, i32) {
    %c0_i32 = arith.constant 0 : i32
    %c0_i32_0 = arith.constant 0 : i32
    return %arg0, %c0_i32 : i32, i32
  }
  func.func @transform_1(%arg0: i32) -> (i32, i32) {
    %c0_i32 = arith.constant 0 : i32
    %c0_i32_0 = arith.constant 0 : i32
    %c0_i32_1 = arith.constant 0 : i32
    return %c0_i32, %c0_i32_0 : i32, i32
  }
  func.func @transform_2(%arg0: i32) -> (i32, i32) {
    %c0_i32 = arith.constant 0 : i32
    %c0_i32_0 = arith.constant 0 : i32
    %c0_i32_1 = arith.constant 0 : i32
    return %c0_i32, %c0_i32_0 : i32, i32
  }
  func.func @transform_3(%arg0: i32) -> (i32, i32) {
    %c0_i32 = arith.constant 0 : i32
    %c0_i32_0 = arith.constant 0 : i32
    %c0_i32_1 = arith.constant 0 : i32
    return %c0_i32, %c0_i32_0 : i32, i32
  }
  func.func @transform_4(%arg0: i32) -> (i32, i32) {
    %c0_i32 = arith.constant 0 : i32
    %c0_i32_0 = arith.constant 0 : i32
    %c0_i32_1 = arith.constant 0 : i32
    return %c0_i32, %c0_i32_0 : i32, i32
  }
  func.func @transform_5(%arg0: i32) -> (i32, i32) {
    %c0_i32 = arith.constant 0 : i32
    %c0_i32_0 = arith.constant 0 : i32
    %c0_i32_1 = arith.constant 0 : i32
    return %c0_i32, %c0_i32_0 : i32, i32
  }
  func.func @transform_6(%arg0: i32) -> (i32, i32) {
    %c0_i32 = arith.constant 0 : i32
    %c0_i32_0 = arith.constant 0 : i32
    %c0_i32_1 = arith.constant 0 : i32
    return %c0_i32, %c0_i32_0 : i32, i32
  }
  func.func @transform_7(%arg0: i32) -> (i32, i32) {
    %c0_i32 = arith.constant 0 : i32
    %c0_i32_0 = arith.constant 0 : i32
    %c0_i32_1 = arith.constant 0 : i32
    return %c0_i32, %c0_i32_0 : i32, i32
  }
  func.func @transform_8(%arg0: i32) -> (i32, i32) {
    %c0_i32 = arith.constant 0 : i32
    %c0_i32_0 = arith.constant 0 : i32
    %c0_i32_1 = arith.constant 0 : i32
    return %c0_i32, %c0_i32_0 : i32, i32
  }
  func.func @transform_9(%arg0: i32) -> (i32, i32) {
    %c0_i32 = arith.constant 0 : i32
    %c0_i32_0 = arith.constant 0 : i32
    %c0_i32_1 = arith.constant 0 : i32
    return %c0_i32, %c0_i32_0 : i32, i32
  }
  func.func @transform_10(%arg0: i32) -> (i32, i32) {
    %c0_i32 = arith.constant 0 : i32
    %c0_i32_0 = arith.constant 0 : i32
    return %arg0, %c0_i32 : i32, i32
  }
}

</mosaic_0001>

<bundles_post_ra>
// kernel: _generator_forward_impl.1
= control target key start
LH: loop header
LB: loop body
LE: loop exit
PB: predicated region body
PF: predicated region fallthrough
CT: control target
= control target key end

     0   :  { %15 = vsyncpa [#allocation3], 0  ;;  %s11088_s0 = inlined_call_operand.vmem [shape: s32[256,1], index: 0, kind: input, shape index: {}]   ;;  %s11089_s1 = inlined_call_operand.vmem [shape: f32[3,128], index: 1, kind: input, shape index: {}]   ;;  %s11090_s2 = inlined_call_operand.hbm [shape: f32[128,256], index: 2, kind: input, shape index: {}]   ;;  %s11091_s3 = inlined_call_operand.hbm [shape: f32[1,256], index: 3, kind: input, shape index: {}]   ;;  %s11092_s4 = inlined_call_operand.hbm [shape: f32[256,512], index: 4, kind: input, shape index: {}]   ;;  %s11093_s5 = inlined_call_operand.hbm [shape: f32[1,512], index: 5, kind: input, shape index: {}]   ;;  %s11094_s6 = inlined_call_operand.hbm [shape: f32[512,1024], index: 6, kind: input, shape index: {}]   ;;  %s11095_s7 = inlined_call_operand.hbm [shape: f32[1,1024], index: 7, kind: input, shape index: {}]   ;;  %s11096_s8 = inlined_call_operand.hbm [shape: f32[1024,128], index: 8, kind: input, shape index: {}]   ;;  %s11097_s9 = inlined_call_operand.hbm [shape: f32[1,128], index: 9, kind: input, shape index: {}]   ;;  %s11098_s10 = inlined_call_operand.hbm [shape: f32[256,128], index: 10, kind: output, shape index: {}]  }
   0x1   :  { %16 = vsyncpa [#allocation6], 0 }
   0x2   :  { %17 = vsyncpa [#allocation9], 0 }
   0x3   :  { %18 = vsyncpa [#allocation12], 0 }
   0x4   :  { %19 = vsyncpa [#allocation15], 0 }
   0x5   :  { %20 = vsyncpa [#allocation4], 0  ;;  %s8041_s13 = smov [#allocation5]   ;;  %s8042_s15 = smov [#allocation8]  }
   0x6   :  { %s43_s14 = sshll.u32 %s8041_s13, 4  ;;  %s65_s16 = sshll.u32 %s8042_s15, 4  ;;  %s44_s14 = int_to_ptr.vmem [resolvable:$true] %s43_s14  ;;  %s66_s16 = int_to_ptr.vmem [resolvable:$true] %s65_s16 }
   0x7   :  { %s7831_s19 = scalar_lea.hbm %s11091_s3, 32 }
   0x8   :  { %p7832_p0 = scmp.ne.s32.totalorder %s11091_s3, %s7831_s19  ;;  %p7835_p1 = scmp.lt.u32.totalorder %s7831_s19, %s11091_s3 }
   0xa   :  { %p7837_p2 = pnand %p7835_p1, %p7832_p0 }
   0xc   :  { %7840 = shalt.err (!%p7837_p2)
}
   0xd   :  { %s7841_s24 = scalar_lea.vmem %s44_s14, 32  ;;  %p7846_p4 = scmp.lt.s32.totalorder %s44_s14, %s44_s14 }
   0xe   :  { %p7842_p3 = scmp.ne.s32.totalorder %s44_s14, %s7841_s24  ;;  %p7847_p5 = scmp.lt.s32.totalorder %s7841_s24, %s7841_s24 }
  0x10   :  { %p7848_p6 = por %p7847_p5, %p7846_p4 }
  0x12   :  { %p7849_p7 = pnand %p7848_p6, %p7842_p3 }
  0x14   :  { %7852 = shalt.err (!%p7849_p7)
}
  0x15   :  { %46 = dma.hbm_to_vmem [thread:$0]  %s11091_s3, 32, %s44_s14, [#allocation6]  }
  0x16   :  { %s7853_s29 = scalar_lea.hbm %s11093_s5, 64 }
  0x17   :  { %p7854_p8 = scmp.ne.s32.totalorder %s11093_s5, %s7853_s29  ;;  %p7857_p9 = scmp.lt.u32.totalorder %s7853_s29, %s11093_s5 }
  0x19   :  { %p7859_p10 = pnand %p7857_p9, %p7854_p8 }
  0x1b   :  { %7862 = shalt.err (!%p7859_p10)
}
  0x1c   :  { %s7863_s15 = scalar_lea.vmem %s66_s16, 64  ;;  %p7868_p12 = scmp.lt.s32.totalorder %s66_s16, %s66_s16 }
  0x1d   :  { %p7864_p11 = scmp.ne.s32.totalorder %s66_s16, %s7863_s15  ;;  %p7869_p13 = scmp.lt.s32.totalorder %s7863_s15, %s7863_s15 }
  0x1f   :  { %p7870_p0 = por %p7869_p13, %p7868_p12 }
  0x21   :  { %p7871_p1 = pnand %p7870_p0, %p7864_p11 }
  0x23   :  { %7874 = shalt.err (!%p7871_p1)
}
  0x24   :  { %68 = dma.hbm_to_vmem [thread:$0]  %s11093_s5, 64, %s66_s16, [#allocation9]  }
  0x25   :  { %s8043_s17 = smov [#allocation11]   ;;  %s8044_s19 = smov [#allocation2]  }
  0x26   :  { %s87_s18 = sshll.u32 %s8043_s17, 4  ;;  %s30_s20 = sshll.u32 %s8044_s19, 4  ;;  %s88_s18 = int_to_ptr.vmem [resolvable:$true] %s87_s18  ;;  %s8140_s20 = int_to_ptr.vmem [resolvable:$true] %s30_s20 }
  0x27   :  { %s7875_s23 = scalar_lea.hbm %s11095_s7, 128 }
  0x28   :  { %p7876_p2 = scmp.ne.s32.totalorder %s11095_s7, %s7875_s23  ;;  %p7879_p3 = scmp.lt.u32.totalorder %s7875_s23, %s11095_s7 }
  0x2a   :  { %p7881_p4 = pnand %p7879_p3, %p7876_p2 }
  0x2c   :  { %7884 = shalt.err (!%p7881_p4)
}
  0x2d   :  { %s7885_s5 = scalar_lea.vmem %s88_s18, 128  ;;  %p7890_p6 = scmp.lt.s32.totalorder %s88_s18, %s88_s18 }
  0x2e   :  { %p7886_p5 = scmp.ne.s32.totalorder %s88_s18, %s7885_s5  ;;  %p7891_p7 = scmp.lt.s32.totalorder %s7885_s5, %s7885_s5 }
  0x30   :  { %p7892_p8 = por %p7891_p7, %p7890_p6 }
  0x32   :  { %p7893_p9 = pnand %p7892_p8, %p7886_p5 }
  0x34   :  { %7896 = shalt.err (!%p7893_p9)
}
  0x35   :  { %90 = dma.hbm_to_vmem [thread:$0]  %s11095_s7, 128, %s88_s18, [#allocation12]  }
  0x36   :  { %s7897_s11 = scalar_lea.hbm %s11090_s2, 4096 }
  0x37   :  { %p7898_p10 = scmp.ne.s32.totalorder %s11090_s2, %s7897_s11  ;;  %p7901_p11 = scmp.lt.u32.totalorder %s7897_s11, %s11090_s2 }
  0x39   :  { %p7903_p12 = pnand %p7901_p11, %p7898_p10 }
  0x3b   :  { %7906 = shalt.err (!%p7903_p12)
}
  0x3c   :  { %s7907_s14 = scalar_lea.vmem %s8140_s20, 4096  ;;  %p7912_p0 = scmp.lt.s32.totalorder %s8140_s20, %s8140_s20 }
  0x3d   :  { %p7908_p13 = scmp.ne.s32.totalorder %s8140_s20, %s7907_s14  ;;  %p7913_p1 = scmp.lt.s32.totalorder %s7907_s14, %s7907_s14 }
  0x3f   :  { %p7914_p2 = por %p7913_p1, %p7912_p0 }
  0x41   :  { %p7915_p3 = pnand %p7914_p2, %p7908_p13 }
  0x43   :  { %7918 = shalt.err (!%p7915_p3)
}
  0x44   :  { %s8045_s7 = smov 256   ;;  %s8046_s17 = smov 16  }
  0x45   :  { %36 = dma.hbm_to_vmem [thread:$0]  %s11090_s2, 4096, %s8140_s20, [#allocation3], %s8045_s7, %s8045_s7, %s8046_s17  }
  0x46   :  { %s8047_s21 = smov [#allocation7]   ;;  %s7919_s25 = scalar_lea.hbm %s11092_s4, 16384 }
  0x47   :  { %s52_s22 = sshll.u32 %s8047_s21, 4  ;;  %p7920_p4 = scmp.ne.s32.totalorder %s11092_s4, %s7919_s25  ;;  %s53_s22 = int_to_ptr.vmem [resolvable:$true] %s52_s22 }
  0x48   :  { %p7923_p5 = scmp.lt.u32.totalorder %s7919_s25, %s11092_s4 }
  0x4a   :  { %p7925_p6 = pnand %p7923_p5, %p7920_p4 }
  0x4c   :  { %7928 = shalt.err (!%p7925_p6)
}
  0x4d   :  { %s7929_s28 = scalar_lea.vmem %s53_s22, 16384  ;;  %p7934_p8 = scmp.lt.s32.totalorder %s53_s22, %s53_s22 }
  0x4e   :  { %p7930_p7 = scmp.ne.s32.totalorder %s53_s22, %s7929_s28  ;;  %p7935_p9 = scmp.lt.s32.totalorder %s7929_s28, %s7929_s28 }
  0x50   :  { %p7936_p10 = por %p7935_p9, %p7934_p8 }
  0x52   :  { %p7937_p11 = pnand %p7936_p10, %p7930_p7 }
  0x54   :  { %7940 = shalt.err (!%p7937_p11)
}
  0x55   :  { %s8048_s2 = smov 512   ;;  %s8049_s20 = smov 32  }
  0x56   :  { %58 = dma.hbm_to_vmem [thread:$0]  %s11092_s4, 16384, %s53_s22, [#allocation6], %s8048_s2, %s8048_s2, %s8049_s20  }
  0x57   :  { %s8050_s11 = smov [#allocation10]   ;;  %s7941_s3 = scalar_lea.hbm %s11094_s6, 65536 }
  0x58   :  { %s74_s12 = sshll.u32 %s8050_s11, 4  ;;  %p7942_p12 = scmp.ne.s32.totalorder %s11094_s6, %s7941_s3  ;;  %s75_s12 = int_to_ptr.vmem [resolvable:$true] %s74_s12 }
  0x59   :  { %p7945_p13 = scmp.lt.u32.totalorder %s7941_s3, %s11094_s6 }
  0x5b   :  { %p7947_p0 = pnand %p7945_p13, %p7942_p12 }
  0x5d   :  { %7950 = shalt.err (!%p7947_p0)
}
  0x5e   :  { %s7951_s19 = scalar_lea.vmem %s75_s12, 65536  ;;  %p7956_p2 = scmp.lt.s32.totalorder %s75_s12, %s75_s12 }
  0x5f   :  { %p7952_p1 = scmp.ne.s32.totalorder %s75_s12, %s7951_s19  ;;  %p7957_p3 = scmp.lt.s32.totalorder %s7951_s19, %s7951_s19 }
  0x61   :  { %p7958_p4 = por %p7957_p3, %p7956_p2 }
  0x63   :  { %p7959_p5 = pnand %p7958_p4, %p7952_p1 }
  0x65   :  { %7962 = shalt.err (!%p7959_p5)
}
  0x66   :  { %s8051_s4 = smov 1024   ;;  %s8052_s21 = smov 64  }
  0x67   :  { %80 = dma.hbm_to_vmem [thread:$0]  %s11094_s6, 65536, %s75_s12, [#allocation9], %s8051_s4, %s8051_s4, %s8052_s21  }
  0x68   :  { %s8053_s24 = smov [#allocation13]   ;;  %s7963_s5 = scalar_lea.hbm %s11096_s8, 16384 }
  0x69   :  { %s96_s25 = sshll.u32 %s8053_s24, 4  ;;  %p7964_p6 = scmp.ne.s32.totalorder %s11096_s8, %s7963_s5  ;;  %s97_s25 = int_to_ptr.vmem [resolvable:$true] %s96_s25 }
  0x6a   :  { %p7967_p7 = scmp.lt.u32.totalorder %s7963_s5, %s11096_s8 }
  0x6c   :  { %p7969_p8 = pnand %p7967_p7, %p7964_p6 }
  0x6e   :  { %7972 = shalt.err (!%p7969_p8)
}
  0x6f   :  { %s7973_s29 = scalar_lea.vmem %s97_s25, 16384  ;;  %p7978_p10 = scmp.lt.s32.totalorder %s97_s25, %s97_s25 }
  0x70   :  { %p7974_p9 = scmp.ne.s32.totalorder %s97_s25, %s7973_s29  ;;  %p7979_p11 = scmp.lt.s32.totalorder %s7973_s29, %s7973_s29 }
  0x72   :  { %p7980_p12 = por %p7979_p11, %p7978_p10 }
  0x74   :  { %p7981_p13 = pnand %p7980_p12, %p7974_p9 }
  0x76   :  { %7984 = shalt.err (!%p7981_p13)
}
  0x77   :  { %s8054_s6 = smov 128   ;;  %s8055_s30 = smov 8  }
  0x78   :  { %102 = dma.hbm_to_vmem [thread:$0]  %s11096_s8, 16384, %s97_s25, [#allocation12], %s8054_s6, %s8054_s6, %s8055_s30  }
  0x79   :  { %s8056_s13 = smov [#allocation14]   ;;  %s7985_s7 = scalar_lea.hbm %s11097_s9, 16 }
  0x7a   :  { %s109_s15 = sshll.u32 %s8056_s13, 4  ;;  %p7986_p0 = scmp.ne.s32.totalorder %s11097_s9, %s7985_s7  ;;  %s110_s15 = int_to_ptr.vmem [resolvable:$true] %s109_s15 }
  0x7b   :  { %p7989_p1 = scmp.lt.u32.totalorder %s7985_s7, %s11097_s9 }
  0x7d   :  { %p7991_p2 = pnand %p7989_p1, %p7986_p0 }
  0x7f   :  { %7994 = shalt.err (!%p7991_p2)
}
  0x80   :  { %s7995_s21 = scalar_lea.vmem %s110_s15, 16  ;;  %s7999_s8 = scalar_lea.vmem %s110_s15, 32 }
  0x81   :  { %p7996_p3 = scmp.ne.s32.totalorder %s110_s15, %s7995_s21  ;;  %p8000_p4 = scmp.lt.s32.totalorder %s110_s15, %s110_s15 }
  0x82   :  { %p8001_p5 = scmp.lt.s32.totalorder %s7999_s8, %s7995_s21 }
  0x84   :  { %p8002_p6 = por %p8001_p5, %p8000_p4 }
  0x86   :  { %p8003_p7 = pnand %p8002_p6, %p7996_p3 }
  0x88   :  { %8006 = shalt.err (!%p8003_p7)
}
  0x89   :  { %112 = dma.hbm_to_vmem [thread:$0]  %s11097_s9, 16, %s110_s15, [#allocation15]  }
  0x8a   :  { %8029 = dma.done.wait [#allocation3], 4096  }
  0x8b   :  { %8030 = vsyncadd [#allocation3], 4294963200 }
  0x8c   :  { %8031 = dma.done.wait [#allocation6], 16416  }
  0x8d   :  { %8032 = vsyncadd [#allocation6], 4294950880 }
  0x8e   :  { %8033 = dma.done.wait [#allocation9], 65600  }
  0x8f   :  { %8034 = vsyncadd [#allocation9], 4294901696 }
  0x90   :  { %8035 = dma.done.wait [#allocation12], 16512  }
  0x91   :  { %8036 = vsyncadd [#allocation12], 4294950784 }
  0x92   :  { %8037 = dma.done.wait [#allocation15], 16  }
  0x93   :  { %8038 = vsyncadd [#allocation15], 4294967280  ;;  %v8057_v0 = vmov 0   ;;  %v138_v1 = vld [vmem:[%s11088_s0 + $0x8] sm:$0xff]  ;;  %v137_v2 = vld [vmem:[%s11088_s0] sm:$0xff]  ;;  %v8058_v59 = vmov 0.0  }
  0x94   :  { %7828 = vset.pattern.permute.xlu1 %v8057_v0  ;;  %7827 = vset.pattern.permute.xlu0 %v8057_v0  ;;  %vm205_vm0 = vcmp.eq.s32.totalorder %v138_v1, 1  ;;  %vm204_vm1 = vcmp.eq.s32.totalorder %v137_v2, 1  ;;  %vm173_vm2 = vcmp.eq.s32.totalorder %v138_v1, 0  ;;  %vm172_vm3 = vcmp.eq.s32.totalorder %v137_v2, 0  ;;  %v139_v5 = vld [vmem:[%s11088_s0 + $0x10] sm:$0xff]  ;;  %v140_v8 = vld [vmem:[%s11088_s0 + $0x18] sm:$0xff] }
  0x95   :  { %v237_v3 = vsel %vm205_vm0, 1, %v8057_v0  ;;  %v236_v4 = vsel %vm204_vm1, 1, %v8057_v0  ;;  %v437_v6 = vsel %vm173_vm2, 1, %v8057_v0  ;;  %v436_v7 = vsel %vm172_vm3, 1, %v8057_v0  ;;  %v141_v11 = vld [vmem:[%s11088_s0 + $0x20] sm:$0xff]  ;;  %v142_v14 = vld [vmem:[%s11088_s0 + $0x28] sm:$0xff]  ;;  %740 = vmatprep.mubr.f32.mxu0 %v8058_v59 }
  0x96   :  { %272 = vperm.xlu1 %7828, %v237_v3   ;;  %269 = vperm.xlu0 %7827, %v236_v4   ;;  %vm174_vm4 = vcmp.eq.s32.totalorder %v139_v5, 0  ;;  %vm206_vm5 = vcmp.eq.s32.totalorder %v139_v5, 1  ;;  %vm175_vm6 = vcmp.eq.s32.totalorder %v140_v8, 0  ;;  %vm207_vm7 = vcmp.eq.s32.totalorder %v140_v8, 1  ;;  %v143_v17 = vld [vmem:[%s11088_s0 + $0x30] sm:$0xff]  ;;  %v144_v20 = vld [vmem:[%s11088_s0 + $0x38] sm:$0xff] }
  0x97   :  { %v438_v9 = vsel %vm174_vm4, 1, %v8057_v0  ;;  %v238_v10 = vsel %vm206_vm5, 1, %v8057_v0  ;;  %v439_v12 = vsel %vm175_vm6, 1, %v8057_v0  ;;  %v239_v13 = vsel %vm207_vm7, 1, %v8057_v0  ;;  %v633_v21 = vld [vmem:[#allocation2 + $0x8] sm:$0xff]  ;;  %v635_v24 = vld [vmem:[#allocation2 + $0x18] sm:$0xff] }
  0x98   :  { %vm176_vm8 = vcmp.eq.s32.totalorder %v141_v11, 0  ;;  %vm208_vm9 = vcmp.eq.s32.totalorder %v141_v11, 1  ;;  %vm177_vm10 = vcmp.eq.s32.totalorder %v142_v14, 0  ;;  %vm209_vm11 = vcmp.eq.s32.totalorder %v142_v14, 1  ;;  %v632_v25 = vld [vmem:[#allocation2] sm:$0xff]  ;;  %v634_v26 = vld [vmem:[#allocation2 + $0x10] sm:$0xff] }
  0x99   :  { %v440_v15 = vsel %vm176_vm8, 1, %v8057_v0  ;;  %v240_v16 = vsel %vm208_vm9, 1, %v8057_v0  ;;  %v441_v18 = vsel %vm177_vm10, 1, %v8057_v0  ;;  %v241_v19 = vsel %vm209_vm11, 1, %v8057_v0  ;;  %v637_v27 = vld [vmem:[#allocation2 + $0x28] sm:$0xff]  ;;  %v639_v28 = vld [vmem:[#allocation2 + $0x38] sm:$0xff] }
  0x9a   :  { %472 = vperm.xlu1 %7828, %v437_v6   ;;  %469 = vperm.xlu0 %7827, %v436_v7   ;;  %vm178_vm12 = vcmp.eq.s32.totalorder %v143_v17, 0  ;;  %vm210_vm13 = vcmp.eq.s32.totalorder %v143_v17, 1  ;;  %vm179_vm14 = vcmp.eq.s32.totalorder %v144_v20, 0  ;;  %vm211_vm15 = vcmp.eq.s32.totalorder %v144_v20, 1  ;;  %v145_v29 = vld [vmem:[%s11088_s0 + $0x40] sm:$0xff]  ;;  %v638_v33 = vld [vmem:[#allocation2 + $0x30] sm:$0xff] }
  0x9b   :  { %v442_v22 = vsel %vm178_vm12, 1, %v8057_v0  ;;  %v242_v23 = vsel %vm210_vm13, 1, %v8057_v0  ;;  %v6195_v30 = vpack.c.bf16 %v635_v24, %v633_v21  ;;  %v6197_v31 = vpack.c.bf16 %v634_v26, %v632_v25  ;;  %v636_v32 = vld [vmem:[#allocation2 + $0x20] sm:$0xff]  ;;  %v641_v37 = vld [vmem:[#allocation2 + $0x48] sm:$0xff]  ;;  %v643_v38 = vld [vmem:[#allocation2 + $0x58] sm:$0xff] }
  0x9c   :  { %v443_v34 = vsel %vm179_vm14, 1, %v8057_v0  ;;  %v243_v35 = vsel %vm211_vm15, 1, %v8057_v0  ;;  %v6199_v36 = vpack.c.bf16 %v639_v28, %v637_v27  ;;  %vm180_vm0 = vcmp.eq.s32.totalorder %v145_v29, 0  ;;  %v146_v39 = vld [vmem:[%s11088_s0 + $0x48] sm:$0xff]  ;;  %v640_v41 = vld [vmem:[#allocation2 + $0x40] sm:$0xff]  ;;  %v642_v42 = vld [vmem:[#allocation2 + $0x50] sm:$0xff] }
  0x9d   :  { %vm212_vm1 = vcmp.eq.s32.totalorder %v145_v29, 1  ;;  %6196 = vmatprep.subr.bf16.mxu0 %v6195_v30  ;;  %v6201_v40 = vpack.c.bf16 %v638_v33, %v636_v32  ;;  %v444_v43 = vsel %vm180_vm0, 1, %v8057_v0  ;;  %v6203_v45 = vpack.c.bf16 %v643_v38, %v641_v37  ;;  %v645_v46 = vld [vmem:[#allocation2 + $0x68] sm:$0xff]  ;;  %v647_v47 = vld [vmem:[#allocation2 + $0x78] sm:$0xff]  ;;  %v147_v48 = vld [vmem:[%s11088_s0 + $0x50] sm:$0xff] }
  0x9e   :  { %475 = vperm.xlu1 %7828, %v438_v9   ;;  %275 = vperm.xlu0 %7827, %v238_v10   ;;  %v244_v44 = vsel %vm212_vm1, 1, %v8057_v0  ;;  %vm181_vm2 = vcmp.eq.s32.totalorder %v146_v39, 0  ;;  %vm213_vm3 = vcmp.eq.s32.totalorder %v146_v39, 1  ;;  %v6205_v49 = vpack.c.bf16 %v642_v42, %v640_v41  ;;  %v644_v50 = vld [vmem:[#allocation2 + $0x60] sm:$0xff]  ;;  %v646_v51 = vld [vmem:[#allocation2 + $0x70] sm:$0xff]  ;;  %v649_v55 = vld [vmem:[#allocation2 + $0x88] sm:$0xff] }
  0x9f   :  { %6198 = vmatpush1.bf16.msra.mxu0 %v6197_v31  ;;  %v445_v52 = vsel %vm181_vm2, 1, %v8057_v0  ;;  %v245_v53 = vsel %vm213_vm3, 1, %v8057_v0  ;;  %v6207_v54 = vpack.c.bf16 %v647_v47, %v645_v46  ;;  %vm182_vm4 = vcmp.eq.s32.totalorder %v147_v48, 0  ;;  %v651_v56 = vld [vmem:[#allocation2 + $0x98] sm:$0xff]  ;;  %v648_v60 = vld [vmem:[#allocation2 + $0x80] sm:$0xff]  ;;  %v650_v61 = vld [vmem:[#allocation2 + $0x90] sm:$0xff] }
  0xa0   :  { %6200 = vmatprep.subr.bf16.mxu0 %v6199_v36  ;;  %vm214_vm5 = vcmp.eq.s32.totalorder %v147_v48, 1  ;;  %v148_v57 = vld [vmem:[%s11088_s0 + $0x58] sm:$0xff]  ;;  %v6209_v58 = vpack.c.bf16 %v646_v51, %v644_v50  ;;  %v446_v62 = vsel %vm182_vm4, 1, %v8057_v0  ;;  %v6211_v1 = vpack.c.bf16 %v651_v56, %v649_v55  ;;  %v653_v2 = vld [vmem:[#allocation2 + $0xa8] sm:$0xff]  ;;  %v149_v4 = vld [vmem:[%s11088_s0 + $0x60] sm:$0xff] }
  0xa1   :  { %v246_v63 = vsel %vm214_vm5, 1, %v8057_v0  ;;  %vm183_vm6 = vcmp.eq.s32.totalorder %v148_v57, 0  ;;  %vm215_vm7 = vcmp.eq.s32.totalorder %v148_v57, 1  ;;  %v655_v3 = vld [vmem:[#allocation2 + $0xb8] sm:$0xff]  ;;  %v6213_v5 = vpack.c.bf16 %v650_v61, %v648_v60  ;;  %v652_v6 = vld [vmem:[#allocation2 + $0xa0] sm:$0xff]  ;;  %v654_v7 = vld [vmem:[#allocation2 + $0xb0] sm:$0xff] }
  0xa2   :  { %478 = vperm.xlu1 %7828, %v439_v12   ;;  %278 = vperm.xlu0 %7827, %v239_v13   ;;  %v447_v8 = vsel %vm183_vm6, 1, %v8057_v0  ;;  %v247_v9 = vsel %vm215_vm7, 1, %v8057_v0  ;;  %v6215_v10 = vpack.c.bf16 %v655_v3, %v653_v2  ;;  %vm184_vm8 = vcmp.eq.s32.totalorder %v149_v4, 0  ;;  %v657_v11 = vld [vmem:[#allocation2 + $0xc8] sm:$0xff]  ;;  %v659_v12 = vld [vmem:[#allocation2 + $0xd8] sm:$0xff]  ;;  %v660_v24 = vld [vmem:[#allocation2 + $0xe0] sm:$0xff] }
  0xa3   :  { %6202 = vmatpush1.bf16.msra.mxu0 %v6201_v40  ;;  %vm216_vm9 = vcmp.eq.s32.totalorder %v149_v4, 1  ;;  %v150_v13 = vld [vmem:[%s11088_s0 + $0x68] sm:$0xff]  ;;  %v6217_v14 = vpack.c.bf16 %v654_v7, %v652_v6  ;;  %v448_v17 = vsel %vm184_vm8, 1, %v8057_v0  ;;  %v663_v21 = vld [vmem:[#allocation2 + $0xf8] sm:$0xff]  ;;  %v662_v25 = vld [vmem:[#allocation2 + $0xf0] sm:$0xff] }
  0xa4   :  { %6204 = vmatprep.subr.bf16.mxu0 %v6203_v45  ;;  %vm185_vm10 = vcmp.eq.s32.totalorder %v150_v13, 0  ;;  %vm217_vm11 = vcmp.eq.s32.totalorder %v150_v13, 1  ;;  %v661_v20 = vld [vmem:[#allocation2 + $0xe8] sm:$0xff]  ;;  %v152_v29 = vld [vmem:[%s11088_s0 + $0x78] sm:$0xff]  ;;  %v6225_v30 = vpack.c.bf16 %v662_v25, %v660_v24  ;;  %v153_v33 = vld [vmem:[%s11088_s0 + $0x80] sm:$0xff] }
  0xa5   :  { %v449_v26 = vsel %vm185_vm10, 1, %v8057_v0  ;;  %v249_v27 = vsel %vm217_vm11, 1, %v8057_v0  ;;  %v6223_v28 = vpack.c.bf16 %v663_v21, %v661_v20  ;;  %vm187_vm14 = vcmp.eq.s32.totalorder %v152_v29, 0  ;;  %v154_v36 = vld [vmem:[%s11088_s0 + $0x88] sm:$0xff]  ;;  %v155_v39 = vld [vmem:[%s11088_s0 + $0x90] sm:$0xff]  ;;  %v156_v42 = vld [vmem:[%s11088_s0 + $0x98] sm:$0xff] }
  0xa6   :  { %481 = vperm.xlu1 %7828, %v440_v15   ;;  %281 = vperm.xlu0 %7827, %v240_v16   ;;  %v656_v15 = vld [vmem:[#allocation2 + $0xc0] sm:$0xff]  ;;  %v658_v16 = vld [vmem:[#allocation2 + $0xd0] sm:$0xff]  ;;  %vm219_vm15 = vcmp.eq.s32.totalorder %v152_v29, 1  ;;  %vm188_vm0 = vcmp.eq.s32.totalorder %v153_v33, 0  ;;  %vm220_vm1 = vcmp.eq.s32.totalorder %v153_v33, 1  ;;  %vm189_vm2 = vcmp.eq.s32.totalorder %v154_v36, 0 }
  0xa7   :  { %6206 = vmatpush1.bf16.msra.mxu0 %v6205_v49  ;;  %v452_v37 = vsel %vm188_vm0, 1, %v8057_v0  ;;  %v252_v38 = vsel %vm220_vm1, 1, %v8057_v0  ;;  %vm221_vm3 = vcmp.eq.s32.totalorder %v154_v36, 1  ;;  %v453_v40 = vsel %vm189_vm2, 1, %v8057_v0  ;;  %v157_v45 = vld [vmem:[%s11088_s0 + $0xa0] sm:$0xff]  ;;  %v158_v48 = vld [vmem:[%s11088_s0 + $0xa8] sm:$0xff] }
  0xa8   :  { %6208 = vmatprep.subr.bf16.mxu0 %v6207_v54  ;;  %v253_v41 = vsel %vm221_vm3, 1, %v8057_v0  ;;  %vm190_vm4 = vcmp.eq.s32.totalorder %v155_v39, 0  ;;  %vm222_vm5 = vcmp.eq.s32.totalorder %v155_v39, 1  ;;  %vm191_vm6 = vcmp.eq.s32.totalorder %v156_v42, 0  ;;  %v159_v51 = vld [vmem:[%s11088_s0 + $0xb0] sm:$0xff]  ;;  %v160_v54 = vld [vmem:[%s11088_s0 + $0xb8] sm:$0xff] }
  0xa9   :  { %vm223_vm7 = vcmp.eq.s32.totalorder %v156_v42, 1  ;;  %v455_v46 = vsel %vm191_vm6, 1, %v8057_v0  ;;  %vm192_vm8 = vcmp.eq.s32.totalorder %v157_v45, 0  ;;  %vm193_vm10 = vcmp.eq.s32.totalorder %v158_v48, 0  ;;  %v161_v57 = vld [vmem:[%s11088_s0 + $0xc0] sm:$0xff]  ;;  %v162_v61 = vld [vmem:[%s11088_s0 + $0xc8] sm:$0xff] }
  0xaa   :  { %484 = vperm.xlu1 %7828, %v441_v18   ;;  %284 = vperm.xlu0 %7827, %v241_v19   ;;  %v248_v18 = vsel %vm216_vm9, 1, %v8057_v0  ;;  %v6219_v19 = vpack.c.bf16 %v659_v12, %v657_v11  ;;  %v255_v47 = vsel %vm223_vm7, 1, %v8057_v0  ;;  %vm224_vm9 = vcmp.eq.s32.totalorder %v157_v45, 1  ;;  %v1062_v4 = vld [vmem:[#allocation7 + $0x8] sm:$0xff]  ;;  %v164_v7 = vld [vmem:[%s11088_s0 + $0xd8] sm:$0xff] }
  0xab   :  { %6210 = vmatpush1.bf16.msra.mxu0 %v6209_v58  ;;  %v456_v49 = vsel %vm192_vm8, 1, %v8057_v0  ;;  %v256_v50 = vsel %vm224_vm9, 1, %v8057_v0  ;;  %vm225_vm11 = vcmp.eq.s32.totalorder %v158_v48, 1  ;;  %vm196_vm0 = vcmp.eq.s32.totalorder %v161_v57, 0  ;;  %v166_v13 = vld [vmem:[%s11088_s0 + $0xe8] sm:$0xff] }
  0xac   :  { %6212 = vmatprep.subr.bf16.mxu0 %v6211_v1  ;;  %vm228_vm1 = vcmp.eq.s32.totalorder %v161_v57, 1  ;;  %vm197_vm2 = vcmp.eq.s32.totalorder %v162_v61, 0  ;;  %vm229_vm3 = vcmp.eq.s32.totalorder %v162_v61, 1  ;;  %v163_v1 = vld [vmem:[%s11088_s0 + $0xd0] sm:$0xff]  ;;  %vm199_vm6 = vcmp.eq.s32.totalorder %v164_v7, 0  ;;  %v1081_v48 = vld [vmem:[#allocation7 + $0xa0] sm:$0xff] }
  0xad   :  { %v461_v2 = vsel %vm197_vm2, 1, %v8057_v0  ;;  %v261_v3 = vsel %vm229_vm3, 1, %v8057_v0  ;;  %vm231_vm7 = vcmp.eq.s32.totalorder %v164_v7, 1  ;;  %v463_v11 = vsel %vm199_vm6, 1, %v8057_v0  ;;  %v8393_v29 = vld [vmem:[%s11089_s1 + $0x2] ss:$0 sm:$0xff] }
  0xae   :  { %487 = vperm.xlu1 %7828, %v442_v22   ;;  %287 = vperm.xlu0 %7827, %v242_v23   ;;  %v151_v22 = vld [vmem:[%s11088_s0 + $0x70] sm:$0xff]  ;;  %v6221_v23 = vpack.c.bf16 %v658_v16, %v656_v15  ;;  %v263_v12 = vsel %vm231_vm7, 1, %v8057_v0  ;;  %v1085_v57 = vld [vmem:[#allocation7 + $0xc0] sm:$0xff] }
  0xaf   :  { %6214 = vmatpush1.bf16.msra.mxu0 %v6213_v5  ;;  %vm186_vm12 = vcmp.eq.s32.totalorder %v151_v22, 0  ;;  %vm218_vm13 = vcmp.eq.s32.totalorder %v151_v22, 1  ;;  %v1066_v5 = vld [vmem:[#allocation7 + $0x28] sm:$0xff] }
  0xb0   :  { %6216 = vmatprep.subr.bf16.mxu0 %v6215_v10  ;;  %v450_v31 = vsel %vm186_vm12, 1, %v8057_v0  ;;  %v250_v32 = vsel %vm218_vm13, 1, %v8057_v0  ;;  %vm194_vm12 = vcmp.eq.s32.totalorder %v159_v51, 0  ;;  %vm226_vm13 = vcmp.eq.s32.totalorder %v159_v51, 1  ;;  %v165_v10 = vld [vmem:[%s11088_s0 + $0xe0] sm:$0xff]  ;;  %v167_v16 = vld [vmem:[%s11088_s0 + $0xf0] sm:$0xff] }
  0xb1   :  { %v458_v55 = vsel %vm194_vm12, 1, %v8057_v0  ;;  %v258_v56 = vsel %vm226_vm13, 1, %v8057_v0  ;;  %v6227_v6 = vpack.c.bf16 %v1066_v5, %v1062_v4  ;;  %vm200_vm8 = vcmp.eq.s32.totalorder %v165_v10, 0  ;;  %v1090_v51 = vld [vmem:[#allocation7 + $0xe8] sm:$0xff]  ;;  %v1093_v5 = vld [vmem:[#allocation7 + $0x100] sm:$0xff] }
  0xb2   :  { %490 = vperm.xlu1 %7828, %v443_v34   ;;  %290 = vperm.xlu0 %7827, %v243_v35   ;;  %v451_v34 = vsel %vm187_vm14, 1, %v8057_v0  ;;  %v251_v35 = vsel %vm219_vm15, 1, %v8057_v0  ;;  %vm195_vm14 = vcmp.eq.s32.totalorder %v160_v54, 0  ;;  %vm227_vm15 = vcmp.eq.s32.totalorder %v160_v54, 1  ;;  %v1094_v61 = vld [vmem:[#allocation7 + $0x108] sm:$0xff] }
  0xb3   :  { %6218 = vmatpush1.bf16.msra.mxu0 %v6217_v14  ;;  %v459_v58 = vsel %vm195_vm14, 1, %v8057_v0  ;;  %v259_v60 = vsel %vm227_vm15, 1, %v8057_v0  ;;  %vm232_vm9 = vcmp.eq.s32.totalorder %v165_v10, 1  ;;  %v464_v14 = vsel %vm200_vm8, 1, %v8057_v0 }
  0xb4   :  { %6220 = vmatprep.subr.bf16.mxu0 %v6219_v19  ;;  %v264_v15 = vsel %vm232_vm9, 1, %v8057_v0  ;;  %vm202_vm12 = vcmp.eq.s32.totalorder %v167_v16, 0  ;;  %vm234_vm13 = vcmp.eq.s32.totalorder %v167_v16, 1  ;;  %v168_v19 = vld [vmem:[%s11088_s0 + $0xf8] sm:$0xff]  ;;  %v1105_v16 = vld [vmem:[#allocation7 + $0x160] sm:$0xff] }
  0xb5   :  { %v466_v20 = vsel %vm202_vm12, 1, %v8057_v0  ;;  %v266_v21 = vsel %vm234_vm13, 1, %v8057_v0  ;;  %vm203_vm14 = vcmp.eq.s32.totalorder %v168_v19, 0  ;;  %vm235_vm15 = vcmp.eq.s32.totalorder %v168_v19, 1  ;;  %v1114_v19 = vld [vmem:[#allocation7 + $0x1a8] sm:$0xff] }
  0xb6   :  { %493 = vperm.xlu1 %7828, %v444_v43   ;;  %293 = vperm.xlu0 %7827, %v244_v44   ;;  %v454_v43 = vsel %vm190_vm4, 1, %v8057_v0  ;;  %v254_v44 = vsel %vm222_vm5, 1, %v8057_v0  ;;  %vm198_vm4 = vcmp.eq.s32.totalorder %v163_v1, 0  ;;  %vm230_vm5 = vcmp.eq.s32.totalorder %v163_v1, 1 }
  0xb7   :  { %6222 = vmatpush1.bf16.msra.mxu0 %v6221_v23  ;;  %v467_v22 = vsel %vm203_vm14, 1, %v8057_v0  ;;  %v267_v23 = vsel %vm235_vm15, 1, %v8057_v0 }
  0xb8   :  { %6224 = vmatprep.subr.bf16.mxu0 %v6223_v28  ;;  %v1065_v28 = vld [vmem:[#allocation7 + $0x20] sm:$0xff] }
  0xba   :  { %496 = vperm.xlu1 %7828, %v445_v52   ;;  %296 = vperm.xlu0 %7827, %v245_v53   ;;  %v457_v52 = vsel %vm193_vm10, 1, %v8057_v0  ;;  %v257_v53 = vsel %vm225_vm11, 1, %v8057_v0  ;;  %vm201_vm10 = vcmp.eq.s32.totalorder %v166_v13, 0  ;;  %vm233_vm11 = vcmp.eq.s32.totalorder %v166_v13, 1 }
  0xbb   :  { %6226 = vmatpush1.bf16.msra.mxu0 %v6225_v30  ;;  %v1070_v30 = vld [vmem:[#allocation7 + $0x48] sm:$0xff] }
  0xbc   :  { %6228 = vmatprep.subr.bf16.mxu0 %v6227_v6  ;;  %v1097_v6 = vld [vmem:[#allocation7 + $0x120] sm:$0xff] }
  0xbd   :  { %v6245_v13 = vpack.c.bf16 %v1097_v6, %v1093_v5  ;;  %v1141_v5 = vld [vmem:[#allocation7 + $0x280] sm:$0xff] }
  0xbe   :  { %499 = vperm.xlu1 %7828, %v446_v62   ;;  %299 = vperm.xlu0 %7827, %v246_v63   ;;  %v460_v62 = vsel %vm196_vm0, 1, %v8057_v0  ;;  %v260_v63 = vsel %vm228_vm1, 1, %v8057_v0  ;;  %v1145_v6 = vld [vmem:[#allocation7 + $0x2a0] sm:$0xff] }
  0xc2   :  { %502 = vperm.xlu1 %7828, %v447_v8   ;;  %302 = vperm.xlu0 %7827, %v247_v9   ;;  %v462_v8 = vsel %vm198_vm4, 1, %v8057_v0  ;;  %v262_v9 = vsel %vm230_vm5, 1, %v8057_v0 }
  0xc6   :  { %505 = vperm.xlu1 %7828, %v448_v17   ;;  %305 = vperm.xlu0 %7827, %v248_v18   ;;  %v465_v17 = vsel %vm201_vm10, 1, %v8057_v0  ;;  %v265_v18 = vsel %vm233_vm11, 1, %v8057_v0  ;;  %v8398_v0 = vld [vmem:[%s11089_s1] ss:$0 sm:$0xff] }
  0xca   :  { %508 = vperm.xlu1 %7828, %v449_v26   ;;  %308 = vperm.xlu0 %7827, %v249_v27   ;;  %v8388_v26 = vld [vmem:[%s11089_s1 + $0x1] ss:$0 sm:$0xff]  ;;  %v1061_v27 = vld [vmem:[#allocation7] sm:$0xff]  ;;  %s8060_s1 = smov [#allocation16]  }
  0xcb   :  { %s6175_s7 = sshll.u32 %s8060_s1, 4  ;;  %s6176_s7 = int_to_ptr.vmem [resolvable:$true] %s6175_s7 }
  0xcc   :  { %s8007_s17 = scalar_lea.vmem %s6176_s7, 4096  ;;  %p8012_p9 = scmp.lt.s32.totalorder %s6176_s7, %s6176_s7 }
  0xcd   :  { %p8008_p8 = scmp.ne.s32.totalorder %s6176_s7, %s8007_s17  ;;  %p8013_p10 = scmp.lt.s32.totalorder %s8007_s17, %s8007_s17 }
  0xce   :  { %511 = vperm.xlu1 %7828, %v450_v31   ;;  %311 = vperm.xlu0 %7827, %v250_v32   ;;  %v1074_v31 = vld [vmem:[#allocation7 + $0x68] sm:$0xff] }
  0xcf   :  { %v6231_v36 = vpack.c.bf16 %v1074_v31, %v1070_v30  ;;  %v1118_v30 = vld [vmem:[#allocation7 + $0x1c8] sm:$0xff]  ;;  %p8014_p11 = por %p8013_p10, %p8012_p9 }
  0xd0   :  { %v1122_v31 = vld [vmem:[#allocation7 + $0x1e8] sm:$0xff] }
  0xd1   :  { %p8015_p12 = pnand %p8014_p11, %p8008_p8 }
  0xd2   :  { %514 = vperm.xlu1 %7828, %v451_v34   ;;  %314 = vperm.xlu0 %7827, %v251_v35   ;;  %v6229_v34 = vpack.c.bf16 %v1065_v28, %v1061_v27  ;;  %v1113_v27 = vld [vmem:[#allocation7 + $0x1a0] sm:$0xff] }
  0xd6   :  { %517 = vperm.xlu1 %7828, %v452_v37   ;;  %317 = vperm.xlu0 %7827, %v252_v38   ;;  %v1069_v37 = vld [vmem:[#allocation7 + $0x40] sm:$0xff] }
  0xd7   :  { %v1073_v38 = vld [vmem:[#allocation7 + $0x60] sm:$0xff] }
  0xd8   :  { %v6233_v45 = vpack.c.bf16 %v1073_v38, %v1069_v37  ;;  %v1117_v37 = vld [vmem:[#allocation7 + $0x1c0] sm:$0xff] }
  0xd9   :  { %v1121_v38 = vld [vmem:[#allocation7 + $0x1e0] sm:$0xff] }
  0xda   :  { %520 = vperm.xlu1 %7828, %v453_v40   ;;  %320 = vperm.xlu0 %7827, %v253_v41   ;;  %v1078_v40 = vld [vmem:[#allocation7 + $0x88] sm:$0xff] }
  0xdb   :  { %v1082_v41 = vld [vmem:[#allocation7 + $0xa8] sm:$0xff] }
  0xde   :  { %523 = vperm.xlu1 %7828, %v454_v43   ;;  %323 = vperm.xlu0 %7827, %v254_v44  }
  0xe2   :  { %526 = vperm.xlu1 %7828, %v455_v46   ;;  %326 = vperm.xlu0 %7827, %v255_v47   ;;  %v6235_v46 = vpack.c.bf16 %v1082_v41, %v1078_v40  ;;  %v1077_v47 = vld [vmem:[#allocation7 + $0x80] sm:$0xff]  ;;  %v1126_v40 = vld [vmem:[#allocation7 + $0x208] sm:$0xff] }
  0xe3   :  { %v1130_v41 = vld [vmem:[#allocation7 + $0x228] sm:$0xff] }
  0xe6   :  { %529 = vperm.xlu1 %7828, %v456_v49   ;;  %329 = vperm.xlu0 %7827, %v256_v50   ;;  %v1086_v50 = vld [vmem:[#allocation7 + $0xc8] sm:$0xff] }
  0xea   :  { %532 = vperm.xlu1 %7828, %v457_v52   ;;  %332 = vperm.xlu0 %7827, %v257_v53  }
  0xee   :  { %535 = vperm.xlu1 %7828, %v458_v55   ;;  %335 = vperm.xlu0 %7827, %v258_v56   ;;  %v6237_v55 = vpack.c.bf16 %v1081_v48, %v1077_v47  ;;  %v6239_v56 = vpack.c.bf16 %v1090_v51, %v1086_v50  ;;  %v1125_v47 = vld [vmem:[#allocation7 + $0x200] sm:$0xff]  ;;  %v1134_v50 = vld [vmem:[#allocation7 + $0x248] sm:$0xff] }
  0xef   :  { %v1129_v48 = vld [vmem:[#allocation7 + $0x220] sm:$0xff]  ;;  %v1138_v51 = vld [vmem:[#allocation7 + $0x268] sm:$0xff] }
  0xf2   :  { %538 = vperm.xlu1 %7828, %v459_v58   ;;  %338 = vperm.xlu0 %7827, %v259_v60   ;;  %v1089_v58 = vld [vmem:[#allocation7 + $0xe0] sm:$0xff] }
  0xf6   :  { %541 = vperm.xlu1 %7828, %v460_v62   ;;  %341 = vperm.xlu0 %7827, %v260_v63   ;;  %v1098_v62 = vld [vmem:[#allocation7 + $0x128] sm:$0xff] }
  0xf7   :  { %v6243_v4 = vpack.c.bf16 %v1098_v62, %v1094_v61  ;;  %v1142_v61 = vld [vmem:[#allocation7 + $0x288] sm:$0xff] }
  0xf8   :  { %v1146_v62 = vld [vmem:[#allocation7 + $0x2a8] sm:$0xff] }
  0xfa   :  { %544 = vperm.xlu1 %7828, %v461_v2   ;;  %344 = vperm.xlu0 %7827, %v261_v3   ;;  %v6241_v3 = vpack.c.bf16 %v1089_v58, %v1085_v57  ;;  %v1133_v57 = vld [vmem:[#allocation7 + $0x240] sm:$0xff] }
  0xfb   :  { %v1137_v58 = vld [vmem:[#allocation7 + $0x260] sm:$0xff] }
  0xfe   :  { %547 = vperm.xlu1 %7828, %v462_v8   ;;  %347 = vperm.xlu0 %7827, %v262_v9   ;;  %v1102_v8 = vld [vmem:[#allocation7 + $0x148] sm:$0xff] }
  0xff   :  { %v1106_v9 = vld [vmem:[#allocation7 + $0x168] sm:$0xff] }
 0x102   :  { %550 = vperm.xlu1 %7828, %v463_v11   ;;  %350 = vperm.xlu0 %7827, %v263_v12  }
 0x106   :  { %553 = vperm.xlu1 %7828, %v464_v14   ;;  %353 = vperm.xlu0 %7827, %v264_v15   ;;  %v6247_v14 = vpack.c.bf16 %v1106_v9, %v1102_v8  ;;  %v1101_v15 = vld [vmem:[#allocation7 + $0x140] sm:$0xff]  ;;  %v1150_v8 = vld [vmem:[#allocation7 + $0x2c8] sm:$0xff] }
 0x107   :  { %v1154_v9 = vld [vmem:[#allocation7 + $0x2e8] sm:$0xff] }
 0x10a   :  { %556 = vperm.xlu1 %7828, %v465_v17   ;;  %356 = vperm.xlu0 %7827, %v265_v18   ;;  %v1110_v18 = vld [vmem:[#allocation7 + $0x188] sm:$0xff] }
 0x10e   :  { %559 = vperm.xlu1 %7828, %v466_v20   ;;  %359 = vperm.xlu0 %7827, %v266_v21  }
 0x112   :  { %562 = vperm.xlu1 %7828, %v467_v22   ;;  %362 = vperm.xlu0 %7827, %v267_v23   ;;  %v6249_v23 = vpack.c.bf16 %v1105_v16, %v1101_v15  ;;  %v1149_v15 = vld [vmem:[#allocation7 + $0x2c0] sm:$0xff] }
 0x113   :  { %v1153_v16 = vld [vmem:[#allocation7 + $0x2e0] sm:$0xff] }
 0x115   :  { %v273_v24 = vpop.permute.xlu1 %272  ;;  %v270_v25 = vpop.permute.xlu0 %269 }
 0x116   :  { %vm364_vm0 = vcmp.eq.s32.totalorder %v270_v25, 1  ;;  %vm365_vm1 = vcmp.eq.s32.totalorder %v273_v24, 1  ;;  %v6251_v24 = vpack.c.bf16 %v1114_v19, %v1110_v18  ;;  %v1109_v25 = vld [vmem:[#allocation7 + $0x180] sm:$0xff]  ;;  %v1158_v18 = vld [vmem:[#allocation7 + $0x308] sm:$0xff] }
 0x117   :  { %v404_v35 = vsel %vm364_vm0, %v8388_v26, %v8393_v29  ;;  %v405_v42 = vsel %vm365_vm1, %v8388_v26, %v8393_v29  ;;  %v1162_v19 = vld [vmem:[#allocation7 + $0x328] sm:$0xff] }
 0x119   :  { %v473_v32 = vpop.permute.xlu1 %472  ;;  %v470_v33 = vpop.permute.xlu0 %469 }
 0x11a   :  { %vm564_vm2 = vcmp.eq.s32.totalorder %v470_v33, 1  ;;  %vm565_vm3 = vcmp.eq.s32.totalorder %v473_v32, 1 }
 0x11b   :  { %v600_v39 = vsel %vm564_vm2, %v8398_v0, %v404_v35  ;;  %v601_v49 = vsel %vm565_vm3, %v8398_v0, %v405_v42  ;;  %v6253_v35 = vpack.c.bf16 %v1113_v27, %v1109_v25  ;;  %v1157_v25 = vld [vmem:[#allocation7 + $0x300] sm:$0xff] }
 0x11c   :  { %741 = vmatmul.mubr.f32.vlgmr.msra.gmra.mrb[0].mxu0 %v600_v39  ;;  %v1161_v27 = vld [vmem:[#allocation7 + $0x320] sm:$0xff] }
 0x11d   :  { %v476_v43 = vpop.permute.xlu1 %475  ;;  %v276_v44 = vpop.permute.xlu0 %275  ;;  %746 = vmatprep.mubr.f32.mxu0 %v8058_v59  ;;  %6230 = vmatpush1.bf16.msra.mxu0 %v6229_v34 }
 0x11e   :  { %vm366_vm4 = vcmp.eq.s32.totalorder %v276_v44, 1  ;;  %6232 = vmatprep.subr.bf16.mxu0 %v6231_v36  ;;  %vm566_vm5 = vcmp.eq.s32.totalorder %v476_v43, 1  ;;  %v6255_v36 = vpack.c.bf16 %v1122_v31, %v1118_v30  ;;  %v1166_v30 = vld [vmem:[#allocation7 + $0x348] sm:$0xff] }
 0x11f   :  { %v406_v52 = vsel %vm366_vm4, %v8388_v26, %v8393_v29  ;;  %v1170_v31 = vld [vmem:[#allocation7 + $0x368] sm:$0xff] }
 0x120   :  { %747 = vmatmul.mubr.f32.gmra.mrb[2].mxu0 %v601_v49  ;;  %v602_v60 = vsel %vm566_vm5, %v8398_v0, %v406_v52 }
 0x121   :  { %v479_v53 = vpop.permute.xlu1 %478  ;;  %v279_v54 = vpop.permute.xlu0 %278  ;;  %752 = vmatprep.mubr.f32.mxu0 %v8058_v59  ;;  %6234 = vmatpush1.bf16.msra.mxu0 %v6233_v45  ;;  %v6257_v45 = vpack.c.bf16 %v1121_v38, %v1117_v37  ;;  %v1165_v37 = vld [vmem:[#allocation7 + $0x340] sm:$0xff] }
 0x122   :  { %vm367_vm6 = vcmp.eq.s32.totalorder %v279_v54, 1  ;;  %6236 = vmatprep.subr.bf16.mxu0 %v6235_v46  ;;  %vm567_vm7 = vcmp.eq.s32.totalorder %v479_v53, 1  ;;  %v6259_v46 = vpack.c.bf16 %v1130_v41, %v1126_v40  ;;  %v1169_v38 = vld [vmem:[#allocation7 + $0x360] sm:$0xff]  ;;  %v1174_v40 = vld [vmem:[#allocation7 + $0x388] sm:$0xff] }
 0x123   :  { %v407_v63 = vsel %vm367_vm6, %v8388_v26, %v8393_v29  ;;  %v1178_v41 = vld [vmem:[#allocation7 + $0x3a8] sm:$0xff] }
 0x124   :  { %753 = vmatmul.mubr.f32.gmra.mrb[4].mxu0 %v602_v60  ;;  %v603_v7 = vsel %vm567_vm7, %v8398_v0, %v407_v63 }
 0x125   :  { %v482_v1 = vpop.permute.xlu1 %481  ;;  %v282_v2 = vpop.permute.xlu0 %281  ;;  %758 = vmatprep.mubr.f32.mxu0 %v8058_v59  ;;  %6238 = vmatpush1.bf16.msra.mxu0 %v6237_v55  ;;  %v6261_v55 = vpack.c.bf16 %v1129_v48, %v1125_v47  ;;  %v1173_v47 = vld [vmem:[#allocation7 + $0x380] sm:$0xff] }
 0x126   :  { %vm368_vm8 = vcmp.eq.s32.totalorder %v282_v2, 1  ;;  %6240 = vmatprep.subr.bf16.mxu0 %v6239_v56  ;;  %vm568_vm9 = vcmp.eq.s32.totalorder %v482_v1, 1  ;;  %v6263_v56 = vpack.c.bf16 %v1138_v51, %v1134_v50  ;;  %v1177_v48 = vld [vmem:[#allocation7 + $0x3a0] sm:$0xff] }
 0x127   :  { %v408_v10 = vsel %vm368_vm8, %v8388_v26, %v8393_v29 }
 0x128   :  { %759 = vmatmul.mubr.f32.gmra.mrb[6].mxu0 %v603_v7  ;;  %v604_v17 = vsel %vm568_vm9, %v8398_v0, %v408_v10 }
 0x129   :  { %v485_v11 = vpop.permute.xlu1 %484  ;;  %v285_v12 = vpop.permute.xlu0 %284  ;;  %764 = vmatprep.mubr.f32.mxu0 %v8058_v59  ;;  %6242 = vmatpush1.bf16.msra.mxu0 %v6241_v3  ;;  %v6265_v3 = vpack.c.bf16 %v1137_v58, %v1133_v57 }
 0x12a   :  { %vm369_vm10 = vcmp.eq.s32.totalorder %v285_v12, 1  ;;  %6244 = vmatprep.subr.bf16.mxu0 %v6243_v4  ;;  %vm569_vm11 = vcmp.eq.s32.totalorder %v485_v11, 1  ;;  %v6267_v4 = vpack.c.bf16 %v1146_v62, %v1142_v61 }
 0x12b   :  { %v409_v20 = vsel %vm369_vm10, %v8388_v26, %v8393_v29 }
 0x12c   :  { %765 = vmatmul.mubr.f32.gmra.mrb[8].mxu0 %v604_v17  ;;  %v605_v28 = vsel %vm569_vm11, %v8398_v0, %v409_v20 }
 0x12d   :  { %v488_v21 = vpop.permute.xlu1 %487  ;;  %v288_v22 = vpop.permute.xlu0 %287  ;;  %770 = vmatprep.mubr.f32.mxu0 %v8058_v59  ;;  %6246 = vmatpush1.bf16.msra.mxu0 %v6245_v13  ;;  %v6269_v13 = vpack.c.bf16 %v1145_v6, %v1141_v5 }
 0x12e   :  { %vm370_vm12 = vcmp.eq.s32.totalorder %v288_v22, 1  ;;  %6248 = vmatprep.subr.bf16.mxu0 %v6247_v14  ;;  %vm570_vm13 = vcmp.eq.s32.totalorder %v488_v21, 1  ;;  %v6271_v14 = vpack.c.bf16 %v1154_v9, %v1150_v8 }
 0x12f   :  { %v410_v32 = vsel %vm370_vm12, %v8388_v26, %v8393_v29 }
 0x130   :  { %771 = vmatmul.mubr.f32.gmra.mrb[10].mxu0 %v605_v28  ;;  %v606_v39 = vsel %vm570_vm13, %v8398_v0, %v410_v32 }
 0x131   :  { %v491_v33 = vpop.permute.xlu1 %490  ;;  %v291_v34 = vpop.permute.xlu0 %290  ;;  %776 = vmatprep.mubr.f32.mxu0 %v8058_v59  ;;  %6250 = vmatpush1.bf16.msra.mxu0 %v6249_v23  ;;  %v6273_v23 = vpack.c.bf16 %v1153_v16, %v1149_v15 }
 0x132   :  { %vm371_vm14 = vcmp.eq.s32.totalorder %v291_v34, 1  ;;  %6252 = vmatprep.subr.bf16.mxu0 %v6251_v24  ;;  %vm571_vm15 = vcmp.eq.s32.totalorder %v491_v33, 1  ;;  %v6275_v24 = vpack.c.bf16 %v1162_v19, %v1158_v18 }
 0x133   :  { %v411_v42 = vsel %vm371_vm14, %v8388_v26, %v8393_v29 }
 0x134   :  { %777 = vmatmul.mubr.f32.gmra.mrb[12].mxu0 %v606_v39  ;;  %v607_v49 = vsel %vm571_vm15, %v8398_v0, %v411_v42 }
 0x135   :  { %v494_v43 = vpop.permute.xlu1 %493  ;;  %v294_v44 = vpop.permute.xlu0 %293  ;;  %782 = vmatprep.mubr.f32.mxu0 %v8058_v59  ;;  %6254 = vmatpush1.bf16.msra.mxu0 %v6253_v35  ;;  %v6277_v35 = vpack.c.bf16 %v1161_v27, %v1157_v25  ;;  %v1186_v25 = vld [vmem:[#allocation7 + $0x3e8] sm:$0xff] }
 0x136   :  { %vm372_vm0 = vcmp.eq.s32.totalorder %v294_v44, 1  ;;  %6256 = vmatprep.subr.bf16.mxu0 %v6255_v36  ;;  %vm572_vm1 = vcmp.eq.s32.totalorder %v494_v43, 1  ;;  %v6279_v36 = vpack.c.bf16 %v1170_v31, %v1166_v30  ;;  %v1185_v30 = vld [vmem:[#allocation7 + $0x3e0] sm:$0xff] }
 0x137   :  { %v412_v52 = vsel %vm372_vm0, %v8388_v26, %v8393_v29 }
 0x138   :  { %783 = vmatmul.mubr.f32.gmra.mrb[14].mxu0 %v607_v49  ;;  %v608_v60 = vsel %vm572_vm1, %v8398_v0, %v412_v52 }
 0x139   :  { %v497_v53 = vpop.permute.xlu1 %496  ;;  %v297_v54 = vpop.permute.xlu0 %296  ;;  %788 = vmatprep.mubr.f32.mxu0 %v8058_v59  ;;  %6258 = vmatpush1.bf16.msra.mxu0 %v6257_v45  ;;  %v6281_v45 = vpack.c.bf16 %v1169_v38, %v1165_v37  ;;  %v1064_v38 = vld [vmem:[#allocation7 + $0x18] sm:$0xff] }
 0x13a   :  { %vm373_vm2 = vcmp.eq.s32.totalorder %v297_v54, 1  ;;  %6260 = vmatprep.subr.bf16.mxu0 %v6259_v46  ;;  %vm573_vm3 = vcmp.eq.s32.totalorder %v497_v53, 1  ;;  %v6283_v46 = vpack.c.bf16 %v1178_v41, %v1174_v40  ;;  %v6285_v53 = vpack.c.bf16 %v1177_v48, %v1173_v47 }
 0x13b   :  { %v413_v63 = vsel %vm373_vm2, %v8388_v26, %v8393_v29 }
 0x13c   :  { %789 = vmatmul.mubr.f32.gmra.mrb[16].mxu0 %v608_v60  ;;  %v609_v7 = vsel %vm573_vm3, %v8398_v0, %v413_v63 }
 0x13d   :  { %v500_v1 = vpop.permute.xlu1 %499  ;;  %v300_v2 = vpop.permute.xlu0 %299  ;;  %794 = vmatprep.mubr.f32.mxu0 %v8058_v59  ;;  %6262 = vmatpush1.bf16.msra.mxu0 %v6261_v55 }
 0x13e   :  { %vm374_vm4 = vcmp.eq.s32.totalorder %v300_v2, 1  ;;  %6264 = vmatprep.subr.bf16.mxu0 %v6263_v56  ;;  %vm574_vm5 = vcmp.eq.s32.totalorder %v500_v1, 1 }
 0x13f   :  { %v414_v10 = vsel %vm374_vm4, %v8388_v26, %v8393_v29 }
 0x140   :  { %795 = vmatmul.mubr.f32.gmra.mrb[18].mxu0 %v609_v7  ;;  %v610_v17 = vsel %vm574_vm5, %v8398_v0, %v414_v10 }
 0x141   :  { %v503_v11 = vpop.permute.xlu1 %502  ;;  %v303_v12 = vpop.permute.xlu0 %302  ;;  %800 = vmatprep.mubr.f32.mxu0 %v8058_v59  ;;  %6266 = vmatpush1.bf16.msra.mxu0 %v6265_v3 }
 0x142   :  { %vm375_vm6 = vcmp.eq.s32.totalorder %v303_v12, 1  ;;  %6268 = vmatprep.subr.bf16.mxu0 %v6267_v4  ;;  %vm575_vm7 = vcmp.eq.s32.totalorder %v503_v11, 1 }
 0x143   :  { %v415_v20 = vsel %vm375_vm6, %v8388_v26, %v8393_v29 }
 0x144   :  { %801 = vmatmul.mubr.f32.gmra.mrb[20].mxu0 %v610_v17  ;;  %v611_v28 = vsel %vm575_vm7, %v8398_v0, %v415_v20 }
 0x145   :  { %v506_v21 = vpop.permute.xlu1 %505  ;;  %v306_v22 = vpop.permute.xlu0 %305  ;;  %806 = vmatprep.mubr.f32.mxu0 %v8058_v59  ;;  %6270 = vmatpush1.bf16.msra.mxu0 %v6269_v13 }
 0x146   :  { %vm376_vm8 = vcmp.eq.s32.totalorder %v306_v22, 1  ;;  %6272 = vmatprep.subr.bf16.mxu0 %v6271_v14  ;;  %vm576_vm9 = vcmp.eq.s32.totalorder %v506_v21, 1 }
 0x147   :  { %v416_v32 = vsel %vm376_vm8, %v8388_v26, %v8393_v29 }
 0x148   :  { %807 = vmatmul.mubr.f32.gmra.mrb[22].mxu0 %v611_v28  ;;  %v612_v39 = vsel %vm576_vm9, %v8398_v0, %v416_v32  ;;  %v1181_v28 = vld [vmem:[#allocation7 + $0x3c0] sm:$0xff] }
 0x149   :  { %v509_v33 = vpop.permute.xlu1 %508  ;;  %v309_v34 = vpop.permute.xlu0 %308  ;;  %812 = vmatprep.mubr.f32.mxu0 %v8058_v59  ;;  %6274 = vmatpush1.bf16.msra.mxu0 %v6273_v23  ;;  %v6289_v32 = vpack.c.bf16 %v1185_v30, %v1181_v28 }
 0x14a   :  { %vm377_vm10 = vcmp.eq.s32.totalorder %v309_v34, 1  ;;  %6276 = vmatprep.subr.bf16.mxu0 %v6275_v24  ;;  %vm577_vm11 = vcmp.eq.s32.totalorder %v509_v33, 1  ;;  %v1182_v24 = vld [vmem:[#allocation7 + $0x3c8] sm:$0xff] }
 0x14b   :  { %v417_v42 = vsel %vm377_vm10, %v8388_v26, %v8393_v29  ;;  %v6287_v27 = vpack.c.bf16 %v1186_v25, %v1182_v24 }
 0x14c   :  { %813 = vmatmul.mubr.f32.gmra.mrb[24].mxu0 %v612_v39  ;;  %v613_v49 = vsel %vm577_vm11, %v8398_v0, %v417_v42  ;;  %v1068_v39 = vld [vmem:[#allocation7 + $0x38] sm:$0xff] }
 0x14d   :  { %v512_v43 = vpop.permute.xlu1 %511  ;;  %v312_v44 = vpop.permute.xlu0 %311  ;;  %818 = vmatprep.mubr.f32.mxu0 %v8058_v59  ;;  %6278 = vmatpush1.bf16.msra.mxu0 %v6277_v35  ;;  %v6291_v42 = vpack.c.bf16 %v1068_v39, %v1064_v38 }
 0x14e   :  { %vm378_vm12 = vcmp.eq.s32.totalorder %v312_v44, 1  ;;  %6280 = vmatprep.subr.bf16.mxu0 %v6279_v36  ;;  %vm578_vm13 = vcmp.eq.s32.totalorder %v512_v43, 1 }
 0x14f   :  { %v418_v50 = vsel %vm378_vm12, %v8388_v26, %v8393_v29 }
 0x150   :  { %819 = vmatmul.mubr.f32.gmra.mrb[26].mxu0 %v613_v49  ;;  %v614_v54 = vsel %vm578_vm13, %v8398_v0, %v418_v50 }
 0x151   :  { %v515_v51 = vpop.permute.xlu1 %514  ;;  %v315_v52 = vpop.permute.xlu0 %314  ;;  %824 = vmatprep.mubr.f32.mxu0 %v8058_v59  ;;  %6282 = vmatpush1.bf16.msra.mxu0 %v6281_v45 }
 0x152   :  { %vm379_vm14 = vcmp.eq.s32.totalorder %v315_v52, 1  ;;  %6284 = vmatprep.subr.bf16.mxu0 %v6283_v46  ;;  %vm579_vm15 = vcmp.eq.s32.totalorder %v515_v51, 1 }
 0x153   :  { %v419_v55 = vsel %vm379_vm14, %v8388_v26, %v8393_v29 }
 0x154   :  { %825 = vmatmul.mubr.f32.gmra.mrb[28].mxu0 %v614_v54  ;;  %v615_v58 = vsel %vm579_vm15, %v8398_v0, %v419_v55 }
 0x155   :  { %v518_v56 = vpop.permute.xlu1 %517  ;;  %v318_v57 = vpop.permute.xlu0 %317  ;;  %830 = vmatprep.mubr.f32.mxu0 %v8058_v59  ;;  %6286 = vmatpush1.bf16.msra.mxu0 %v6285_v53 }
 0x156   :  { %vm380_vm0 = vcmp.eq.s32.totalorder %v318_v57, 1  ;;  %vm580_vm1 = vcmp.eq.s32.totalorder %v518_v56, 1  ;;  %6288 = vmatprep.subr.bf16.mxu0 %v6287_v27 }
 0x157   :  { %v420_v60 = vsel %vm380_vm0, %v8388_v26, %v8393_v29 }
 0x158   :  { %831 = vmatmul.mubr.f32.gmra.mrb[30].mxu0 %v615_v58  ;;  %v616_v63 = vsel %vm580_vm1, %v8398_v0, %v420_v60 }
 0x159   :  { %v521_v61 = vpop.permute.xlu1 %520  ;;  %v321_v62 = vpop.permute.xlu0 %320  ;;  %836 = vmatprep.mubr.f32.mxu0 %v8058_v59  ;;  %6290 = vmatpush1.bf16.msra.mxu0 %v6289_v32  ;;  %v1071_v32 = vld [vmem:[#allocation7 + $0x50] sm:$0xff] }
 0x15a   :  { %vm381_vm2 = vcmp.eq.s32.totalorder %v321_v62, 1  ;;  %vm581_vm3 = vcmp.eq.s32.totalorder %v521_v61, 1  ;;  %6292 = vmatprep.subr.bf16.mxu0 %v6291_v42 }
 0x15b   :  { %v421_v1 = vsel %vm381_vm2, %v8388_v26, %v8393_v29 }
 0x15c   :  { %837 = vmatmul.mubr.f32.gmra.mrb[32].mxu0 %v616_v63  ;;  %v617_v4 = vsel %vm581_vm3, %v8398_v0, %v421_v1 }
 0x15d   :  { %v524_v2 = vpop.permute.xlu1 %523  ;;  %v324_v3 = vpop.permute.xlu0 %323  ;;  %842 = vmatprep.mubr.f32.mxu0 %v8058_v59 }
 0x15e   :  { %vm382_vm4 = vcmp.eq.s32.totalorder %v324_v3, 1  ;;  %vm582_vm5 = vcmp.eq.s32.totalorder %v524_v2, 1 }
 0x15f   :  { %v422_v5 = vsel %vm382_vm4, %v8388_v26, %v8393_v29 }
 0x160   :  { %843 = vmatmul.mubr.f32.gmra.mrb[34].mxu0 %v617_v4  ;;  %v618_v8 = vsel %vm582_vm5, %v8398_v0, %v422_v5 }
 0x161   :  { %v527_v6 = vpop.permute.xlu1 %526  ;;  %v327_v7 = vpop.permute.xlu0 %326  ;;  %848 = vmatprep.mubr.f32.mxu0 %v8058_v59 }
 0x162   :  { %vm383_vm6 = vcmp.eq.s32.totalorder %v327_v7, 1  ;;  %vm583_vm7 = vcmp.eq.s32.totalorder %v527_v6, 1 }
 0x163   :  { %v423_v9 = vsel %vm383_vm6, %v8388_v26, %v8393_v29 }
 0x164   :  { %849 = vmatmul.mubr.f32.gmra.mrb[36].mxu0 %v618_v8  ;;  %v619_v12 = vsel %vm583_vm7, %v8398_v0, %v423_v9  ;;  %v666_v8 = vlaneseq }
 0x165   :  { %v530_v10 = vpop.permute.xlu1 %529  ;;  %v330_v11 = vpop.permute.xlu0 %329  ;;  %854 = vmatprep.mubr.f32.mxu0 %v8058_v59 }
 0x166   :  { %vm384_vm8 = vcmp.eq.s32.totalorder %v330_v11, 1  ;;  %vm584_vm9 = vcmp.eq.s32.totalorder %v530_v10, 1  ;;  %v8527_v9 = vshrl.u32 %v666_v8, 7  ;;  %v664_v11 = vld [vmem:[#allocation5] sm:$0x3] }
 0x167   :  { %v424_v13 = vsel %vm384_vm8, %v8388_v26, %v8393_v29 }
 0x168   :  { %855 = vmatmul.mubr.f32.gmra.mrb[38].mxu0 %v619_v12  ;;  %v620_v16 = vsel %vm584_vm9, %v8398_v0, %v424_v13  ;;  %11332 = vst [vmem:[#allocation23_spill] sm:$0xff] %v8527_v9  ;;  %v8530_v10 = vsub.s32 0, %v8527_v9  ;;  %v8533_v12 = vsub.s32 1, %v8527_v9  ;;  %v2197_v9 = vld [vmem:[#allocation10 + $0x6c0] sm:$0xff] }
 0x169   :  { %v533_v14 = vpop.permute.xlu1 %532  ;;  %v333_v15 = vpop.permute.xlu0 %332  ;;  %860 = vmatprep.mubr.f32.mxu0 %v8058_v59 }
 0x16a   :  { %vm385_vm10 = vcmp.eq.s32.totalorder %v333_v15, 1  ;;  %vm585_vm11 = vcmp.eq.s32.totalorder %v533_v14, 1  ;;  %11333 = vst [vmem:[#allocation24_spill] sm:$0xff] %v8530_v10  ;;  %11334 = vst [vmem:[#allocation25_spill] sm:$0xff] %v8533_v12  ;;  %v8536_v13 = vrot.slane %v664_v11, %v8530_v10  ;;  %v2213_v10 = vld [vmem:[#allocation10 + $0x740] sm:$0xff] }
 0x16b   :  { %v425_v17 = vsel %vm385_vm10, %v8388_v26, %v8393_v29 }
 0x16c   :  { %861 = vmatmul.mubr.f32.gmra.mrb[40].mxu0 %v620_v16  ;;  %v621_v20 = vsel %vm585_vm11, %v8398_v0, %v425_v17  ;;  %v1063_v16 = vld [vmem:[#allocation7 + $0x10] sm:$0xff] }
 0x16d   :  { %v536_v18 = vpop.permute.xlu1 %535  ;;  %v336_v19 = vpop.permute.xlu0 %335  ;;  %866 = vmatprep.mubr.f32.mxu0 %v8058_v59  ;;  %v1067_v17 = vld [vmem:[#allocation7 + $0x30] sm:$0xff] }
 0x16e   :  { %vm386_vm12 = vcmp.eq.s32.totalorder %v336_v19, 1  ;;  %vm586_vm13 = vcmp.eq.s32.totalorder %v536_v18, 1  ;;  %v6293_v27 = vpack.c.bf16 %v1067_v17, %v1063_v16  ;;  %v1104_v17 = vld [vmem:[#allocation7 + $0x158] sm:$0xff] }
 0x16f   :  { %v426_v21 = vsel %vm386_vm12, %v8388_v26, %v8393_v29 }
 0x170   :  { %867 = vmatmul.mubr.f32.gmra.mrb[42].mxu0 %v621_v20  ;;  %v622_v31 = vsel %vm586_vm13, %v8398_v0, %v426_v21  ;;  %v1072_v20 = vld [vmem:[#allocation7 + $0x58] sm:$0xff] }
 0x171   :  { %v539_v22 = vpop.permute.xlu1 %538  ;;  %v339_v23 = vpop.permute.xlu0 %338  ;;  %872 = vmatprep.mubr.f32.mxu0 %v8058_v59  ;;  %v1076_v21 = vld [vmem:[#allocation7 + $0x78] sm:$0xff] }
 0x172   :  { %vm387_vm14 = vcmp.eq.s32.totalorder %v339_v23, 1  ;;  %vm587_vm15 = vcmp.eq.s32.totalorder %v539_v22, 1 }
 0x173   :  { %v427_v33 = vsel %vm387_vm14, %v8388_v26, %v8393_v29 }
 0x174   :  { %873 = vmatmul.mubr.f32.gmra.mrb[44].mxu0 %v622_v31  ;;  %v623_v36 = vsel %vm587_vm15, %v8398_v0, %v427_v33  ;;  %v6295_v31 = vpack.c.bf16 %v1076_v21, %v1072_v20  ;;  %v1075_v33 = vld [vmem:[#allocation7 + $0x70] sm:$0xff] }
 0x175   :  { %v542_v34 = vpop.permute.xlu1 %541  ;;  %v342_v35 = vpop.permute.xlu0 %341  ;;  %878 = vmatprep.mubr.f32.mxu0 %v8058_v59  ;;  %v6297_v42 = vpack.c.bf16 %v1075_v33, %v1071_v32  ;;  %v1107_v32 = vld [vmem:[#allocation7 + $0x170] sm:$0xff] }
 0x176   :  { %vm388_vm0 = vcmp.eq.s32.totalorder %v342_v35, 1  ;;  %vm588_vm1 = vcmp.eq.s32.totalorder %v542_v34, 1 }
 0x177   :  { %v428_v37 = vsel %vm388_vm0, %v8388_v26, %v8393_v29 }
 0x178   :  { %879 = vmatmul.mubr.f32.gmra.mrb[46].mxu0 %v623_v36  ;;  %v624_v43 = vsel %vm588_vm1, %v8398_v0, %v428_v37  ;;  %v1080_v36 = vld [vmem:[#allocation7 + $0x98] sm:$0xff] }
 0x179   :  { %v545_v40 = vpop.permute.xlu1 %544  ;;  %v345_v41 = vpop.permute.xlu0 %344  ;;  %884 = vmatprep.mubr.f32.mxu0 %v8058_v59  ;;  %v1084_v37 = vld [vmem:[#allocation7 + $0xb8] sm:$0xff] }
 0x17a   :  { %vm389_vm2 = vcmp.eq.s32.totalorder %v345_v41, 1  ;;  %vm589_vm3 = vcmp.eq.s32.totalorder %v545_v40, 1 }
 0x17b   :  { %v429_v44 = vsel %vm389_vm2, %v8388_v26, %v8393_v29 }
 0x17c   :  { %885 = vmatmul.mubr.f32.gmra.mrb[48].mxu0 %v624_v43  ;;  %v625_v47 = vsel %vm589_vm3, %v8398_v0, %v429_v44 }
 0x17d   :  { %v548_v45 = vpop.permute.xlu1 %547  ;;  %v348_v46 = vpop.permute.xlu0 %347  ;;  %890 = vmatprep.mubr.f32.mxu0 %v8058_v59 }
 0x17e   :  { %vm390_vm4 = vcmp.eq.s32.totalorder %v348_v46, 1  ;;  %vm590_vm5 = vcmp.eq.s32.totalorder %v548_v45, 1  ;;  %v6299_v45 = vpack.c.bf16 %v1084_v37, %v1080_v36  ;;  %v1079_v46 = vld [vmem:[#allocation7 + $0x90] sm:$0xff]  ;;  %v1116_v36 = vld [vmem:[#allocation7 + $0x1b8] sm:$0xff] }
 0x17f   :  { %v430_v48 = vsel %vm390_vm4, %v8388_v26, %v8393_v29 }
 0x180   :  { %891 = vmatmul.mubr.f32.gmra.mrb[50].mxu0 %v625_v47  ;;  %v626_v51 = vsel %vm590_vm5, %v8398_v0, %v430_v48  ;;  %v1083_v47 = vld [vmem:[#allocation7 + $0xb0] sm:$0xff] }
 0x181   :  { %v551_v49 = vpop.permute.xlu1 %550  ;;  %v351_v50 = vpop.permute.xlu0 %350  ;;  %896 = vmatprep.mubr.f32.mxu0 %v8058_v59 }
 0x182   :  { %vm391_vm6 = vcmp.eq.s32.totalorder %v351_v50, 1  ;;  %vm591_vm7 = vcmp.eq.s32.totalorder %v551_v49, 1  ;;  %v1088_v50 = vld [vmem:[#allocation7 + $0xd8] sm:$0xff] }
 0x183   :  { %v431_v52 = vsel %vm391_vm6, %v8388_v26, %v8393_v29 }
 0x184   :  { %897 = vmatmul.mubr.f32.gmra.mrb[52].mxu0 %v626_v51  ;;  %v627_v55 = vsel %vm591_vm7, %v8398_v0, %v431_v52  ;;  %v1092_v51 = vld [vmem:[#allocation7 + $0xf8] sm:$0xff] }
 0x185   :  { %v554_v53 = vpop.permute.xlu1 %553  ;;  %v354_v54 = vpop.permute.xlu0 %353  ;;  %902 = vmatprep.mubr.f32.mxu0 %v8058_v59 }
 0x186   :  { %vm392_vm8 = vcmp.eq.s32.totalorder %v354_v54, 1  ;;  %vm592_vm9 = vcmp.eq.s32.totalorder %v554_v53, 1 }
 0x187   :  { %v432_v56 = vsel %vm392_vm8, %v8388_v26, %v8393_v29 }
 0x188   :  { %903 = vmatmul.mubr.f32.gmra.mrb[54].mxu0 %v627_v55  ;;  %v628_v60 = vsel %vm592_vm9, %v8398_v0, %v432_v56  ;;  %v6301_v56 = vpack.c.bf16 %v1083_v47, %v1079_v46  ;;  %v1111_v47 = vld [vmem:[#allocation7 + $0x190] sm:$0xff] }
 0x189   :  { %v557_v57 = vpop.permute.xlu1 %556  ;;  %v357_v58 = vpop.permute.xlu0 %356  ;;  %908 = vmatprep.mubr.f32.mxu0 %v8058_v59 }
 0x18a   :  { %vm393_vm10 = vcmp.eq.s32.totalorder %v357_v58, 1  ;;  %vm593_vm11 = vcmp.eq.s32.totalorder %v557_v57, 1 }
 0x18b   :  { %v433_v61 = vsel %vm393_vm10, %v8388_v26, %v8393_v29 }
 0x18c   :  { %909 = vmatmul.mubr.f32.gmra.mrb[56].mxu0 %v628_v60  ;;  %v629_v1 = vsel %vm593_vm11, %v8398_v0, %v433_v61  ;;  %v6303_v60 = vpack.c.bf16 %v1092_v51, %v1088_v50  ;;  %v1087_v61 = vld [vmem:[#allocation7 + $0xd0] sm:$0xff]  ;;  %v1120_v51 = vld [vmem:[#allocation7 + $0x1d8] sm:$0xff] }
 0x18d   :  { %v560_v62 = vpop.permute.xlu1 %559  ;;  %v360_v63 = vpop.permute.xlu0 %359  ;;  %914 = vmatprep.mubr.f32.mxu0 %v8058_v59 }
 0x18e   :  { %vm394_vm12 = vcmp.eq.s32.totalorder %v360_v63, 1  ;;  %vm594_vm13 = vcmp.eq.s32.totalorder %v560_v62, 1  ;;  %v1091_v62 = vld [vmem:[#allocation7 + $0xf0] sm:$0xff] }
 0x18f   :  { %v434_v2 = vsel %vm394_vm12, %v8388_v26, %v8393_v29  ;;  %v6305_v8 = vpack.c.bf16 %v1091_v62, %v1087_v61 }
 0x190   :  { %915 = vmatmul.mubr.f32.gmra.mrb[58].mxu0 %v629_v1  ;;  %v630_v5 = vsel %vm594_vm13, %v8398_v0, %v434_v2  ;;  %v1096_v2 = vld [vmem:[#allocation7 + $0x118] sm:$0xff] }
 0x191   :  { %v563_v3 = vpop.permute.xlu1 %562  ;;  %v363_v4 = vpop.permute.xlu0 %362  ;;  %920 = vmatprep.mubr.f32.mxu0 %v8058_v59 }
 0x192   :  { %vm395_vm14 = vcmp.eq.s32.totalorder %v363_v4, 1  ;;  %vm595_vm15 = vcmp.eq.s32.totalorder %v563_v3, 1  ;;  %v1100_v3 = vld [vmem:[#allocation7 + $0x138] sm:$0xff] }
 0x193   :  { %v435_v6 = vsel %vm395_vm14, %v8388_v26, %v8393_v29  ;;  %v8539_v26 = vrot.slane %v664_v11, %v8533_v12 }
 0x194   :  { %921 = vmatmul.mubr.f32.gmra.mrb[60].mxu0 %v630_v5  ;;  %v631_v7 = vsel %vm595_vm15, %v8398_v0, %v435_v6 }
 0x195   :  { %926 = vmatprep.mubr.f32.mxu0 %v8058_v59 }
 0x198   :  { %927 = vmatmul.mubr.f32.gmra.mrb[62].mxu0 %v631_v7 }
 0x1ef   :  { %v742_v59 = vpop.f32.mrb[0].mxu0 }
 0x1f0   :  { %v743_v29 = vadd.f32 %v742_v59, %v8536_v13  ;;  %v744_v0 = vpop.f32.mrb[1].mxu0 }
 0x1f1   :  { %v745_v14 = vadd.f32 %v744_v0, %v8539_v26  ;;  %v1095_v0 = vld [vmem:[#allocation7 + $0x110] sm:$0xff] }
 0x1f2   :  { %v933_v15 = vmul.f32 0.2, %v743_v29 }
 0x1f3   :  { %v748_v18 = vpop.f32.mrb[2].mxu0  ;;  %v934_v19 = vmul.f32 0.2, %v745_v14 }
 0x1f4   :  { %v749_v22 = vadd.f32 %v748_v18, %v8536_v13  ;;  %v750_v23 = vpop.f32.mrb[3].mxu0  ;;  %v8547_v28 = vmax.f32 %v743_v29, %v933_v15  ;;  %v6307_v29 = vpack.c.bf16 %v1100_v3, %v1096_v2  ;;  %v1108_v18 = vld [vmem:[#allocation7 + $0x178] sm:$0xff]  ;;  %v1123_v2 = vld [vmem:[#allocation7 + $0x1f0] sm:$0xff] }
 0x1f5   :  { %v751_v24 = vadd.f32 %v750_v23, %v8539_v26  ;;  %v8545_v25 = vmax.f32 %v745_v14, %v934_v19  ;;  %v1099_v14 = vld [vmem:[#allocation7 + $0x130] sm:$0xff] }
 0x1f6   :  { %v935_v30 = vmul.f32 0.2, %v749_v22  ;;  %v6309_v23 = vpack.c.bf16 %v1099_v14, %v1095_v0 }
 0x1f7   :  { %v754_v34 = vpop.f32.mrb[4].mxu0  ;;  %1275 = vmatprep.mubr.f32.mxu0 %v8545_v25  ;;  %v936_v35 = vmul.f32 0.2, %v751_v24 }
 0x1f8   :  { %v755_v38 = vadd.f32 %v754_v34, %v8536_v13  ;;  %v756_v39 = vpop.f32.mrb[5].mxu0  ;;  %1276 = vmatmul.mubr.f32.vlgmr.msra.gmra.mrb[64].mxu0 %v8547_v28  ;;  %v8555_v43 = vmax.f32 %v749_v22, %v935_v30  ;;  %v6311_v30 = vpack.c.bf16 %v1108_v18, %v1104_v17  ;;  %v1990_v17 = vld [vmem:[#allocation10 + $0x48] sm:$0xff] }
 0x1f9   :  { %v757_v40 = vadd.f32 %v756_v39, %v8539_v26  ;;  %6294 = vmatpush1.bf16.msra.mxu0 %v6293_v27  ;;  %v8553_v41 = vmax.f32 %v751_v24, %v936_v35  ;;  %v1112_v35 = vld [vmem:[#allocation7 + $0x198] sm:$0xff] }
 0x1fa   :  { %6296 = vmatprep.subr.bf16.mxu0 %v6295_v31  ;;  %v937_v44 = vmul.f32 0.2, %v755_v38  ;;  %v1103_v31 = vld [vmem:[#allocation7 + $0x150] sm:$0xff]  ;;  %v6315_v46 = vpack.c.bf16 %v1116_v36, %v1112_v35 }
 0x1fb   :  { %v760_v48 = vpop.f32.mrb[6].mxu0  ;;  %1281 = vmatprep.mubr.f32.mxu0 %v8553_v41  ;;  %v938_v49 = vmul.f32 0.2, %v757_v40 }
 0x1fc   :  { %v761_v52 = vadd.f32 %v760_v48, %v8536_v13  ;;  %v762_v53 = vpop.f32.mrb[7].mxu0  ;;  %1282 = vmatmul.mubr.f32.gmra.mrb[66].mxu0 %v8555_v43  ;;  %v8563_v57 = vmax.f32 %v755_v38, %v937_v44  ;;  %v1115_v48 = vld [vmem:[#allocation7 + $0x1b0] sm:$0xff] }
 0x1fd   :  { %v763_v54 = vadd.f32 %v762_v53, %v8539_v26  ;;  %v8561_v55 = vmax.f32 %v757_v40, %v938_v49  ;;  %6298 = vmatpush1.bf16.msra.mxu0 %v6297_v42  ;;  %v6313_v42 = vpack.c.bf16 %v1107_v32, %v1103_v31 }
 0x1fe   :  { %v939_v58 = vmul.f32 0.2, %v761_v52  ;;  %6300 = vmatprep.subr.bf16.mxu0 %v6299_v45 }
 0x1ff   :  { %v766_v63 = vpop.f32.mrb[8].mxu0  ;;  %1287 = vmatprep.mubr.f32.mxu0 %v8561_v55  ;;  %v940_v1 = vmul.f32 0.2, %v763_v54 }
 0x200   :  { %v767_v4 = vadd.f32 %v766_v63, %v8536_v13  ;;  %v768_v5 = vpop.f32.mrb[9].mxu0  ;;  %1288 = vmatmul.mubr.f32.gmra.mrb[68].mxu0 %v8563_v57  ;;  %v8571_v11 = vmax.f32 %v761_v52, %v939_v58  ;;  %v1124_v52 = vld [vmem:[#allocation7 + $0x1f8] sm:$0xff] }
 0x201   :  { %v769_v6 = vadd.f32 %v768_v5, %v8539_v26  ;;  %v8569_v7 = vmax.f32 %v763_v54, %v940_v1  ;;  %6302 = vmatpush1.bf16.msra.mxu0 %v6301_v56  ;;  %v6319_v63 = vpack.c.bf16 %v1124_v52, %v1120_v51  ;;  %v1119_v1 = vld [vmem:[#allocation7 + $0x1d0] sm:$0xff]  ;;  %v1128_v5 = vld [vmem:[#allocation7 + $0x218] sm:$0xff] }
 0x202   :  { %v941_v59 = vmul.f32 0.2, %v767_v4  ;;  %6304 = vmatprep.subr.bf16.mxu0 %v6303_v60  ;;  %v6317_v60 = vpack.c.bf16 %v1115_v48, %v1111_v47  ;;  %v6321_v14 = vpack.c.bf16 %v1123_v2, %v1119_v1  ;;  %v2006_v47 = vld [vmem:[#allocation10 + $0xc8] sm:$0xff] }
 0x203   :  { %v772_v15 = vpop.f32.mrb[10].mxu0  ;;  %1293 = vmatprep.mubr.f32.mxu0 %v8569_v7  ;;  %v942_v16 = vmul.f32 0.2, %v769_v6  ;;  %v1139_v51 = vld [vmem:[#allocation7 + $0x270] sm:$0xff] }
 0x204   :  { %v773_v19 = vadd.f32 %v772_v15, %v8536_v13  ;;  %v774_v20 = vpop.f32.mrb[11].mxu0  ;;  %1294 = vmatmul.mubr.f32.gmra.mrb[70].mxu0 %v8571_v11  ;;  %v8579_v24 = vmax.f32 %v767_v4, %v941_v59  ;;  %v1127_v15 = vld [vmem:[#allocation7 + $0x210] sm:$0xff] }
 0x205   :  { %v775_v21 = vadd.f32 %v774_v20, %v8539_v26  ;;  %v8577_v22 = vmax.f32 %v769_v6, %v942_v16  ;;  %6306 = vmatpush1.bf16.msra.mxu0 %v6305_v8  ;;  %v1132_v6 = vld [vmem:[#allocation7 + $0x238] sm:$0xff]  ;;  %v1982_v16 = vld [vmem:[#allocation10 + $0x8] sm:$0xff] }
 0x206   :  { %v943_v27 = vmul.f32 0.2, %v773_v19  ;;  %6308 = vmatprep.subr.bf16.mxu0 %v6307_v29  ;;  %v6323_v20 = vpack.c.bf16 %v1132_v6, %v1128_v5 }
 0x207   :  { %v778_v33 = vpop.f32.mrb[12].mxu0  ;;  %1299 = vmatprep.mubr.f32.mxu0 %v8577_v22  ;;  %v944_v34 = vmul.f32 0.2, %v775_v21 }
 0x208   :  { %v779_v37 = vadd.f32 %v778_v33, %v8536_v13  ;;  %v780_v38 = vpop.f32.mrb[13].mxu0  ;;  %1300 = vmatmul.mubr.f32.gmra.mrb[72].mxu0 %v8579_v24  ;;  %v8587_v44 = vmax.f32 %v773_v19, %v943_v27  ;;  %v1981_v27 = vld [vmem:[#allocation10] sm:$0xff]  ;;  %v1136_v33 = vld [vmem:[#allocation7 + $0x258] sm:$0xff] }
 0x209   :  { %v781_v39 = vadd.f32 %v780_v38, %v8539_v26  ;;  %v8585_v40 = vmax.f32 %v775_v21, %v944_v34  ;;  %6310 = vmatpush1.bf16.msra.mxu0 %v6309_v23  ;;  %v1131_v21 = vld [vmem:[#allocation7 + $0x230] sm:$0xff]  ;;  %v6355_v23 = vpack.c.bf16 %v1990_v17, %v1982_v16  ;;  %v1140_v34 = vld [vmem:[#allocation7 + $0x278] sm:$0xff] }
 0x20a   :  { %v945_v45 = vmul.f32 0.2, %v779_v37  ;;  %6312 = vmatprep.subr.bf16.mxu0 %v6311_v30  ;;  %v1989_v30 = vld [vmem:[#allocation10 + $0x40] sm:$0xff]  ;;  %v1147_v17 = vld [vmem:[#allocation7 + $0x2b0] sm:$0xff] }
 0x20b   :  { %v784_v49 = vpop.f32.mrb[14].mxu0  ;;  %1305 = vmatprep.mubr.f32.mxu0 %v8585_v40  ;;  %v946_v50 = vmul.f32 0.2, %v781_v39  ;;  %v6357_v35 = vpack.c.bf16 %v1989_v30, %v1981_v27  ;;  %6356 = vmatprep.subr.bf16.mxu1 %v6355_v23  ;;  %v1152_v30 = vld [vmem:[#allocation7 + $0x2d8] sm:$0xff] }
 0x20c   :  { %v785_v53 = vadd.f32 %v784_v49, %v8536_v13  ;;  %v786_v54 = vpop.f32.mrb[15].mxu0  ;;  %1306 = vmatmul.mubr.f32.gmra.mrb[74].mxu0 %v8587_v44  ;;  %v8595_v61 = vmax.f32 %v779_v37, %v945_v45  ;;  %v1135_v45 = vld [vmem:[#allocation7 + $0x250] sm:$0xff] }
 0x20d   :  { %v787_v56 = vadd.f32 %v786_v54, %v8539_v26  ;;  %v8593_v58 = vmax.f32 %v781_v39, %v946_v50  ;;  %6314 = vmatpush1.bf16.msra.mxu0 %v6313_v42  ;;  %v6325_v42 = vpack.c.bf16 %v1131_v21, %v1127_v15  ;;  %6358 = vmatpush1.bf16.msra.mxu1 %v6357_v35  ;;  %v2005_v54 = vld [vmem:[#allocation10 + $0xc0] sm:$0xff] }
 0x20e   :  { %v947_v62 = vmul.f32 0.2, %v785_v53  ;;  %6316 = vmatprep.subr.bf16.mxu0 %v6315_v46  ;;  %v1998_v46 = vld [vmem:[#allocation10 + $0x88] sm:$0xff]  ;;  %v6327_v50 = vpack.c.bf16 %v1140_v34, %v1136_v33  ;;  %v6329_v6 = vpack.c.bf16 %v1139_v51, %v1135_v45  ;;  %v2021_v21 = vld [vmem:[#allocation10 + $0x140] sm:$0xff] }
 0x20f   :  { %v790_v3 = vpop.f32.mrb[16].mxu0  ;;  %1311 = vmatprep.mubr.f32.mxu0 %v8593_v58  ;;  %v948_v4 = vmul.f32 0.2, %v787_v56  ;;  %v6359_v52 = vpack.c.bf16 %v2006_v47, %v1998_v46  ;;  %v2038_v45 = vld [vmem:[#allocation10 + $0x1c8] sm:$0xff] }
 0x210   :  { %v791_v8 = vadd.f32 %v790_v3, %v8536_v13  ;;  %v792_v59 = vpop.f32.mrb[17].mxu0  ;;  %1312 = vmatmul.mubr.f32.gmra.mrb[76].mxu0 %v8595_v61  ;;  %v8603_v18 = vmax.f32 %v785_v53, %v947_v62  ;;  %v1997_v53 = vld [vmem:[#allocation10 + $0x80] sm:$0xff]  ;;  %v1144_v62 = vld [vmem:[#allocation7 + $0x298] sm:$0xff] }
 0x211   :  { %v793_v29 = vadd.f32 %v792_v59, %v8539_v26  ;;  %v8601_v0 = vmax.f32 %v787_v56, %v948_v4  ;;  %6318 = vmatpush1.bf16.msra.mxu0 %v6317_v60  ;;  %v6361_v1 = vpack.c.bf16 %v2005_v54, %v1997_v53  ;;  %6360 = vmatprep.subr.bf16.mxu1 %v6359_v52  ;;  %v2014_v59 = vld [vmem:[#allocation10 + $0x108] sm:$0xff]  ;;  %v2029_v52 = vld [vmem:[#allocation10 + $0x180] sm:$0xff] }
 0x212   :  { %v949_v19 = vmul.f32 0.2, %v791_v8  ;;  %6320 = vmatprep.subr.bf16.mxu0 %v6319_v63  ;;  %v1148_v63 = vld [vmem:[#allocation7 + $0x2b8] sm:$0xff]  ;;  %v2037_v53 = vld [vmem:[#allocation10 + $0x1c0] sm:$0xff] }
 0x213   :  { %v796_v31 = vpop.f32.mrb[18].mxu0  ;;  %1317 = vmatprep.mubr.f32.mxu0 %v8601_v0  ;;  %v950_v32 = vmul.f32 0.2, %v793_v29  ;;  %6362 = vmatpush1.bf16.msra.mxu1 %v6361_v1  ;;  %v6331_v16 = vpack.c.bf16 %v1148_v63, %v1144_v62  ;;  %v1164_v62 = vld [vmem:[#allocation7 + $0x338] sm:$0xff]  ;;  %v6369_v63 = vpack.c.bf16 %v2037_v53, %v2029_v52  ;;  %v1171_v53 = vld [vmem:[#allocation7 + $0x370] sm:$0xff] }
 0x214   :  { %v797_v36 = vadd.f32 %v796_v31, %v8536_v13  ;;  %v798_v37 = vpop.f32.mrb[19].mxu0  ;;  %1318 = vmatmul.mubr.f32.gmra.mrb[78].mxu0 %v8603_v18  ;;  %v8611_v48 = vmax.f32 %v791_v8, %v949_v19  ;;  %v1143_v8 = vld [vmem:[#allocation7 + $0x290] sm:$0xff]  ;;  %v1156_v31 = vld [vmem:[#allocation7 + $0x2f8] sm:$0xff] }
 0x215   :  { %v799_v38 = vadd.f32 %v798_v37, %v8539_v26  ;;  %v8609_v39 = vmax.f32 %v793_v29, %v950_v32  ;;  %6322 = vmatpush1.bf16.msra.mxu0 %v6321_v14  ;;  %v2022_v29 = vld [vmem:[#allocation10 + $0x148] sm:$0xff]  ;;  %v6333_v37 = vpack.c.bf16 %v1147_v17, %v1143_v8 }
 0x216   :  { %v951_v49 = vmul.f32 0.2, %v797_v36  ;;  %6324 = vmatprep.subr.bf16.mxu0 %v6323_v20  ;;  %v6363_v19 = vpack.c.bf16 %v2022_v29, %v2014_v59  ;;  %v2013_v20 = vld [vmem:[#allocation10 + $0x100] sm:$0xff]  ;;  %v1159_v8 = vld [vmem:[#allocation7 + $0x310] sm:$0xff] }
 0x217   :  { %v802_v56 = vpop.f32.mrb[20].mxu0  ;;  %1323 = vmatprep.mubr.f32.mxu0 %v8609_v39  ;;  %v952_v60 = vmul.f32 0.2, %v799_v38  ;;  %v6365_v32 = vpack.c.bf16 %v2021_v21, %v2013_v20  ;;  %v2046_v59 = vld [vmem:[#allocation10 + $0x208] sm:$0xff]  ;;  %v2045_v21 = vld [vmem:[#allocation10 + $0x200] sm:$0xff] }
 0x218   :  { %v803_v2 = vadd.f32 %v802_v56, %v8536_v13  ;;  %v804_v3 = vpop.f32.mrb[21].mxu0  ;;  %1324 = vmatmul.mubr.f32.gmra.mrb[80].mxu0 %v8611_v48  ;;  %v8619_v14 = vmax.f32 %v797_v36, %v951_v49  ;;  %6364 = vmatprep.subr.bf16.mxu1 %v6363_v19  ;;  %v6335_v49 = vpack.c.bf16 %v1156_v31, %v1152_v30  ;;  %v2054_v29 = vld [vmem:[#allocation10 + $0x248] sm:$0xff]  ;;  %v1168_v31 = vld [vmem:[#allocation7 + $0x358] sm:$0xff] }
 0x219   :  { %v805_v4 = vadd.f32 %v804_v3, %v8539_v26  ;;  %v8617_v5 = vmax.f32 %v799_v38, %v952_v60  ;;  %6326 = vmatpush1.bf16.msra.mxu0 %v6325_v42  ;;  %v1151_v38 = vld [vmem:[#allocation7 + $0x2d0] sm:$0xff]  ;;  %6366 = vmatpush1.bf16.msra.mxu1 %v6365_v32  ;;  %v1160_v60 = vld [vmem:[#allocation7 + $0x318] sm:$0xff]  ;;  %v6371_v20 = vpack.c.bf16 %v2054_v29, %v2046_v59 }
 0x21a   :  { %v953_v15 = vmul.f32 0.2, %v803_v2  ;;  %6328 = vmatprep.subr.bf16.mxu0 %v6327_v50  ;;  %v2030_v42 = vld [vmem:[#allocation10 + $0x188] sm:$0xff]  ;;  %v6339_v17 = vpack.c.bf16 %v1164_v62, %v1160_v60  ;;  %v1172_v32 = vld [vmem:[#allocation7 + $0x378] sm:$0xff]  ;;  %v2069_v60 = vld [vmem:[#allocation10 + $0x2c0] sm:$0xff] }
 0x21b   :  { %v808_v23 = vpop.f32.mrb[22].mxu0  ;;  %1329 = vmatprep.mubr.f32.mxu0 %v8617_v5  ;;  %v954_v27 = vmul.f32 0.2, %v805_v4  ;;  %v1155_v50 = vld [vmem:[#allocation7 + $0x2f0] sm:$0xff]  ;;  %v6367_v51 = vpack.c.bf16 %v2038_v45, %v2030_v42  ;;  %v6343_v52 = vpack.c.bf16 %v1172_v32, %v1168_v31  ;;  %v2077_v32 = vld [vmem:[#allocation10 + $0x300] sm:$0xff] }
 0x21c   :  { %v809_v33 = vadd.f32 %v808_v23, %v8536_v13  ;;  %v810_v34 = vpop.f32.mrb[23].mxu0  ;;  %1330 = vmatmul.mubr.f32.gmra.mrb[82].mxu0 %v8619_v14  ;;  %v8627_v46 = vmax.f32 %v803_v2, %v953_v15  ;;  %v1163_v19 = vld [vmem:[#allocation7 + $0x330] sm:$0xff]  ;;  %v2053_v23 = vld [vmem:[#allocation10 + $0x240] sm:$0xff] }
 0x21d   :  { %v811_v35 = vadd.f32 %v810_v34, %v8539_v26  ;;  %v8625_v36 = vmax.f32 %v805_v4, %v954_v27  ;;  %6330 = vmatpush1.bf16.msra.mxu0 %v6329_v6  ;;  %6368 = vmatprep.subr.bf16.mxu1 %v6367_v51  ;;  %v6337_v6 = vpack.c.bf16 %v1155_v50, %v1151_v38  ;;  %v1167_v45 = vld [vmem:[#allocation7 + $0x350] sm:$0xff] }
 0x21e   :  { %v955_v47 = vmul.f32 0.2, %v809_v33  ;;  %6332 = vmatprep.subr.bf16.mxu0 %v6331_v16  ;;  %6370 = vmatpush1.bf16.msra.mxu1 %v6369_v63  ;;  %v6373_v34 = vpack.c.bf16 %v2053_v23, %v2045_v21  ;;  %v6341_v42 = vpack.c.bf16 %v1163_v19, %v1159_v8  ;;  %v2078_v19 = vld [vmem:[#allocation10 + $0x308] sm:$0xff] }
 0x21f   :  { %v814_v54 = vpop.f32.mrb[24].mxu0  ;;  %1335 = vmatprep.mubr.f32.mxu0 %v8625_v36  ;;  %v956_v56 = vmul.f32 0.2, %v811_v35  ;;  %6372 = vmatprep.subr.bf16.mxu1 %v6371_v20  ;;  %v2086_v20 = vld [vmem:[#allocation10 + $0x348] sm:$0xff] }
 0x220   :  { %v815_v1 = vadd.f32 %v814_v54, %v8536_v13  ;;  %v816_v3 = vpop.f32.mrb[25].mxu0  ;;  %1336 = vmatmul.mubr.f32.gmra.mrb[84].mxu0 %v8627_v46  ;;  %v8635_v15 = vmax.f32 %v809_v33, %v955_v47  ;;  %v2062_v47 = vld [vmem:[#allocation10 + $0x288] sm:$0xff]  ;;  %v6379_v31 = vpack.c.bf16 %v2086_v20, %v2078_v19  ;;  %v2101_v19 = vld [vmem:[#allocation10 + $0x3c0] sm:$0xff] }
 0x221   :  { %v817_v2 = vadd.f32 %v816_v3, %v8539_v26  ;;  %v8633_v4 = vmax.f32 %v811_v35, %v956_v56  ;;  %6334 = vmatpush1.bf16.msra.mxu0 %v6333_v37  ;;  %v2061_v56 = vld [vmem:[#allocation10 + $0x280] sm:$0xff]  ;;  %v1176_v3 = vld [vmem:[#allocation7 + $0x398] sm:$0xff] }
 0x222   :  { %v957_v16 = vmul.f32 0.2, %v815_v1  ;;  %6336 = vmatprep.subr.bf16.mxu0 %v6335_v49  ;;  %6374 = vmatpush1.bf16.msra.mxu1 %v6373_v34  ;;  %v2070_v49 = vld [vmem:[#allocation10 + $0x2c8] sm:$0xff]  ;;  %v2085_v34 = vld [vmem:[#allocation10 + $0x340] sm:$0xff] }
 0x223   :  { %v820_v27 = vpop.f32.mrb[26].mxu0  ;;  %1341 = vmatprep.mubr.f32.mxu0 %v8633_v4  ;;  %v958_v30 = vmul.f32 0.2, %v817_v2  ;;  %v6375_v54 = vpack.c.bf16 %v2070_v49, %v2062_v47  ;;  %v1184_v47 = vld [vmem:[#allocation7 + $0x3d8] sm:$0xff] }
 0x224   :  { %v821_v35 = vadd.f32 %v820_v27, %v8536_v13  ;;  %v822_v37 = vpop.f32.mrb[27].mxu0  ;;  %1342 = vmatmul.mubr.f32.gmra.mrb[86].mxu0 %v8635_v15  ;;  %v8643_v50 = vmax.f32 %v815_v1, %v957_v16  ;;  %v6345_v16 = vpack.c.bf16 %v1171_v53, %v1167_v45  ;;  %v6381_v45 = vpack.c.bf16 %v2085_v34, %v2077_v32  ;;  %v2118_v32 = vld [vmem:[#allocation10 + $0x448] sm:$0xff] }
 0x225   :  { %v823_v33 = vadd.f32 %v822_v37, %v8539_v26  ;;  %v8641_v38 = vmax.f32 %v817_v2, %v958_v30  ;;  %6338 = vmatpush1.bf16.msra.mxu0 %v6337_v6  ;;  %v1180_v2 = vld [vmem:[#allocation7 + $0x3b8] sm:$0xff]  ;;  %v6377_v6 = vpack.c.bf16 %v2069_v60, %v2061_v56  ;;  %6376 = vmatprep.subr.bf16.mxu1 %v6375_v54  ;;  %v1179_v30 = vld [vmem:[#allocation7 + $0x3b0] sm:$0xff] }
 0x226   :  { %v959_v51 = vmul.f32 0.2, %v821_v35  ;;  %6340 = vmatprep.subr.bf16.mxu0 %v6339_v17  ;;  %v1175_v17 = vld [vmem:[#allocation7 + $0x390] sm:$0xff]  ;;  %v6347_v27 = vpack.c.bf16 %v1180_v2, %v1176_v3 }
 0x227   :  { %v826_v62 = vpop.f32.mrb[28].mxu0  ;;  %1347 = vmatprep.mubr.f32.mxu0 %v8641_v38  ;;  %v960_v63 = vmul.f32 0.2, %v823_v33  ;;  %6378 = vmatpush1.bf16.msra.mxu1 %v6377_v6  ;;  %v1183_v54 = vld [vmem:[#allocation7 + $0x3d0] sm:$0xff] }
 0x228   :  { %v827_v8 = vadd.f32 %v826_v62, %v8536_v13  ;;  %v828_v59 = vpop.f32.mrb[29].mxu0  ;;  %1348 = vmatmul.mubr.f32.gmra.mrb[88].mxu0 %v8643_v50  ;;  %v8651_v21 = vmax.f32 %v821_v35, %v959_v51  ;;  %6380 = vmatprep.subr.bf16.mxu1 %v6379_v31  ;;  %v2094_v56 = vld [vmem:[#allocation10 + $0x388] sm:$0xff] }
 0x229   :  { %v829_v1 = vadd.f32 %v828_v59, %v8539_v26  ;;  %v8649_v29 = vmax.f32 %v823_v33, %v960_v63  ;;  %6342 = vmatpush1.bf16.msra.mxu0 %v6341_v42  ;;  %v1188_v42 = vld [vmem:[#allocation7 + $0x3f8] sm:$0xff]  ;;  %v2102_v60 = vld [vmem:[#allocation10 + $0x3c8] sm:$0xff]  ;;  %v2093_v59 = vld [vmem:[#allocation10 + $0x380] sm:$0xff] }
 0x22a   :  { %v961_v23 = vmul.f32 0.2, %v827_v8  ;;  %6344 = vmatprep.subr.bf16.mxu0 %v6343_v52  ;;  %v6349_v52 = vpack.c.bf16 %v1179_v30, %v1175_v17  ;;  %v6351_v3 = vpack.c.bf16 %v1188_v42, %v1184_v47  ;;  %v1187_v2 = vld [vmem:[#allocation7 + $0x3f0] sm:$0xff]  ;;  %v6383_v6 = vpack.c.bf16 %v2102_v60, %v2094_v56  ;;  %v2109_v47 = vld [vmem:[#allocation10 + $0x400] sm:$0xff] }
 0x22b   :  { %v832_v37 = vpop.f32.mrb[30].mxu0  ;;  %1353 = vmatprep.mubr.f32.mxu0 %v8649_v29  ;;  %v962_v33 = vmul.f32 0.2, %v829_v1  ;;  %6382 = vmatpush1.bf16.msra.mxu1 %v6381_v45  ;;  %v6385_v31 = vpack.c.bf16 %v2101_v19, %v2093_v59  ;;  %v2110_v30 = vld [vmem:[#allocation10 + $0x408] sm:$0xff]  ;;  %v2117_v42 = vld [vmem:[#allocation10 + $0x440] sm:$0xff] }
 0x22c   :  { %v833_v49 = vadd.f32 %v832_v37, %v8536_v13  ;;  %v834_v53 = vpop.f32.mrb[31].mxu0  ;;  %1354 = vmatmul.mubr.f32.gmra.mrb[90].mxu0 %v8651_v21  ;;  %v8659_v62 = vmax.f32 %v827_v8, %v961_v23  ;;  %6384 = vmatprep.subr.bf16.mxu1 %v6383_v6  ;;  %v6389_v56 = vpack.c.bf16 %v2117_v42, %v2109_v47  ;;  %v2125_v19 = vld [vmem:[#allocation10 + $0x480] sm:$0xff]  ;;  %v2150_v47 = vld [vmem:[#allocation10 + $0x548] sm:$0xff] }
 0x22d   :  { %v835_v35 = vadd.f32 %v834_v53, %v8539_v26  ;;  %v8657_v51 = vmax.f32 %v829_v1, %v962_v33  ;;  %6346 = vmatpush1.bf16.msra.mxu0 %v6345_v16  ;;  %v6387_v33 = vpack.c.bf16 %v2118_v32, %v2110_v30 }
 0x22e   :  { %v963_v63 = vmul.f32 0.2, %v833_v49  ;;  %6348 = vmatprep.subr.bf16.mxu0 %v6347_v27  ;;  %v6353_v27 = vpack.c.bf16 %v1187_v2, %v1183_v54  ;;  %v2126_v54 = vld [vmem:[#allocation10 + $0x488] sm:$0xff] }
 0x22f   :  { %v838_v20 = vpop.f32.mrb[32].mxu0  ;;  %1359 = vmatprep.mubr.f32.mxu0 %v8657_v51  ;;  %v964_v1 = vmul.f32 0.2, %v835_v35  ;;  %6386 = vmatpush1.bf16.msra.mxu1 %v6385_v31 }
 0x230   :  { %v839_v16 = vadd.f32 %v838_v20, %v8536_v13  ;;  %v840_v17 = vpop.f32.mrb[33].mxu0  ;;  %1360 = vmatmul.mubr.f32.gmra.mrb[92].mxu0 %v8659_v62  ;;  %v8667_v34 = vmax.f32 %v833_v49, %v963_v63  ;;  %6388 = vmatprep.subr.bf16.mxu1 %v6387_v33  ;;  %v2134_v63 = vld [vmem:[#allocation10 + $0x4c8] sm:$0xff]  ;;  %v2133_v20 = vld [vmem:[#allocation10 + $0x4c0] sm:$0xff] }
 0x231   :  { %v841_v8 = vadd.f32 %v840_v17, %v8539_v26  ;;  %v8665_v23 = vmax.f32 %v835_v35, %v964_v1  ;;  %6350 = vmatpush1.bf16.msra.mxu0 %v6349_v52  ;;  %v6391_v59 = vpack.c.bf16 %v2134_v63, %v2126_v54  ;;  %v1992_v1 = vld [vmem:[#allocation10 + $0x58] sm:$0xff]  ;;  %v6393_v30 = vpack.c.bf16 %v2133_v20, %v2125_v19  ;;  %v2142_v33 = vld [vmem:[#allocation10 + $0x508] sm:$0xff] }
 0x232   :  { %v965_v37 = vmul.f32 0.2, %v839_v16  ;;  %6352 = vmatprep.subr.bf16.mxu0 %v6351_v3  ;;  %v1984_v3 = vld [vmem:[#allocation10 + $0x18] sm:$0xff] }
 0x233   :  { %v844_v45 = vpop.f32.mrb[34].mxu0  ;;  %1365 = vmatprep.mubr.f32.mxu0 %v8665_v23  ;;  %v966_v53 = vmul.f32 0.2, %v841_v8  ;;  %6390 = vmatpush1.bf16.msra.mxu1 %v6389_v56  ;;  %v6483_v32 = vpack.c.bf16 %v1992_v1, %v1984_v3  ;;  %v2141_v56 = vld [vmem:[#allocation10 + $0x500] sm:$0xff] }
 0x234   :  { %v845_v35 = vadd.f32 %v844_v45, %v8536_v13  ;;  %v846_v60 = vpop.f32.mrb[35].mxu0  ;;  %1366 = vmatmul.mubr.f32.gmra.mrb[94].mxu0 %v8667_v34  ;;  %v8675_v2 = vmax.f32 %v839_v16, %v965_v37  ;;  %6392 = vmatprep.subr.bf16.mxu1 %v6391_v59 }
 0x235   :  { %v847_v52 = vadd.f32 %v846_v60, %v8539_v26  ;;  %v8673_v49 = vmax.f32 %v841_v8, %v966_v53  ;;  %6354 = vmatpush1.bf16.msra.mxu0 %v6353_v27  ;;  %v6395_v53 = vpack.c.bf16 %v2150_v47, %v2142_v33  ;;  %v2149_v60 = vld [vmem:[#allocation10 + $0x540] sm:$0xff] }
 0x236   :  { %v967_v6 = vmul.f32 0.2, %v845_v35  ;;  %6484 = vmatprep.subr.bf16.mxu0 %v6483_v32  ;;  %v6397_v3 = vpack.c.bf16 %v2149_v60, %v2141_v56  ;;  %v2165_v32 = vld [vmem:[#allocation10 + $0x5c0] sm:$0xff] }
 0x237   :  { %v850_v31 = vpop.f32.mrb[36].mxu0  ;;  %1371 = vmatprep.mubr.f32.mxu0 %v8673_v49  ;;  %v968_v17 = vmul.f32 0.2, %v847_v52  ;;  %6394 = vmatpush1.bf16.msra.mxu1 %v6393_v30  ;;  %v2157_v30 = vld [vmem:[#allocation10 + $0x580] sm:$0xff] }
 0x238   :  { %v851_v8 = vadd.f32 %v850_v31, %v8536_v13  ;;  %v852_v27 = vpop.f32.mrb[37].mxu0  ;;  %1372 = vmatmul.mubr.f32.gmra.mrb[96].mxu0 %v8675_v2  ;;  %v8683_v42 = vmax.f32 %v845_v35, %v967_v6  ;;  %6396 = vmatprep.subr.bf16.mxu1 %v6395_v53  ;;  %v2158_v35 = vld [vmem:[#allocation10 + $0x588] sm:$0xff]  ;;  %v6401_v47 = vpack.c.bf16 %v2165_v32, %v2157_v30 }
 0x239   :  { %v853_v16 = vadd.f32 %v852_v27, %v8539_v26  ;;  %v8681_v37 = vmax.f32 %v847_v52, %v968_v17  ;;  %v2166_v6 = vld [vmem:[#allocation10 + $0x5c8] sm:$0xff] }
 0x23a   :  { %v969_v45 = vmul.f32 0.2, %v851_v8  ;;  %v6399_v17 = vpack.c.bf16 %v2166_v6, %v2158_v35  ;;  %v2181_v35 = vld [vmem:[#allocation10 + $0x640] sm:$0xff] }
 0x23b   :  { %v856_v54 = vpop.f32.mrb[38].mxu0  ;;  %1377 = vmatprep.mubr.f32.mxu0 %v8681_v37  ;;  %v970_v63 = vmul.f32 0.2, %v853_v16  ;;  %6398 = vmatpush1.bf16.msra.mxu1 %v6397_v3 }
 0x23c   :  { %v857_v59 = vadd.f32 %v856_v54, %v8536_v13  ;;  %v858_v19 = vpop.f32.mrb[39].mxu0  ;;  %1378 = vmatmul.mubr.f32.gmra.mrb[98].mxu0 %v8683_v42  ;;  %v8691_v1 = vmax.f32 %v851_v8, %v969_v45  ;;  %6400 = vmatprep.subr.bf16.mxu1 %v6399_v17  ;;  %v2174_v8 = vld [vmem:[#allocation10 + $0x608] sm:$0xff] }
 0x23d   :  { %v859_v52 = vadd.f32 %v858_v19, %v8539_v26  ;;  %v8689_v20 = vmax.f32 %v853_v16, %v970_v63  ;;  %v2182_v45 = vld [vmem:[#allocation10 + $0x648] sm:$0xff]  ;;  %v2173_v19 = vld [vmem:[#allocation10 + $0x600] sm:$0xff] }
 0x23e   :  { %v971_v31 = vmul.f32 0.2, %v857_v59  ;;  %v6403_v3 = vpack.c.bf16 %v2182_v45, %v2174_v8  ;;  %v6405_v32 = vpack.c.bf16 %v2181_v35, %v2173_v19  ;;  %v2189_v45 = vld [vmem:[#allocation10 + $0x680] sm:$0xff] }
 0x23f   :  { %v862_v27 = vpop.f32.mrb[40].mxu0  ;;  %1383 = vmatprep.mubr.f32.mxu0 %v8689_v20  ;;  %v972_v33 = vmul.f32 0.2, %v859_v52  ;;  %6402 = vmatpush1.bf16.msra.mxu1 %v6401_v47 }
 0x240   :  { %v863_v53 = vadd.f32 %v862_v27, %v8536_v13  ;;  %v864_v56 = vpop.f32.mrb[41].mxu0  ;;  %1384 = vmatmul.mubr.f32.gmra.mrb[100].mxu0 %v8691_v1  ;;  %v8699_v54 = vmax.f32 %v857_v59, %v971_v31  ;;  %6404 = vmatprep.subr.bf16.mxu1 %v6403_v3  ;;  %v2190_v59 = vld [vmem:[#allocation10 + $0x688] sm:$0xff] }
 0x241   :  { %v865_v16 = vadd.f32 %v864_v56, %v8539_v26  ;;  %v8697_v60 = vmax.f32 %v859_v52, %v972_v33  ;;  %v2198_v31 = vld [vmem:[#allocation10 + $0x6c8] sm:$0xff] }
 0x242   :  { %v973_v63 = vmul.f32 0.2, %v863_v53  ;;  %v6407_v8 = vpack.c.bf16 %v2198_v31, %v2190_v59  ;;  %v2205_v31 = vld [vmem:[#allocation10 + $0x700] sm:$0xff] }
 0x243   :  { %v868_v6 = vpop.f32.mrb[42].mxu0  ;;  %1389 = vmatprep.mubr.f32.mxu0 %v8697_v60  ;;  %v974_v30 = vmul.f32 0.2, %v865_v16  ;;  %6406 = vmatpush1.bf16.msra.mxu1 %v6405_v32 }
 0x244   :  { %v869_v17 = vadd.f32 %v868_v6, %v8536_v13  ;;  %v870_v27 = vpop.f32.mrb[43].mxu0  ;;  %1390 = vmatmul.mubr.f32.gmra.mrb[102].mxu0 %v8699_v54  ;;  %v8707_v47 = vmax.f32 %v863_v53, %v973_v63  ;;  %v6409_v6 = vpack.c.bf16 %v2197_v9, %v2189_v45  ;;  %6408 = vmatprep.subr.bf16.mxu1 %v6407_v8  ;;  %v2206_v53 = vld [vmem:[#allocation10 + $0x708] sm:$0xff] }
 0x245   :  { %v871_v52 = vadd.f32 %v870_v27, %v8539_v26  ;;  %v8705_v33 = vmax.f32 %v865_v16, %v974_v30  ;;  %v2214_v63 = vld [vmem:[#allocation10 + $0x748] sm:$0xff] }
 0x246   :  { %11335 = vst [vmem:[#allocation26_spill] sm:$0xff] %v8707_v47  ;;  %v975_v56 = vmul.f32 0.2, %v869_v17  ;;  %v6411_v59 = vpack.c.bf16 %v2214_v63, %v2206_v53  ;;  %v2221_v63 = vld [vmem:[#allocation10 + $0x780] sm:$0xff] }
 0x247   :  { %v874_v19 = vpop.f32.mrb[44].mxu0  ;;  %1395 = vmatprep.mubr.f32.mxu0 %v8705_v33  ;;  %v976_v35 = vmul.f32 0.2, %v871_v52  ;;  %6410 = vmatpush1.bf16.msra.mxu1 %v6409_v6 }
 0x248   :  { %v875_v3 = vadd.f32 %v874_v19, %v8536_v13  ;;  %v876_v12 = vpop.f32.mrb[45].mxu0  ;;  %1396 = vmatmul.mubr.f32.gmra.mrb[104].mxu0 %v8707_v47  ;;  %v8715_v32 = vmax.f32 %v869_v17, %v975_v56  ;;  %v6413_v19 = vpack.c.bf16 %v2213_v10, %v2205_v31  ;;  %6412 = vmatprep.subr.bf16.mxu1 %v6411_v59  ;;  %v2222_v17 = vld [vmem:[#allocation10 + $0x788] sm:$0xff] }
 0x249   :  { %v877_v16 = vadd.f32 %v876_v12, %v8539_v26  ;;  %v8713_v30 = vmax.f32 %v871_v52, %v976_v35  ;;  %v2230_v56 = vld [vmem:[#allocation10 + $0x7c8] sm:$0xff] }
 0x24a   :  { %11337 = vst [vmem:[#allocation28_spill] sm:$0xff] %v8715_v32  ;;  %v977_v27 = vmul.f32 0.2, %v875_v3  ;;  %v6415_v53 = vpack.c.bf16 %v2230_v56, %v2222_v17 }
 0x24b   :  { %11336 = vst [vmem:[#allocation27_spill] sm:$0xff] %v8713_v30  ;;  %v880_v9 = vpop.f32.mrb[46].mxu0  ;;  %1401 = vmatprep.mubr.f32.mxu0 %v8713_v30  ;;  %v978_v45 = vmul.f32 0.2, %v877_v16  ;;  %6414 = vmatpush1.bf16.msra.mxu1 %v6413_v19  ;;  %v2229_v30 = vld [vmem:[#allocation10 + $0x7c0] sm:$0xff] }
 0x24c   :  { %v881_v8 = vadd.f32 %v880_v9, %v8536_v13  ;;  %v882_v47 = vpop.f32.mrb[47].mxu0  ;;  %1402 = vmatmul.mubr.f32.gmra.mrb[106].mxu0 %v8715_v32  ;;  %v8723_v35 = vmax.f32 %v875_v3, %v977_v27  ;;  %v6417_v9 = vpack.c.bf16 %v2229_v30, %v2221_v63  ;;  %6416 = vmatprep.subr.bf16.mxu1 %v6415_v53 }
 0x24d   :  { %v883_v12 = vadd.f32 %v882_v47, %v8539_v26  ;;  %v8721_v52 = vmax.f32 %v877_v16, %v978_v45 }
 0x24e   :  { %v979_v6 = vmul.f32 0.2, %v881_v8 }
 0x24f   :  { %v886_v10 = vpop.f32.mrb[48].mxu0  ;;  %1407 = vmatprep.mubr.f32.mxu0 %v8721_v52  ;;  %v980_v31 = vmul.f32 0.2, %v883_v12  ;;  %6418 = vmatpush1.bf16.msra.mxu1 %v6417_v9  ;;  %v2246_v9 = vld [vmem:[#allocation10 + $0x848] sm:$0xff] }
 0x250   :  { %v887_v59 = vadd.f32 %v886_v10, %v8536_v13  ;;  %v888_v32 = vpop.f32.mrb[49].mxu0  ;;  %1408 = vmatmul.mubr.f32.gmra.mrb[108].mxu0 %v8723_v35  ;;  %v8731_v3 = vmax.f32 %v881_v8, %v979_v6 }
 0x251   :  { %v889_v47 = vadd.f32 %v888_v32, %v8539_v26  ;;  %v8729_v16 = vmax.f32 %v883_v12, %v980_v31  ;;  %v2238_v31 = vld [vmem:[#allocation10 + $0x808] sm:$0xff] }
 0x252   :  { %11339 = vst [vmem:[#allocation30_spill] sm:$0xff] %v8731_v3  ;;  %v981_v27 = vmul.f32 0.2, %v887_v59 }
 0x253   :  { %11338 = vst [vmem:[#allocation29_spill] sm:$0xff] %v8729_v16  ;;  %v892_v45 = vpop.f32.mrb[50].mxu0  ;;  %1413 = vmatprep.mubr.f32.mxu0 %v8729_v16  ;;  %v982_v19 = vmul.f32 0.2, %v889_v47 }
 0x254   :  { %v893_v30 = vadd.f32 %v892_v45, %v8536_v13  ;;  %v894_v17 = vpop.f32.mrb[51].mxu0  ;;  %1414 = vmatmul.mubr.f32.gmra.mrb[110].mxu0 %v8731_v3  ;;  %v8739_v32 = vmax.f32 %v887_v59, %v981_v27 }
 0x255   :  { %v895_v56 = vadd.f32 %v894_v17, %v8539_v26  ;;  %v8737_v53 = vmax.f32 %v889_v47, %v982_v19  ;;  %v6419_v47 = vpack.c.bf16 %v2246_v9, %v2238_v31 }
 0x256   :  { %11341 = vst [vmem:[#allocation32_spill] sm:$0xff] %v8739_v32  ;;  %v983_v12 = vmul.f32 0.2, %v893_v30 }
 0x257   :  { %11340 = vst [vmem:[#allocation31_spill] sm:$0xff] %v8737_v53  ;;  %v898_v63 = vpop.f32.mrb[52].mxu0  ;;  %1419 = vmatprep.mubr.f32.mxu0 %v8737_v53  ;;  %v984_v8 = vmul.f32 0.2, %v895_v56  ;;  %6420 = vmatprep.subr.bf16.mxu1 %v6419_v47 }
 0x258   :  { %v899_v6 = vadd.f32 %v898_v63, %v8536_v13  ;;  %v900_v10 = vpop.f32.mrb[53].mxu0  ;;  %1420 = vmatmul.mubr.f32.gmra.mrb[112].mxu0 %v8739_v32  ;;  %v8747_v19 = vmax.f32 %v893_v30, %v983_v12 }
 0x259   :  { %v901_v45 = vadd.f32 %v900_v10, %v8539_v26  ;;  %v8745_v3 = vmax.f32 %v895_v56, %v984_v8 }
 0x25a   :  { %v985_v59 = vmul.f32 0.2, %v899_v6 }
 0x25b   :  { %v904_v27 = vpop.f32.mrb[54].mxu0  ;;  %1425 = vmatprep.mubr.f32.mxu0 %v8745_v3  ;;  %v986_v17 = vmul.f32 0.2, %v901_v45 }
 0x25c   :  { %v905_v63 = vadd.f32 %v904_v27, %v8536_v13  ;;  %v906_v53 = vpop.f32.mrb[55].mxu0  ;;  %1426 = vmatmul.mubr.f32.gmra.mrb[114].mxu0 %v8747_v19  ;;  %v8755_v56 = vmax.f32 %v899_v6, %v985_v59 }
 0x25d   :  { %v907_v32 = vadd.f32 %v906_v53, %v8539_v26  ;;  %v8753_v16 = vmax.f32 %v901_v45, %v986_v17 }
 0x25e   :  { %11343 = vst [vmem:[#allocation34_spill] sm:$0xff] %v8755_v56  ;;  %v987_v8 = vmul.f32 0.2, %v905_v63 }
 0x25f   :  { %11342 = vst [vmem:[#allocation33_spill] sm:$0xff] %v8753_v16  ;;  %v910_v30 = vpop.f32.mrb[56].mxu0  ;;  %1431 = vmatprep.mubr.f32.mxu0 %v8753_v16  ;;  %v988_v12 = vmul.f32 0.2, %v907_v32 }
 0x260   :  { %v911_v10 = vadd.f32 %v910_v30, %v8536_v13  ;;  %v912_v31 = vpop.f32.mrb[57].mxu0  ;;  %1432 = vmatmul.mubr.f32.gmra.mrb[116].mxu0 %v8755_v56  ;;  %v8763_v27 = vmax.f32 %v905_v63, %v987_v8 }
 0x261   :  { %v913_v9 = vadd.f32 %v912_v31, %v8539_v26  ;;  %v8761_v47 = vmax.f32 %v907_v32, %v988_v12 }
 0x262   :  { %11345 = vst [vmem:[#allocation36_spill] sm:$0xff] %v8763_v27  ;;  %v989_v53 = vmul.f32 0.2, %v911_v10 }
 0x263   :  { %11344 = vst [vmem:[#allocation35_spill] sm:$0xff] %v8761_v47  ;;  %v916_v45 = vpop.f32.mrb[58].mxu0  ;;  %1437 = vmatprep.mubr.f32.mxu0 %v8761_v47  ;;  %v990_v6 = vmul.f32 0.2, %v913_v9 }
 0x264   :  { %v917_v59 = vadd.f32 %v916_v45, %v8536_v13  ;;  %v918_v17 = vpop.f32.mrb[59].mxu0  ;;  %1438 = vmatmul.mubr.f32.gmra.mrb[118].mxu0 %v8763_v27  ;;  %v8771_v56 = vmax.f32 %v911_v10, %v989_v53 }
 0x265   :  { %v919_v30 = vadd.f32 %v918_v17, %v8539_v26  ;;  %v8769_v16 = vmax.f32 %v913_v9, %v990_v6 }
 0x266   :  { %11347 = vst [vmem:[#allocation38_spill] sm:$0xff] %v8771_v56  ;;  %v991_v32 = vmul.f32 0.2, %v917_v59 }
 0x267   :  { %11346 = vst [vmem:[#allocation37_spill] sm:$0xff] %v8769_v16  ;;  %v922_v12 = vpop.f32.mrb[60].mxu0  ;;  %1443 = vmatprep.mubr.f32.mxu0 %v8769_v16  ;;  %v992_v63 = vmul.f32 0.2, %v919_v30 }
 0x268   :  { %v923_v8 = vadd.f32 %v922_v12, %v8536_v13  ;;  %v924_v31 = vpop.f32.mrb[61].mxu0  ;;  %1444 = vmatmul.mubr.f32.gmra.mrb[120].mxu0 %v8771_v56  ;;  %v8779_v27 = vmax.f32 %v917_v59, %v991_v32 }
 0x269   :  { %v925_v45 = vadd.f32 %v924_v31, %v8539_v26  ;;  %v8777_v47 = vmax.f32 %v919_v30, %v992_v63  ;;  %v1991_v31 = vld [vmem:[#allocation10 + $0x50] sm:$0xff] }
 0x26a   :  { %v993_v9 = vmul.f32 0.2, %v923_v8 }
 0x26b   :  { %v928_v6 = vpop.f32.mrb[62].mxu0  ;;  %1449 = vmatprep.mubr.f32.mxu0 %v8777_v47  ;;  %v994_v10 = vmul.f32 0.2, %v925_v45 }
 0x26c   :  { %v929_v53 = vadd.f32 %v928_v6, %v8536_v13  ;;  %v930_v17 = vpop.f32.mrb[63].mxu0  ;;  %1450 = vmatmul.mubr.f32.gmra.mrb[122].mxu0 %v8779_v27  ;;  %v8787_v56 = vmax.f32 %v923_v8, %v993_v9  ;;  %v1983_v13 = vld [vmem:[#allocation10 + $0x10] sm:$0xff]  ;;  %v2000_v6 = vld [vmem:[#allocation10 + $0x98] sm:$0xff] }
 0x26d   :  { %v931_v12 = vadd.f32 %v930_v17, %v8539_v26  ;;  %v8785_v16 = vmax.f32 %v925_v45, %v994_v10  ;;  %v2008_v26 = vld [vmem:[#allocation10 + $0xd8] sm:$0xff]  ;;  %v6485_v8 = vpack.c.bf16 %v1991_v31, %v1983_v13  ;;  %v1999_v9 = vld [vmem:[#allocation10 + $0x90] sm:$0xff] }
 0x26e   :  { %11348 = vst [vmem:[#allocation39_spill] sm:$0xff] %v8787_v56  ;;  %v995_v30 = vmul.f32 0.2, %v929_v53  ;;  %v6487_v45 = vpack.c.bf16 %v2008_v26, %v2000_v6  ;;  %v2007_v10 = vld [vmem:[#allocation10 + $0xd0] sm:$0xff]  ;;  %v2016_v17 = vld [vmem:[#allocation10 + $0x118] sm:$0xff] }
 0x26f   :  { %1455 = vmatprep.mubr.f32.mxu0 %v8785_v16  ;;  %v996_v59 = vmul.f32 0.2, %v931_v12  ;;  %v2031_v31 = vld [vmem:[#allocation10 + $0x190] sm:$0xff]  ;;  %v2048_v6 = vld [vmem:[#allocation10 + $0x218] sm:$0xff] }
 0x270   :  { %1456 = vmatmul.mubr.f32.gmra.mrb[124].mxu0 %v8787_v56  ;;  %v8793_v63 = vmax.f32 %v929_v53, %v995_v30  ;;  %v2024_v56 = vld [vmem:[#allocation10 + $0x158] sm:$0xff]  ;;  %v6489_v53 = vpack.c.bf16 %v2007_v10, %v1999_v9  ;;  %v2015_v30 = vld [vmem:[#allocation10 + $0x110] sm:$0xff] }
 0x271   :  { %v8791_v32 = vmax.f32 %v931_v12, %v996_v59  ;;  %v6491_v12 = vpack.c.bf16 %v2024_v56, %v2016_v17  ;;  %v2023_v59 = vld [vmem:[#allocation10 + $0x150] sm:$0xff]  ;;  %v2080_v10 = vld [vmem:[#allocation10 + $0x318] sm:$0xff] }
 0x272   :  { %11350 = vst [vmem:[#allocation41_spill] sm:$0xff] %v8793_v63  ;;  %v2063_v9 = vld [vmem:[#allocation10 + $0x290] sm:$0xff] }
 0x273   :  { %11349 = vst [vmem:[#allocation40_spill] sm:$0xff] %v8791_v32  ;;  %1461 = vmatprep.mubr.f32.mxu0 %v8791_v32  ;;  %v2032_v32 = vld [vmem:[#allocation10 + $0x198] sm:$0xff] }
 0x274   :  { %1462 = vmatmul.mubr.f32.gmra.mrb[126].mxu0 %v8793_v63  ;;  %v2040_v63 = vld [vmem:[#allocation10 + $0x1d8] sm:$0xff] }
 0x275   :  { %1532 = vmatprep.mubr.f32.mxu0 %v8545_v25  ;;  %v6493_v25 = vpack.c.bf16 %v2023_v59, %v2015_v30  ;;  %v6495_v13 = vpack.c.bf16 %v2040_v63, %v2032_v32  ;;  %v2096_v30 = vld [vmem:[#allocation10 + $0x398] sm:$0xff] }
 0x278   :  { %1533 = vmatmul.mubr.f32.vlgmr.msra.gmra.mrb[128].mxu0 %v8547_v28  ;;  %v2039_v28 = vld [vmem:[#allocation10 + $0x1d0] sm:$0xff] }
 0x279   :  { %1538 = vmatprep.mubr.f32.mxu0 %v8553_v41  ;;  %6486 = vmatpush1.bf16.msra.mxu0 %v6485_v8  ;;  %v2056_v41 = vld [vmem:[#allocation10 + $0x258] sm:$0xff]  ;;  %v6497_v56 = vpack.c.bf16 %v2039_v28, %v2031_v31  ;;  %v2047_v8 = vld [vmem:[#allocation10 + $0x210] sm:$0xff] }
 0x27a   :  { %6488 = vmatprep.subr.bf16.mxu0 %v6487_v45  ;;  %v6499_v26 = vpack.c.bf16 %v2056_v41, %v2048_v6  ;;  %v2064_v45 = vld [vmem:[#allocation10 + $0x298] sm:$0xff]  ;;  %v2111_v41 = vld [vmem:[#allocation10 + $0x410] sm:$0xff] }
 0x27b   :  { %v2112_v31 = vld [vmem:[#allocation10 + $0x418] sm:$0xff] }
 0x27c   :  { %1539 = vmatmul.mubr.f32.gmra.mrb[130].mxu0 %v8555_v43  ;;  %v2055_v43 = vld [vmem:[#allocation10 + $0x250] sm:$0xff] }
 0x27d   :  { %1544 = vmatprep.mubr.f32.mxu0 %v8561_v55  ;;  %6490 = vmatpush1.bf16.msra.mxu0 %v6489_v53  ;;  %v2072_v55 = vld [vmem:[#allocation10 + $0x2d8] sm:$0xff]  ;;  %v6501_v32 = vpack.c.bf16 %v2055_v43, %v2047_v8  ;;  %v2127_v43 = vld [vmem:[#allocation10 + $0x490] sm:$0xff] }
 0x27e   :  { %6492 = vmatprep.subr.bf16.mxu0 %v6491_v12  ;;  %v6503_v63 = vpack.c.bf16 %v2072_v55, %v2064_v45  ;;  %v2079_v12 = vld [vmem:[#allocation10 + $0x310] sm:$0xff]  ;;  %v2144_v45 = vld [vmem:[#allocation10 + $0x518] sm:$0xff] }
 0x280   :  { %1545 = vmatmul.mubr.f32.gmra.mrb[132].mxu0 %v8563_v57  ;;  %v2071_v57 = vld [vmem:[#allocation10 + $0x2d0] sm:$0xff] }
 0x281   :  { %1550 = vmatprep.mubr.f32.mxu0 %v8569_v7  ;;  %6494 = vmatpush1.bf16.msra.mxu0 %v6493_v25  ;;  %v2088_v7 = vld [vmem:[#allocation10 + $0x358] sm:$0xff]  ;;  %v6505_v17 = vpack.c.bf16 %v2071_v57, %v2063_v9 }
 0x282   :  { %6496 = vmatprep.subr.bf16.mxu0 %v6495_v13  ;;  %v6507_v53 = vpack.c.bf16 %v2088_v7, %v2080_v10  ;;  %v2095_v13 = vld [vmem:[#allocation10 + $0x390] sm:$0xff]  ;;  %v2160_v9 = vld [vmem:[#allocation10 + $0x598] sm:$0xff] }
 0x283   :  { %v2159_v7 = vld [vmem:[#allocation10 + $0x590] sm:$0xff] }
 0x284   :  { %1551 = vmatmul.mubr.f32.gmra.mrb[134].mxu0 %v8571_v11  ;;  %v2087_v11 = vld [vmem:[#allocation10 + $0x350] sm:$0xff] }
 0x285   :  { %1556 = vmatprep.mubr.f32.mxu0 %v8577_v22  ;;  %6498 = vmatpush1.bf16.msra.mxu0 %v6497_v56  ;;  %v2104_v22 = vld [vmem:[#allocation10 + $0x3d8] sm:$0xff]  ;;  %v6509_v59 = vpack.c.bf16 %v2087_v11, %v2079_v12  ;;  %v2175_v11 = vld [vmem:[#allocation10 + $0x610] sm:$0xff] }
 0x286   :  { %6500 = vmatprep.subr.bf16.mxu0 %v6499_v26  ;;  %v6511_v25 = vpack.c.bf16 %v2104_v22, %v2096_v30  ;;  %v2128_v56 = vld [vmem:[#allocation10 + $0x498] sm:$0xff] }
 0x287   :  { %v2192_v30 = vld [vmem:[#allocation10 + $0x698] sm:$0xff] }
 0x288   :  { %1557 = vmatmul.mubr.f32.gmra.mrb[136].mxu0 %v8579_v24  ;;  %v2103_v24 = vld [vmem:[#allocation10 + $0x3d0] sm:$0xff] }
 0x289   :  { %1562 = vmatprep.mubr.f32.mxu0 %v8585_v40  ;;  %6502 = vmatpush1.bf16.msra.mxu0 %v6501_v32  ;;  %v2120_v40 = vld [vmem:[#allocation10 + $0x458] sm:$0xff]  ;;  %v6513_v28 = vpack.c.bf16 %v2103_v24, %v2095_v13 }
 0x28a   :  { %6504 = vmatprep.subr.bf16.mxu0 %v6503_v63  ;;  %v6515_v6 = vpack.c.bf16 %v2120_v40, %v2112_v31  ;;  %v2143_v63 = vld [vmem:[#allocation10 + $0x510] sm:$0xff]  ;;  %v2208_v13 = vld [vmem:[#allocation10 + $0x718] sm:$0xff] }
 0x28b   :  { %v2207_v40 = vld [vmem:[#allocation10 + $0x710] sm:$0xff] }
 0x28c   :  { %1563 = vmatmul.mubr.f32.gmra.mrb[138].mxu0 %v8587_v44  ;;  %v2119_v44 = vld [vmem:[#allocation10 + $0x450] sm:$0xff] }
 0x28d   :  { %1568 = vmatprep.mubr.f32.mxu0 %v8593_v58  ;;  %6506 = vmatpush1.bf16.msra.mxu0 %v6505_v17  ;;  %v2136_v58 = vld [vmem:[#allocation10 + $0x4d8] sm:$0xff]  ;;  %v6517_v26 = vpack.c.bf16 %v2119_v44, %v2111_v41  ;;  %v2223_v44 = vld [vmem:[#allocation10 + $0x790] sm:$0xff] }
 0x28e   :  { %6508 = vmatprep.subr.bf16.mxu0 %v6507_v53  ;;  %v6519_v8 = vpack.c.bf16 %v2136_v58, %v2128_v56  ;;  %v2176_v17 = vld [vmem:[#allocation10 + $0x618] sm:$0xff] }
 0x290   :  { %1569 = vmatmul.mubr.f32.gmra.mrb[140].mxu0 %v8595_v61  ;;  %v2135_v61 = vld [vmem:[#allocation10 + $0x4d0] sm:$0xff] }
 0x291   :  { %1574 = vmatprep.mubr.f32.mxu0 %v8601_v0  ;;  %6510 = vmatpush1.bf16.msra.mxu0 %v6509_v59  ;;  %v2152_v0 = vld [vmem:[#allocation10 + $0x558] sm:$0xff]  ;;  %v6521_v55 = vpack.c.bf16 %v2135_v61, %v2127_v43 }
 0x292   :  { %6512 = vmatprep.subr.bf16.mxu0 %v6511_v25  ;;  %v6523_v32 = vpack.c.bf16 %v2152_v0, %v2144_v45  ;;  %v2191_v25 = vld [vmem:[#allocation10 + $0x690] sm:$0xff]  ;;  %v2254_v45 = vld [vmem:[#allocation10 + $0x888] sm:$0xff] }
 0x293   :  { %v2262_v0 = vld [vmem:[#allocation10 + $0x8c8] sm:$0xff] }
 0x294   :  { %1575 = vmatmul.mubr.f32.gmra.mrb[142].mxu0 %v8603_v18  ;;  %v2151_v18 = vld [vmem:[#allocation10 + $0x550] sm:$0xff] }
 0x295   :  { %1580 = vmatprep.mubr.f32.mxu0 %v8609_v39  ;;  %6514 = vmatpush1.bf16.msra.mxu0 %v6513_v28  ;;  %v2168_v39 = vld [vmem:[#allocation10 + $0x5d8] sm:$0xff]  ;;  %v6525_v57 = vpack.c.bf16 %v2151_v18, %v2143_v63 }
 0x296   :  { %6516 = vmatprep.subr.bf16.mxu0 %v6515_v6  ;;  %v6527_v10 = vpack.c.bf16 %v2168_v39, %v2160_v9  ;;  %v2224_v28 = vld [vmem:[#allocation10 + $0x798] sm:$0xff] }
 0x297   :  { %v11356_v9 = vld [vmem:[#allocation29_spill] sm:$0xff] }
 0x298   :  { %1581 = vmatmul.mubr.f32.gmra.mrb[144].mxu0 %v8611_v48  ;;  %v2167_v48 = vld [vmem:[#allocation10 + $0x5d0] sm:$0xff] }
 0x299   :  { %1586 = vmatprep.mubr.f32.mxu0 %v8617_v5  ;;  %6518 = vmatpush1.bf16.msra.mxu0 %v6517_v26  ;;  %v2184_v5 = vld [vmem:[#allocation10 + $0x658] sm:$0xff]  ;;  %v6529_v53 = vpack.c.bf16 %v2167_v48, %v2159_v7  ;;  %v2237_v26 = vld [vmem:[#allocation10 + $0x800] sm:$0xff] }
 0x29a   :  { %6520 = vmatprep.subr.bf16.mxu0 %v6519_v8  ;;  %v6531_v12 = vpack.c.bf16 %v2184_v5, %v2176_v17  ;;  %v2245_v8 = vld [vmem:[#allocation10 + $0x840] sm:$0xff] }
 0x29b   :  { %v6421_v39 = vpack.c.bf16 %v2245_v8, %v2237_v26  ;;  %v2253_v7 = vld [vmem:[#allocation10 + $0x880] sm:$0xff] }
 0x29c   :  { %1587 = vmatmul.mubr.f32.gmra.mrb[146].mxu0 %v8619_v14  ;;  %v2183_v14 = vld [vmem:[#allocation10 + $0x650] sm:$0xff]  ;;  %v2261_v48 = vld [vmem:[#allocation10 + $0x8c0] sm:$0xff] }
 0x29d   :  { %1592 = vmatprep.mubr.f32.mxu0 %v8625_v36  ;;  %6522 = vmatpush1.bf16.msra.mxu0 %v6521_v55  ;;  %v2200_v36 = vld [vmem:[#allocation10 + $0x6d8] sm:$0xff]  ;;  %v6533_v22 = vpack.c.bf16 %v2183_v14, %v2175_v11  ;;  %v11357_v14 = vld [vmem:[#allocation30_spill] sm:$0xff] }
 0x29e   :  { %6524 = vmatprep.subr.bf16.mxu0 %v6523_v32  ;;  %v6535_v59 = vpack.c.bf16 %v2200_v36, %v2192_v30  ;;  %v11360_v26 = vld [vmem:[#allocation33_spill] sm:$0xff] }
 0x2a0   :  { %1593 = vmatmul.mubr.f32.gmra.mrb[148].mxu0 %v8627_v46  ;;  %v2199_v46 = vld [vmem:[#allocation10 + $0x6d0] sm:$0xff] }
 0x2a1   :  { %1598 = vmatprep.mubr.f32.mxu0 %v8633_v4  ;;  %6526 = vmatpush1.bf16.msra.mxu0 %v6525_v57  ;;  %v2216_v4 = vld [vmem:[#allocation10 + $0x758] sm:$0xff]  ;;  %v6537_v24 = vpack.c.bf16 %v2199_v46, %v2191_v25 }
 0x2a2   :  { %6528 = vmatprep.subr.bf16.mxu0 %v6527_v10  ;;  %v6539_v31 = vpack.c.bf16 %v2216_v4, %v2208_v13  ;;  %v6423_v10 = vpack.c.bf16 %v2262_v0, %v2254_v45  ;;  %v2269_v4 = vld [vmem:[#allocation10 + $0x900] sm:$0xff] }
 0x2a3   :  { %v2301_v0 = vld [vmem:[#allocation10 + $0xa00] sm:$0xff] }
 0x2a4   :  { %1599 = vmatmul.mubr.f32.gmra.mrb[150].mxu0 %v8635_v15  ;;  %v2215_v15 = vld [vmem:[#allocation10 + $0x750] sm:$0xff] }
 0x2a5   :  { %1604 = vmatprep.mubr.f32.mxu0 %v8641_v38  ;;  %6530 = vmatpush1.bf16.msra.mxu0 %v6529_v53  ;;  %v2232_v38 = vld [vmem:[#allocation10 + $0x7d8] sm:$0xff]  ;;  %v6541_v6 = vpack.c.bf16 %v2215_v15, %v2207_v40  ;;  %v2270_v53 = vld [vmem:[#allocation10 + $0x908] sm:$0xff] }
 0x2a6   :  { %6532 = vmatprep.subr.bf16.mxu0 %v6531_v12  ;;  %v6543_v41 = vpack.c.bf16 %v2232_v38, %v2224_v28  ;;  %v2278_v12 = vld [vmem:[#allocation10 + $0x948] sm:$0xff] }
 0x2a7   :  { %v6427_v13 = vpack.c.bf16 %v2278_v12, %v2270_v53  ;;  %v2286_v15 = vld [vmem:[#allocation10 + $0x988] sm:$0xff] }
 0x2a8   :  { %1605 = vmatmul.mubr.f32.gmra.mrb[152].mxu0 %v8643_v50  ;;  %v2231_v50 = vld [vmem:[#allocation10 + $0x7d0] sm:$0xff]  ;;  %v2294_v28 = vld [vmem:[#allocation10 + $0x9c8] sm:$0xff] }
 0x2a9   :  { %1610 = vmatprep.mubr.f32.mxu0 %v8649_v29  ;;  %6534 = vmatpush1.bf16.msra.mxu0 %v6533_v22  ;;  %v6545_v29 = vpack.c.bf16 %v2231_v50, %v2223_v44  ;;  %v11358_v22 = vld [vmem:[#allocation31_spill] sm:$0xff] }
 0x2aa   :  { %6536 = vmatprep.subr.bf16.mxu0 %v6535_v59  ;;  %v6425_v59 = vpack.c.bf16 %v2261_v48, %v2253_v7 }
 0x2ac   :  { %1611 = vmatmul.mubr.f32.gmra.mrb[154].mxu0 %v8651_v21  ;;  %v2240_v21 = vld [vmem:[#allocation10 + $0x818] sm:$0xff] }
 0x2ad   :  { %1616 = vmatprep.mubr.f32.mxu0 %v8657_v51  ;;  %6538 = vmatpush1.bf16.msra.mxu0 %v6537_v24  ;;  %v2248_v51 = vld [vmem:[#allocation10 + $0x858] sm:$0xff]  ;;  %v2277_v24 = vld [vmem:[#allocation10 + $0x940] sm:$0xff] }
 0x2ae   :  { %6540 = vmatprep.subr.bf16.mxu0 %v6539_v31  ;;  %v6547_v56 = vpack.c.bf16 %v2248_v51, %v2240_v21 }
 0x2b0   :  { %1617 = vmatmul.mubr.f32.gmra.mrb[156].mxu0 %v8659_v62  ;;  %v1189_v62 = vld [vmem:[#allocation8] sm:$0xf] }
 0x2b1   :  { %1622 = vmatprep.mubr.f32.mxu0 %v8665_v23  ;;  %6542 = vmatpush1.bf16.msra.mxu0 %v6541_v6  ;;  %v11351_v23 = vld [vmem:[#allocation26_spill] sm:$0xff] }
 0x2b2   :  { %6544 = vmatprep.subr.bf16.mxu0 %v6543_v41  ;;  %v11359_v41 = vld [vmem:[#allocation32_spill] sm:$0xff] }
 0x2b4   :  { %1623 = vmatmul.mubr.f32.gmra.mrb[158].mxu0 %v8667_v34  ;;  %v11352_v34 = vld [vmem:[#allocation24_spill] sm:$0xff] }
 0x2b5   :  { %1628 = vmatprep.mubr.f32.mxu0 %v8673_v49  ;;  %6546 = vmatpush1.bf16.msra.mxu0 %v6545_v29  ;;  %v8840_v49 = vrot.slane %v1189_v62, %v11352_v34  ;;  %v6429_v29 = vpack.c.bf16 %v2277_v24, %v2269_v4  ;;  %v11363_v24 = vld [vmem:[#allocation36_spill] sm:$0xff] }
 0x2b6   :  { %6548 = vmatprep.subr.bf16.mxu0 %v6547_v56  ;;  %v6431_v56 = vpack.c.bf16 %v2294_v28, %v2286_v15  ;;  %v11364_v15 = vld [vmem:[#allocation37_spill] sm:$0xff]  ;;  %v2431_v34 = vld [vmem:[#allocation10 + $0xe10] sm:$0xff] }
 0x2b8   :  { %1629 = vmatmul.mubr.f32.gmra.mrb[160].mxu0 %v8675_v2  ;;  %v11353_v2 = vld [vmem:[#allocation27_spill] sm:$0xff] }
 0x2b9   :  { %1634 = vmatprep.mubr.f32.mxu0 %v8681_v37  ;;  %v11354_v37 = vld [vmem:[#allocation25_spill] sm:$0xff] }
 0x2bc   :  { %1635 = vmatmul.mubr.f32.gmra.mrb[162].mxu0 %v8683_v42  ;;  %v8844_v42 = vrot.slane %v1189_v62, %v11354_v37  ;;  %v2285_v62 = vld [vmem:[#allocation10 + $0x980] sm:$0xff]  ;;  %v2439_v37 = vld [vmem:[#allocation10 + $0xe50] sm:$0xff] }
 0x2bd   :  { %1640 = vmatprep.mubr.f32.mxu0 %v8689_v20 }
 0x2c0   :  { %1641 = vmatmul.mubr.f32.gmra.mrb[164].mxu0 %v8691_v1 }
 0x2c1   :  { %1646 = vmatprep.mubr.f32.mxu0 %v8697_v60  ;;  %v11355_v60 = vld [vmem:[#allocation28_spill] sm:$0xff] }
 0x2c4   :  { %1647 = vmatmul.mubr.f32.gmra.mrb[166].mxu0 %v8699_v54 }
 0x2c5   :  { %1652 = vmatprep.mubr.f32.mxu0 %v8705_v33 }
 0x2c8   :  { %1653 = vmatmul.mubr.f32.gmra.mrb[168].mxu0 %v11351_v23  ;;  %v2293_v23 = vld [vmem:[#allocation10 + $0x9c0] sm:$0xff] }
 0x2c9   :  { %1658 = vmatprep.mubr.f32.mxu0 %v11353_v2  ;;  %v6433_v8 = vpack.c.bf16 %v2293_v23, %v2285_v62  ;;  %v2350_v62 = vld [vmem:[#allocation10 + $0xb88] sm:$0xff] }
 0x2ca   :  { %v2358_v23 = vld [vmem:[#allocation10 + $0xbc8] sm:$0xff] }
 0x2cb   :  { %v1277_v20 = vpop.f32.mrb[64].mxu0 }
 0x2cc   :  { %v1278_v1 = vadd.f32 %v1277_v20, %v8840_v49  ;;  %v1279_v58 = vpop.f32.mrb[65].mxu0  ;;  %1659 = vmatmul.mubr.f32.gmra.mrb[170].mxu0 %v11355_v60 }
 0x2cd   :  { %v1280_v54 = vadd.f32 %v1279_v58, %v8844_v42  ;;  %1664 = vmatprep.mubr.f32.mxu0 %v8721_v52  ;;  %v2310_v58 = vld [vmem:[#allocation10 + $0xa48] sm:$0xff] }
 0x2ce   :  { %v1725_v33 = vmul.f32 0.2, %v1278_v1 }
 0x2cf   :  { %v1726_v43 = vmul.f32 0.2, %v1280_v54  ;;  %v1283_v61 = vpop.f32.mrb[66].mxu0 }
 0x2d0   :  { %v1284_v55 = vadd.f32 %v1283_v61, %v8840_v49  ;;  %v1285_v32 = vpop.f32.mrb[67].mxu0  ;;  %1665 = vmatmul.mubr.f32.gmra.mrb[172].mxu0 %v8723_v35  ;;  %v8856_v52 = vmax.f32 %v1278_v1, %v1725_v33  ;;  %v2302_v1 = vld [vmem:[#allocation10 + $0xa08] sm:$0xff] }
 0x2d1   :  { %v8852_v63 = vmax.f32 %v1280_v54, %v1726_v43  ;;  %v1286_v18 = vadd.f32 %v1285_v32, %v8844_v42  ;;  %1670 = vmatprep.mubr.f32.mxu0 %v11356_v9  ;;  %v6435_v45 = vpack.c.bf16 %v2310_v58, %v2302_v1  ;;  %v2326_v9 = vld [vmem:[#allocation10 + $0xac8] sm:$0xff] }
 0x2d2   :  { %v1729_v57 = vmul.f32 0.2, %v1284_v55  ;;  %v11365_v1 = vld [vmem:[#allocation38_spill] sm:$0xff] }
 0x2d3   :  { %v1730_v17 = vmul.f32 0.2, %v1286_v18  ;;  %v1289_v5 = vpop.f32.mrb[68].mxu0  ;;  %2599 = vmatprep.mubr.f32.mxu1 %v8852_v63 }
 0x2d4   :  { %v1290_v35 = vadd.f32 %v1289_v5, %v8840_v49  ;;  %v1291_v11 = vpop.f32.mrb[69].mxu0  ;;  %1671 = vmatmul.mubr.f32.gmra.mrb[174].mxu0 %v11357_v14  ;;  %2600 = vmatmul.mubr.f32.vlgmr.msra.gmra.mrb[0].mxu1 %v8856_v52  ;;  %v8866_v25 = vmax.f32 %v1284_v55, %v1729_v57  ;;  %v2309_v55 = vld [vmem:[#allocation10 + $0xa40] sm:$0xff] }
 0x2d5   :  { %v8862_v30 = vmax.f32 %v1286_v18, %v1730_v17  ;;  %v1292_v36 = vadd.f32 %v1291_v11, %v8844_v42  ;;  %6422 = vmatpush1.bf16.msra.mxu1 %v6421_v39  ;;  %1676 = vmatprep.mubr.f32.mxu0 %v11358_v22  ;;  %v11362_v17 = vld [vmem:[#allocation35_spill] sm:$0xff]  ;;  %v6437_v5 = vpack.c.bf16 %v2309_v55, %v2301_v0  ;;  %v2317_v11 = vld [vmem:[#allocation10 + $0xa80] sm:$0xff] }
 0x2d6   :  { %v1733_v46 = vmul.f32 0.2, %v1290_v35  ;;  %6424 = vmatprep.subr.bf16.mxu1 %v6423_v10  ;;  %v11361_v10 = vld [vmem:[#allocation34_spill] sm:$0xff] }
 0x2d7   :  { %v1734_v31 = vmul.f32 0.2, %v1292_v36  ;;  %v1295_v40 = vpop.f32.mrb[70].mxu0  ;;  %2605 = vmatprep.mubr.f32.mxu1 %v8862_v30  ;;  %v2325_v14 = vld [vmem:[#allocation10 + $0xac0] sm:$0xff] }
 0x2d8   :  { %v1296_v38 = vadd.f32 %v1295_v40, %v8840_v49  ;;  %v1297_v6 = vpop.f32.mrb[71].mxu0  ;;  %1677 = vmatmul.mubr.f32.gmra.mrb[176].mxu0 %v11359_v41  ;;  %2606 = vmatmul.mubr.f32.gmra.mrb[2].mxu1 %v8866_v25  ;;  %v8876_v21 = vmax.f32 %v1290_v35, %v1733_v46  ;;  %v2342_v46 = vld [vmem:[#allocation10 + $0xb48] sm:$0xff]  ;;  %v6441_v28 = vpack.c.bf16 %v2325_v14, %v2317_v11 }
 0x2d9   :  { %v8872_v44 = vmax.f32 %v1292_v36, %v1734_v31  ;;  %v1298_v50 = vadd.f32 %v1297_v6, %v8844_v42  ;;  %1682 = vmatprep.mubr.f32.mxu0 %v8745_v3  ;;  %6426 = vmatpush1.bf16.msra.mxu1 %v6425_v59  ;;  %v2334_v59 = vld [vmem:[#allocation10 + $0xb08] sm:$0xff] }
 0x2da   :  { %v1737_v51 = vmul.f32 0.2, %v1296_v38  ;;  %6428 = vmatprep.subr.bf16.mxu1 %v6427_v13  ;;  %v6443_v41 = vpack.c.bf16 %v2342_v46, %v2334_v59  ;;  %v2390_v14 = vld [vmem:[#allocation10 + $0xcc8] sm:$0xff] }
 0x2db   :  { %v1738_v2 = vmul.f32 0.2, %v1298_v50  ;;  %v1301_v20 = vpop.f32.mrb[72].mxu0  ;;  %2611 = vmatprep.mubr.f32.mxu1 %v8872_v44  ;;  %v11368_v59 = vld [vmem:[#allocation39_spill] sm:$0xff] }
 0x2dc   :  { %v1302_v60 = vadd.f32 %v1301_v20, %v8840_v49  ;;  %v1303_v54 = vpop.f32.mrb[73].mxu0  ;;  %1683 = vmatmul.mubr.f32.gmra.mrb[178].mxu0 %v8747_v19  ;;  %2612 = vmatmul.mubr.f32.gmra.mrb[4].mxu1 %v8876_v21  ;;  %v8886_v43 = vmax.f32 %v1296_v38, %v1737_v51  ;;  %v2318_v19 = vld [vmem:[#allocation10 + $0xa88] sm:$0xff] }
 0x2dd   :  { %v8882_v3 = vmax.f32 %v1298_v50, %v1738_v2  ;;  %v1304_v33 = vadd.f32 %v1303_v54, %v8844_v42  ;;  %1688 = vmatprep.mubr.f32.mxu0 %v11360_v26  ;;  %6430 = vmatpush1.bf16.msra.mxu1 %v6429_v29  ;;  %v6439_v35 = vpack.c.bf16 %v2326_v9, %v2318_v19  ;;  %v2333_v50 = vld [vmem:[#allocation10 + $0xb00] sm:$0xff] }
 0x2de   :  { %v1741_v61 = vmul.f32 0.2, %v1302_v60  ;;  %6432 = vmatprep.subr.bf16.mxu1 %v6431_v56  ;;  %v2341_v29 = vld [vmem:[#allocation10 + $0xb40] sm:$0xff] }
 0x2df   :  { %v1742_v32 = vmul.f32 0.2, %v1304_v33  ;;  %v1307_v18 = vpop.f32.mrb[74].mxu0  ;;  %2617 = vmatprep.mubr.f32.mxu1 %v8882_v3  ;;  %v6445_v54 = vpack.c.bf16 %v2341_v29, %v2333_v50 }
 0x2e0   :  { %v1308_v39 = vadd.f32 %v1307_v18, %v8840_v49  ;;  %v1309_v57 = vpop.f32.mrb[75].mxu0  ;;  %1689 = vmatmul.mubr.f32.gmra.mrb[180].mxu0 %v11361_v10  ;;  %2618 = vmatmul.mubr.f32.gmra.mrb[6].mxu1 %v8886_v43  ;;  %v8896_v53 = vmax.f32 %v1302_v60, %v1741_v61  ;;  %v2349_v61 = vld [vmem:[#allocation10 + $0xb80] sm:$0xff]  ;;  %v2374_v18 = vld [vmem:[#allocation10 + $0xc48] sm:$0xff] }
 0x2e1   :  { %v8892_v7 = vmax.f32 %v1304_v33, %v1742_v32  ;;  %v1310_v48 = vadd.f32 %v1309_v57, %v8844_v42  ;;  %1694 = vmatprep.mubr.f32.mxu0 %v11362_v17  ;;  %6434 = vmatpush1.bf16.msra.mxu1 %v6433_v8  ;;  %v6447_v8 = vpack.c.bf16 %v2358_v23, %v2350_v62  ;;  %v2366_v32 = vld [vmem:[#allocation10 + $0xc08] sm:$0xff]  ;;  %v2247_v62 = vld [vmem:[#allocation10 + $0x850] sm:$0xff] }
 0x2e2   :  { %v1745_v12 = vmul.f32 0.2, %v1308_v39  ;;  %6436 = vmatprep.subr.bf16.mxu1 %v6435_v45  ;;  %v2357_v45 = vld [vmem:[#allocation10 + $0xbc0] sm:$0xff]  ;;  %v6451_v17 = vpack.c.bf16 %v2374_v18, %v2366_v32  ;;  %v2414_v18 = vld [vmem:[#allocation10 + $0xd88] sm:$0xff] }
 0x2e3   :  { %v1746_v36 = vmul.f32 0.2, %v1310_v48  ;;  %v1313_v22 = vpop.f32.mrb[76].mxu0  ;;  %2623 = vmatprep.mubr.f32.mxu1 %v8892_v7  ;;  %v6449_v57 = vpack.c.bf16 %v2357_v45, %v2349_v61  ;;  %v2405_v32 = vld [vmem:[#allocation10 + $0xd40] sm:$0xff] }
 0x2e4   :  { %v1314_v13 = vadd.f32 %v1313_v22, %v8840_v49  ;;  %v1315_v4 = vpop.f32.mrb[77].mxu0  ;;  %1695 = vmatmul.mubr.f32.gmra.mrb[182].mxu0 %v11363_v24  ;;  %2624 = vmatmul.mubr.f32.gmra.mrb[8].mxu1 %v8896_v53  ;;  %v8906_v38 = vmax.f32 %v1308_v39, %v1745_v12  ;;  %v2373_v12 = vld [vmem:[#allocation10 + $0xc40] sm:$0xff] }
 0x2e5   :  { %v8902_v31 = vmax.f32 %v1310_v48, %v1746_v36  ;;  %v1316_v40 = vadd.f32 %v1315_v4, %v8844_v42  ;;  %1700 = vmatprep.mubr.f32.mxu0 %v11364_v15  ;;  %6438 = vmatpush1.bf16.msra.mxu1 %v6437_v5  ;;  %v2365_v5 = vld [vmem:[#allocation10 + $0xc00] sm:$0xff] }
 0x2e6   :  { %v1749_v6 = vmul.f32 0.2, %v1314_v13  ;;  %6440 = vmatprep.subr.bf16.mxu1 %v6439_v35  ;;  %v6453_v4 = vpack.c.bf16 %v2373_v12, %v2365_v5  ;;  %v2263_v5 = vld [vmem:[#allocation10 + $0x8d0] sm:$0xff] }
 0x2e7   :  { %v1750_v51 = vmul.f32 0.2, %v1316_v40  ;;  %v1319_v56 = vpop.f32.mrb[78].mxu0  ;;  %2629 = vmatprep.mubr.f32.mxu1 %v8902_v31 }
 0x2e8   :  { %v1320_v2 = vadd.f32 %v1319_v56, %v8840_v49  ;;  %v1321_v20 = vpop.f32.mrb[79].mxu0  ;;  %1701 = vmatmul.mubr.f32.gmra.mrb[184].mxu0 %v11365_v1  ;;  %2630 = vmatmul.mubr.f32.gmra.mrb[10].mxu1 %v8906_v38  ;;  %v8916_v33 = vmax.f32 %v1314_v13, %v1749_v6  ;;  %v11370_v13 = vld [vmem:[#allocation40_spill] sm:$0xff]  ;;  %v2389_v6 = vld [vmem:[#allocation10 + $0xcc0] sm:$0xff] }
 0x2e9   :  { %v8912_v58 = vmax.f32 %v1316_v40, %v1750_v51  ;;  %v1322_v60 = vadd.f32 %v1321_v20, %v8844_v42  ;;  %1706 = vmatprep.mubr.f32.mxu0 %v8777_v47  ;;  %6442 = vmatpush1.bf16.msra.mxu1 %v6441_v28  ;;  %v2381_v28 = vld [vmem:[#allocation10 + $0xc80] sm:$0xff]  ;;  %v2406_v51 = vld [vmem:[#allocation10 + $0xd48] sm:$0xff]  ;;  %v2239_v56 = vld [vmem:[#allocation10 + $0x810] sm:$0xff] }
 0x2ea   :  { %v1753_v26 = vmul.f32 0.2, %v1320_v2  ;;  %6444 = vmatprep.subr.bf16.mxu1 %v6443_v41  ;;  %v2398_v41 = vld [vmem:[#allocation10 + $0xd08] sm:$0xff]  ;;  %v11372_v20 = vld [vmem:[#allocation41_spill] sm:$0xff] }
 0x2eb   :  { %v1754_v0 = vmul.f32 0.2, %v1322_v60  ;;  %v1325_v55 = vpop.f32.mrb[80].mxu0  ;;  %2635 = vmatprep.mubr.f32.mxu1 %v8912_v58  ;;  %v2256_v1 = vld [vmem:[#allocation10 + $0x898] sm:$0xff] }
 0x2ec   :  { %v1326_v19 = vadd.f32 %v1325_v55, %v8840_v49  ;;  %v1327_v9 = vpop.f32.mrb[81].mxu0  ;;  %1707 = vmatmul.mubr.f32.gmra.mrb[186].mxu0 %v8779_v27  ;;  %2636 = vmatmul.mubr.f32.gmra.mrb[12].mxu1 %v8916_v33  ;;  %v8926_v10 = vmax.f32 %v1320_v2, %v1753_v26  ;;  %v2382_v27 = vld [vmem:[#allocation10 + $0xc88] sm:$0xff]  ;;  %v2397_v55 = vld [vmem:[#allocation10 + $0xd00] sm:$0xff] }
 0x2ed   :  { %v8922_v47 = vmax.f32 %v1322_v60, %v1754_v0  ;;  %v1328_v39 = vadd.f32 %v1327_v9, %v8844_v42  ;;  %1712 = vmatprep.mubr.f32.mxu0 %v8785_v16  ;;  %6446 = vmatpush1.bf16.msra.mxu1 %v6445_v54  ;;  %v6455_v15 = vpack.c.bf16 %v2390_v14, %v2382_v27  ;;  %v2264_v60 = vld [vmem:[#allocation10 + $0x8d8] sm:$0xff] }
 0x2ee   :  { %11367 = vst [vmem:[#allocation27_spill] sm:$0xff] %v8926_v10  ;;  %v1757_v48 = vmul.f32 0.2, %v1326_v19  ;;  %6448 = vmatprep.subr.bf16.mxu1 %v6447_v8  ;;  %v6457_v8 = vpack.c.bf16 %v2389_v6, %v2381_v28  ;;  %v6459_v0 = vpack.c.bf16 %v2406_v51, %v2398_v41  ;;  %v2280_v27 = vld [vmem:[#allocation10 + $0x958] sm:$0xff]  ;;  %v2271_v51 = vld [vmem:[#allocation10 + $0x910] sm:$0xff] }
 0x2ef   :  { %11366 = vst [vmem:[#allocation26_spill] sm:$0xff] %v8922_v47  ;;  %v1758_v35 = vmul.f32 0.2, %v1328_v39  ;;  %v1331_v11 = vpop.f32.mrb[82].mxu0  ;;  %2641 = vmatprep.mubr.f32.mxu1 %v8922_v47 }
 0x2f0   :  { %v1332_v36 = vadd.f32 %v1331_v11, %v8840_v49  ;;  %v1333_v22 = vpop.f32.mrb[83].mxu0  ;;  %1713 = vmatmul.mubr.f32.gmra.mrb[188].mxu0 %v11368_v59  ;;  %2642 = vmatmul.mubr.f32.gmra.mrb[14].mxu1 %v8926_v10  ;;  %v8936_v24 = vmax.f32 %v1326_v19, %v1757_v48  ;;  %v6549_v19 = vpack.c.bf16 %v2247_v62, %v2239_v56  ;;  %v2272_v11 = vld [vmem:[#allocation10 + $0x918] sm:$0xff]  ;;  %v2279_v56 = vld [vmem:[#allocation10 + $0x950] sm:$0xff] }
 0x2f1   :  { %v8932_v16 = vmax.f32 %v1328_v39, %v1758_v35  ;;  %v1334_v46 = vadd.f32 %v1333_v22, %v8844_v42  ;;  %1718 = vmatprep.mubr.f32.mxu0 %v11370_v13  ;;  %6450 = vmatpush1.bf16.msra.mxu1 %v6449_v57  ;;  %v2422_v57 = vld [vmem:[#allocation10 + $0xdc8] sm:$0xff]  ;;  %v6551_v48 = vpack.c.bf16 %v2264_v60, %v2256_v1 }
 0x2f2   :  { %11371 = vst [vmem:[#allocation29_spill] sm:$0xff] %v8936_v24  ;;  %v1761_v40 = vmul.f32 0.2, %v1332_v36  ;;  %6452 = vmatprep.subr.bf16.mxu1 %v6451_v17  ;;  %v2255_v17 = vld [vmem:[#allocation10 + $0x890] sm:$0xff]  ;;  %v6461_v22 = vpack.c.bf16 %v2405_v32, %v2397_v55  ;;  %v6463_v13 = vpack.c.bf16 %v2422_v57, %v2414_v18  ;;  %v2429_v55 = vld [vmem:[#allocation10 + $0xe00] sm:$0xff]  ;;  %v2446_v18 = vld [vmem:[#allocation10 + $0xe88] sm:$0xff] }
 0x2f3   :  { %11369 = vst [vmem:[#allocation28_spill] sm:$0xff] %v8932_v16  ;;  %v1762_v50 = vmul.f32 0.2, %v1334_v46  ;;  %v1337_v29 = vpop.f32.mrb[84].mxu0  ;;  %2647 = vmatprep.mubr.f32.mxu1 %v8932_v16  ;;  %v6553_v28 = vpack.c.bf16 %v2263_v5, %v2255_v17  ;;  %v2437_v32 = vld [vmem:[#allocation10 + $0xe40] sm:$0xff]  ;;  %v2454_v57 = vld [vmem:[#allocation10 + $0xec8] sm:$0xff] }
 0x2f4   :  { %v1338_v23 = vadd.f32 %v1337_v29, %v8840_v49  ;;  %v1339_v2 = vpop.f32.mrb[85].mxu0  ;;  %1719 = vmatmul.mubr.f32.gmra.mrb[190].mxu0 %v11372_v20  ;;  %2648 = vmatmul.mubr.f32.gmra.mrb[16].mxu1 %v8936_v24  ;;  %v8946_v61 = vmax.f32 %v1332_v36, %v1761_v40  ;;  %v2421_v40 = vld [vmem:[#allocation10 + $0xdc0] sm:$0xff]  ;;  %v6555_v29 = vpack.c.bf16 %v2280_v27, %v2272_v11  ;;  %v2296_v20 = vld [vmem:[#allocation10 + $0x9d8] sm:$0xff]  ;;  %v2287_v17 = vld [vmem:[#allocation10 + $0x990] sm:$0xff] }
 0x2f5   :  { %v8942_v54 = vmax.f32 %v1334_v46, %v1762_v50  ;;  %v1340_v26 = vadd.f32 %v1339_v2, %v8844_v42  ;;  %3113 = vmatprep.mubr.f32.mxu0 %v8852_v63  ;;  %6454 = vmatpush1.bf16.msra.mxu1 %v6453_v4  ;;  %v2413_v4 = vld [vmem:[#allocation10 + $0xd80] sm:$0xff]  ;;  %v2438_v50 = vld [vmem:[#allocation10 + $0xe48] sm:$0xff]  ;;  %v2288_v2 = vld [vmem:[#allocation10 + $0x998] sm:$0xff] }
 0x2f6   :  { %11374 = vst [vmem:[#allocation31_spill] sm:$0xff] %v8946_v61  ;;  %v1765_v45 = vmul.f32 0.2, %v1338_v23  ;;  %6456 = vmatprep.subr.bf16.mxu1 %v6455_v15  ;;  %v2430_v15 = vld [vmem:[#allocation10 + $0xe08] sm:$0xff]  ;;  %v2295_v5 = vld [vmem:[#allocation10 + $0x9d0] sm:$0xff]  ;;  %v2304_v11 = vld [vmem:[#allocation10 + $0xa18] sm:$0xff] }
 0x2f7   :  { %11373 = vst [vmem:[#allocation30_spill] sm:$0xff] %v8942_v54  ;;  %v1766_v9 = vmul.f32 0.2, %v1340_v26  ;;  %v1343_v39 = vpop.f32.mrb[86].mxu0  ;;  %2653 = vmatprep.mubr.f32.mxu1 %v8942_v54  ;;  %v2312_v27 = vld [vmem:[#allocation10 + $0xa58] sm:$0xff] }
 0x2f8   :  { %v1344_v12 = vadd.f32 %v1343_v39, %v8840_v49  ;;  %v1345_v35 = vpop.f32.mrb[87].mxu0  ;;  %2654 = vmatmul.mubr.f32.gmra.mrb[18].mxu1 %v8946_v61  ;;  %3114 = vmatmul.mubr.f32.vlgmr.msra.gmra.mrb[192].mxu0 %v8856_v52  ;;  %v8956_v59 = vmax.f32 %v1338_v23, %v1765_v45 }
 0x2f9   :  { %v8952_v14 = vmax.f32 %v1340_v26, %v1766_v9  ;;  %v1346_v36 = vadd.f32 %v1345_v35, %v8844_v42  ;;  %3119 = vmatprep.mubr.f32.mxu0 %v8862_v30  ;;  %6458 = vmatpush1.bf16.msra.mxu1 %v6457_v8  ;;  %v6465_v26 = vpack.c.bf16 %v2421_v40, %v2413_v4 }
 0x2fa   :  { %11376 = vst [vmem:[#allocation33_spill] sm:$0xff] %v8956_v59  ;;  %v1769_v46 = vmul.f32 0.2, %v1344_v12  ;;  %6460 = vmatprep.subr.bf16.mxu1 %v6459_v0  ;;  %6550 = vmatpush1.bf16.msra.mxu0 %v6549_v19  ;;  %v6467_v0 = vpack.c.bf16 %v2438_v50, %v2430_v15  ;;  %v6557_v19 = vpack.c.bf16 %v2279_v56, %v2271_v51  ;;  %v2445_v15 = vld [vmem:[#allocation10 + $0xe80] sm:$0xff]  ;;  %v2462_v51 = vld [vmem:[#allocation10 + $0xf08] sm:$0xff] }
 0x2fb   :  { %11375 = vst [vmem:[#allocation32_spill] sm:$0xff] %v8952_v14  ;;  %v1770_v6 = vmul.f32 0.2, %v1346_v36  ;;  %v1349_v41 = vpop.f32.mrb[88].mxu0  ;;  %2659 = vmatprep.mubr.f32.mxu1 %v8952_v14  ;;  %6552 = vmatprep.subr.bf16.mxu0 %v6551_v48  ;;  %v6559_v48 = vpack.c.bf16 %v2296_v20, %v2288_v2  ;;  %v6471_v40 = vpack.c.bf16 %v2454_v57, %v2446_v18  ;;  %v2470_v56 = vld [vmem:[#allocation10 + $0xf48] sm:$0xff]  ;;  %v2311_v2 = vld [vmem:[#allocation10 + $0xa50] sm:$0xff] }
 0x2fc   :  { %v1350_v62 = vadd.f32 %v1349_v41, %v8840_v49  ;;  %v1351_v23 = vpop.f32.mrb[89].mxu0  ;;  %2660 = vmatmul.mubr.f32.gmra.mrb[20].mxu1 %v8956_v59  ;;  %3120 = vmatmul.mubr.f32.gmra.mrb[194].mxu0 %v8866_v25  ;;  %v8966_v8 = vmax.f32 %v1344_v12, %v1769_v46  ;;  %v6469_v46 = vpack.c.bf16 %v2437_v32, %v2429_v55  ;;  %v2303_v41 = vld [vmem:[#allocation10 + $0xa10] sm:$0xff] }
 0x2fd   :  { %v8962_v1 = vmax.f32 %v1346_v36, %v1770_v6  ;;  %v1352_v60 = vadd.f32 %v1351_v23, %v8844_v42  ;;  %3125 = vmatprep.mubr.f32.mxu0 %v8872_v44  ;;  %6462 = vmatpush1.bf16.msra.mxu1 %v6461_v22  ;;  %v6561_v6 = vpack.c.bf16 %v2295_v5, %v2287_v17 }
 0x2fe   :  { %11378 = vst [vmem:[#allocation35_spill] sm:$0xff] %v8966_v8  ;;  %v1773_v45 = vmul.f32 0.2, %v1350_v62  ;;  %6464 = vmatprep.subr.bf16.mxu1 %v6463_v13  ;;  %6554 = vmatpush1.bf16.msra.mxu0 %v6553_v28  ;;  %v2453_v28 = vld [vmem:[#allocation10 + $0xec0] sm:$0xff]  ;;  %v6563_v23 = vpack.c.bf16 %v2312_v27, %v2304_v11  ;;  %v6565_v57 = vpack.c.bf16 %v2311_v2, %v2303_v41  ;;  %v2486_v11 = vld [vmem:[#allocation10 + $0xfc8] sm:$0xff]  ;;  %v2335_v2 = vld [vmem:[#allocation10 + $0xb10] sm:$0xff] }
 0x2ff   :  { %11377 = vst [vmem:[#allocation34_spill] sm:$0xff] %v8962_v1  ;;  %v1774_v9 = vmul.f32 0.2, %v1352_v60  ;;  %v1355_v39 = vpop.f32.mrb[90].mxu0  ;;  %2665 = vmatprep.mubr.f32.mxu1 %v8962_v1  ;;  %6556 = vmatprep.subr.bf16.mxu0 %v6555_v29  ;;  %v6473_v55 = vpack.c.bf16 %v2453_v28, %v2445_v15 }
 0x300   :  { %v1356_v12 = vadd.f32 %v1355_v39, %v8840_v49  ;;  %v1357_v35 = vpop.f32.mrb[91].mxu0  ;;  %2666 = vmatmul.mubr.f32.gmra.mrb[22].mxu1 %v8966_v8  ;;  %3126 = vmatmul.mubr.f32.gmra.mrb[196].mxu0 %v8876_v21  ;;  %v8976_v13 = vmax.f32 %v1350_v62, %v1773_v45  ;;  %v2469_v39 = vld [vmem:[#allocation10 + $0xf40] sm:$0xff] }
 0x301   :  { %v8972_v36 = vmax.f32 %v1352_v60, %v1774_v9  ;;  %v1358_v22 = vadd.f32 %v1357_v35, %v8844_v42  ;;  %3131 = vmatprep.mubr.f32.mxu0 %v8882_v3  ;;  %6466 = vmatpush1.bf16.msra.mxu1 %v6465_v26  ;;  %v2320_v60 = vld [vmem:[#allocation10 + $0xa98] sm:$0xff]  ;;  %v2461_v9 = vld [vmem:[#allocation10 + $0xf00] sm:$0xff]  ;;  %v2478_v35 = vld [vmem:[#allocation10 + $0xf88] sm:$0xff] }
 0x302   :  { %11380 = vst [vmem:[#allocation37_spill] sm:$0xff] %v8976_v13  ;;  %v1777_v4 = vmul.f32 0.2, %v1356_v12  ;;  %6468 = vmatprep.subr.bf16.mxu1 %v6467_v0  ;;  %6558 = vmatpush1.bf16.msra.mxu0 %v6557_v19  ;;  %v2328_v26 = vld [vmem:[#allocation10 + $0xad8] sm:$0xff]  ;;  %v6475_v19 = vpack.c.bf16 %v2470_v56, %v2462_v51  ;;  %v2477_v51 = vld [vmem:[#allocation10 + $0xf80] sm:$0xff] }
 0x303   :  { %11379 = vst [vmem:[#allocation36_spill] sm:$0xff] %v8972_v36  ;;  %v1778_v50 = vmul.f32 0.2, %v1358_v22  ;;  %v1361_v29 = vpop.f32.mrb[92].mxu0  ;;  %2671 = vmatprep.mubr.f32.mxu1 %v8972_v36  ;;  %6560 = vmatprep.subr.bf16.mxu0 %v6559_v48  ;;  %v2319_v48 = vld [vmem:[#allocation10 + $0xa90] sm:$0xff]  ;;  %v6567_v27 = vpack.c.bf16 %v2328_v26, %v2320_v60  ;;  %v2485_v56 = vld [vmem:[#allocation10 + $0xfc0] sm:$0xff] }
 0x304   :  { %v1362_v62 = vadd.f32 %v1361_v29, %v8840_v49  ;;  %v1363_v20 = vpop.f32.mrb[93].mxu0  ;;  %2672 = vmatmul.mubr.f32.gmra.mrb[24].mxu1 %v8976_v13  ;;  %3132 = vmatmul.mubr.f32.gmra.mrb[198].mxu0 %v8886_v43  ;;  %v8986_v32 = vmax.f32 %v1356_v12, %v1777_v4  ;;  %v2336_v4 = vld [vmem:[#allocation10 + $0xb18] sm:$0xff]  ;;  %v6479_v29 = vpack.c.bf16 %v2486_v11, %v2478_v35 }
 0x305   :  { %v8982_v45 = vmax.f32 %v1358_v22, %v1778_v50  ;;  %v1364_v0 = vadd.f32 %v1363_v20, %v8844_v42  ;;  %3137 = vmatprep.mubr.f32.mxu0 %v8892_v7  ;;  %6470 = vmatpush1.bf16.msra.mxu1 %v6469_v46  ;;  %v2327_v22 = vld [vmem:[#allocation10 + $0xad0] sm:$0xff] }
 0x306   :  { %11382 = vst [vmem:[#allocation39_spill] sm:$0xff] %v8986_v32  ;;  %v1781_v18 = vmul.f32 0.2, %v1362_v62  ;;  %6472 = vmatprep.subr.bf16.mxu1 %v6471_v40  ;;  %6562 = vmatpush1.bf16.msra.mxu0 %v6561_v6  ;;  %v2344_v40 = vld [vmem:[#allocation10 + $0xb58] sm:$0xff]  ;;  %v6477_v6 = vpack.c.bf16 %v2469_v39, %v2461_v9 }
 0x307   :  { %11381 = vst [vmem:[#allocation38_spill] sm:$0xff] %v8982_v45  ;;  %v1782_v17 = vmul.f32 0.2, %v1364_v0  ;;  %v1367_v5 = vpop.f32.mrb[94].mxu0  ;;  %2677 = vmatprep.mubr.f32.mxu1 %v8982_v45  ;;  %6564 = vmatprep.subr.bf16.mxu0 %v6563_v23  ;;  %v6569_v23 = vpack.c.bf16 %v2327_v22, %v2319_v48  ;;  %v6571_v26 = vpack.c.bf16 %v2344_v40, %v2336_v4  ;;  %v2360_v9 = vld [vmem:[#allocation10 + $0xbd8] sm:$0xff]  ;;  %v2351_v40 = vld [vmem:[#allocation10 + $0xb90] sm:$0xff] }
 0x308   :  { %v1368_v12 = vadd.f32 %v1367_v5, %v8840_v49  ;;  %v1369_v46 = vpop.f32.mrb[95].mxu0  ;;  %2678 = vmatmul.mubr.f32.gmra.mrb[26].mxu1 %v8986_v32  ;;  %3138 = vmatmul.mubr.f32.gmra.mrb[200].mxu0 %v8896_v53  ;;  %v8996_v41 = vmax.f32 %v1362_v62, %v1781_v18  ;;  %v6481_v48 = vpack.c.bf16 %v2485_v56, %v2477_v51 }
 0x309   :  { %v8992_v15 = vmax.f32 %v1364_v0, %v1782_v17  ;;  %v1370_v28 = vadd.f32 %v1369_v46, %v8844_v42  ;;  %3143 = vmatprep.mubr.f32.mxu0 %v8902_v31  ;;  %6474 = vmatpush1.bf16.msra.mxu1 %v6473_v55  ;;  %v2343_v0 = vld [vmem:[#allocation10 + $0xb50] sm:$0xff]  ;;  %v1986_v17 = vld [vmem:[#allocation10 + $0x28] sm:$0xff] }
 0x30a   :  { %11384 = vst [vmem:[#allocation41_spill] sm:$0xff] %v8996_v41  ;;  %v1785_v50 = vmul.f32 0.2, %v1368_v12  ;;  %6476 = vmatprep.subr.bf16.mxu1 %v6475_v19  ;;  %6566 = vmatpush1.bf16.msra.mxu0 %v6565_v57  ;;  %v1994_v55 = vld [vmem:[#allocation10 + $0x68] sm:$0xff]  ;;  %v2352_v19 = vld [vmem:[#allocation10 + $0xb98] sm:$0xff]  ;;  %v6573_v11 = vpack.c.bf16 %v2343_v0, %v2335_v2 }
 0x30b   :  { %11383 = vst [vmem:[#allocation40_spill] sm:$0xff] %v8992_v15  ;;  %v1786_v20 = vmul.f32 0.2, %v1370_v28  ;;  %v1373_v60 = vpop.f32.mrb[96].mxu0  ;;  %2683 = vmatprep.mubr.f32.mxu1 %v8992_v15  ;;  %6568 = vmatprep.subr.bf16.mxu0 %v6567_v27  ;;  %v6611_v27 = vpack.c.bf16 %v1994_v55, %v1986_v17  ;;  %v6575_v4 = vpack.c.bf16 %v2360_v9, %v2352_v19  ;;  %v2367_v17 = vld [vmem:[#allocation10 + $0xc10] sm:$0xff]  ;;  %v2392_v9 = vld [vmem:[#allocation10 + $0xcd8] sm:$0xff] }
 0x30c   :  { %v1374_v62 = vadd.f32 %v1373_v60, %v8840_v49  ;;  %v1375_v18 = vpop.f32.mrb[97].mxu0  ;;  %2684 = vmatmul.mubr.f32.gmra.mrb[28].mxu1 %v8996_v41  ;;  %3144 = vmatmul.mubr.f32.gmra.mrb[202].mxu0 %v8906_v38  ;;  %v9006_v5 = vmax.f32 %v1368_v12, %v1785_v50  ;;  %v2368_v12 = vld [vmem:[#allocation10 + $0xc18] sm:$0xff]  ;;  %v2375_v55 = vld [vmem:[#allocation10 + $0xc50] sm:$0xff] }
 0x30d   :  { %v9002_v39 = vmax.f32 %v1370_v28, %v1786_v20  ;;  %v1376_v57 = vadd.f32 %v1375_v18, %v8844_v42  ;;  %3149 = vmatprep.mubr.f32.mxu0 %v8912_v58  ;;  %6478 = vmatpush1.bf16.msra.mxu1 %v6477_v6  ;;  %v2359_v28 = vld [vmem:[#allocation10 + $0xbd0] sm:$0xff]  ;;  %v2376_v6 = vld [vmem:[#allocation10 + $0xc58] sm:$0xff] }
 0x30e   :  { %11386 = vst [vmem:[#allocation43_spill] sm:$0xff] %v9006_v5  ;;  %v1789_v35 = vmul.f32 0.2, %v1374_v62  ;;  %6480 = vmatprep.subr.bf16.mxu1 %v6479_v29  ;;  %6570 = vmatpush1.bf16.msra.mxu0 %v6569_v23  ;;  %v6577_v23 = vpack.c.bf16 %v2359_v28, %v2351_v40  ;;  %v6579_v0 = vpack.c.bf16 %v2376_v6, %v2368_v12  ;;  %v2383_v40 = vld [vmem:[#allocation10 + $0xc90] sm:$0xff]  ;;  %v2408_v6 = vld [vmem:[#allocation10 + $0xd58] sm:$0xff] }
 0x30f   :  { %11385 = vst [vmem:[#allocation42_spill] sm:$0xff] %v9002_v39  ;;  %v1790_v22 = vmul.f32 0.2, %v1376_v57  ;;  %v1379_v46 = vpop.f32.mrb[98].mxu0  ;;  %2689 = vmatprep.mubr.f32.mxu1 %v9002_v39  ;;  %6572 = vmatprep.subr.bf16.mxu0 %v6571_v26  ;;  %v2391_v28 = vld [vmem:[#allocation10 + $0xcd0] sm:$0xff] }
 0x310   :  { %v1380_v20 = vadd.f32 %v1379_v46, %v8840_v49  ;;  %v1381_v60 = vpop.f32.mrb[99].mxu0  ;;  %2690 = vmatmul.mubr.f32.gmra.mrb[30].mxu1 %v9006_v5  ;;  %3150 = vmatmul.mubr.f32.gmra.mrb[204].mxu0 %v8916_v33  ;;  %v9016_v51 = vmax.f32 %v1374_v62, %v1789_v35  ;;  %v2384_v62 = vld [vmem:[#allocation10 + $0xc98] sm:$0xff] }
 0x311   :  { %v9012_v50 = vmax.f32 %v1376_v57, %v1790_v22  ;;  %v1382_v29 = vadd.f32 %v1381_v60, %v8844_v42  ;;  %3155 = vmatprep.mubr.f32.mxu0 %v8922_v47  ;;  %6482 = vmatpush1.bf16.msra.mxu1 %v6481_v48 }
 0x312   :  { %11388 = vst [vmem:[#allocation45_spill] sm:$0xff] %v9016_v51  ;;  %v1793_v56 = vmul.f32 0.2, %v1380_v20  ;;  %6574 = vmatpush1.bf16.msra.mxu0 %v6573_v11  ;;  %6612 = vmatprep.subr.bf16.mxu1 %v6611_v27  ;;  %v6581_v27 = vpack.c.bf16 %v2375_v55, %v2367_v17 }
 0x313   :  { %11387 = vst [vmem:[#allocation44_spill] sm:$0xff] %v9012_v50  ;;  %v1794_v2 = vmul.f32 0.2, %v1382_v29  ;;  %v1385_v26 = vpop.f32.mrb[100].mxu0  ;;  %2695 = vmatprep.mubr.f32.mxu1 %v9012_v50  ;;  %6576 = vmatprep.subr.bf16.mxu0 %v6575_v4  ;;  %v6583_v4 = vpack.c.bf16 %v2392_v9, %v2384_v62  ;;  %v2407_v62 = vld [vmem:[#allocation10 + $0xd50] sm:$0xff] }
 0x314   :  { %v1386_v18 = vadd.f32 %v1385_v26, %v8840_v49  ;;  %v1387_v19 = vpop.f32.mrb[101].mxu0  ;;  %2696 = vmatmul.mubr.f32.gmra.mrb[32].mxu1 %v9016_v51  ;;  %3156 = vmatmul.mubr.f32.gmra.mrb[206].mxu0 %v8926_v10  ;;  %v9026_v35 = vmax.f32 %v1380_v20, %v1793_v56  ;;  %v2400_v20 = vld [vmem:[#allocation10 + $0xd18] sm:$0xff]  ;;  %v6585_v26 = vpack.c.bf16 %v2391_v28, %v2383_v40  ;;  %v2011_v10 = vld [vmem:[#allocation10 + $0xf0] sm:$0xff] }
 0x315   :  { %v9022_v57 = vmax.f32 %v1382_v29, %v1794_v2  ;;  %v1388_v48 = vadd.f32 %v1387_v19, %v8844_v42  ;;  %3161 = vmatprep.mubr.f32.mxu0 %v8932_v16  ;;  %v6587_v55 = vpack.c.bf16 %v2408_v6, %v2400_v20  ;;  %v2399_v19 = vld [vmem:[#allocation10 + $0xd10] sm:$0xff] }
 0x316   :  { %11390 = vst [vmem:[#allocation47_spill] sm:$0xff] %v9026_v35  ;;  %v1797_v11 = vmul.f32 0.2, %v1386_v18  ;;  %6578 = vmatpush1.bf16.msra.mxu0 %v6577_v23  ;;  %v6589_v40 = vpack.c.bf16 %v2407_v62, %v2399_v19  ;;  %v2415_v6 = vld [vmem:[#allocation10 + $0xd90] sm:$0xff] }
 0x317   :  { %11389 = vst [vmem:[#allocation46_spill] sm:$0xff] %v9022_v57  ;;  %v1798_v22 = vmul.f32 0.2, %v1388_v48  ;;  %v1391_v46 = vpop.f32.mrb[102].mxu0  ;;  %2701 = vmatprep.mubr.f32.mxu1 %v9022_v57  ;;  %6580 = vmatprep.subr.bf16.mxu0 %v6579_v0 }
 0x318   :  { %v1392_v60 = vadd.f32 %v1391_v46, %v8840_v49  ;;  %v1393_v12 = vpop.f32.mrb[103].mxu0  ;;  %2702 = vmatmul.mubr.f32.gmra.mrb[34].mxu1 %v9026_v35  ;;  %3162 = vmatmul.mubr.f32.gmra.mrb[208].mxu0 %v8936_v24  ;;  %v9036_v23 = vmax.f32 %v1386_v18, %v1797_v11  ;;  %v2416_v18 = vld [vmem:[#allocation10 + $0xd98] sm:$0xff] }
 0x319   :  { %v9032_v29 = vmax.f32 %v1388_v48, %v1798_v22  ;;  %v1394_v56 = vadd.f32 %v1393_v12, %v8844_v42  ;;  %3167 = vmatprep.mubr.f32.mxu0 %v8942_v54  ;;  %v2424_v11 = vld [vmem:[#allocation10 + $0xdd8] sm:$0xff]  ;;  %v2162_v54 = vld [vmem:[#allocation10 + $0x5a8] sm:$0xff] }
 0x31a   :  { %11392 = vst [vmem:[#allocation49_spill] sm:$0xff] %v9036_v23  ;;  %v1801_v2 = vmul.f32 0.2, %v1392_v60  ;;  %6582 = vmatpush1.bf16.msra.mxu0 %v6581_v27  ;;  %v6591_v20 = vpack.c.bf16 %v2424_v11, %v2416_v18 }
 0x31b   :  { %11391 = vst [vmem:[#allocation48_spill] sm:$0xff] %v9032_v29  ;;  %v1802_v0 = vmul.f32 0.2, %v1394_v56  ;;  %v1397_v17 = vpop.f32.mrb[104].mxu0  ;;  %2707 = vmatprep.mubr.f32.mxu1 %v9032_v29  ;;  %6584 = vmatprep.subr.bf16.mxu0 %v6583_v4 }
 0x31c   :  { %v1398_v9 = vadd.f32 %v1397_v17, %v8840_v49  ;;  %v1399_v48 = vpop.f32.mrb[105].mxu0  ;;  %2708 = vmatmul.mubr.f32.gmra.mrb[36].mxu1 %v9036_v23  ;;  %3168 = vmatmul.mubr.f32.gmra.mrb[210].mxu0 %v8946_v61  ;;  %v9046_v46 = vmax.f32 %v1392_v60, %v1801_v2  ;;  %v2423_v17 = vld [vmem:[#allocation10 + $0xdd0] sm:$0xff]  ;;  %v2432_v60 = vld [vmem:[#allocation10 + $0xe18] sm:$0xff]  ;;  %v2153_v61 = vld [vmem:[#allocation10 + $0x560] sm:$0xff] }
 0x31d   :  { %v9042_v22 = vmax.f32 %v1394_v56, %v1802_v0  ;;  %v1400_v27 = vadd.f32 %v1399_v48, %v8844_v42  ;;  %3173 = vmatprep.mubr.f32.mxu0 %v8952_v14  ;;  %v2440_v2 = vld [vmem:[#allocation10 + $0xe58] sm:$0xff]  ;;  %v6593_v62 = vpack.c.bf16 %v2423_v17, %v2415_v6  ;;  %v6597_v17 = vpack.c.bf16 %v2439_v37, %v2431_v34 }
 0x31e   :  { %11394 = vst [vmem:[#allocation51_spill] sm:$0xff] %v9046_v46  ;;  %v1805_v4 = vmul.f32 0.2, %v1398_v9  ;;  %6586 = vmatpush1.bf16.msra.mxu0 %v6585_v26 }
 0x31f   :  { %11393 = vst [vmem:[#allocation50_spill] sm:$0xff] %v9042_v22  ;;  %v1806_v28 = vmul.f32 0.2, %v1400_v27  ;;  %v1403_v12 = vpop.f32.mrb[106].mxu0  ;;  %2713 = vmatprep.mubr.f32.mxu1 %v9042_v22  ;;  %6588 = vmatprep.subr.bf16.mxu0 %v6587_v55 }
 0x320   :  { %v1404_v56 = vadd.f32 %v1403_v12, %v8840_v49  ;;  %v1405_v0 = vpop.f32.mrb[107].mxu0  ;;  %2714 = vmatmul.mubr.f32.gmra.mrb[38].mxu1 %v9046_v46  ;;  %3174 = vmatmul.mubr.f32.gmra.mrb[212].mxu0 %v8956_v59  ;;  %v9056_v19 = vmax.f32 %v1398_v9, %v1805_v4  ;;  %v6595_v12 = vpack.c.bf16 %v2440_v2, %v2432_v60  ;;  %v2448_v9 = vld [vmem:[#allocation10 + $0xe98] sm:$0xff]  ;;  %v2026_v59 = vld [vmem:[#allocation10 + $0x168] sm:$0xff] }
 0x321   :  { %v9052_v48 = vmax.f32 %v1400_v27, %v1806_v28  ;;  %v1406_v26 = vadd.f32 %v1405_v0, %v8844_v42  ;;  %3179 = vmatprep.mubr.f32.mxu0 %v8962_v1  ;;  %v2456_v4 = vld [vmem:[#allocation10 + $0xed8] sm:$0xff]  ;;  %v2455_v1 = vld [vmem:[#allocation10 + $0xed0] sm:$0xff] }
 0x322   :  { %11396 = vst [vmem:[#allocation53_spill] sm:$0xff] %v9056_v19  ;;  %v1809_v55 = vmul.f32 0.2, %v1404_v56  ;;  %6590 = vmatpush1.bf16.msra.mxu0 %v6589_v40 }
 0x323   :  { %11395 = vst [vmem:[#allocation52_spill] sm:$0xff] %v9052_v48  ;;  %v1810_v18 = vmul.f32 0.2, %v1406_v26  ;;  %v1409_v11 = vpop.f32.mrb[108].mxu0  ;;  %2719 = vmatprep.mubr.f32.mxu1 %v9052_v48  ;;  %6592 = vmatprep.subr.bf16.mxu0 %v6591_v20 }
 0x324   :  { %v1410_v27 = vadd.f32 %v1409_v11, %v8840_v49  ;;  %v1411_v28 = vpop.f32.mrb[109].mxu0  ;;  %2720 = vmatmul.mubr.f32.gmra.mrb[40].mxu1 %v9056_v19  ;;  %3180 = vmatmul.mubr.f32.gmra.mrb[214].mxu0 %v8966_v8  ;;  %v9066_v6 = vmax.f32 %v1404_v56, %v1809_v55  ;;  %v6599_v11 = vpack.c.bf16 %v2456_v4, %v2448_v9  ;;  %v2447_v8 = vld [vmem:[#allocation10 + $0xe90] sm:$0xff]  ;;  %v2464_v56 = vld [vmem:[#allocation10 + $0xf18] sm:$0xff] }
 0x325   :  { %v9062_v0 = vmax.f32 %v1406_v26, %v1810_v18  ;;  %v1412_v40 = vadd.f32 %v1411_v28, %v8844_v42  ;;  %3185 = vmatprep.mubr.f32.mxu0 %v8972_v36  ;;  %v2472_v55 = vld [vmem:[#allocation10 + $0xf58] sm:$0xff]  ;;  %v2471_v36 = vld [vmem:[#allocation10 + $0xf50] sm:$0xff] }
 0x326   :  { %11398 = vst [vmem:[#allocation55_spill] sm:$0xff] %v9066_v6  ;;  %v1813_v20 = vmul.f32 0.2, %v1410_v27  ;;  %6594 = vmatpush1.bf16.msra.mxu0 %v6593_v62 }
 0x327   :  { %11397 = vst [vmem:[#allocation54_spill] sm:$0xff] %v9062_v0  ;;  %v1814_v60 = vmul.f32 0.2, %v1412_v40  ;;  %v1415_v2 = vpop.f32.mrb[110].mxu0  ;;  %2725 = vmatprep.mubr.f32.mxu1 %v9062_v0  ;;  %6596 = vmatprep.subr.bf16.mxu0 %v6595_v12  ;;  %v6601_v12 = vpack.c.bf16 %v2455_v1, %v2447_v8 }
 0x328   :  { %v1416_v26 = vadd.f32 %v1415_v2, %v8840_v49  ;;  %v1417_v18 = vpop.f32.mrb[111].mxu0  ;;  %2726 = vmatmul.mubr.f32.gmra.mrb[42].mxu1 %v9066_v6  ;;  %3186 = vmatmul.mubr.f32.gmra.mrb[216].mxu0 %v8976_v13  ;;  %v9076_v37 = vmax.f32 %v1410_v27, %v1813_v20  ;;  %v6603_v2 = vpack.c.bf16 %v2472_v55, %v2464_v56  ;;  %v2463_v13 = vld [vmem:[#allocation10 + $0xf10] sm:$0xff]  ;;  %v2480_v27 = vld [vmem:[#allocation10 + $0xf98] sm:$0xff] }
 0x329   :  { %v9072_v28 = vmax.f32 %v1412_v40, %v1814_v60  ;;  %v1418_v34 = vadd.f32 %v1417_v18, %v8844_v42  ;;  %3191 = vmatprep.mubr.f32.mxu0 %v8982_v45  ;;  %v2488_v20 = vld [vmem:[#allocation10 + $0xfd8] sm:$0xff]  ;;  %v2487_v45 = vld [vmem:[#allocation10 + $0xfd0] sm:$0xff] }
 0x32a   :  { %11400 = vst [vmem:[#allocation57_spill] sm:$0xff] %v9076_v37  ;;  %v1817_v62 = vmul.f32 0.2, %v1416_v26  ;;  %6598 = vmatpush1.bf16.msra.mxu0 %v6597_v17 }
 0x32b   :  { %11399 = vst [vmem:[#allocation56_spill] sm:$0xff] %v9072_v28  ;;  %v1818_v9 = vmul.f32 0.2, %v1418_v34  ;;  %v1421_v4 = vpop.f32.mrb[112].mxu0  ;;  %2731 = vmatprep.mubr.f32.mxu1 %v9072_v28  ;;  %6600 = vmatprep.subr.bf16.mxu0 %v6599_v11  ;;  %v6605_v11 = vpack.c.bf16 %v2471_v36, %v2463_v13 }
 0x32c   :  { %v1422_v40 = vadd.f32 %v1421_v4, %v8840_v49  ;;  %v1423_v60 = vpop.f32.mrb[113].mxu0  ;;  %2732 = vmatmul.mubr.f32.gmra.mrb[44].mxu1 %v9076_v37  ;;  %3192 = vmatmul.mubr.f32.gmra.mrb[218].mxu0 %v8986_v32  ;;  %v9086_v8 = vmax.f32 %v1416_v26, %v1817_v62  ;;  %v6607_v4 = vpack.c.bf16 %v2488_v20, %v2480_v27  ;;  %v2479_v32 = vld [vmem:[#allocation10 + $0xf90] sm:$0xff] }
 0x32d   :  { %v9082_v18 = vmax.f32 %v1418_v34, %v1818_v9  ;;  %v1424_v1 = vadd.f32 %v1423_v60, %v8844_v42  ;;  %3197 = vmatprep.mubr.f32.mxu0 %v8992_v15  ;;  %v2018_v15 = vld [vmem:[#allocation10 + $0x128] sm:$0xff] }
 0x32e   :  { %11402 = vst [vmem:[#allocation59_spill] sm:$0xff] %v9086_v8  ;;  %v1821_v17 = vmul.f32 0.2, %v1422_v40  ;;  %6602 = vmatpush1.bf16.msra.mxu0 %v6601_v12  ;;  %v6609_v12 = vpack.c.bf16 %v2487_v45, %v2479_v32  ;;  %v1996_v45 = vld [vmem:[#allocation10 + $0x78] sm:$0xff] }
 0x32f   :  { %11401 = vst [vmem:[#allocation58_spill] sm:$0xff] %v9082_v18  ;;  %v1822_v56 = vmul.f32 0.2, %v1424_v1  ;;  %v1427_v55 = vpop.f32.mrb[114].mxu0  ;;  %2737 = vmatprep.mubr.f32.mxu1 %v9082_v18  ;;  %6604 = vmatprep.subr.bf16.mxu0 %v6603_v2 }
 0x330   :  { %v1428_v34 = vadd.f32 %v1427_v55, %v8840_v49  ;;  %v1429_v9 = vpop.f32.mrb[115].mxu0  ;;  %2738 = vmatmul.mubr.f32.gmra.mrb[46].mxu1 %v9086_v8  ;;  %3198 = vmatmul.mubr.f32.gmra.mrb[220].mxu0 %v8996_v41  ;;  %v9096_v36 = vmax.f32 %v1422_v40, %v1821_v17  ;;  %v1988_v17 = vld [vmem:[#allocation10 + $0x38] sm:$0xff] }
 0x331   :  { %v9092_v26 = vmax.f32 %v1424_v1, %v1822_v56  ;;  %v1430_v62 = vadd.f32 %v1429_v9, %v8844_v42  ;;  %3203 = vmatprep.mubr.f32.mxu0 %v9002_v39  ;;  %v6739_v56 = vpack.c.bf16 %v1996_v45, %v1988_v17  ;;  %v2009_v39 = vld [vmem:[#allocation10 + $0xe0] sm:$0xff] }
 0x332   :  { %11404 = vst [vmem:[#allocation61_spill] sm:$0xff] %v9096_v36  ;;  %v1825_v13 = vmul.f32 0.2, %v1428_v34  ;;  %6606 = vmatpush1.bf16.msra.mxu0 %v6605_v11 }
 0x333   :  { %11403 = vst [vmem:[#allocation60_spill] sm:$0xff] %v9092_v26  ;;  %v1826_v2 = vmul.f32 0.2, %v1430_v62  ;;  %v1433_v60 = vpop.f32.mrb[116].mxu0  ;;  %2743 = vmatprep.mubr.f32.mxu1 %v9092_v26  ;;  %6608 = vmatprep.subr.bf16.mxu0 %v6607_v4 }
 0x334   :  { %v1434_v27 = vadd.f32 %v1433_v60, %v8840_v49  ;;  %v1435_v20 = vpop.f32.mrb[117].mxu0  ;;  %2744 = vmatmul.mubr.f32.gmra.mrb[48].mxu1 %v9096_v36  ;;  %3204 = vmatmul.mubr.f32.gmra.mrb[222].mxu0 %v9006_v5  ;;  %v9106_v32 = vmax.f32 %v1428_v34, %v1825_v13  ;;  %v2001_v5 = vld [vmem:[#allocation10 + $0xa0] sm:$0xff] }
 0x335   :  { %v9102_v1 = vmax.f32 %v1430_v62, %v1826_v2  ;;  %v1436_v40 = vadd.f32 %v1435_v20, %v8844_v42  ;;  %3209 = vmatprep.mubr.f32.mxu0 %v9012_v50 }
 0x336   :  { %11406 = vst [vmem:[#allocation63_spill] sm:$0xff] %v9106_v32  ;;  %v1829_v11 = vmul.f32 0.2, %v1434_v27  ;;  %6610 = vmatpush1.bf16.msra.mxu0 %v6609_v12 }
 0x337   :  { %11405 = vst [vmem:[#allocation62_spill] sm:$0xff] %v9102_v1  ;;  %v1830_v55 = vmul.f32 0.2, %v1436_v40  ;;  %v1439_v4 = vpop.f32.mrb[118].mxu0  ;;  %2749 = vmatprep.mubr.f32.mxu1 %v9102_v1  ;;  %6740 = vmatprep.subr.bf16.mxu0 %v6739_v56 }
 0x338   :  { %v1440_v9 = vadd.f32 %v1439_v4, %v8840_v49  ;;  %v1441_v60 = vpop.f32.mrb[119].mxu0  ;;  %2750 = vmatmul.mubr.f32.gmra.mrb[50].mxu1 %v9106_v32  ;;  %3210 = vmatmul.mubr.f32.gmra.mrb[224].mxu0 %v9016_v51  ;;  %v9116_v34 = vmax.f32 %v1434_v27, %v1829_v11 }
 0x339   :  { %v9112_v62 = vmax.f32 %v1436_v40, %v1830_v55  ;;  %v1442_v2 = vadd.f32 %v1441_v60, %v8844_v42  ;;  %3215 = vmatprep.mubr.f32.mxu0 %v9022_v57 }
 0x33a   :  { %11408 = vst [vmem:[#allocation65_spill] sm:$0xff] %v9116_v34  ;;  %v1833_v13 = vmul.f32 0.2, %v1440_v9 }
 0x33b   :  { %11407 = vst [vmem:[#allocation64_spill] sm:$0xff] %v9112_v62  ;;  %v1834_v12 = vmul.f32 0.2, %v1442_v2  ;;  %v1445_v20 = vpop.f32.mrb[120].mxu0  ;;  %2755 = vmatprep.mubr.f32.mxu1 %v9112_v62 }
 0x33c   :  { %v1446_v17 = vadd.f32 %v1445_v20, %v8840_v49  ;;  %v1447_v45 = vpop.f32.mrb[121].mxu0  ;;  %2756 = vmatmul.mubr.f32.gmra.mrb[52].mxu1 %v9116_v34  ;;  %3216 = vmatmul.mubr.f32.gmra.mrb[226].mxu0 %v9026_v35  ;;  %v9126_v27 = vmax.f32 %v1440_v9, %v1833_v13 }
 0x33d   :  { %v9122_v40 = vmax.f32 %v1442_v2, %v1834_v12  ;;  %v1448_v55 = vadd.f32 %v1447_v45, %v8844_v42  ;;  %3221 = vmatprep.mubr.f32.mxu0 %v9032_v29 }
 0x33e   :  { %11410 = vst [vmem:[#allocation67_spill] sm:$0xff] %v9126_v27  ;;  %v1837_v11 = vmul.f32 0.2, %v1446_v17 }
 0x33f   :  { %11409 = vst [vmem:[#allocation66_spill] sm:$0xff] %v9122_v40  ;;  %v1838_v56 = vmul.f32 0.2, %v1448_v55  ;;  %v1451_v4 = vpop.f32.mrb[122].mxu0  ;;  %2761 = vmatprep.mubr.f32.mxu1 %v9122_v40 }
 0x340   :  { %v1452_v60 = vadd.f32 %v1451_v4, %v8840_v49  ;;  %v1453_v20 = vpop.f32.mrb[123].mxu0  ;;  %2762 = vmatmul.mubr.f32.gmra.mrb[54].mxu1 %v9126_v27  ;;  %3222 = vmatmul.mubr.f32.gmra.mrb[228].mxu0 %v9036_v23  ;;  %v9136_v9 = vmax.f32 %v1446_v17, %v1837_v11 }
 0x341   :  { %v9132_v2 = vmax.f32 %v1448_v55, %v1838_v56  ;;  %v1454_v12 = vadd.f32 %v1453_v20, %v8844_v42  ;;  %3227 = vmatprep.mubr.f32.mxu0 %v9042_v22  ;;  %v11413_v55 = vld [vmem:[#allocation23_spill] sm:$0xff] }
 0x342   :  { %11412 = vst [vmem:[#allocation69_spill] sm:$0xff] %v9136_v9  ;;  %v1841_v13 = vmul.f32 0.2, %v1452_v60  ;;  %v11151_v56 = vsub.s32 2, %v11413_v55  ;;  %v11154_v17 = vsub.s32 3, %v11413_v55  ;;  %v2010_v55 = vld [vmem:[#allocation10 + $0xe8] sm:$0xff] }
 0x343   :  { %11411 = vst [vmem:[#allocation68_spill] sm:$0xff] %v9132_v2  ;;  %v1842_v45 = vmul.f32 0.2, %v1454_v12  ;;  %v1457_v29 = vpop.f32.mrb[124].mxu0  ;;  %2767 = vmatprep.mubr.f32.mxu1 %v9132_v2 }
 0x344   :  { %v1458_v4 = vadd.f32 %v1457_v29, %v8840_v49  ;;  %v1459_v35 = vpop.f32.mrb[125].mxu0  ;;  %2768 = vmatmul.mubr.f32.gmra.mrb[56].mxu1 %v9136_v9  ;;  %3228 = vmatmul.mubr.f32.gmra.mrb[230].mxu0 %v9046_v46  ;;  %v9148_v11 = vmax.f32 %v1452_v60, %v1841_v13 }
 0x345   :  { %v9143_v23 = vmax.f32 %v1454_v12, %v1842_v45  ;;  %v1460_v20 = vadd.f32 %v1459_v35, %v8844_v42  ;;  %3233 = vmatprep.mubr.f32.mxu0 %v9052_v48  ;;  %v7829_v12 = vld [vmem:[#allocation8] sm:$0xf] }
 0x346   :  { %11415 = vst [vmem:[#allocation71_spill] sm:$0xff] %v9148_v11  ;;  %v1845_v22 = vmul.f32 0.2, %v1458_v4  ;;  %v9156_v35 = vrot.slane %v7829_v12, %v11151_v56  ;;  %v9164_v13 = vrot.slane %v7829_v12, %v11154_v17 }
 0x347   :  { %11414 = vst [vmem:[#allocation70_spill] sm:$0xff] %v9143_v23  ;;  %v1846_v57 = vmul.f32 0.2, %v1460_v20  ;;  %v1463_v29 = vpop.f32.mrb[126].mxu0  ;;  %2773 = vmatprep.mubr.f32.mxu1 %v9143_v23 }
 0x348   :  { %v1464_v51 = vadd.f32 %v1463_v29, %v8840_v49  ;;  %v1465_v46 = vpop.f32.mrb[127].mxu0  ;;  %2774 = vmatmul.mubr.f32.gmra.mrb[58].mxu1 %v9148_v11  ;;  %3234 = vmatmul.mubr.f32.gmra.mrb[232].mxu0 %v9056_v19  ;;  %v9166_v49 = vmax.f32 %v1458_v4, %v1845_v22  ;;  %v1985_v4 = vld [vmem:[#allocation10 + $0x20] sm:$0xff] }
 0x349   :  { %v9158_v45 = vmax.f32 %v1460_v20, %v1846_v57  ;;  %v1466_v60 = vadd.f32 %v1465_v46, %v8844_v42  ;;  %3239 = vmatprep.mubr.f32.mxu0 %v9062_v0  ;;  %v1993_v20 = vld [vmem:[#allocation10 + $0x60] sm:$0xff] }
 0x34a   :  { %11417 = vst [vmem:[#allocation73_spill] sm:$0xff] %v9166_v49  ;;  %v1849_v29 = vmul.f32 0.2, %v1464_v51 }
 0x34b   :  { %11416 = vst [vmem:[#allocation72_spill] sm:$0xff] %v9158_v45  ;;  %v1850_v48 = vmul.f32 0.2, %v1466_v60  ;;  %v1534_v19 = vpop.f32.mrb[128].mxu0  ;;  %2779 = vmatprep.mubr.f32.mxu1 %v9158_v45 }
 0x34c   :  { %v1535_v56 = vadd.f32 %v1534_v19, %v9156_v35  ;;  %v1536_v50 = vpop.f32.mrb[129].mxu0  ;;  %2780 = vmatmul.mubr.f32.gmra.mrb[60].mxu1 %v9166_v49  ;;  %3240 = vmatmul.mubr.f32.gmra.mrb[234].mxu0 %v9066_v6  ;;  %v9176_v22 = vmax.f32 %v1464_v51, %v1849_v29  ;;  %v2002_v19 = vld [vmem:[#allocation10 + $0xa8] sm:$0xff] }
 0x34d   :  { %v9172_v42 = vmax.f32 %v1466_v60, %v1850_v48  ;;  %v1537_v57 = vadd.f32 %v1536_v50, %v9164_v13  ;;  %3245 = vmatprep.mubr.f32.mxu0 %v9072_v28  ;;  %v6613_v48 = vpack.c.bf16 %v1993_v20, %v1985_v4  ;;  %v6615_v28 = vpack.c.bf16 %v2010_v55, %v2002_v19  ;;  %v2017_v19 = vld [vmem:[#allocation10 + $0x120] sm:$0xff] }
 0x34e   :  { %11419 = vst [vmem:[#allocation75_spill] sm:$0xff] %v9176_v22  ;;  %v1727_v46 = vmul.f32 0.2, %v1535_v56  ;;  %v6617_v55 = vpack.c.bf16 %v2009_v39, %v2001_v5  ;;  %v6619_v20 = vpack.c.bf16 %v2026_v59, %v2018_v15 }
 0x34f   :  { %11418 = vst [vmem:[#allocation74_spill] sm:$0xff] %v9172_v42  ;;  %v1728_v12 = vmul.f32 0.2, %v1537_v57  ;;  %v1540_v17 = vpop.f32.mrb[130].mxu0  ;;  %2785 = vmatprep.mubr.f32.mxu1 %v9172_v42 }
 0x350   :  { %v1541_v0 = vadd.f32 %v1540_v17, %v9156_v35  ;;  %v1542_v6 = vpop.f32.mrb[131].mxu0  ;;  %2786 = vmatmul.mubr.f32.gmra.mrb[62].mxu1 %v9176_v22  ;;  %3246 = vmatmul.mubr.f32.gmra.mrb[236].mxu0 %v9076_v37  ;;  %v9186_v60 = vmax.f32 %v1535_v56, %v1727_v46 }
 0x351   :  { %v9182_v50 = vmax.f32 %v1537_v57, %v1728_v12  ;;  %v1543_v51 = vadd.f32 %v1542_v6, %v9164_v13  ;;  %3251 = vmatprep.mubr.f32.mxu0 %v9082_v18 }
 0x352   :  { %11421 = vst [vmem:[#allocation77_spill] sm:$0xff] %v9186_v60  ;;  %v1731_v29 = vmul.f32 0.2, %v1541_v0 }
 0x353   :  { %11420 = vst [vmem:[#allocation76_spill] sm:$0xff] %v9182_v50  ;;  %v1732_v41 = vmul.f32 0.2, %v1543_v51  ;;  %v1546_v17 = vpop.f32.mrb[132].mxu0  ;;  %2856 = vmatprep.mubr.f32.mxu1 %v9182_v50 }
 0x354   :  { %v1547_v57 = vadd.f32 %v1546_v17, %v9156_v35  ;;  %v1548_v12 = vpop.f32.mrb[133].mxu0  ;;  %2857 = vmatmul.mubr.f32.vlgmr.msra.gmra.mrb[0].mxu1 %v9186_v60  ;;  %3252 = vmatmul.mubr.f32.gmra.mrb[238].mxu0 %v9086_v8  ;;  %v9196_v46 = vmax.f32 %v1541_v0, %v1731_v29  ;;  %v2025_v17 = vld [vmem:[#allocation10 + $0x160] sm:$0xff]  ;;  %v2034_v8 = vld [vmem:[#allocation10 + $0x1a8] sm:$0xff] }
 0x355   :  { %v9192_v6 = vmax.f32 %v1543_v51, %v1732_v41  ;;  %v1549_v56 = vadd.f32 %v1548_v12, %v9164_v13  ;;  %6614 = vmatpush1.bf16.msra.mxu1 %v6613_v48  ;;  %3257 = vmatprep.mubr.f32.mxu0 %v9092_v26  ;;  %v2042_v41 = vld [vmem:[#allocation10 + $0x1e8] sm:$0xff]  ;;  %v6621_v59 = vpack.c.bf16 %v2025_v17, %v2017_v19  ;;  %v2033_v48 = vld [vmem:[#allocation10 + $0x1a0] sm:$0xff] }
 0x356   :  { %11423 = vst [vmem:[#allocation79_spill] sm:$0xff] %v9196_v46  ;;  %v1735_v4 = vmul.f32 0.2, %v1547_v57  ;;  %6616 = vmatprep.subr.bf16.mxu1 %v6615_v28  ;;  %v6623_v28 = vpack.c.bf16 %v2042_v41, %v2034_v8  ;;  %v2049_v17 = vld [vmem:[#allocation10 + $0x220] sm:$0xff] }
 0x357   :  { %11422 = vst [vmem:[#allocation78_spill] sm:$0xff] %v9192_v6  ;;  %v1736_v18 = vmul.f32 0.2, %v1549_v56  ;;  %v1552_v37 = vpop.f32.mrb[134].mxu0  ;;  %2862 = vmatprep.mubr.f32.mxu1 %v9192_v6 }
 0x358   :  { %v1553_v51 = vadd.f32 %v1552_v37, %v9156_v35  ;;  %v1554_v12 = vpop.f32.mrb[135].mxu0  ;;  %2863 = vmatmul.mubr.f32.gmra.mrb[2].mxu1 %v9196_v46  ;;  %3258 = vmatmul.mubr.f32.gmra.mrb[240].mxu0 %v9096_v36  ;;  %v9206_v15 = vmax.f32 %v1547_v57, %v1735_v4  ;;  %v2041_v37 = vld [vmem:[#allocation10 + $0x1e0] sm:$0xff]  ;;  %v2050_v36 = vld [vmem:[#allocation10 + $0x228] sm:$0xff] }
 0x359   :  { %v9202_v39 = vmax.f32 %v1549_v56, %v1736_v18  ;;  %v1555_v5 = vadd.f32 %v1554_v12, %v9164_v13  ;;  %3263 = vmatprep.mubr.f32.mxu0 %v9102_v1  ;;  %6618 = vmatpush1.bf16.msra.mxu1 %v6617_v55  ;;  %v2058_v18 = vld [vmem:[#allocation10 + $0x268] sm:$0xff]  ;;  %v6625_v8 = vpack.c.bf16 %v2041_v37, %v2033_v48  ;;  %v2065_v37 = vld [vmem:[#allocation10 + $0x2a0] sm:$0xff] }
 0x35a   :  { %11425 = vst [vmem:[#allocation81_spill] sm:$0xff] %v9206_v15  ;;  %v1739_v0 = vmul.f32 0.2, %v1553_v51  ;;  %6620 = vmatprep.subr.bf16.mxu1 %v6619_v20  ;;  %v6627_v19 = vpack.c.bf16 %v2058_v18, %v2050_v36 }
 0x35b   :  { %11424 = vst [vmem:[#allocation80_spill] sm:$0xff] %v9202_v39  ;;  %v1740_v29 = vmul.f32 0.2, %v1555_v5  ;;  %v1558_v26 = vpop.f32.mrb[136].mxu0  ;;  %2868 = vmatprep.mubr.f32.mxu1 %v9202_v39 }
 0x35c   :  { %v1559_v56 = vadd.f32 %v1558_v26, %v9156_v35  ;;  %v1560_v12 = vpop.f32.mrb[137].mxu0  ;;  %2869 = vmatmul.mubr.f32.gmra.mrb[4].mxu1 %v9206_v15  ;;  %3264 = vmatmul.mubr.f32.gmra.mrb[242].mxu0 %v9106_v32  ;;  %v9216_v4 = vmax.f32 %v1553_v51, %v1739_v0  ;;  %v2057_v26 = vld [vmem:[#allocation10 + $0x260] sm:$0xff]  ;;  %v2066_v32 = vld [vmem:[#allocation10 + $0x2a8] sm:$0xff] }
 0x35d   :  { %v9212_v57 = vmax.f32 %v1555_v5, %v1740_v29  ;;  %v1561_v55 = vadd.f32 %v1560_v12, %v9164_v13  ;;  %3269 = vmatprep.mubr.f32.mxu0 %v9112_v62  ;;  %6622 = vmatpush1.bf16.msra.mxu1 %v6621_v59  ;;  %v2074_v5 = vld [vmem:[#allocation10 + $0x2e8] sm:$0xff]  ;;  %v6629_v36 = vpack.c.bf16 %v2057_v26, %v2049_v17  ;;  %v2081_v26 = vld [vmem:[#allocation10 + $0x320] sm:$0xff] }
 0x35e   :  { %11427 = vst [vmem:[#allocation83_spill] sm:$0xff] %v9216_v4  ;;  %v1743_v20 = vmul.f32 0.2, %v1559_v56  ;;  %6624 = vmatprep.subr.bf16.mxu1 %v6623_v28  ;;  %v6631_v48 = vpack.c.bf16 %v2074_v5, %v2066_v32 }
 0x35f   :  { %11426 = vst [vmem:[#allocation82_spill] sm:$0xff] %v9212_v57  ;;  %v1744_v41 = vmul.f32 0.2, %v1561_v55  ;;  %v1564_v1 = vpop.f32.mrb[138].mxu0  ;;  %2874 = vmatprep.mubr.f32.mxu1 %v9212_v57 }
 0x360   :  { %v1565_v29 = vadd.f32 %v1564_v1, %v9156_v35  ;;  %v1566_v12 = vpop.f32.mrb[139].mxu0  ;;  %2875 = vmatmul.mubr.f32.gmra.mrb[6].mxu1 %v9216_v4  ;;  %3270 = vmatmul.mubr.f32.gmra.mrb[244].mxu0 %v9116_v34  ;;  %v9226_v0 = vmax.f32 %v1559_v56, %v1743_v20  ;;  %v2073_v1 = vld [vmem:[#allocation10 + $0x2e0] sm:$0xff]  ;;  %v2082_v34 = vld [vmem:[#allocation10 + $0x328] sm:$0xff] }
 0x361   :  { %v9222_v51 = vmax.f32 %v1561_v55, %v1744_v41  ;;  %v1567_v59 = vadd.f32 %v1566_v12, %v9164_v13  ;;  %3275 = vmatprep.mubr.f32.mxu0 %v9122_v40  ;;  %6626 = vmatpush1.bf16.msra.mxu1 %v6625_v8  ;;  %v2090_v55 = vld [vmem:[#allocation10 + $0x368] sm:$0xff]  ;;  %v6633_v32 = vpack.c.bf16 %v2073_v1, %v2065_v37  ;;  %v2097_v1 = vld [vmem:[#allocation10 + $0x3a0] sm:$0xff] }
 0x362   :  { %11429 = vst [vmem:[#allocation85_spill] sm:$0xff] %v9226_v0  ;;  %v1747_v28 = vmul.f32 0.2, %v1565_v29  ;;  %6628 = vmatprep.subr.bf16.mxu1 %v6627_v19  ;;  %v6635_v17 = vpack.c.bf16 %v2090_v55, %v2082_v34 }
 0x363   :  { %11428 = vst [vmem:[#allocation84_spill] sm:$0xff] %v9222_v51  ;;  %v1748_v18 = vmul.f32 0.2, %v1567_v59  ;;  %v1570_v62 = vpop.f32.mrb[140].mxu0  ;;  %2880 = vmatprep.mubr.f32.mxu1 %v9222_v51 }
 0x364   :  { %v1571_v41 = vadd.f32 %v1570_v62, %v9156_v35  ;;  %v1572_v12 = vpop.f32.mrb[141].mxu0  ;;  %2881 = vmatmul.mubr.f32.gmra.mrb[8].mxu1 %v9226_v0  ;;  %3276 = vmatmul.mubr.f32.gmra.mrb[246].mxu0 %v9126_v27  ;;  %v9236_v20 = vmax.f32 %v1565_v29, %v1747_v28  ;;  %v2089_v62 = vld [vmem:[#allocation10 + $0x360] sm:$0xff]  ;;  %v2098_v27 = vld [vmem:[#allocation10 + $0x3a8] sm:$0xff] }
 0x365   :  { %v9232_v56 = vmax.f32 %v1567_v59, %v1748_v18  ;;  %v1573_v8 = vadd.f32 %v1572_v12, %v9164_v13  ;;  %3281 = vmatprep.mubr.f32.mxu0 %v9132_v2  ;;  %6630 = vmatpush1.bf16.msra.mxu1 %v6629_v36  ;;  %v2106_v59 = vld [vmem:[#allocation10 + $0x3e8] sm:$0xff]  ;;  %v6637_v34 = vpack.c.bf16 %v2089_v62, %v2081_v26  ;;  %v2113_v62 = vld [vmem:[#allocation10 + $0x420] sm:$0xff] }
 0x366   :  { %v1751_v19 = vmul.f32 0.2, %v1571_v41  ;;  %6632 = vmatprep.subr.bf16.mxu1 %v6631_v48  ;;  %v6639_v37 = vpack.c.bf16 %v2106_v59, %v2098_v27 }
 0x367   :  { %v1752_v5 = vmul.f32 0.2, %v1573_v8  ;;  %v1576_v40 = vpop.f32.mrb[142].mxu0  ;;  %2886 = vmatprep.mubr.f32.mxu1 %v9232_v56 }
 0x368   :  { %v1577_v18 = vadd.f32 %v1576_v40, %v9156_v35  ;;  %v1578_v12 = vpop.f32.mrb[143].mxu0  ;;  %2887 = vmatmul.mubr.f32.gmra.mrb[10].mxu1 %v9236_v20  ;;  %3282 = vmatmul.mubr.f32.gmra.mrb[248].mxu0 %v9136_v9  ;;  %v9246_v28 = vmax.f32 %v1571_v41, %v1751_v19  ;;  %v2105_v40 = vld [vmem:[#allocation10 + $0x3e0] sm:$0xff]  ;;  %v2114_v9 = vld [vmem:[#allocation10 + $0x428] sm:$0xff] }
 0x369   :  { %v9242_v29 = vmax.f32 %v1573_v8, %v1752_v5  ;;  %v1579_v36 = vadd.f32 %v1578_v12, %v9164_v13  ;;  %3287 = vmatprep.mubr.f32.mxu0 %v9143_v23  ;;  %6634 = vmatpush1.bf16.msra.mxu1 %v6633_v32  ;;  %v2122_v8 = vld [vmem:[#allocation10 + $0x468] sm:$0xff]  ;;  %v6641_v27 = vpack.c.bf16 %v2105_v40, %v2097_v1  ;;  %v2129_v40 = vld [vmem:[#allocation10 + $0x4a0] sm:$0xff] }
 0x36a   :  { %v1755_v48 = vmul.f32 0.2, %v1577_v18  ;;  %6636 = vmatprep.subr.bf16.mxu1 %v6635_v17  ;;  %v6643_v26 = vpack.c.bf16 %v2122_v8, %v2114_v9  ;;  %v2146_v8 = vld [vmem:[#allocation10 + $0x528] sm:$0xff] }
 0x36b   :  { %11430 = vst [vmem:[#allocation86_spill] sm:$0xff] %v9242_v29  ;;  %v1756_v55 = vmul.f32 0.2, %v1579_v36  ;;  %v1582_v2 = vpop.f32.mrb[144].mxu0  ;;  %2892 = vmatprep.mubr.f32.mxu1 %v9242_v29 }
 0x36c   :  { %v1583_v5 = vadd.f32 %v1582_v2, %v9156_v35  ;;  %v1584_v12 = vpop.f32.mrb[145].mxu0  ;;  %2893 = vmatmul.mubr.f32.gmra.mrb[12].mxu1 %v9246_v28  ;;  %3288 = vmatmul.mubr.f32.gmra.mrb[250].mxu0 %v9148_v11  ;;  %v9256_v19 = vmax.f32 %v1577_v18, %v1755_v48  ;;  %v2121_v2 = vld [vmem:[#allocation10 + $0x460] sm:$0xff]  ;;  %v2130_v11 = vld [vmem:[#allocation10 + $0x4a8] sm:$0xff] }
 0x36d   :  { %v9252_v41 = vmax.f32 %v1579_v36, %v1756_v55  ;;  %v1585_v32 = vadd.f32 %v1584_v12, %v9164_v13  ;;  %3293 = vmatprep.mubr.f32.mxu0 %v9158_v45  ;;  %6638 = vmatpush1.bf16.msra.mxu1 %v6637_v34  ;;  %v2138_v36 = vld [vmem:[#allocation10 + $0x4e8] sm:$0xff]  ;;  %v6645_v9 = vpack.c.bf16 %v2121_v2, %v2113_v62 }
 0x36e   :  { %v1759_v17 = vmul.f32 0.2, %v1583_v5  ;;  %6640 = vmatprep.subr.bf16.mxu1 %v6639_v37  ;;  %v6647_v1 = vpack.c.bf16 %v2138_v36, %v2130_v11  ;;  %v2145_v36 = vld [vmem:[#allocation10 + $0x520] sm:$0xff] }
 0x36f   :  { %v1760_v59 = vmul.f32 0.2, %v1585_v32  ;;  %v1588_v23 = vpop.f32.mrb[146].mxu0  ;;  %2898 = vmatprep.mubr.f32.mxu1 %v9252_v41 }
 0x370   :  { %v1589_v55 = vadd.f32 %v1588_v23, %v9156_v35  ;;  %v1590_v12 = vpop.f32.mrb[147].mxu0  ;;  %2899 = vmatmul.mubr.f32.gmra.mrb[14].mxu1 %v9256_v19  ;;  %3294 = vmatmul.mubr.f32.gmra.mrb[252].mxu0 %v9166_v49  ;;  %v9266_v48 = vmax.f32 %v1583_v5, %v1759_v17  ;;  %v2137_v23 = vld [vmem:[#allocation10 + $0x4e0] sm:$0xff]  ;;  %v1995_v49 = vld [vmem:[#allocation10 + $0x70] sm:$0xff]  ;;  %v2004_v5 = vld [vmem:[#allocation10 + $0xb8] sm:$0xff] }
 0x371   :  { %v9262_v18 = vmax.f32 %v1585_v32, %v1760_v59  ;;  %v1591_v34 = vadd.f32 %v1590_v12, %v9164_v13  ;;  %3299 = vmatprep.mubr.f32.mxu0 %v9172_v42  ;;  %6642 = vmatpush1.bf16.msra.mxu1 %v6641_v27  ;;  %v2154_v32 = vld [vmem:[#allocation10 + $0x568] sm:$0xff]  ;;  %v1987_v59 = vld [vmem:[#allocation10 + $0x30] sm:$0xff]  ;;  %v2012_v27 = vld [vmem:[#allocation10 + $0xf8] sm:$0xff] }
 0x372   :  { %v1763_v37 = vmul.f32 0.2, %v1589_v55  ;;  %6644 = vmatprep.subr.bf16.mxu1 %v6643_v26  ;;  %v6649_v26 = vpack.c.bf16 %v2137_v23, %v2129_v40  ;;  %v6741_v24 = vpack.c.bf16 %v1995_v49, %v1987_v59  ;;  %v6653_v23 = vpack.c.bf16 %v2153_v61, %v2145_v36  ;;  %v2161_v59 = vld [vmem:[#allocation10 + $0x5a0] sm:$0xff] }
 0x373   :  { %v1764_v45 = vmul.f32 0.2, %v1591_v34  ;;  %v1594_v14 = vpop.f32.mrb[148].mxu0  ;;  %2904 = vmatprep.mubr.f32.mxu1 %v9262_v18 }
 0x374   :  { %v1595_v12 = vadd.f32 %v1594_v14, %v9156_v35  ;;  %v1596_v42 = vpop.f32.mrb[149].mxu0  ;;  %2905 = vmatmul.mubr.f32.gmra.mrb[16].mxu1 %v9266_v48  ;;  %3300 = vmatmul.mubr.f32.gmra.mrb[254].mxu0 %v9176_v22  ;;  %v9276_v62 = vmax.f32 %v1589_v55, %v1763_v37  ;;  %v6651_v14 = vpack.c.bf16 %v2154_v32, %v2146_v8  ;;  %v2020_v55 = vld [vmem:[#allocation10 + $0x138] sm:$0xff] }
 0x375   :  { %v9272_v11 = vmax.f32 %v1591_v34, %v1764_v45  ;;  %v1597_v17 = vadd.f32 %v1596_v42, %v9164_v13  ;;  %3370 = vmatprep.mubr.f32.mxu0 %v9182_v50  ;;  %6646 = vmatpush1.bf16.msra.mxu1 %v6645_v9  ;;  %v2170_v45 = vld [vmem:[#allocation10 + $0x5e8] sm:$0xff]  ;;  %v6743_v34 = vpack.c.bf16 %v2012_v27, %v2004_v5  ;;  %v2003_v42 = vld [vmem:[#allocation10 + $0xb0] sm:$0xff]  ;;  %v2028_v37 = vld [vmem:[#allocation10 + $0x178] sm:$0xff] }
 0x376   :  { %11431 = vst [vmem:[#allocation87_spill] sm:$0xff] %v9276_v62  ;;  %v1767_v2 = vmul.f32 0.2, %v1595_v12  ;;  %6648 = vmatprep.subr.bf16.mxu1 %v6647_v1  ;;  %v2169_v5 = vld [vmem:[#allocation10 + $0x5e0] sm:$0xff]  ;;  %v2178_v27 = vld [vmem:[#allocation10 + $0x628] sm:$0xff] }
 0x377   :  { %v1768_v22 = vmul.f32 0.2, %v1597_v17  ;;  %v1600_v16 = vpop.f32.mrb[150].mxu0  ;;  %2910 = vmatprep.mubr.f32.mxu1 %v9272_v11 }
 0x378   :  { %v1601_v9 = vadd.f32 %v1600_v16, %v9156_v35  ;;  %v1602_v40 = vpop.f32.mrb[151].mxu0  ;;  %2911 = vmatmul.mubr.f32.gmra.mrb[18].mxu1 %v9276_v62  ;;  %3371 = vmatmul.mubr.f32.vlgmr.msra.gmra.mrb[192].mxu0 %v9186_v60  ;;  %v9286_v8 = vmax.f32 %v1595_v12, %v1767_v2  ;;  %v6655_v16 = vpack.c.bf16 %v2170_v45, %v2162_v54  ;;  %v2036_v54 = vld [vmem:[#allocation10 + $0x1b8] sm:$0xff] }
 0x379   :  { %v9282_v1 = vmax.f32 %v1597_v17, %v1768_v22  ;;  %v1603_v49 = vadd.f32 %v1602_v40, %v9164_v13  ;;  %3376 = vmatprep.mubr.f32.mxu0 %v9192_v6  ;;  %6650 = vmatpush1.bf16.msra.mxu1 %v6649_v26  ;;  %v6745_v60 = vpack.c.bf16 %v2011_v10, %v2003_v42  ;;  %v2186_v22 = vld [vmem:[#allocation10 + $0x668] sm:$0xff]  ;;  %v2019_v40 = vld [vmem:[#allocation10 + $0x130] sm:$0xff]  ;;  %v2044_v2 = vld [vmem:[#allocation10 + $0x1f8] sm:$0xff] }
 0x37a   :  { %11433 = vst [vmem:[#allocation89_spill] sm:$0xff] %v9286_v8  ;;  %v1771_v32 = vmul.f32 0.2, %v1601_v9  ;;  %6652 = vmatprep.subr.bf16.mxu1 %v6651_v14  ;;  %6742 = vmatpush1.bf16.msra.mxu0 %v6741_v24  ;;  %v6747_v17 = vpack.c.bf16 %v2028_v37, %v2020_v55  ;;  %v2027_v26 = vld [vmem:[#allocation10 + $0x170] sm:$0xff]  ;;  %v6657_v14 = vpack.c.bf16 %v2169_v5, %v2161_v59  ;;  %v2185_v42 = vld [vmem:[#allocation10 + $0x660] sm:$0xff]  ;;  %v2194_v55 = vld [vmem:[#allocation10 + $0x6a8] sm:$0xff] }
 0x37b   :  { %11432 = vst [vmem:[#allocation88_spill] sm:$0xff] %v9282_v1  ;;  %v1772_v50 = vmul.f32 0.2, %v1603_v49  ;;  %v1606_v47 = vpop.f32.mrb[152].mxu0  ;;  %2916 = vmatprep.mubr.f32.mxu1 %v9282_v1  ;;  %6744 = vmatprep.subr.bf16.mxu0 %v6743_v34  ;;  %v2177_v34 = vld [vmem:[#allocation10 + $0x620] sm:$0xff]  ;;  %v6749_v37 = vpack.c.bf16 %v2027_v26, %v2019_v40  ;;  %v2060_v59 = vld [vmem:[#allocation10 + $0x278] sm:$0xff] }
 0x37c   :  { %v1607_v61 = vadd.f32 %v1606_v47, %v9156_v35  ;;  %v1608_v12 = vpop.f32.mrb[153].mxu0  ;;  %2917 = vmatmul.mubr.f32.gmra.mrb[20].mxu1 %v9286_v8  ;;  %3377 = vmatmul.mubr.f32.gmra.mrb[194].mxu0 %v9196_v46  ;;  %v9296_v36 = vmax.f32 %v1601_v9, %v1771_v32  ;;  %v6659_v47 = vpack.c.bf16 %v2186_v22, %v2178_v27  ;;  %v2193_v40 = vld [vmem:[#allocation10 + $0x6a0] sm:$0xff] }
 0x37d   :  { %v9292_v24 = vmax.f32 %v1603_v49, %v1772_v50  ;;  %v1609_v10 = vadd.f32 %v1608_v12, %v9164_v13  ;;  %3382 = vmatprep.mubr.f32.mxu0 %v9202_v39  ;;  %6654 = vmatpush1.bf16.msra.mxu1 %v6653_v23  ;;  %v2202_v50 = vld [vmem:[#allocation10 + $0x6e8] sm:$0xff]  ;;  %v6751_v49 = vpack.c.bf16 %v2044_v2, %v2036_v54  ;;  %v2035_v12 = vld [vmem:[#allocation10 + $0x1b0] sm:$0xff]  ;;  %v2201_v26 = vld [vmem:[#allocation10 + $0x6e0] sm:$0xff] }
 0x37e   :  { %11435 = vst [vmem:[#allocation91_spill] sm:$0xff] %v9296_v36  ;;  %v1775_v45 = vmul.f32 0.2, %v1607_v61  ;;  %6656 = vmatprep.subr.bf16.mxu1 %v6655_v16  ;;  %6746 = vmatpush1.bf16.msra.mxu0 %v6745_v60  ;;  %v2043_v23 = vld [vmem:[#allocation10 + $0x1f0] sm:$0xff]  ;;  %v2052_v16 = vld [vmem:[#allocation10 + $0x238] sm:$0xff]  ;;  %v6661_v27 = vpack.c.bf16 %v2185_v42, %v2177_v34 }
 0x37f   :  { %11434 = vst [vmem:[#allocation90_spill] sm:$0xff] %v9292_v24  ;;  %v1776_v46 = vmul.f32 0.2, %v1609_v10  ;;  %v1612_v6 = vpop.f32.mrb[154].mxu0  ;;  %2922 = vmatprep.mubr.f32.mxu1 %v9292_v24  ;;  %6748 = vmatprep.subr.bf16.mxu0 %v6747_v17  ;;  %v6753_v54 = vpack.c.bf16 %v2043_v23, %v2035_v12  ;;  %v2051_v2 = vld [vmem:[#allocation10 + $0x230] sm:$0xff]  ;;  %v2076_v34 = vld [vmem:[#allocation10 + $0x2f8] sm:$0xff] }
 0x380   :  { %v1613_v9 = vadd.f32 %v1612_v6, %v9156_v35  ;;  %v1614_v32 = vpop.f32.mrb[155].mxu0  ;;  %2923 = vmatmul.mubr.f32.gmra.mrb[22].mxu1 %v9296_v36  ;;  %3383 = vmatmul.mubr.f32.gmra.mrb[196].mxu0 %v9206_v15  ;;  %v9306_v22 = vmax.f32 %v1607_v61, %v1775_v45  ;;  %v6663_v6 = vpack.c.bf16 %v2202_v50, %v2194_v55  ;;  %v2209_v12 = vld [vmem:[#allocation10 + $0x720] sm:$0xff] }
 0x381   :  { %v9302_v60 = vmax.f32 %v1609_v10, %v1776_v46  ;;  %v1615_v5 = vadd.f32 %v1614_v32, %v9164_v13  ;;  %3388 = vmatprep.mubr.f32.mxu0 %v9212_v57  ;;  %6658 = vmatpush1.bf16.msra.mxu1 %v6657_v14  ;;  %v2210_v46 = vld [vmem:[#allocation10 + $0x728] sm:$0xff]  ;;  %v6755_v32 = vpack.c.bf16 %v2060_v59, %v2052_v16  ;;  %v2059_v14 = vld [vmem:[#allocation10 + $0x270] sm:$0xff]  ;;  %v2217_v23 = vld [vmem:[#allocation10 + $0x760] sm:$0xff] }
 0x382   :  { %11437 = vst [vmem:[#allocation93_spill] sm:$0xff] %v9306_v22  ;;  %v1779_v17 = vmul.f32 0.2, %v1613_v9  ;;  %6660 = vmatprep.subr.bf16.mxu1 %v6659_v47  ;;  %6750 = vmatpush1.bf16.msra.mxu0 %v6749_v37  ;;  %v2218_v10 = vld [vmem:[#allocation10 + $0x768] sm:$0xff]  ;;  %v2068_v47 = vld [vmem:[#allocation10 + $0x2b8] sm:$0xff]  ;;  %v6665_v37 = vpack.c.bf16 %v2201_v26, %v2193_v40  ;;  %v6757_v16 = vpack.c.bf16 %v2059_v14, %v2051_v2  ;;  %v2067_v59 = vld [vmem:[#allocation10 + $0x2b0] sm:$0xff] }
 0x383   :  { %11436 = vst [vmem:[#allocation92_spill] sm:$0xff] %v9302_v60  ;;  %v1780_v15 = vmul.f32 0.2, %v1615_v5  ;;  %v1618_v39 = vpop.f32.mrb[156].mxu0  ;;  %2928 = vmatprep.mubr.f32.mxu1 %v9302_v60  ;;  %6752 = vmatprep.subr.bf16.mxu0 %v6751_v49  ;;  %v2092_v40 = vld [vmem:[#allocation10 + $0x378] sm:$0xff]  ;;  %v6669_v2 = vpack.c.bf16 %v2217_v23, %v2209_v12  ;;  %v2233_v14 = vld [vmem:[#allocation10 + $0x7e0] sm:$0xff] }
 0x384   :  { %v1619_v61 = vadd.f32 %v1618_v39, %v9156_v35  ;;  %v1620_v45 = vpop.f32.mrb[157].mxu0  ;;  %2929 = vmatmul.mubr.f32.gmra.mrb[24].mxu1 %v9306_v22  ;;  %3389 = vmatmul.mubr.f32.gmra.mrb[198].mxu0 %v9216_v4  ;;  %v9316_v50 = vmax.f32 %v1613_v9, %v1779_v17  ;;  %v6667_v39 = vpack.c.bf16 %v2218_v10, %v2210_v46  ;;  %v2108_v12 = vld [vmem:[#allocation10 + $0x3f8] sm:$0xff] }
 0x385   :  { %v9312_v42 = vmax.f32 %v1615_v5, %v1780_v15  ;;  %v1621_v55 = vadd.f32 %v1620_v45, %v9164_v13  ;;  %3394 = vmatprep.mubr.f32.mxu0 %v9222_v51  ;;  %6662 = vmatpush1.bf16.msra.mxu1 %v6661_v27  ;;  %v2226_v15 = vld [vmem:[#allocation10 + $0x7a8] sm:$0xff]  ;;  %v6759_v45 = vpack.c.bf16 %v2076_v34, %v2068_v47  ;;  %v2075_v27 = vld [vmem:[#allocation10 + $0x2f0] sm:$0xff] }
 0x386   :  { %11439 = vst [vmem:[#allocation95_spill] sm:$0xff] %v9316_v50  ;;  %v1783_v49 = vmul.f32 0.2, %v1619_v61  ;;  %6664 = vmatprep.subr.bf16.mxu1 %v6663_v6  ;;  %6754 = vmatpush1.bf16.msra.mxu0 %v6753_v54  ;;  %v2234_v5 = vld [vmem:[#allocation10 + $0x7e8] sm:$0xff]  ;;  %v2084_v6 = vld [vmem:[#allocation10 + $0x338] sm:$0xff]  ;;  %v6761_v47 = vpack.c.bf16 %v2075_v27, %v2067_v59  ;;  %v2083_v34 = vld [vmem:[#allocation10 + $0x330] sm:$0xff] }
 0x387   :  { %11438 = vst [vmem:[#allocation94_spill] sm:$0xff] %v9312_v42  ;;  %v1784_v4 = vmul.f32 0.2, %v1621_v55  ;;  %v1624_v57 = vpop.f32.mrb[158].mxu0  ;;  %2934 = vmatprep.mubr.f32.mxu1 %v9312_v42  ;;  %6756 = vmatprep.subr.bf16.mxu0 %v6755_v32  ;;  %v2225_v32 = vld [vmem:[#allocation10 + $0x7a0] sm:$0xff] }
 0x388   :  { %v1625_v9 = vadd.f32 %v1624_v57, %v9156_v35  ;;  %v1626_v17 = vpop.f32.mrb[159].mxu0  ;;  %2935 = vmatmul.mubr.f32.gmra.mrb[26].mxu1 %v9316_v50  ;;  %3395 = vmatmul.mubr.f32.gmra.mrb[200].mxu0 %v9226_v0  ;;  %v9326_v46 = vmax.f32 %v1619_v61, %v1783_v49  ;;  %v6671_v57 = vpack.c.bf16 %v2234_v5, %v2226_v15 }
 0x389   :  { %v9322_v26 = vmax.f32 %v1621_v55, %v1784_v4  ;;  %v1627_v54 = vadd.f32 %v1626_v17, %v9164_v13  ;;  %3400 = vmatprep.mubr.f32.mxu0 %v9232_v56  ;;  %6666 = vmatpush1.bf16.msra.mxu1 %v6665_v37  ;;  %v6763_v4 = vpack.c.bf16 %v2092_v40, %v2084_v6  ;;  %v2091_v55 = vld [vmem:[#allocation10 + $0x370] sm:$0xff]  ;;  %v2242_v17 = vld [vmem:[#allocation10 + $0x828] sm:$0xff] }
 0x38a   :  { %v1787_v10 = vmul.f32 0.2, %v1625_v9  ;;  %6668 = vmatprep.subr.bf16.mxu1 %v6667_v39  ;;  %6758 = vmatpush1.bf16.msra.mxu0 %v6757_v16  ;;  %v2250_v37 = vld [vmem:[#allocation10 + $0x868] sm:$0xff]  ;;  %v2100_v39 = vld [vmem:[#allocation10 + $0x3b8] sm:$0xff]  ;;  %v6673_v59 = vpack.c.bf16 %v2233_v14, %v2225_v32  ;;  %v2099_v40 = vld [vmem:[#allocation10 + $0x3b0] sm:$0xff] }
 0x38b   :  { %v1788_v0 = vmul.f32 0.2, %v1627_v54  ;;  %v1630_v51 = vpop.f32.mrb[160].mxu0  ;;  %2940 = vmatprep.mubr.f32.mxu1 %v9322_v26  ;;  %6760 = vmatprep.subr.bf16.mxu0 %v6759_v45  ;;  %v6675_v45 = vpack.c.bf16 %v2250_v37, %v2242_v17  ;;  %v2115_v17 = vld [vmem:[#allocation10 + $0x430] sm:$0xff] }
 0x38c   :  { %v1631_v61 = vadd.f32 %v1630_v51, %v9156_v35  ;;  %v1632_v49 = vpop.f32.mrb[161].mxu0  ;;  %2941 = vmatmul.mubr.f32.gmra.mrb[28].mxu1 %v9326_v46  ;;  %3401 = vmatmul.mubr.f32.gmra.mrb[202].mxu0 %v9236_v20  ;;  %v9336_v15 = vmax.f32 %v1625_v9, %v1787_v10  ;;  %v6765_v51 = vpack.c.bf16 %v2091_v55, %v2083_v34  ;;  %v2116_v9 = vld [vmem:[#allocation10 + $0x438] sm:$0xff]  ;;  %v2123_v37 = vld [vmem:[#allocation10 + $0x470] sm:$0xff] }
 0x38d   :  { %v9332_v23 = vmax.f32 %v1627_v54, %v1788_v0  ;;  %v1633_v16 = vadd.f32 %v1632_v49, %v9164_v13  ;;  %3406 = vmatprep.mubr.f32.mxu0 %v9242_v29  ;;  %6670 = vmatpush1.bf16.msra.mxu1 %v6669_v2  ;;  %v6767_v0 = vpack.c.bf16 %v2108_v12, %v2100_v39  ;;  %v2107_v54 = vld [vmem:[#allocation10 + $0x3f0] sm:$0xff]  ;;  %v2124_v2 = vld [vmem:[#allocation10 + $0x478] sm:$0xff] }
 0x38e   :  { %v1791_v5 = vmul.f32 0.2, %v1631_v61  ;;  %6672 = vmatprep.subr.bf16.mxu1 %v6671_v57  ;;  %6762 = vmatpush1.bf16.msra.mxu0 %v6761_v47  ;;  %v6769_v47 = vpack.c.bf16 %v2107_v54, %v2099_v40  ;;  %v6771_v55 = vpack.c.bf16 %v2124_v2, %v2116_v9  ;;  %v2140_v12 = vld [vmem:[#allocation10 + $0x4f8] sm:$0xff]  ;;  %v2131_v40 = vld [vmem:[#allocation10 + $0x4b0] sm:$0xff] }
 0x38f   :  { %v1792_v27 = vmul.f32 0.2, %v1633_v16  ;;  %v1636_v6 = vpop.f32.mrb[162].mxu0  ;;  %2946 = vmatprep.mubr.f32.mxu1 %v9332_v23  ;;  %6764 = vmatprep.subr.bf16.mxu0 %v6763_v4  ;;  %v2139_v54 = vld [vmem:[#allocation10 + $0x4f0] sm:$0xff] }
 0x390   :  { %v1637_v49 = vadd.f32 %v1636_v6, %v9156_v35  ;;  %v1638_v29 = vpop.f32.mrb[163].mxu0  ;;  %2947 = vmatmul.mubr.f32.gmra.mrb[30].mxu1 %v9336_v15  ;;  %3407 = vmatmul.mubr.f32.gmra.mrb[204].mxu0 %v9246_v28  ;;  %v9346_v32 = vmax.f32 %v1631_v61, %v1791_v5  ;;  %v2132_v61 = vld [vmem:[#allocation10 + $0x4b8] sm:$0xff] }
 0x391   :  { %v9342_v10 = vmax.f32 %v1633_v16, %v1792_v27  ;;  %v1639_v57 = vadd.f32 %v1638_v29, %v9164_v13  ;;  %3412 = vmatprep.mubr.f32.mxu0 %v9252_v41  ;;  %6674 = vmatpush1.bf16.msra.mxu1 %v6673_v59 }
 0x392   :  { %v1795_v14 = vmul.f32 0.2, %v1637_v49  ;;  %6766 = vmatpush1.bf16.msra.mxu0 %v6765_v51  ;;  %6676 = vmatprep.subr.bf16.mxu1 %v6675_v45  ;;  %v6773_v45 = vpack.c.bf16 %v2123_v37, %v2115_v17 }
 0x393   :  { %v1796_v34 = vmul.f32 0.2, %v1639_v57  ;;  %v1642_v4 = vpop.f32.mrb[164].mxu0  ;;  %2952 = vmatprep.mubr.f32.mxu1 %v9342_v10  ;;  %6768 = vmatprep.subr.bf16.mxu0 %v6767_v0  ;;  %v6775_v0 = vpack.c.bf16 %v2140_v12, %v2132_v61  ;;  %v2147_v61 = vld [vmem:[#allocation10 + $0x530] sm:$0xff] }
 0x394   :  { %v1643_v39 = vadd.f32 %v1642_v4, %v9156_v35  ;;  %v1644_v29 = vpop.f32.mrb[165].mxu0  ;;  %2953 = vmatmul.mubr.f32.gmra.mrb[32].mxu1 %v9346_v32  ;;  %3413 = vmatmul.mubr.f32.gmra.mrb[206].mxu0 %v9256_v19  ;;  %v9356_v5 = vmax.f32 %v1637_v49, %v1795_v14  ;;  %v2148_v49 = vld [vmem:[#allocation10 + $0x538] sm:$0xff]  ;;  %v2155_v12 = vld [vmem:[#allocation10 + $0x570] sm:$0xff] }
 0x395   :  { %v9352_v16 = vmax.f32 %v1639_v57, %v1796_v34  ;;  %v1645_v59 = vadd.f32 %v1644_v29, %v9164_v13  ;;  %3418 = vmatprep.mubr.f32.mxu0 %v9262_v18  ;;  %v2156_v57 = vld [vmem:[#allocation10 + $0x578] sm:$0xff] }
 0x396   :  { %11440 = vst [vmem:[#allocation96_spill] sm:$0xff] %v9356_v5  ;;  %v1799_v51 = vmul.f32 0.2, %v1643_v39  ;;  %6770 = vmatpush1.bf16.msra.mxu0 %v6769_v47  ;;  %v6779_v29 = vpack.c.bf16 %v2156_v57, %v2148_v49 }
 0x397   :  { %v1800_v27 = vmul.f32 0.2, %v1645_v59  ;;  %v1648_v6 = vpop.f32.mrb[166].mxu0  ;;  %2958 = vmatprep.mubr.f32.mxu1 %v9352_v16  ;;  %6772 = vmatprep.subr.bf16.mxu0 %v6771_v55  ;;  %v6777_v55 = vpack.c.bf16 %v2139_v54, %v2131_v40  ;;  %v6781_v54 = vpack.c.bf16 %v2155_v12, %v2147_v61 }
 0x398   :  { %v1649_v9 = vadd.f32 %v1648_v6, %v9156_v35  ;;  %v1650_v2 = vpop.f32.mrb[167].mxu0  ;;  %2959 = vmatmul.mubr.f32.gmra.mrb[34].mxu1 %v9356_v5  ;;  %3419 = vmatmul.mubr.f32.gmra.mrb[208].mxu0 %v9266_v48  ;;  %v9366_v34 = vmax.f32 %v1643_v39, %v1799_v51  ;;  %v2164_v39 = vld [vmem:[#allocation10 + $0x5b8] sm:$0xff] }
 0x399   :  { %v9362_v14 = vmax.f32 %v1645_v59, %v1800_v27  ;;  %v1651_v47 = vadd.f32 %v1650_v2, %v9164_v13  ;;  %3424 = vmatprep.mubr.f32.mxu0 %v9272_v11  ;;  %v2172_v51 = vld [vmem:[#allocation10 + $0x5f8] sm:$0xff] }
 0x39a   :  { %11442 = vst [vmem:[#allocation98_spill] sm:$0xff] %v9366_v34  ;;  %v1803_v4 = vmul.f32 0.2, %v1649_v9  ;;  %6774 = vmatpush1.bf16.msra.mxu0 %v6773_v45  ;;  %v6783_v57 = vpack.c.bf16 %v2172_v51, %v2164_v39 }
 0x39b   :  { %11441 = vst [vmem:[#allocation97_spill] sm:$0xff] %v9362_v14  ;;  %v1804_v17 = vmul.f32 0.2, %v1651_v47  ;;  %v1654_v37 = vpop.f32.mrb[168].mxu0  ;;  %2964 = vmatprep.mubr.f32.mxu1 %v9362_v14  ;;  %6776 = vmatprep.subr.bf16.mxu0 %v6775_v0 }
 0x39c   :  { %v1655_v59 = vadd.f32 %v1654_v37, %v9156_v35  ;;  %v1656_v27 = vpop.f32.mrb[169].mxu0  ;;  %2965 = vmatmul.mubr.f32.gmra.mrb[36].mxu1 %v9366_v34  ;;  %3425 = vmatmul.mubr.f32.gmra.mrb[210].mxu0 %v9276_v62  ;;  %v9376_v40 = vmax.f32 %v1649_v9, %v1803_v4  ;;  %v2163_v37 = vld [vmem:[#allocation10 + $0x5b0] sm:$0xff]  ;;  %v2180_v9 = vld [vmem:[#allocation10 + $0x638] sm:$0xff] }
 0x39d   :  { %v9372_v6 = vmax.f32 %v1651_v47, %v1804_v17  ;;  %v1657_v45 = vadd.f32 %v1656_v27, %v9164_v13  ;;  %3430 = vmatprep.mubr.f32.mxu0 %v9282_v1  ;;  %v2171_v62 = vld [vmem:[#allocation10 + $0x5f0] sm:$0xff]  ;;  %v2188_v4 = vld [vmem:[#allocation10 + $0x678] sm:$0xff] }
 0x39e   :  { %v1807_v0 = vmul.f32 0.2, %v1655_v59  ;;  %6778 = vmatpush1.bf16.msra.mxu0 %v6777_v55  ;;  %v6785_v12 = vpack.c.bf16 %v2171_v62, %v2163_v37  ;;  %v2187_v1 = vld [vmem:[#allocation10 + $0x670] sm:$0xff] }
 0x39f   :  { %11443 = vst [vmem:[#allocation99_spill] sm:$0xff] %v9372_v6  ;;  %v1808_v2 = vmul.f32 0.2, %v1657_v45  ;;  %v1660_v49 = vpop.f32.mrb[170].mxu0  ;;  %2970 = vmatprep.mubr.f32.mxu1 %v9372_v6  ;;  %6780 = vmatprep.subr.bf16.mxu0 %v6779_v29 }
 0x3a0   :  { %v1661_v47 = vadd.f32 %v1660_v49, %v9156_v35  ;;  %v1662_v17 = vpop.f32.mrb[171].mxu0  ;;  %2971 = vmatmul.mubr.f32.gmra.mrb[38].mxu1 %v9376_v40  ;;  %3431 = vmatmul.mubr.f32.gmra.mrb[212].mxu0 %v9286_v8  ;;  %v9386_v61 = vmax.f32 %v1655_v59, %v1807_v0  ;;  %v6787_v49 = vpack.c.bf16 %v2188_v4, %v2180_v9  ;;  %v2179_v8 = vld [vmem:[#allocation10 + $0x630] sm:$0xff]  ;;  %v2196_v59 = vld [vmem:[#allocation10 + $0x6b8] sm:$0xff] }
 0x3a1   :  { %v9382_v27 = vmax.f32 %v1657_v45, %v1808_v2  ;;  %v1663_v55 = vadd.f32 %v1662_v17, %v9164_v13  ;;  %3436 = vmatprep.mubr.f32.mxu0 %v9292_v24  ;;  %v2204_v0 = vld [vmem:[#allocation10 + $0x6f8] sm:$0xff]  ;;  %v6789_v37 = vpack.c.bf16 %v2187_v1, %v2179_v8  ;;  %v2203_v24 = vld [vmem:[#allocation10 + $0x6f0] sm:$0xff] }
 0x3a2   :  { %v1811_v29 = vmul.f32 0.2, %v1661_v47  ;;  %6782 = vmatpush1.bf16.msra.mxu0 %v6781_v54 }
 0x3a3   :  { %v1812_v39 = vmul.f32 0.2, %v1663_v55  ;;  %v1666_v51 = vpop.f32.mrb[172].mxu0  ;;  %2976 = vmatprep.mubr.f32.mxu1 %v9382_v27  ;;  %6784 = vmatprep.subr.bf16.mxu0 %v6783_v57 }
 0x3a4   :  { %v1667_v45 = vadd.f32 %v1666_v51, %v9156_v35  ;;  %v1668_v2 = vpop.f32.mrb[173].mxu0  ;;  %2977 = vmatmul.mubr.f32.gmra.mrb[40].mxu1 %v9386_v61  ;;  %3437 = vmatmul.mubr.f32.gmra.mrb[214].mxu0 %v9296_v36  ;;  %v9396_v54 = vmax.f32 %v1661_v47, %v1811_v29  ;;  %v6791_v51 = vpack.c.bf16 %v2204_v0, %v2196_v59  ;;  %v2195_v36 = vld [vmem:[#allocation10 + $0x6b0] sm:$0xff]  ;;  %v2212_v47 = vld [vmem:[#allocation10 + $0x738] sm:$0xff] }
 0x3a5   :  { %v9392_v17 = vmax.f32 %v1663_v55, %v1812_v39  ;;  %v1669_v62 = vadd.f32 %v1668_v2, %v9164_v13  ;;  %3442 = vmatprep.mubr.f32.mxu0 %v9302_v60  ;;  %v2220_v29 = vld [vmem:[#allocation10 + $0x778] sm:$0xff]  ;;  %v2219_v60 = vld [vmem:[#allocation10 + $0x770] sm:$0xff] }
 0x3a6   :  { %11444 = vst [vmem:[#allocation100_spill] sm:$0xff] %v9396_v54  ;;  %v1815_v57 = vmul.f32 0.2, %v1667_v45  ;;  %6786 = vmatpush1.bf16.msra.mxu0 %v6785_v12 }
 0x3a7   :  { %v1816_v9 = vmul.f32 0.2, %v1669_v62  ;;  %v1672_v4 = vpop.f32.mrb[174].mxu0  ;;  %2982 = vmatprep.mubr.f32.mxu1 %v9392_v17  ;;  %6788 = vmatprep.subr.bf16.mxu0 %v6787_v49  ;;  %v6793_v49 = vpack.c.bf16 %v2203_v24, %v2195_v36 }
 0x3a8   :  { %v1673_v55 = vadd.f32 %v1672_v4, %v9156_v35  ;;  %v1674_v39 = vpop.f32.mrb[175].mxu0  ;;  %2983 = vmatmul.mubr.f32.gmra.mrb[42].mxu1 %v9396_v54  ;;  %3443 = vmatmul.mubr.f32.gmra.mrb[216].mxu0 %v9306_v22  ;;  %v9406_v8 = vmax.f32 %v1667_v45, %v1815_v57  ;;  %v6795_v4 = vpack.c.bf16 %v2220_v29, %v2212_v47  ;;  %v2211_v22 = vld [vmem:[#allocation10 + $0x730] sm:$0xff]  ;;  %v2228_v45 = vld [vmem:[#allocation10 + $0x7b8] sm:$0xff] }
 0x3a9   :  { %v9402_v2 = vmax.f32 %v1669_v62, %v1816_v9  ;;  %v1675_v1 = vadd.f32 %v1674_v39, %v9164_v13  ;;  %3448 = vmatprep.mubr.f32.mxu0 %v9312_v42  ;;  %v2236_v57 = vld [vmem:[#allocation10 + $0x7f8] sm:$0xff]  ;;  %v2235_v42 = vld [vmem:[#allocation10 + $0x7f0] sm:$0xff] }
 0x3aa   :  { %11446 = vst [vmem:[#allocation102_spill] sm:$0xff] %v9406_v8  ;;  %v1819_v12 = vmul.f32 0.2, %v1673_v55  ;;  %6790 = vmatpush1.bf16.msra.mxu0 %v6789_v37 }
 0x3ab   :  { %11445 = vst [vmem:[#allocation101_spill] sm:$0xff] %v9402_v2  ;;  %v1820_v59 = vmul.f32 0.2, %v1675_v1  ;;  %v1678_v0 = vpop.f32.mrb[176].mxu0  ;;  %2988 = vmatprep.mubr.f32.mxu1 %v9402_v2  ;;  %6792 = vmatprep.subr.bf16.mxu0 %v6791_v51  ;;  %v6797_v51 = vpack.c.bf16 %v2219_v60, %v2211_v22 }
 0x3ac   :  { %v1679_v62 = vadd.f32 %v1678_v0, %v9156_v35  ;;  %v1680_v9 = vpop.f32.mrb[177].mxu0  ;;  %2989 = vmatmul.mubr.f32.gmra.mrb[44].mxu1 %v9406_v8  ;;  %3449 = vmatmul.mubr.f32.gmra.mrb[218].mxu0 %v9316_v50  ;;  %v9416_v36 = vmax.f32 %v1673_v55, %v1819_v12  ;;  %v6799_v0 = vpack.c.bf16 %v2236_v57, %v2228_v45  ;;  %v2227_v50 = vld [vmem:[#allocation10 + $0x7b0] sm:$0xff] }
 0x3ad   :  { %v9412_v39 = vmax.f32 %v1675_v1, %v1820_v59  ;;  %v1681_v24 = vadd.f32 %v1680_v9, %v9164_v13  ;;  %3454 = vmatprep.mubr.f32.mxu0 %v9322_v26 }
 0x3ae   :  { %v1823_v37 = vmul.f32 0.2, %v1679_v62  ;;  %6794 = vmatpush1.bf16.msra.mxu0 %v6793_v49  ;;  %v6801_v49 = vpack.c.bf16 %v2235_v42, %v2227_v50  ;;  %v2244_v50 = vld [vmem:[#allocation10 + $0x838] sm:$0xff] }
 0x3af   :  { %11447 = vst [vmem:[#allocation103_spill] sm:$0xff] %v9412_v39  ;;  %v1824_v47 = vmul.f32 0.2, %v1681_v24  ;;  %v1684_v29 = vpop.f32.mrb[178].mxu0  ;;  %2994 = vmatprep.mubr.f32.mxu1 %v9412_v39  ;;  %6796 = vmatprep.subr.bf16.mxu0 %v6795_v4 }
 0x3b0   :  { %v1685_v1 = vadd.f32 %v1684_v29, %v9156_v35  ;;  %v1686_v59 = vpop.f32.mrb[179].mxu0  ;;  %2995 = vmatmul.mubr.f32.gmra.mrb[46].mxu1 %v9416_v36  ;;  %3455 = vmatmul.mubr.f32.gmra.mrb[220].mxu0 %v9326_v46  ;;  %v9426_v60 = vmax.f32 %v1679_v62, %v1823_v37 }
 0x3b1   :  { %v9422_v55 = vmax.f32 %v1681_v24, %v1824_v47  ;;  %v1687_v12 = vadd.f32 %v1686_v59, %v9164_v13  ;;  %3460 = vmatprep.mubr.f32.mxu0 %v9332_v23 }
 0x3b2   :  { %11448 = vst [vmem:[#allocation104_spill] sm:$0xff] %v9426_v60  ;;  %v1827_v22 = vmul.f32 0.2, %v1685_v1  ;;  %6798 = vmatpush1.bf16.msra.mxu0 %v6797_v51  ;;  %v2252_v51 = vld [vmem:[#allocation10 + $0x878] sm:$0xff] }
 0x3b3   :  { %v1828_v4 = vmul.f32 0.2, %v1687_v12  ;;  %v1690_v9 = vpop.f32.mrb[180].mxu0  ;;  %3000 = vmatprep.mubr.f32.mxu1 %v9422_v55  ;;  %6800 = vmatprep.subr.bf16.mxu0 %v6799_v0  ;;  %v6803_v0 = vpack.c.bf16 %v2252_v51, %v2244_v50 }
 0x3b4   :  { %v1691_v45 = vadd.f32 %v1690_v9, %v9156_v35  ;;  %v1692_v57 = vpop.f32.mrb[181].mxu0  ;;  %3001 = vmatmul.mubr.f32.gmra.mrb[48].mxu1 %v9426_v60  ;;  %3461 = vmatmul.mubr.f32.gmra.mrb[222].mxu0 %v9336_v15  ;;  %v9436_v37 = vmax.f32 %v1685_v1, %v1827_v22 }
 0x3b5   :  { %v9432_v24 = vmax.f32 %v1687_v12, %v1828_v4  ;;  %v1693_v62 = vadd.f32 %v1692_v57, %v9164_v13  ;;  %3466 = vmatprep.mubr.f32.mxu0 %v9342_v10 }
 0x3b6   :  { %11450 = vst [vmem:[#allocation106_spill] sm:$0xff] %v9436_v37  ;;  %v1831_v42 = vmul.f32 0.2, %v1691_v45  ;;  %6802 = vmatpush1.bf16.msra.mxu0 %v6801_v49 }
 0x3b7   :  { %11449 = vst [vmem:[#allocation105_spill] sm:$0xff] %v9432_v24  ;;  %v1832_v47 = vmul.f32 0.2, %v1693_v62  ;;  %v1696_v29 = vpop.f32.mrb[182].mxu0  ;;  %3006 = vmatprep.mubr.f32.mxu1 %v9432_v24  ;;  %6804 = vmatprep.subr.bf16.mxu0 %v6803_v0 }
 0x3b8   :  { %v1697_v59 = vadd.f32 %v1696_v29, %v9156_v35  ;;  %v1698_v9 = vpop.f32.mrb[183].mxu0  ;;  %3007 = vmatmul.mubr.f32.gmra.mrb[50].mxu1 %v9436_v37  ;;  %3467 = vmatmul.mubr.f32.gmra.mrb[224].mxu0 %v9346_v32  ;;  %v9446_v22 = vmax.f32 %v1691_v45, %v1831_v42 }
 0x3b9   :  { %v9442_v12 = vmax.f32 %v1693_v62, %v1832_v47  ;;  %v1699_v1 = vadd.f32 %v1698_v9, %v9164_v13  ;;  %3472 = vmatprep.mubr.f32.mxu0 %v9352_v16 }
 0x3ba   :  { %11452 = vst [vmem:[#allocation108_spill] sm:$0xff] %v9446_v22  ;;  %v1835_v49 = vmul.f32 0.2, %v1697_v59 }
 0x3bb   :  { %11451 = vst [vmem:[#allocation107_spill] sm:$0xff] %v9442_v12  ;;  %v1836_v4 = vmul.f32 0.2, %v1699_v1  ;;  %v1702_v57 = vpop.f32.mrb[184].mxu0  ;;  %3012 = vmatprep.mubr.f32.mxu1 %v9442_v12 }
 0x3bc   :  { %v1703_v50 = vadd.f32 %v1702_v57, %v9156_v35  ;;  %v1704_v51 = vpop.f32.mrb[185].mxu0  ;;  %3013 = vmatmul.mubr.f32.gmra.mrb[52].mxu1 %v9446_v22  ;;  %3473 = vmatmul.mubr.f32.gmra.mrb[226].mxu0 %v9356_v5  ;;  %v9456_v45 = vmax.f32 %v1697_v59, %v1835_v49 }
 0x3bd   :  { %v9452_v62 = vmax.f32 %v1699_v1, %v1836_v4  ;;  %v1705_v47 = vadd.f32 %v1704_v51, %v9164_v13  ;;  %3478 = vmatprep.mubr.f32.mxu0 %v9362_v14 }
 0x3be   :  { %11454 = vst [vmem:[#allocation110_spill] sm:$0xff] %v9456_v45  ;;  %v1839_v42 = vmul.f32 0.2, %v1703_v50 }
 0x3bf   :  { %11453 = vst [vmem:[#allocation109_spill] sm:$0xff] %v9452_v62  ;;  %v1840_v29 = vmul.f32 0.2, %v1705_v47  ;;  %v1708_v0 = vpop.f32.mrb[186].mxu0  ;;  %3018 = vmatprep.mubr.f32.mxu1 %v9452_v62 }
 0x3c0   :  { %v1709_v9 = vadd.f32 %v1708_v0, %v9156_v35  ;;  %v1710_v57 = vpop.f32.mrb[187].mxu0  ;;  %3019 = vmatmul.mubr.f32.gmra.mrb[54].mxu1 %v9456_v45  ;;  %3479 = vmatmul.mubr.f32.gmra.mrb[228].mxu0 %v9366_v34  ;;  %v9466_v59 = vmax.f32 %v1703_v50, %v1839_v42 }
 0x3c1   :  { %v9462_v1 = vmax.f32 %v1705_v47, %v1840_v29  ;;  %v1711_v4 = vadd.f32 %v1710_v57, %v9164_v13  ;;  %3484 = vmatprep.mubr.f32.mxu0 %v9372_v6 }
 0x3c2   :  { %11456 = vst [vmem:[#allocation112_spill] sm:$0xff] %v9466_v59  ;;  %v1843_v49 = vmul.f32 0.2, %v1709_v9 }
 0x3c3   :  { %11455 = vst [vmem:[#allocation111_spill] sm:$0xff] %v9462_v1  ;;  %v1844_v51 = vmul.f32 0.2, %v1711_v4  ;;  %v1714_v14 = vpop.f32.mrb[188].mxu0  ;;  %3024 = vmatprep.mubr.f32.mxu1 %v9462_v1 }
 0x3c4   :  { %v1715_v0 = vadd.f32 %v1714_v14, %v9156_v35  ;;  %v1716_v5 = vpop.f32.mrb[189].mxu0  ;;  %3025 = vmatmul.mubr.f32.gmra.mrb[56].mxu1 %v9466_v59  ;;  %3485 = vmatmul.mubr.f32.gmra.mrb[230].mxu0 %v9376_v40  ;;  %v9476_v50 = vmax.f32 %v1709_v9, %v1843_v49 }
 0x3c5   :  { %v9472_v47 = vmax.f32 %v1711_v4, %v1844_v51  ;;  %v1717_v29 = vadd.f32 %v1716_v5, %v9164_v13  ;;  %3490 = vmatprep.mubr.f32.mxu0 %v9382_v27 }
 0x3c6   :  { %11458 = vst [vmem:[#allocation114_spill] sm:$0xff] %v9476_v50  ;;  %v1847_v42 = vmul.f32 0.2, %v1715_v0 }
 0x3c7   :  { %11457 = vst [vmem:[#allocation113_spill] sm:$0xff] %v9472_v47  ;;  %v1848_v57 = vmul.f32 0.2, %v1717_v29  ;;  %v1720_v6 = vpop.f32.mrb[190].mxu0  ;;  %3030 = vmatprep.mubr.f32.mxu1 %v9472_v47 }
 0x3c8   :  { %v1721_v14 = vadd.f32 %v1720_v6, %v9156_v35  ;;  %v1722_v34 = vpop.f32.mrb[191].mxu0  ;;  %3031 = vmatmul.mubr.f32.gmra.mrb[58].mxu1 %v9476_v50  ;;  %3491 = vmatmul.mubr.f32.gmra.mrb[232].mxu0 %v9386_v61  ;;  %v9486_v9 = vmax.f32 %v1715_v0, %v1847_v42  ;;  %v2266_v0 = vld [vmem:[#allocation10 + $0x8e8] sm:$0xff] }
 0x3c9   :  { %v9482_v4 = vmax.f32 %v1717_v29, %v1848_v57  ;;  %v1723_v5 = vadd.f32 %v1722_v34, %v9164_v13  ;;  %3496 = vmatprep.mubr.f32.mxu0 %v9392_v17  ;;  %v2241_v29 = vld [vmem:[#allocation10 + $0x820] sm:$0xff]  ;;  %v2258_v34 = vld [vmem:[#allocation10 + $0x8a8] sm:$0xff] }
 0x3ca   :  { %11460 = vst [vmem:[#allocation116_spill] sm:$0xff] %v9486_v9  ;;  %v1851_v49 = vmul.f32 0.2, %v1721_v14  ;;  %v2249_v13 = vld [vmem:[#allocation10 + $0x860] sm:$0xff]  ;;  %v6679_v57 = vpack.c.bf16 %v2266_v0, %v2258_v34 }
 0x3cb   :  { %11459 = vst [vmem:[#allocation115_spill] sm:$0xff] %v9482_v4  ;;  %v1852_v51 = vmul.f32 0.2, %v1723_v5  ;;  %3036 = vmatprep.mubr.f32.mxu1 %v9482_v4  ;;  %v6677_v42 = vpack.c.bf16 %v2249_v13, %v2241_v29  ;;  %v2290_v29 = vld [vmem:[#allocation10 + $0x9a8] sm:$0xff] }
 0x3cc   :  { %3037 = vmatmul.mubr.f32.gmra.mrb[60].mxu1 %v9486_v9  ;;  %3497 = vmatmul.mubr.f32.gmra.mrb[234].mxu0 %v9396_v54  ;;  %v9494_v6 = vmax.f32 %v1721_v14, %v1851_v49  ;;  %v2274_v14 = vld [vmem:[#allocation10 + $0x928] sm:$0xff]  ;;  %v2281_v54 = vld [vmem:[#allocation10 + $0x960] sm:$0xff] }
 0x3cd   :  { %v9491_v35 = vmax.f32 %v1723_v5, %v1852_v51  ;;  %3502 = vmatprep.mubr.f32.mxu0 %v9402_v2  ;;  %v2257_v5 = vld [vmem:[#allocation10 + $0x8a0] sm:$0xff]  ;;  %v2282_v49 = vld [vmem:[#allocation10 + $0x968] sm:$0xff] }
 0x3ce   :  { %11462 = vst [vmem:[#allocation118_spill] sm:$0xff] %v9494_v6  ;;  %v2265_v51 = vld [vmem:[#allocation10 + $0x8e0] sm:$0xff]  ;;  %v2298_v13 = vld [vmem:[#allocation10 + $0x9e8] sm:$0xff] }
 0x3cf   :  { %11461 = vst [vmem:[#allocation117_spill] sm:$0xff] %v9491_v35  ;;  %3042 = vmatprep.mubr.f32.mxu1 %v9491_v35  ;;  %v2273_v2 = vld [vmem:[#allocation10 + $0x920] sm:$0xff]  ;;  %v6687_v0 = vpack.c.bf16 %v2298_v13, %v2290_v29 }
 0x3d0   :  { %3043 = vmatmul.mubr.f32.gmra.mrb[62].mxu1 %v9494_v6  ;;  %3503 = vmatmul.mubr.f32.gmra.mrb[236].mxu0 %v9406_v8  ;;  %v6681_v8 = vpack.c.bf16 %v2265_v51, %v2257_v5  ;;  %v6685_v34 = vpack.c.bf16 %v2281_v54, %v2273_v2  ;;  %v2306_v5 = vld [vmem:[#allocation10 + $0xa28] sm:$0xff]  ;;  %v2313_v54 = vld [vmem:[#allocation10 + $0xa60] sm:$0xff] }
 0x3d1   :  { %3508 = vmatprep.mubr.f32.mxu0 %v9412_v39  ;;  %3627 = vmatprep.mubr.f32.mxu1 %v8852_v63  ;;  %v6683_v39 = vpack.c.bf16 %v2282_v49, %v2274_v14  ;;  %v2314_v51 = vld [vmem:[#allocation10 + $0xa68] sm:$0xff] }
 0x3d2   :  { %v6691_v49 = vpack.c.bf16 %v2314_v51, %v2306_v5  ;;  %v2322_v2 = vld [vmem:[#allocation10 + $0xaa8] sm:$0xff] }
 0x3d4   :  { %3509 = vmatmul.mubr.f32.gmra.mrb[238].mxu0 %v9416_v36  ;;  %3628 = vmatmul.mubr.f32.vlgmr.msra.gmra.mrb[64].mxu1 %v8856_v52 }
 0x3d5   :  { %6678 = vmatpush1.bf16.msra.mxu1 %v6677_v42  ;;  %3514 = vmatprep.mubr.f32.mxu0 %v9422_v55  ;;  %v2289_v42 = vld [vmem:[#allocation10 + $0x9a0] sm:$0xff] }
 0x3d6   :  { %3633 = vmatprep.mubr.f32.mxu1 %v8862_v30  ;;  %6680 = vmatprep.subr.bf16.mxu1 %v6679_v57  ;;  %v2297_v57 = vld [vmem:[#allocation10 + $0x9e0] sm:$0xff] }
 0x3d7   :  { %v6689_v14 = vpack.c.bf16 %v2297_v57, %v2289_v42  ;;  %v2329_v42 = vld [vmem:[#allocation10 + $0xae0] sm:$0xff]  ;;  %v2346_v57 = vld [vmem:[#allocation10 + $0xb68] sm:$0xff] }
 0x3d8   :  { %3515 = vmatmul.mubr.f32.gmra.mrb[240].mxu0 %v9426_v60  ;;  %3634 = vmatmul.mubr.f32.gmra.mrb[66].mxu1 %v8866_v25  ;;  %v11469_v60 = vld [vmem:[#allocation32_spill] sm:$0xff] }
 0x3d9   :  { %3520 = vmatprep.mubr.f32.mxu0 %v9432_v24  ;;  %3639 = vmatprep.mubr.f32.mxu1 %v8872_v44  ;;  %v2284_v24 = vld [vmem:[#allocation10 + $0x978] sm:$0xff] }
 0x3da   :  { %6682 = vmatpush1.bf16.msra.mxu1 %v6681_v8  ;;  %v2305_v8 = vld [vmem:[#allocation10 + $0xa20] sm:$0xff] }
 0x3db   :  { %6684 = vmatprep.subr.bf16.mxu1 %v6683_v39  ;;  %v2330_v39 = vld [vmem:[#allocation10 + $0xae8] sm:$0xff]  ;;  %v6693_v29 = vpack.c.bf16 %v2313_v54, %v2305_v8  ;;  %v2345_v8 = vld [vmem:[#allocation10 + $0xb60] sm:$0xff] }
 0x3dc   :  { %3521 = vmatmul.mubr.f32.gmra.mrb[242].mxu0 %v9436_v37  ;;  %3640 = vmatmul.mubr.f32.gmra.mrb[68].mxu1 %v8876_v21  ;;  %v6695_v13 = vpack.c.bf16 %v2330_v39, %v2322_v2  ;;  %v2362_v54 = vld [vmem:[#allocation10 + $0xbe8] sm:$0xff]  ;;  %v2276_v37 = vld [vmem:[#allocation10 + $0x938] sm:$0xff] }
 0x3dd   :  { %3526 = vmatprep.mubr.f32.mxu0 %v9442_v12  ;;  %3645 = vmatprep.mubr.f32.mxu1 %v8882_v3  ;;  %v2426_v12 = vld [vmem:[#allocation10 + $0xde8] sm:$0xff] }
 0x3de   :  { %6686 = vmatpush1.bf16.msra.mxu1 %v6685_v34  ;;  %v2321_v34 = vld [vmem:[#allocation10 + $0xaa0] sm:$0xff] }
 0x3df   :  { %6688 = vmatprep.subr.bf16.mxu1 %v6687_v0  ;;  %v2338_v0 = vld [vmem:[#allocation10 + $0xb28] sm:$0xff]  ;;  %v6697_v5 = vpack.c.bf16 %v2329_v42, %v2321_v34  ;;  %v2361_v34 = vld [vmem:[#allocation10 + $0xbe0] sm:$0xff] }
 0x3e0   :  { %3527 = vmatmul.mubr.f32.gmra.mrb[244].mxu0 %v9446_v22  ;;  %3646 = vmatmul.mubr.f32.gmra.mrb[70].mxu1 %v8886_v43  ;;  %v6699_v51 = vpack.c.bf16 %v2346_v57, %v2338_v0  ;;  %v2378_v42 = vld [vmem:[#allocation10 + $0xc68] sm:$0xff] }
 0x3e1   :  { %3532 = vmatprep.mubr.f32.mxu0 %v9452_v62  ;;  %3651 = vmatprep.mubr.f32.mxu1 %v8892_v7  ;;  %v11463_v0 = vld [vmem:[#allocation26_spill] sm:$0xff]  ;;  %v2259_v62 = vld [vmem:[#allocation10 + $0x8b0] sm:$0xff] }
 0x3e2   :  { %6690 = vmatpush1.bf16.msra.mxu1 %v6689_v14  ;;  %v2337_v14 = vld [vmem:[#allocation10 + $0xb20] sm:$0xff]  ;;  %v11468_v22 = vld [vmem:[#allocation31_spill] sm:$0xff] }
 0x3e3   :  { %6692 = vmatprep.subr.bf16.mxu1 %v6691_v49  ;;  %v2354_v49 = vld [vmem:[#allocation10 + $0xba8] sm:$0xff]  ;;  %v6701_v2 = vpack.c.bf16 %v2345_v8, %v2337_v14  ;;  %v2377_v14 = vld [vmem:[#allocation10 + $0xc60] sm:$0xff] }
 0x3e4   :  { %3533 = vmatmul.mubr.f32.gmra.mrb[246].mxu0 %v9456_v45  ;;  %3652 = vmatmul.mubr.f32.gmra.mrb[72].mxu1 %v8896_v53  ;;  %v6703_v39 = vpack.c.bf16 %v2362_v54, %v2354_v49  ;;  %v2386_v8 = vld [vmem:[#allocation10 + $0xca8] sm:$0xff]  ;;  %v11465_v54 = vld [vmem:[#allocation28_spill] sm:$0xff] }
 0x3e5   :  { %3538 = vmatprep.mubr.f32.mxu0 %v9462_v1  ;;  %3657 = vmatprep.mubr.f32.mxu1 %v8902_v31  ;;  %v2394_v49 = vld [vmem:[#allocation10 + $0xce8] sm:$0xff]  ;;  %v2268_v1 = vld [vmem:[#allocation10 + $0x8f8] sm:$0xff] }
 0x3e6   :  { %6694 = vmatpush1.bf16.msra.mxu1 %v6693_v29  ;;  %v2353_v29 = vld [vmem:[#allocation10 + $0xba0] sm:$0xff] }
 0x3e7   :  { %6696 = vmatprep.subr.bf16.mxu1 %v6695_v13  ;;  %v2370_v13 = vld [vmem:[#allocation10 + $0xc28] sm:$0xff]  ;;  %v6705_v57 = vpack.c.bf16 %v2361_v34, %v2353_v29  ;;  %v2243_v29 = vld [vmem:[#allocation10 + $0x830] sm:$0xff] }
 0x3e8   :  { %3539 = vmatmul.mubr.f32.gmra.mrb[248].mxu0 %v9466_v59  ;;  %3658 = vmatmul.mubr.f32.gmra.mrb[74].mxu1 %v8906_v38  ;;  %v2393_v59 = vld [vmem:[#allocation10 + $0xce0] sm:$0xff]  ;;  %v2251_v34 = vld [vmem:[#allocation10 + $0x870] sm:$0xff] }
 0x3e9   :  { %3544 = vmatprep.mubr.f32.mxu0 %v9472_v47  ;;  %3663 = vmatprep.mubr.f32.mxu1 %v8912_v58  ;;  %v6707_v47 = vpack.c.bf16 %v2378_v42, %v2370_v13  ;;  %v11466_v13 = vld [vmem:[#allocation29_spill] sm:$0xff]  ;;  %v2410_v42 = vld [vmem:[#allocation10 + $0xd68] sm:$0xff] }
 0x3ea   :  { %6698 = vmatpush1.bf16.msra.mxu1 %v6697_v5  ;;  %v2369_v5 = vld [vmem:[#allocation10 + $0xc20] sm:$0xff] }
 0x3eb   :  { %6700 = vmatprep.subr.bf16.mxu1 %v6699_v51  ;;  %v11464_v51 = vld [vmem:[#allocation27_spill] sm:$0xff]  ;;  %v11467_v45 = vld [vmem:[#allocation30_spill] sm:$0xff] }
 0x3ec   :  { %3545 = vmatmul.mubr.f32.gmra.mrb[250].mxu0 %v9476_v50  ;;  %3664 = vmatmul.mubr.f32.gmra.mrb[76].mxu1 %v8916_v33  ;;  %v2385_v50 = vld [vmem:[#allocation10 + $0xca0] sm:$0xff] }
 0x3ed   :  { %3550 = vmatprep.mubr.f32.mxu0 %v9482_v4  ;;  %3669 = vmatprep.mubr.f32.mxu1 %v11463_v0  ;;  %v6709_v4 = vpack.c.bf16 %v2377_v14, %v2369_v5  ;;  %v2401_v5 = vld [vmem:[#allocation10 + $0xd20] sm:$0xff] }
 0x3ee   :  { %6702 = vmatpush1.bf16.msra.mxu1 %v6701_v2  ;;  %v6711_v2 = vpack.c.bf16 %v2394_v49, %v2386_v8  ;;  %v2409_v14 = vld [vmem:[#allocation10 + $0xd60] sm:$0xff]  ;;  %v2418_v49 = vld [vmem:[#allocation10 + $0xda8] sm:$0xff] }
 0x3ef   :  { %6704 = vmatprep.subr.bf16.mxu1 %v6703_v39  ;;  %v2402_v39 = vld [vmem:[#allocation10 + $0xd28] sm:$0xff] }
 0x3f0   :  { %3551 = vmatmul.mubr.f32.gmra.mrb[252].mxu0 %v9486_v9  ;;  %3670 = vmatmul.mubr.f32.gmra.mrb[78].mxu1 %v11464_v51  ;;  %v2260_v9 = vld [vmem:[#allocation10 + $0x8b8] sm:$0xff]  ;;  %v6715_v8 = vpack.c.bf16 %v2410_v42, %v2402_v39  ;;  %v2275_v39 = vld [vmem:[#allocation10 + $0x930] sm:$0xff] }
 0x3f1   :  { %3556 = vmatprep.mubr.f32.mxu0 %v9491_v35  ;;  %3675 = vmatprep.mubr.f32.mxu1 %v11465_v54  ;;  %v6807_v35 = vpack.c.bf16 %v2268_v1, %v2260_v9  ;;  %v6719_v1 = vpack.c.bf16 %v2426_v12, %v2418_v49  ;;  %v2434_v9 = vld [vmem:[#allocation10 + $0xe28] sm:$0xff]  ;;  %v2292_v42 = vld [vmem:[#allocation10 + $0x9b8] sm:$0xff]  ;;  %v2441_v12 = vld [vmem:[#allocation10 + $0xe60] sm:$0xff] }
 0x3f2   :  { %6706 = vmatpush1.bf16.msra.mxu1 %v6705_v57  ;;  %v6713_v57 = vpack.c.bf16 %v2393_v59, %v2385_v50  ;;  %v2417_v59 = vld [vmem:[#allocation10 + $0xda0] sm:$0xff]  ;;  %v2308_v49 = vld [vmem:[#allocation10 + $0xa38] sm:$0xff] }
 0x3f3   :  { %6708 = vmatprep.subr.bf16.mxu1 %v6707_v47  ;;  %v6805_v47 = vpack.c.bf16 %v2251_v34, %v2243_v29  ;;  %v2425_v50 = vld [vmem:[#allocation10 + $0xde0] sm:$0xff]  ;;  %v2442_v34 = vld [vmem:[#allocation10 + $0xe68] sm:$0xff] }
 0x3f4   :  { %3557 = vmatmul.mubr.f32.gmra.mrb[254].mxu0 %v9494_v6  ;;  %3676 = vmatmul.mubr.f32.gmra.mrb[80].mxu1 %v11466_v13  ;;  %v2267_v6 = vld [vmem:[#allocation10 + $0x8f0] sm:$0xff]  ;;  %v11470_v29 = vld [vmem:[#allocation33_spill] sm:$0xff] }
 0x3f5   :  { %3681 = vmatprep.mubr.f32.mxu1 %v11467_v45  ;;  %4141 = vmatprep.mubr.f32.mxu0 %v8852_v63  ;;  %v6717_v63 = vpack.c.bf16 %v2409_v14, %v2401_v5  ;;  %v2291_v14 = vld [vmem:[#allocation10 + $0x9b0] sm:$0xff] }
 0x3f6   :  { %6710 = vmatpush1.bf16.msra.mxu1 %v6709_v4  ;;  %v6809_v4 = vpack.c.bf16 %v2267_v6, %v2259_v62  ;;  %v6721_v62 = vpack.c.bf16 %v2425_v50, %v2417_v59  ;;  %v2433_v6 = vld [vmem:[#allocation10 + $0xe20] sm:$0xff] }
 0x3f7   :  { %6712 = vmatprep.subr.bf16.mxu1 %v6711_v2  ;;  %v6811_v2 = vpack.c.bf16 %v2284_v24, %v2276_v37  ;;  %v6723_v24 = vpack.c.bf16 %v2442_v34, %v2434_v9  ;;  %v2450_v37 = vld [vmem:[#allocation10 + $0xea8] sm:$0xff]  ;;  %v6725_v59 = vpack.c.bf16 %v2441_v12, %v2433_v6  ;;  %v2449_v50 = vld [vmem:[#allocation10 + $0xea0] sm:$0xff] }
 0x3f8   :  { %3682 = vmatmul.mubr.f32.gmra.mrb[82].mxu1 %v11468_v22  ;;  %4142 = vmatmul.mubr.f32.vlgmr.msra.gmra.mrb[0].mxu0 %v8856_v52  ;;  %v2283_v52 = vld [vmem:[#allocation10 + $0x970] sm:$0xff]  ;;  %v11474_v34 = vld [vmem:[#allocation37_spill] sm:$0xff] }
 0x3f9   :  { %3687 = vmatprep.mubr.f32.mxu1 %v11469_v60  ;;  %4147 = vmatprep.mubr.f32.mxu0 %v8862_v30  ;;  %v2300_v30 = vld [vmem:[#allocation10 + $0x9f8] sm:$0xff]  ;;  %v2465_v12 = vld [vmem:[#allocation10 + $0xf20] sm:$0xff] }
 0x3fa   :  { %6714 = vmatpush1.bf16.msra.mxu1 %v6713_v57  ;;  %6806 = vmatpush1.bf16.msra.mxu0 %v6805_v47  ;;  %v11471_v57 = vld [vmem:[#allocation34_spill] sm:$0xff]  ;;  %v6815_v5 = vpack.c.bf16 %v2300_v30, %v2292_v42  ;;  %v11472_v47 = vld [vmem:[#allocation35_spill] sm:$0xff]  ;;  %v2324_v30 = vld [vmem:[#allocation10 + $0xab8] sm:$0xff] }
 0x3fb   :  { %6716 = vmatprep.subr.bf16.mxu1 %v6715_v8  ;;  %6808 = vmatprep.subr.bf16.mxu0 %v6807_v35  ;;  %v6813_v35 = vpack.c.bf16 %v2283_v52, %v2275_v39  ;;  %v2458_v8 = vld [vmem:[#allocation10 + $0xee8] sm:$0xff]  ;;  %v2307_v52 = vld [vmem:[#allocation10 + $0xa30] sm:$0xff] }
 0x3fc   :  { %3688 = vmatmul.mubr.f32.gmra.mrb[84].mxu1 %v11470_v29  ;;  %4148 = vmatmul.mubr.f32.gmra.mrb[2].mxu0 %v8866_v25  ;;  %v2299_v25 = vld [vmem:[#allocation10 + $0x9f0] sm:$0xff]  ;;  %v6727_v9 = vpack.c.bf16 %v2458_v8, %v2450_v37  ;;  %v2474_v42 = vld [vmem:[#allocation10 + $0xf68] sm:$0xff] }
 0x3fd   :  { %3693 = vmatprep.mubr.f32.mxu1 %v11471_v57  ;;  %4153 = vmatprep.mubr.f32.mxu0 %v8872_v44  ;;  %v2316_v44 = vld [vmem:[#allocation10 + $0xa78] sm:$0xff]  ;;  %v11476_v8 = vld [vmem:[#allocation39_spill] sm:$0xff] }
 0x3fe   :  { %6718 = vmatpush1.bf16.msra.mxu1 %v6717_v63  ;;  %6810 = vmatpush1.bf16.msra.mxu0 %v6809_v4  ;;  %v11473_v63 = vld [vmem:[#allocation36_spill] sm:$0xff]  ;;  %v2457_v4 = vld [vmem:[#allocation10 + $0xee0] sm:$0xff]  ;;  %v6819_v39 = vpack.c.bf16 %v2316_v44, %v2308_v49  ;;  %v2490_v49 = vld [vmem:[#allocation10 + $0xfe8] sm:$0xff] }
 0x3ff   :  { %6720 = vmatprep.subr.bf16.mxu1 %v6719_v1  ;;  %6812 = vmatprep.subr.bf16.mxu0 %v6811_v2  ;;  %v6817_v1 = vpack.c.bf16 %v2299_v25, %v2291_v14  ;;  %v2466_v2 = vld [vmem:[#allocation10 + $0xf28] sm:$0xff]  ;;  %v6729_v6 = vpack.c.bf16 %v2457_v4, %v2449_v50  ;;  %v2323_v25 = vld [vmem:[#allocation10 + $0xab0] sm:$0xff]  ;;  %v2340_v44 = vld [vmem:[#allocation10 + $0xb38] sm:$0xff] }
 0x400   :  { %3694 = vmatmul.mubr.f32.gmra.mrb[86].mxu1 %v11472_v47  ;;  %4154 = vmatmul.mubr.f32.gmra.mrb[4].mxu0 %v8876_v21  ;;  %v2315_v21 = vld [vmem:[#allocation10 + $0xa70] sm:$0xff]  ;;  %v6731_v37 = vpack.c.bf16 %v2474_v42, %v2466_v2  ;;  %v2481_v4 = vld [vmem:[#allocation10 + $0xfa0] sm:$0xff]  ;;  %v2356_v42 = vld [vmem:[#allocation10 + $0xbb8] sm:$0xff] }
 0x401   :  { %3699 = vmatprep.mubr.f32.mxu1 %v11473_v63  ;;  %4159 = vmatprep.mubr.f32.mxu0 %v8882_v3  ;;  %v2332_v3 = vld [vmem:[#allocation10 + $0xaf8] sm:$0xff]  ;;  %v2489_v2 = vld [vmem:[#allocation10 + $0xfe0] sm:$0xff] }
 0x402   :  { %6722 = vmatpush1.bf16.msra.mxu1 %v6721_v62  ;;  %6814 = vmatpush1.bf16.msra.mxu0 %v6813_v35  ;;  %v11475_v62 = vld [vmem:[#allocation38_spill] sm:$0xff]  ;;  %v6823_v14 = vpack.c.bf16 %v2332_v3, %v2324_v30  ;;  %v2364_v30 = vld [vmem:[#allocation10 + $0xbf8] sm:$0xff] }
 0x403   :  { %6724 = vmatprep.subr.bf16.mxu1 %v6723_v24  ;;  %6816 = vmatprep.subr.bf16.mxu0 %v6815_v5  ;;  %v2473_v35 = vld [vmem:[#allocation10 + $0xf60] sm:$0xff]  ;;  %v6821_v24 = vpack.c.bf16 %v2315_v21, %v2307_v52  ;;  %v2482_v5 = vld [vmem:[#allocation10 + $0xfa8] sm:$0xff]  ;;  %v2339_v52 = vld [vmem:[#allocation10 + $0xb30] sm:$0xff] }
 0x404   :  { %3700 = vmatmul.mubr.f32.gmra.mrb[88].mxu1 %v11474_v34  ;;  %4160 = vmatmul.mubr.f32.gmra.mrb[6].mxu0 %v8886_v43  ;;  %v2331_v43 = vld [vmem:[#allocation10 + $0xaf0] sm:$0xff]  ;;  %v6733_v50 = vpack.c.bf16 %v2473_v35, %v2465_v12  ;;  %v11479_v3 = vld [vmem:[#allocation42_spill] sm:$0xff]  ;;  %v6831_v12 = vpack.c.bf16 %v2364_v30, %v2356_v42 }
 0x405   :  { %3705 = vmatprep.mubr.f32.mxu1 %v11475_v62  ;;  %4165 = vmatprep.mubr.f32.mxu0 %v8892_v7  ;;  %v2348_v7 = vld [vmem:[#allocation10 + $0xb78] sm:$0xff]  ;;  %v2347_v21 = vld [vmem:[#allocation10 + $0xb70] sm:$0xff] }
 0x406   :  { %6726 = vmatpush1.bf16.msra.mxu1 %v6725_v59  ;;  %6818 = vmatpush1.bf16.msra.mxu0 %v6817_v1  ;;  %v11477_v59 = vld [vmem:[#allocation40_spill] sm:$0xff]  ;;  %v6825_v1 = vpack.c.bf16 %v2331_v43, %v2323_v25  ;;  %v11310_v25 = vmov 0.0|0.0  }
 0x407   :  { %6728 = vmatprep.subr.bf16.mxu1 %v6727_v9  ;;  %6820 = vmatprep.subr.bf16.mxu0 %v6819_v39  ;;  %v6735_v9 = vpack.c.bf16 %v2490_v49, %v2482_v5  ;;  %v6827_v39 = vpack.c.bf16 %v2348_v7, %v2340_v44  ;;  %v2355_v35 = vld [vmem:[#allocation10 + $0xbb0] sm:$0xff]  ;;  %v2380_v5 = vld [vmem:[#allocation10 + $0xc78] sm:$0xff] }
 0x408   :  { %3706 = vmatmul.mubr.f32.gmra.mrb[90].mxu1 %v11476_v8  ;;  %4166 = vmatmul.mubr.f32.gmra.mrb[8].mxu0 %v8896_v53  ;;  %v11478_v53 = vld [vmem:[#allocation41_spill] sm:$0xff]  ;;  %v2371_v49 = vld [vmem:[#allocation10 + $0xc30] sm:$0xff] }
 0x409   :  { %3711 = vmatprep.mubr.f32.mxu1 %v11477_v59  ;;  %4171 = vmatprep.mubr.f32.mxu0 %v8902_v31  ;;  %v6737_v31 = vpack.c.bf16 %v2489_v2, %v2481_v4  ;;  %v2379_v44 = vld [vmem:[#allocation10 + $0xc70] sm:$0xff]  ;;  %v11482_v7 = vld [vmem:[#allocation45_spill] sm:$0xff]  ;;  %v11483_v4 = vld [vmem:[#allocation46_spill] sm:$0xff] }
 0x40a   :  { %6730 = vmatpush1.bf16.msra.mxu1 %v6729_v6  ;;  %6822 = vmatpush1.bf16.msra.mxu0 %v6821_v24  ;;  %v6829_v6 = vpack.c.bf16 %v2347_v21, %v2339_v52  ;;  %v2363_v24 = vld [vmem:[#allocation10 + $0xbf0] sm:$0xff]  ;;  %v2404_v52 = vld [vmem:[#allocation10 + $0xd38] sm:$0xff] }
 0x40b   :  { %6732 = vmatprep.subr.bf16.mxu1 %v6731_v37  ;;  %6824 = vmatprep.subr.bf16.mxu0 %v6823_v14  ;;  %v11480_v37 = vld [vmem:[#allocation43_spill] sm:$0xff]  ;;  %v11481_v14 = vld [vmem:[#allocation44_spill] sm:$0xff] }
 0x40c   :  { %3712 = vmatmul.mubr.f32.gmra.mrb[92].mxu1 %v11478_v53  ;;  %4172 = vmatmul.mubr.f32.gmra.mrb[10].mxu0 %v8906_v38  ;;  %v2372_v38 = vld [vmem:[#allocation10 + $0xc38] sm:$0xff]  ;;  %v2395_v2 = vld [vmem:[#allocation10 + $0xcf0] sm:$0xff] }
 0x40d   :  { %3717 = vmatprep.mubr.f32.mxu1 %v11479_v3  ;;  %4177 = vmatprep.mubr.f32.mxu0 %v8912_v58  ;;  %v6833_v58 = vpack.c.bf16 %v2363_v24, %v2355_v35  ;;  %v6835_v43 = vpack.c.bf16 %v2380_v5, %v2372_v38  ;;  %v2412_v21 = vld [vmem:[#allocation10 + $0xd78] sm:$0xff]  ;;  %v2403_v30 = vld [vmem:[#allocation10 + $0xd30] sm:$0xff]  ;;  %v11487_v24 = vld [vmem:[#allocation50_spill] sm:$0xff] }
 0x40e   :  { %6734 = vmatpush1.bf16.msra.mxu1 %v6733_v50  ;;  %6826 = vmatpush1.bf16.msra.mxu0 %v6825_v1  ;;  %v2396_v50 = vld [vmem:[#allocation10 + $0xcf8] sm:$0xff]  ;;  %v2419_v38 = vld [vmem:[#allocation10 + $0xdb0] sm:$0xff] }
 0x40f   :  { %6736 = vmatprep.subr.bf16.mxu1 %v6735_v9  ;;  %6828 = vmatprep.subr.bf16.mxu0 %v6827_v39  ;;  %v2387_v9 = vld [vmem:[#allocation10 + $0xcb0] sm:$0xff]  ;;  %v2428_v35 = vld [vmem:[#allocation10 + $0xdf8] sm:$0xff] }
 0x410   :  { %3718 = vmatmul.mubr.f32.gmra.mrb[94].mxu1 %v11480_v37  ;;  %4178 = vmatmul.mubr.f32.gmra.mrb[12].mxu0 %v8916_v33  ;;  %v2388_v33 = vld [vmem:[#allocation10 + $0xcb8] sm:$0xff]  ;;  %v11484_v39 = vld [vmem:[#allocation47_spill] sm:$0xff] }
 0x411   :  { %3723 = vmatprep.mubr.f32.mxu1 %v11481_v14  ;;  %4183 = vmatprep.mubr.f32.mxu0 %v11463_v0  ;;  %v6837_v0 = vpack.c.bf16 %v2379_v44, %v2371_v49  ;;  %v6839_v1 = vpack.c.bf16 %v2396_v50, %v2388_v33  ;;  %v11485_v42 = vld [vmem:[#allocation48_spill] sm:$0xff] }
 0x412   :  { %6738 = vmatpush1.bf16.msra.mxu1 %v6737_v31  ;;  %6830 = vmatpush1.bf16.msra.mxu0 %v6829_v6  ;;  %v2411_v31 = vld [vmem:[#allocation10 + $0xd70] sm:$0xff]  ;;  %v11486_v6 = vld [vmem:[#allocation49_spill] sm:$0xff] }
 0x413   :  { %6867 = vmatprep.subr.bf16.mxu1 %v11310_v25  ;;  %6832 = vmatprep.subr.bf16.mxu0 %v6831_v12  ;;  %v2420_v12 = vld [vmem:[#allocation10 + $0xdb8] sm:$0xff]  ;;  %v2427_v5 = vld [vmem:[#allocation10 + $0xdf0] sm:$0xff] }
 0x414   :  { %3724 = vmatmul.mubr.f32.gmra.mrb[96].mxu1 %v11482_v7  ;;  %4184 = vmatmul.mubr.f32.gmra.mrb[14].mxu0 %v11464_v51  ;;  %v6841_v51 = vpack.c.bf16 %v2395_v2, %v2387_v9  ;;  %v2444_v49 = vld [vmem:[#allocation10 + $0xe78] sm:$0xff]  ;;  %v2435_v33 = vld [vmem:[#allocation10 + $0xe30] sm:$0xff]  ;;  %v11491_v2 = vld [vmem:[#allocation54_spill] sm:$0xff] }
 0x415   :  { %3729 = vmatprep.mubr.f32.mxu1 %v11483_v4  ;;  %4189 = vmatprep.mubr.f32.mxu0 %v11465_v54  ;;  %v6843_v54 = vpack.c.bf16 %v2412_v21, %v2404_v52  ;;  %v11489_v44 = vld [vmem:[#allocation52_spill] sm:$0xff] }
 0x416   :  { %6834 = vmatpush1.bf16.msra.mxu0 %v6833_v58  ;;  %v11488_v58 = vld [vmem:[#allocation51_spill] sm:$0xff]  ;;  %v2460_v9 = vld [vmem:[#allocation10 + $0xef8] sm:$0xff] }
 0x417   :  { %6836 = vmatprep.subr.bf16.mxu0 %v6835_v43  ;;  %v2436_v43 = vld [vmem:[#allocation10 + $0xe38] sm:$0xff]  ;;  %v2443_v50 = vld [vmem:[#allocation10 + $0xe70] sm:$0xff] }
 0x418   :  { %3730 = vmatmul.mubr.f32.gmra.mrb[98].mxu1 %v11484_v39  ;;  %4190 = vmatmul.mubr.f32.gmra.mrb[16].mxu0 %v11466_v13  ;;  %v6845_v13 = vpack.c.bf16 %v2411_v31, %v2403_v30  ;;  %v2451_v21 = vld [vmem:[#allocation10 + $0xeb0] sm:$0xff]  ;;  %v2476_v31 = vld [vmem:[#allocation10 + $0xf78] sm:$0xff] }
 0x419   :  { %3735 = vmatprep.mubr.f32.mxu1 %v11485_v42  ;;  %4195 = vmatprep.mubr.f32.mxu0 %v11467_v45  ;;  %v6847_v45 = vpack.c.bf16 %v2428_v35, %v2420_v12  ;;  %v11492_v30 = vld [vmem:[#allocation55_spill] sm:$0xff]  ;;  %v11493_v12 = vld [vmem:[#allocation56_spill] sm:$0xff] }
 0x41a   :  { %6838 = vmatpush1.bf16.msra.mxu0 %v6837_v0  ;;  %v11490_v0 = vld [vmem:[#allocation53_spill] sm:$0xff] }
 0x41b   :  { %6840 = vmatprep.subr.bf16.mxu0 %v6839_v1  ;;  %v2452_v1 = vld [vmem:[#allocation10 + $0xeb8] sm:$0xff] }
 0x41c   :  { %3736 = vmatmul.mubr.f32.gmra.mrb[100].mxu1 %v11486_v6  ;;  %4196 = vmatmul.mubr.f32.gmra.mrb[18].mxu0 %v11468_v22  ;;  %v6849_v22 = vpack.c.bf16 %v2427_v5, %v2419_v38  ;;  %v2475_v38 = vld [vmem:[#allocation10 + $0xf70] sm:$0xff] }
 0x41d   :  { %3741 = vmatprep.mubr.f32.mxu1 %v11487_v24  ;;  %4201 = vmatprep.mubr.f32.mxu0 %v11469_v60  ;;  %v6851_v60 = vpack.c.bf16 %v2444_v49, %v2436_v43  ;;  %v11494_v43 = vld [vmem:[#allocation57_spill] sm:$0xff] }
 0x41e   :  { %6842 = vmatpush1.bf16.msra.mxu0 %v6841_v51  ;;  %v2459_v51 = vld [vmem:[#allocation10 + $0xef0] sm:$0xff]  ;;  %v2492_v49 = vld [vmem:[#allocation10 + $0xff8] sm:$0xff] }
 0x41f   :  { %6844 = vmatprep.subr.bf16.mxu0 %v6843_v54 }
 0x420   :  { %3742 = vmatmul.mubr.f32.gmra.mrb[102].mxu1 %v11488_v58  ;;  %4202 = vmatmul.mubr.f32.gmra.mrb[20].mxu0 %v11470_v29  ;;  %v6853_v29 = vpack.c.bf16 %v2443_v50, %v2435_v33  ;;  %v2483_v50 = vld [vmem:[#allocation10 + $0xfb0] sm:$0xff] }
 0x421   :  { %3747 = vmatprep.mubr.f32.mxu1 %v11489_v44  ;;  %4207 = vmatprep.mubr.f32.mxu0 %v11471_v57  ;;  %v6855_v57 = vpack.c.bf16 %v2460_v9, %v2452_v1  ;;  %v2491_v1 = vld [vmem:[#allocation10 + $0xff0] sm:$0xff] }
 0x422   :  { %6846 = vmatpush1.bf16.msra.mxu0 %v6845_v13 }
 0x423   :  { %6848 = vmatprep.subr.bf16.mxu0 %v6847_v45  ;;  %v2467_v45 = vld [vmem:[#allocation10 + $0xf30] sm:$0xff] }
 0x424   :  { %3748 = vmatmul.mubr.f32.gmra.mrb[104].mxu1 %v11490_v0  ;;  %4208 = vmatmul.mubr.f32.gmra.mrb[22].mxu0 %v11472_v47  ;;  %v2468_v47 = vld [vmem:[#allocation10 + $0xf38] sm:$0xff] }
 0x425   :  { %3753 = vmatprep.mubr.f32.mxu1 %v11491_v2  ;;  %4213 = vmatprep.mubr.f32.mxu0 %v11473_v63  ;;  %v6857_v63 = vpack.c.bf16 %v2459_v51, %v2451_v21  ;;  %v6859_v13 = vpack.c.bf16 %v2476_v31, %v2468_v47  ;;  %v11498_v51 = vld [vmem:[#allocation61_spill] sm:$0xff]  ;;  %v11499_v47 = vld [vmem:[#allocation62_spill] sm:$0xff]  ;;  %v11500_v31 = vld [vmem:[#allocation63_spill] sm:$0xff] }
 0x426   :  { %6850 = vmatpush1.bf16.msra.mxu0 %v6849_v22  ;;  %v11495_v22 = vld [vmem:[#allocation58_spill] sm:$0xff] }
 0x427   :  { %v9586_v52 = vpop.f32.mrb[0].mxu1  ;;  %6852 = vmatprep.subr.bf16.mxu0 %v6851_v60 }
 0x428   :  { %v9588_v54 = vpop.f32.mrb[1].mxu1  ;;  %3754 = vmatmul.mubr.f32.gmra.mrb[106].mxu1 %v11492_v30  ;;  %4214 = vmatmul.mubr.f32.gmra.mrb[24].mxu0 %v11474_v34  ;;  %v2484_v34 = vld [vmem:[#allocation10 + $0xfb8] sm:$0xff] }
 0x429   :  { %3759 = vmatprep.mubr.f32.mxu1 %v11493_v12  ;;  %4219 = vmatprep.mubr.f32.mxu0 %v11475_v62  ;;  %v6861_v62 = vpack.c.bf16 %v2475_v38, %v2467_v45  ;;  %v6863_v33 = vpack.c.bf16 %v2492_v49, %v2484_v34  ;;  %v11503_v45 = vld [vmem:[#allocation66_spill] sm:$0xff] }
 0x42a   :  { %6854 = vmatpush1.bf16.msra.mxu0 %v6853_v29  ;;  %v11496_v29 = vld [vmem:[#allocation59_spill] sm:$0xff] }
 0x42b   :  { %v9594_v35 = vpop.f32.mrb[2].mxu1  ;;  %6856 = vmatprep.subr.bf16.mxu0 %v6855_v57 }
 0x42c   :  { %v9596_v5 = vpop.f32.mrb[3].mxu1  ;;  %3760 = vmatmul.mubr.f32.gmra.mrb[108].mxu1 %v11494_v43  ;;  %4220 = vmatmul.mubr.f32.gmra.mrb[26].mxu0 %v11476_v8  ;;  %v11497_v8 = vld [vmem:[#allocation60_spill] sm:$0xff] }
 0x42d   :  { %3765 = vmatprep.mubr.f32.mxu1 %v11495_v22  ;;  %4225 = vmatprep.mubr.f32.mxu0 %v11477_v59  ;;  %v6865_v59 = vpack.c.bf16 %v2491_v1, %v2483_v50 }
 0x42e   :  { %6858 = vmatpush1.bf16.msra.mxu0 %v6857_v63  ;;  %v11501_v63 = vld [vmem:[#allocation64_spill] sm:$0xff] }
 0x42f   :  { %v9602_v60 = vpop.f32.mrb[4].mxu1  ;;  %6860 = vmatprep.subr.bf16.mxu0 %v6859_v13 }
 0x430   :  { %v9604_v9 = vpop.f32.mrb[5].mxu1  ;;  %3766 = vmatmul.mubr.f32.gmra.mrb[110].mxu1 %v11496_v29  ;;  %4226 = vmatmul.mubr.f32.gmra.mrb[28].mxu0 %v11478_v53 }
 0x431   :  { %3771 = vmatprep.mubr.f32.mxu1 %v11497_v8  ;;  %4231 = vmatprep.mubr.f32.mxu0 %v11479_v3 }
 0x432   :  { %6862 = vmatpush1.bf16.msra.mxu0 %v6861_v62 }
 0x433   :  { %v9610_v57 = vpop.f32.mrb[6].mxu1  ;;  %6864 = vmatprep.subr.bf16.mxu0 %v6863_v33 }
 0x434   :  { %v9612_v21 = vpop.f32.mrb[7].mxu1  ;;  %3772 = vmatmul.mubr.f32.gmra.mrb[112].mxu1 %v11498_v51  ;;  %4232 = vmatmul.mubr.f32.gmra.mrb[30].mxu0 %v11480_v37 }
 0x435   :  { %3777 = vmatprep.mubr.f32.mxu1 %v11499_v47  ;;  %4237 = vmatprep.mubr.f32.mxu0 %v11481_v14  ;;  %v11502_v14 = vld [vmem:[#allocation65_spill] sm:$0xff] }
 0x436   :  { %6866 = vmatpush1.bf16.msra.mxu0 %v6865_v59 }
 0x437   :  { %v9618_v53 = vpop.f32.mrb[8].mxu1  ;;  %7011 = vmatprep.subr.bf16.mxu0 %v11310_v25 }
 0x438   :  { %v9621_v3 = vpop.f32.mrb[9].mxu1  ;;  %3778 = vmatmul.mubr.f32.gmra.mrb[114].mxu1 %v11500_v31  ;;  %4238 = vmatmul.mubr.f32.gmra.mrb[32].mxu0 %v11482_v7  ;;  %v11505_v7 = vld [vmem:[#allocation67_spill] sm:$0xff] }
 0x439   :  { %3783 = vmatprep.mubr.f32.mxu1 %v11501_v63  ;;  %4243 = vmatprep.mubr.f32.mxu0 %v11483_v4  ;;  %v11506_v4 = vld [vmem:[#allocation68_spill] sm:$0xff] }
 0x43b   :  { %v9627_v37 = vpop.f32.mrb[10].mxu1 }
 0x43c   :  { %v9629_v13 = vpop.f32.mrb[11].mxu1  ;;  %3784 = vmatmul.mubr.f32.gmra.mrb[116].mxu1 %v11502_v14  ;;  %4244 = vmatmul.mubr.f32.gmra.mrb[34].mxu0 %v11484_v39  ;;  %v11509_v39 = vld [vmem:[#allocation69_spill] sm:$0xff] }
 0x43d   :  { %3789 = vmatprep.mubr.f32.mxu1 %v11503_v45  ;;  %4249 = vmatprep.mubr.f32.mxu0 %v11485_v42  ;;  %v11510_v42 = vld [vmem:[#allocation70_spill] sm:$0xff] }
 0x43f   :  { %v9635_v38 = vpop.f32.mrb[12].mxu1 }
 0x440   :  { %11504 = vst [vmem:[#allocation26_spill] sm:$0xff] %v9635_v38  ;;  %v9637_v34 = vpop.f32.mrb[13].mxu1  ;;  %3790 = vmatmul.mubr.f32.gmra.mrb[118].mxu1 %v11505_v7  ;;  %4250 = vmatmul.mubr.f32.gmra.mrb[36].mxu0 %v11486_v6  ;;  %v11513_v6 = vld [vmem:[#allocation71_spill] sm:$0xff]  ;;  %v5106_v38 = vld [vmem:[#allocation13 + $0x18] sm:$0xff] }
 0x441   :  { %3795 = vmatprep.mubr.f32.mxu1 %v11506_v4  ;;  %4255 = vmatprep.mubr.f32.mxu0 %v11487_v24  ;;  %v11514_v24 = vld [vmem:[#allocation72_spill] sm:$0xff] }
 0x443   :  { %v9643_v49 = vpop.f32.mrb[14].mxu1 }
 0x444   :  { %11507 = vst [vmem:[#allocation27_spill] sm:$0xff] %v9643_v49  ;;  %v9645_v62 = vpop.f32.mrb[15].mxu1  ;;  %3796 = vmatmul.mubr.f32.gmra.mrb[120].mxu1 %v11509_v39  ;;  %4256 = vmatmul.mubr.f32.gmra.mrb[38].mxu0 %v11488_v58 }
 0x445   :  { %11508 = vst [vmem:[#allocation28_spill] sm:$0xff] %v9645_v62  ;;  %3801 = vmatprep.mubr.f32.mxu1 %v11510_v42  ;;  %4261 = vmatprep.mubr.f32.mxu0 %v11489_v44  ;;  %v11519_v44 = vld [vmem:[#allocation73_spill] sm:$0xff] }
 0x447   :  { %v9651_v33 = vpop.f32.mrb[16].mxu1 }
 0x448   :  { %11511 = vst [vmem:[#allocation29_spill] sm:$0xff] %v9651_v33  ;;  %v9653_v50 = vpop.f32.mrb[17].mxu1  ;;  %3802 = vmatmul.mubr.f32.gmra.mrb[122].mxu1 %v11513_v6  ;;  %4262 = vmatmul.mubr.f32.gmra.mrb[40].mxu0 %v11490_v0  ;;  %v11520_v33 = vld [vmem:[#allocation74_spill] sm:$0xff] }
 0x449   :  { %11512 = vst [vmem:[#allocation30_spill] sm:$0xff] %v9653_v50  ;;  %3807 = vmatprep.mubr.f32.mxu1 %v11514_v24  ;;  %4267 = vmatprep.mubr.f32.mxu0 %v11491_v2  ;;  %v5103_v2 = vld [vmem:[#allocation13] sm:$0xff] }
 0x44b   :  { %v9659_v1 = vpop.f32.mrb[18].mxu1  ;;  %v9661_v59 = vpop.f32.mrb[192].mxu0 }
 0x44c   :  { %11515 = vst [vmem:[#allocation31_spill] sm:$0xff] %v9659_v1  ;;  %11516 = vst [vmem:[#allocation32_spill] sm:$0xff] %v9661_v59  ;;  %v9663_v58 = vpop.f32.mrb[19].mxu1  ;;  %v9665_v25 = vpop.f32.mrb[193].mxu0  ;;  %3808 = vmatmul.mubr.f32.gmra.mrb[124].mxu1 %v11519_v44  ;;  %4268 = vmatmul.mubr.f32.gmra.mrb[42].mxu0 %v11492_v30  ;;  %v5104_v1 = vld [vmem:[#allocation13 + $0x8] sm:$0xff] }
 0x44d   :  { %11517 = vst [vmem:[#allocation33_spill] sm:$0xff] %v9663_v58  ;;  %11518 = vst [vmem:[#allocation34_spill] sm:$0xff] %v9665_v25  ;;  %3813 = vmatprep.mubr.f32.mxu1 %v11520_v33  ;;  %4273 = vmatprep.mubr.f32.mxu0 %v11493_v12  ;;  %v11525_v58 = vld [vmem:[#allocation75_spill] sm:$0xff]  ;;  %v11526_v25 = vld [vmem:[#allocation76_spill] sm:$0xff]  ;;  %v6868_v30 = vpack.c.bf16 %v5104_v1, %v5103_v2  ;;  %v11535_v2 = vmov 0.0|0.0  }
 0x44f   :  { %v9671_v0 = vpop.f32.mrb[20].mxu1  ;;  %v9673_v50 = vpop.f32.mrb[194].mxu0 }
 0x450   :  { %11521 = vst [vmem:[#allocation35_spill] sm:$0xff] %v9671_v0  ;;  %11522 = vst [vmem:[#allocation36_spill] sm:$0xff] %v9673_v50  ;;  %v9675_v49 = vpop.f32.mrb[21].mxu1  ;;  %v9677_v59 = vpop.f32.mrb[195].mxu0  ;;  %3814 = vmatmul.mubr.f32.gmra.mrb[126].mxu1 %v11525_v58  ;;  %4274 = vmatmul.mubr.f32.gmra.mrb[44].mxu0 %v11494_v43  ;;  %v11532_v43 = vld [vmem:[#allocation78_spill] sm:$0xff] }
 0x451   :  { %11523 = vst [vmem:[#allocation37_spill] sm:$0xff] %v9675_v49  ;;  %11524 = vst [vmem:[#allocation38_spill] sm:$0xff] %v9677_v59  ;;  %3884 = vmatprep.mubr.f32.mxu1 %v11526_v25  ;;  %4279 = vmatprep.mubr.f32.mxu0 %v11495_v22  ;;  %v11531_v49 = vld [vmem:[#allocation77_spill] sm:$0xff] }
 0x452   :  { %v5105_v59 = vld [vmem:[#allocation13 + $0x10] sm:$0xff] }
 0x453   :  { %v9683_v12 = vpop.f32.mrb[22].mxu1  ;;  %v9685_v0 = vpop.f32.mrb[196].mxu0 }
 0x454   :  { %11527 = vst [vmem:[#allocation39_spill] sm:$0xff] %v9683_v12  ;;  %11528 = vst [vmem:[#allocation40_spill] sm:$0xff] %v9685_v0  ;;  %v9687_v50 = vpop.f32.mrb[23].mxu1  ;;  %v9689_v62 = vpop.f32.mrb[197].mxu0  ;;  %3885 = vmatmul.mubr.f32.vlgmr.msra.gmra.mrb[64].mxu1 %v11531_v49  ;;  %4280 = vmatmul.mubr.f32.gmra.mrb[46].mxu0 %v11496_v29  ;;  %v6871_v0 = vpack.c.bf16 %v5106_v38, %v5105_v59  ;;  %v11538_v29 = vld [vmem:[#allocation80_spill] sm:$0xff]  ;;  %v11543_v59 = vld [vmem:[#allocation81_spill] sm:$0xff] }
 0x455   :  { %11529 = vst [vmem:[#allocation41_spill] sm:$0xff] %v9687_v50  ;;  %11530 = vst [vmem:[#allocation42_spill] sm:$0xff] %v9689_v62  ;;  %6869 = vmatpush1.bf16.msra.mxu1 %v6868_v30  ;;  %3890 = vmatprep.mubr.f32.mxu1 %v11532_v43  ;;  %v11537_v50 = vld [vmem:[#allocation79_spill] sm:$0xff] }
 0x456   :  { %4285 = vmatprep.mubr.f32.mxu0 %v11497_v8  ;;  %6870 = vmatprep.subr.bf16.mxu1 %v11535_v2 }
 0x457   :  { %v9695_v22 = vpop.f32.mrb[24].mxu1  ;;  %v9697_v1 = vpop.f32.mrb[198].mxu0 }
 0x458   :  { %11533 = vst [vmem:[#allocation43_spill] sm:$0xff] %v9695_v22  ;;  %11534 = vst [vmem:[#allocation44_spill] sm:$0xff] %v9697_v1  ;;  %v9700_v12 = vpop.f32.mrb[25].mxu1  ;;  %v9702_v62 = vpop.f32.mrb[199].mxu0  ;;  %3891 = vmatmul.mubr.f32.gmra.mrb[66].mxu1 %v11537_v50  ;;  %4286 = vmatmul.mubr.f32.gmra.mrb[48].mxu0 %v11498_v51  ;;  %v5108_v22 = vld [vmem:[#allocation13 + $0x28] sm:$0xff]  ;;  %v11544_v51 = vld [vmem:[#allocation82_spill] sm:$0xff] }
 0x459   :  { %11536 = vst [vmem:[#allocation45_spill] sm:$0xff] %v9702_v62  ;;  %3896 = vmatprep.mubr.f32.mxu1 %v11538_v29  ;;  %4291 = vmatprep.mubr.f32.mxu0 %v11499_v47  ;;  %v5107_v62 = vld [vmem:[#allocation13 + $0x20] sm:$0xff] }
 0x45a   :  { %6872 = vmatpush1.bf16.msra.mxu1 %v6871_v0  ;;  %v6874_v0 = vpack.c.bf16 %v5108_v22, %v5107_v62  ;;  %v11553_v22 = vld [vmem:[#allocation85_spill] sm:$0xff] }
 0x45b   :  { %v9708_v8 = vpop.f32.mrb[26].mxu1  ;;  %v9710_v30 = vpop.f32.mrb[200].mxu0  ;;  %6873 = vmatprep.subr.bf16.mxu1 %v11535_v2 }
 0x45c   :  { %11539 = vst [vmem:[#allocation46_spill] sm:$0xff] %v9708_v8  ;;  %11540 = vst [vmem:[#allocation47_spill] sm:$0xff] %v9710_v30  ;;  %v9712_v1 = vpop.f32.mrb[27].mxu1  ;;  %v9714_v38 = vpop.f32.mrb[201].mxu0  ;;  %3897 = vmatmul.mubr.f32.gmra.mrb[68].mxu1 %v11543_v59  ;;  %4292 = vmatmul.mubr.f32.gmra.mrb[50].mxu0 %v11500_v31  ;;  %v11550_v31 = vld [vmem:[#allocation84_spill] sm:$0xff] }
 0x45d   :  { %11541 = vst [vmem:[#allocation48_spill] sm:$0xff] %v9712_v1  ;;  %11542 = vst [vmem:[#allocation49_spill] sm:$0xff] %v9714_v38  ;;  %3902 = vmatprep.mubr.f32.mxu1 %v11544_v51  ;;  %4297 = vmatprep.mubr.f32.mxu0 %v11501_v63  ;;  %v11549_v1 = vld [vmem:[#allocation83_spill] sm:$0xff] }
 0x45e   :  { %6875 = vmatpush1.bf16.msra.mxu1 %v6874_v0 }
 0x45f   :  { %v9720_v47 = vpop.f32.mrb[28].mxu1  ;;  %v9722_v8 = vpop.f32.mrb[202].mxu0  ;;  %6876 = vmatprep.subr.bf16.mxu1 %v11535_v2 }
 0x460   :  { %11545 = vst [vmem:[#allocation50_spill] sm:$0xff] %v9720_v47  ;;  %11546 = vst [vmem:[#allocation51_spill] sm:$0xff] %v9722_v8  ;;  %v9725_v30 = vpop.f32.mrb[29].mxu1  ;;  %v9727_v38 = vpop.f32.mrb[203].mxu0  ;;  %3903 = vmatmul.mubr.f32.gmra.mrb[70].mxu1 %v11549_v1  ;;  %4298 = vmatmul.mubr.f32.gmra.mrb[52].mxu0 %v11502_v14 }
 0x461   :  { %11547 = vst [vmem:[#allocation52_spill] sm:$0xff] %v9725_v30  ;;  %11548 = vst [vmem:[#allocation53_spill] sm:$0xff] %v9727_v38  ;;  %3908 = vmatprep.mubr.f32.mxu1 %v11550_v31  ;;  %4303 = vmatprep.mubr.f32.mxu0 %v11503_v45  ;;  %v5109_v38 = vld [vmem:[#allocation13 + $0x30] sm:$0xff]  ;;  %v5110_v30 = vld [vmem:[#allocation13 + $0x38] sm:$0xff] }
 0x462   :  { %v6877_v0 = vpack.c.bf16 %v5110_v30, %v5109_v38  ;;  %v5111_v38 = vld [vmem:[#allocation13 + $0x40] sm:$0xff] }
 0x463   :  { %v9733_v63 = vpop.f32.mrb[30].mxu1  ;;  %v9735_v47 = vpop.f32.mrb[204].mxu0 }
 0x464   :  { %11551 = vst [vmem:[#allocation54_spill] sm:$0xff] %v9735_v47  ;;  %v9737_v8 = vpop.f32.mrb[31].mxu1  ;;  %v9739_v62 = vpop.f32.mrb[205].mxu0  ;;  %3909 = vmatmul.mubr.f32.gmra.mrb[72].mxu1 %v11553_v22  ;;  %4304 = vmatmul.mubr.f32.gmra.mrb[54].mxu0 %v11505_v7  ;;  %v11557_v7 = vld [vmem:[#allocation86_spill] sm:$0xff] }
 0x465   :  { %11552 = vst [vmem:[#allocation55_spill] sm:$0xff] %v9739_v62  ;;  %3914 = vmatprep.mubr.f32.mxu1 %v9232_v56  ;;  %4309 = vmatprep.mubr.f32.mxu0 %v11506_v4 }
 0x466   :  { %6878 = vmatpush1.bf16.msra.mxu1 %v6877_v0 }
 0x467   :  { %v9745_v14 = vpop.f32.mrb[32].mxu1  ;;  %v9747_v45 = vpop.f32.mrb[206].mxu0  ;;  %6879 = vmatprep.subr.bf16.mxu1 %v11535_v2 }
 0x468   :  { %11554 = vst [vmem:[#allocation56_spill] sm:$0xff] %v9745_v14  ;;  %11555 = vst [vmem:[#allocation57_spill] sm:$0xff] %v9747_v45  ;;  %v9750_v47 = vpop.f32.mrb[33].mxu1  ;;  %v9752_v62 = vpop.f32.mrb[207].mxu0  ;;  %3915 = vmatmul.mubr.f32.gmra.mrb[74].mxu1 %v9236_v20  ;;  %4310 = vmatmul.mubr.f32.gmra.mrb[56].mxu0 %v11509_v39 }
 0x469   :  { %11556 = vst [vmem:[#allocation58_spill] sm:$0xff] %v9752_v62  ;;  %3920 = vmatprep.mubr.f32.mxu1 %v11557_v7  ;;  %4315 = vmatprep.mubr.f32.mxu0 %v11510_v42  ;;  %v5112_v62 = vld [vmem:[#allocation13 + $0x48] sm:$0xff] }
 0x46a   :  { %v6880_v0 = vpack.c.bf16 %v5112_v62, %v5111_v38  ;;  %v5113_v38 = vld [vmem:[#allocation13 + $0x50] sm:$0xff] }
 0x46b   :  { %v9758_v4 = vpop.f32.mrb[34].mxu1  ;;  %v9760_v14 = vpop.f32.mrb[208].mxu0 }
 0x46c   :  { %11558 = vst [vmem:[#allocation59_spill] sm:$0xff] %v9760_v14  ;;  %v9762_v45 = vpop.f32.mrb[35].mxu1  ;;  %v9764_v30 = vpop.f32.mrb[209].mxu0  ;;  %3921 = vmatmul.mubr.f32.gmra.mrb[76].mxu1 %v9246_v28  ;;  %4316 = vmatmul.mubr.f32.gmra.mrb[58].mxu0 %v11513_v6 }
 0x46d   :  { %11559 = vst [vmem:[#allocation60_spill] sm:$0xff] %v9764_v30  ;;  %3926 = vmatprep.mubr.f32.mxu1 %v9252_v41  ;;  %4321 = vmatprep.mubr.f32.mxu0 %v11514_v24 }
 0x46e   :  { %6881 = vmatpush1.bf16.msra.mxu1 %v6880_v0 }
 0x46f   :  { %v9770_v39 = vpop.f32.mrb[36].mxu1  ;;  %v9772_v42 = vpop.f32.mrb[210].mxu0  ;;  %6882 = vmatprep.subr.bf16.mxu1 %v11535_v2 }
 0x470   :  { %11560 = vst [vmem:[#allocation61_spill] sm:$0xff] %v9772_v42  ;;  %v9775_v14 = vpop.f32.mrb[37].mxu1  ;;  %v9777_v30 = vpop.f32.mrb[211].mxu0  ;;  %3927 = vmatmul.mubr.f32.gmra.mrb[78].mxu1 %v9256_v19  ;;  %4322 = vmatmul.mubr.f32.gmra.mrb[60].mxu0 %v11519_v44 }
 0x471   :  { %11561 = vst [vmem:[#allocation62_spill] sm:$0xff] %v9777_v30  ;;  %3932 = vmatprep.mubr.f32.mxu1 %v9262_v18  ;;  %4327 = vmatprep.mubr.f32.mxu0 %v11520_v33  ;;  %v5114_v30 = vld [vmem:[#allocation13 + $0x58] sm:$0xff] }
 0x472   :  { %v6883_v0 = vpack.c.bf16 %v5114_v30, %v5113_v38  ;;  %v11575_v38 = vld [vmem:[#allocation89_spill] sm:$0xff] }
 0x473   :  { %v9783_v6 = vpop.f32.mrb[38].mxu1  ;;  %v9785_v24 = vpop.f32.mrb[212].mxu0 }
 0x474   :  { %11562 = vst [vmem:[#allocation63_spill] sm:$0xff] %v9783_v6  ;;  %11563 = vst [vmem:[#allocation64_spill] sm:$0xff] %v9785_v24  ;;  %v9787_v42 = vpop.f32.mrb[39].mxu1  ;;  %v9789_v62 = vpop.f32.mrb[213].mxu0  ;;  %3933 = vmatmul.mubr.f32.gmra.mrb[80].mxu1 %v9266_v48  ;;  %4328 = vmatmul.mubr.f32.gmra.mrb[62].mxu0 %v11525_v58  ;;  %v11569_v6 = vld [vmem:[#allocation87_spill] sm:$0xff]  ;;  %v11570_v58 = vld [vmem:[#allocation88_spill] sm:$0xff] }
 0x475   :  { %11564 = vst [vmem:[#allocation65_spill] sm:$0xff] %v9789_v62  ;;  %3938 = vmatprep.mubr.f32.mxu1 %v9272_v11  ;;  %4398 = vmatprep.mubr.f32.mxu0 %v11526_v25 }
 0x476   :  { %6884 = vmatpush1.bf16.msra.mxu1 %v6883_v0 }
 0x477   :  { %v9795_v33 = vpop.f32.mrb[40].mxu1  ;;  %v9797_v44 = vpop.f32.mrb[214].mxu0  ;;  %6885 = vmatprep.subr.bf16.mxu1 %v11535_v2 }
 0x478   :  { %11565 = vst [vmem:[#allocation66_spill] sm:$0xff] %v9795_v33  ;;  %11566 = vst [vmem:[#allocation67_spill] sm:$0xff] %v9797_v44  ;;  %v9800_v24 = vpop.f32.mrb[41].mxu1  ;;  %v9802_v62 = vpop.f32.mrb[215].mxu0  ;;  %3939 = vmatmul.mubr.f32.gmra.mrb[82].mxu1 %v11569_v6  ;;  %4399 = vmatmul.mubr.f32.vlgmr.msra.gmra.mrb[0].mxu0 %v11531_v49  ;;  %v11576_v49 = vld [vmem:[#allocation90_spill] sm:$0xff] }
 0x479   :  { %11567 = vst [vmem:[#allocation68_spill] sm:$0xff] %v9800_v24  ;;  %11568 = vst [vmem:[#allocation69_spill] sm:$0xff] %v9802_v62  ;;  %3944 = vmatprep.mubr.f32.mxu1 %v11570_v58  ;;  %4404 = vmatprep.mubr.f32.mxu0 %v11532_v43  ;;  %v5115_v62 = vld [vmem:[#allocation13 + $0x60] sm:$0xff]  ;;  %v5116_v24 = vld [vmem:[#allocation13 + $0x68] sm:$0xff] }
 0x47a   :  { %v6886_v0 = vpack.c.bf16 %v5116_v24, %v5115_v62  ;;  %v11587_v62 = vld [vmem:[#allocation93_spill] sm:$0xff] }
 0x47b   :  { %v9808_v25 = vpop.f32.mrb[42].mxu1  ;;  %v9810_v33 = vpop.f32.mrb[216].mxu0 }
 0x47c   :  { %11571 = vst [vmem:[#allocation70_spill] sm:$0xff] %v9808_v25  ;;  %11572 = vst [vmem:[#allocation71_spill] sm:$0xff] %v9810_v33  ;;  %v9812_v44 = vpop.f32.mrb[43].mxu1  ;;  %v9814_v30 = vpop.f32.mrb[217].mxu0  ;;  %3945 = vmatmul.mubr.f32.gmra.mrb[84].mxu1 %v11575_v38  ;;  %4405 = vmatmul.mubr.f32.gmra.mrb[2].mxu0 %v11537_v50  ;;  %v11582_v50 = vld [vmem:[#allocation92_spill] sm:$0xff] }
 0x47d   :  { %11573 = vst [vmem:[#allocation72_spill] sm:$0xff] %v9812_v44  ;;  %11574 = vst [vmem:[#allocation73_spill] sm:$0xff] %v9814_v30  ;;  %3950 = vmatprep.mubr.f32.mxu1 %v11576_v49  ;;  %4410 = vmatprep.mubr.f32.mxu0 %v11538_v29  ;;  %v11581_v44 = vld [vmem:[#allocation91_spill] sm:$0xff] }
 0x47e   :  { %6887 = vmatpush1.bf16.msra.mxu1 %v6886_v0 }
 0x47f   :  { %v9820_v43 = vpop.f32.mrb[44].mxu1  ;;  %v9822_v25 = vpop.f32.mrb[218].mxu0  ;;  %6888 = vmatprep.subr.bf16.mxu1 %v11535_v2 }
 0x480   :  { %11577 = vst [vmem:[#allocation74_spill] sm:$0xff] %v9820_v43  ;;  %11578 = vst [vmem:[#allocation75_spill] sm:$0xff] %v9822_v25  ;;  %v9825_v33 = vpop.f32.mrb[45].mxu1  ;;  %v9827_v30 = vpop.f32.mrb[219].mxu0  ;;  %3951 = vmatmul.mubr.f32.gmra.mrb[86].mxu1 %v11581_v44  ;;  %4411 = vmatmul.mubr.f32.gmra.mrb[4].mxu0 %v11543_v59  ;;  %v11588_v59 = vld [vmem:[#allocation94_spill] sm:$0xff] }
 0x481   :  { %11579 = vst [vmem:[#allocation76_spill] sm:$0xff] %v9825_v33  ;;  %11580 = vst [vmem:[#allocation77_spill] sm:$0xff] %v9827_v30  ;;  %3956 = vmatprep.mubr.f32.mxu1 %v11582_v50  ;;  %4416 = vmatprep.mubr.f32.mxu0 %v11544_v51  ;;  %v5117_v30 = vld [vmem:[#allocation13 + $0x70] sm:$0xff]  ;;  %v5118_v33 = vld [vmem:[#allocation13 + $0x78] sm:$0xff] }
 0x482   :  { %v6889_v0 = vpack.c.bf16 %v5118_v33, %v5117_v30  ;;  %v5119_v30 = vld [vmem:[#allocation13 + $0x80] sm:$0xff] }
 0x483   :  { %v9833_v29 = vpop.f32.mrb[46].mxu1  ;;  %v9835_v43 = vpop.f32.mrb[220].mxu0 }
 0x484   :  { %11583 = vst [vmem:[#allocation78_spill] sm:$0xff] %v9833_v29  ;;  %11584 = vst [vmem:[#allocation79_spill] sm:$0xff] %v9835_v43  ;;  %v9837_v25 = vpop.f32.mrb[47].mxu1  ;;  %v9839_v24 = vpop.f32.mrb[221].mxu0  ;;  %3957 = vmatmul.mubr.f32.gmra.mrb[88].mxu1 %v11587_v62  ;;  %4417 = vmatmul.mubr.f32.gmra.mrb[6].mxu0 %v11549_v1 }
 0x485   :  { %11585 = vst [vmem:[#allocation80_spill] sm:$0xff] %v9837_v25  ;;  %11586 = vst [vmem:[#allocation81_spill] sm:$0xff] %v9839_v24  ;;  %3962 = vmatprep.mubr.f32.mxu1 %v11588_v59  ;;  %4422 = vmatprep.mubr.f32.mxu0 %v11550_v31  ;;  %v11591_v25 = vld [vmem:[#allocation95_spill] sm:$0xff] }
 0x486   :  { %6890 = vmatpush1.bf16.msra.mxu1 %v6889_v0 }
 0x487   :  { %v9845_v51 = vpop.f32.mrb[48].mxu1  ;;  %v9847_v29 = vpop.f32.mrb[222].mxu0  ;;  %6891 = vmatprep.subr.bf16.mxu1 %v11535_v2 }
 0x488   :  { %11589 = vst [vmem:[#allocation82_spill] sm:$0xff] %v9847_v29  ;;  %v9850_v43 = vpop.f32.mrb[49].mxu1  ;;  %v9852_v24 = vpop.f32.mrb[223].mxu0  ;;  %3963 = vmatmul.mubr.f32.gmra.mrb[90].mxu1 %v11591_v25  ;;  %4423 = vmatmul.mubr.f32.gmra.mrb[8].mxu0 %v11553_v22 }
 0x489   :  { %11590 = vst [vmem:[#allocation83_spill] sm:$0xff] %v9852_v24  ;;  %3968 = vmatprep.mubr.f32.mxu1 %v9322_v26  ;;  %4428 = vmatprep.mubr.f32.mxu0 %v9232_v56  ;;  %v5120_v24 = vld [vmem:[#allocation13 + $0x88] sm:$0xff] }
 0x48a   :  { %v6892_v0 = vpack.c.bf16 %v5120_v24, %v5119_v30  ;;  %v5121_v30 = vld [vmem:[#allocation13 + $0x90] sm:$0xff] }
 0x48b   :  { %v9858_v1 = vpop.f32.mrb[50].mxu1  ;;  %v9860_v31 = vpop.f32.mrb[224].mxu0 }
 0x48c   :  { %11592 = vst [vmem:[#allocation84_spill] sm:$0xff] %v9860_v31  ;;  %v9862_v29 = vpop.f32.mrb[51].mxu1  ;;  %v9864_v33 = vpop.f32.mrb[225].mxu0  ;;  %3969 = vmatmul.mubr.f32.gmra.mrb[92].mxu1 %v9326_v46  ;;  %4429 = vmatmul.mubr.f32.gmra.mrb[10].mxu0 %v9236_v20 }
 0x48d   :  { %11593 = vst [vmem:[#allocation85_spill] sm:$0xff] %v9864_v33  ;;  %3974 = vmatprep.mubr.f32.mxu1 %v9332_v23  ;;  %4434 = vmatprep.mubr.f32.mxu0 %v11557_v7 }
 0x48e   :  { %6893 = vmatpush1.bf16.msra.mxu1 %v6892_v0 }
 0x48f   :  { %v9870_v56 = vpop.f32.mrb[52].mxu1  ;;  %v9872_v22 = vpop.f32.mrb[226].mxu0  ;;  %6894 = vmatprep.subr.bf16.mxu1 %v11535_v2 }
 0x490   :  { %11594 = vst [vmem:[#allocation86_spill] sm:$0xff] %v9870_v56  ;;  %11595 = vst [vmem:[#allocation87_spill] sm:$0xff] %v9872_v22  ;;  %v9875_v31 = vpop.f32.mrb[53].mxu1  ;;  %v9877_v33 = vpop.f32.mrb[227].mxu0  ;;  %3975 = vmatmul.mubr.f32.gmra.mrb[94].mxu1 %v9336_v15  ;;  %4435 = vmatmul.mubr.f32.gmra.mrb[12].mxu0 %v9246_v28  ;;  %v5199_v56 = vld [vmem:[#allocation13 + $0x300] sm:$0xff]  ;;  %v5200_v28 = vld [vmem:[#allocation13 + $0x308] sm:$0xff] }
 0x491   :  { %11596 = vst [vmem:[#allocation88_spill] sm:$0xff] %v9875_v31  ;;  %11597 = vst [vmem:[#allocation89_spill] sm:$0xff] %v9877_v33  ;;  %3980 = vmatprep.mubr.f32.mxu1 %v9342_v10  ;;  %4440 = vmatprep.mubr.f32.mxu0 %v9252_v41  ;;  %v5122_v33 = vld [vmem:[#allocation13 + $0x98] sm:$0xff]  ;;  %v11607_v31 = vld [vmem:[#allocation96_spill] sm:$0xff] }
 0x492   :  { %v6895_v0 = vpack.c.bf16 %v5122_v33, %v5121_v30  ;;  %v5123_v33 = vld [vmem:[#allocation13 + $0xa0] sm:$0xff] }
 0x493   :  { %v9883_v20 = vpop.f32.mrb[54].mxu1  ;;  %v9885_v7 = vpop.f32.mrb[228].mxu0 }
 0x494   :  { %11598 = vst [vmem:[#allocation90_spill] sm:$0xff] %v9883_v20  ;;  %11599 = vst [vmem:[#allocation91_spill] sm:$0xff] %v9885_v7  ;;  %v9887_v22 = vpop.f32.mrb[55].mxu1  ;;  %v9889_v24 = vpop.f32.mrb[229].mxu0  ;;  %3981 = vmatmul.mubr.f32.gmra.mrb[96].mxu1 %v9346_v32  ;;  %4441 = vmatmul.mubr.f32.gmra.mrb[14].mxu0 %v9256_v19  ;;  %v11608_v19 = vld [vmem:[#allocation97_spill] sm:$0xff] }
 0x495   :  { %11600 = vst [vmem:[#allocation92_spill] sm:$0xff] %v9887_v22  ;;  %11601 = vst [vmem:[#allocation93_spill] sm:$0xff] %v9889_v24  ;;  %3986 = vmatprep.mubr.f32.mxu1 %v9352_v16  ;;  %4446 = vmatprep.mubr.f32.mxu0 %v9262_v18  ;;  %v9900_v24 = vpack.c.bf16 %v5200_v28, %v5199_v56  ;;  %v11613_v28 = vld [vmem:[#allocation98_spill] sm:$0xff] }
 0x496   :  { %6896 = vmatpush1.bf16.msra.mxu1 %v6895_v0 }
 0x497   :  { %v9895_v41 = vpop.f32.mrb[56].mxu1  ;;  %v9897_v7 = vpop.f32.mrb[230].mxu0  ;;  %11604 = vst [vmem:[#allocation119_spill] sm:$0xff] %v9900_v24  ;;  %7013 = vmatpush1.bf16.msra.mxu0 %v9900_v24  ;;  %6897 = vmatprep.subr.bf16.mxu1 %v11535_v2 }
 0x498   :  { %11602 = vst [vmem:[#allocation94_spill] sm:$0xff] %v9895_v41  ;;  %11603 = vst [vmem:[#allocation95_spill] sm:$0xff] %v9897_v7  ;;  %v9902_v20 = vpop.f32.mrb[57].mxu1  ;;  %v9904_v22 = vpop.f32.mrb[231].mxu0  ;;  %3987 = vmatmul.mubr.f32.gmra.mrb[98].mxu1 %v11607_v31  ;;  %4447 = vmatmul.mubr.f32.gmra.mrb[16].mxu0 %v9266_v48  ;;  %v5201_v48 = vld [vmem:[#allocation13 + $0x310] sm:$0xff]  ;;  %v5202_v41 = vld [vmem:[#allocation13 + $0x318] sm:$0xff] }
 0x499   :  { %11605 = vst [vmem:[#allocation120_spill] sm:$0xff] %v9902_v20  ;;  %11606 = vst [vmem:[#allocation121_spill] sm:$0xff] %v9904_v22  ;;  %3992 = vmatprep.mubr.f32.mxu1 %v11608_v19  ;;  %4452 = vmatprep.mubr.f32.mxu0 %v9272_v11  ;;  %v5124_v22 = vld [vmem:[#allocation13 + $0xa8] sm:$0xff] }
 0x49a   :  { %v11614_v11 = vld [vmem:[#allocation99_spill] sm:$0xff]  ;;  %v6898_v24 = vpack.c.bf16 %v5124_v22, %v5123_v33  ;;  %7014 = vmatprep.subr.bf16.mxu0 %v11535_v2  ;;  %v5126_v33 = vld [vmem:[#allocation13 + $0xb8] sm:$0xff] }
 0x49b   :  { %v9910_v18 = vpop.f32.mrb[58].mxu1  ;;  %v9912_v7 = vpop.f32.mrb[232].mxu0 }
 0x49c   :  { %11609 = vst [vmem:[#allocation96_spill] sm:$0xff] %v9910_v18  ;;  %11610 = vst [vmem:[#allocation97_spill] sm:$0xff] %v9912_v7  ;;  %v9915_v56 = vpop.f32.mrb[59].mxu1  ;;  %v9917_v30 = vpop.f32.mrb[233].mxu0  ;;  %3993 = vmatmul.mubr.f32.gmra.mrb[100].mxu1 %v11613_v28  ;;  %4453 = vmatmul.mubr.f32.gmra.mrb[18].mxu0 %v11569_v6  ;;  %v5203_v6 = vld [vmem:[#allocation13 + $0x320] sm:$0xff] }
 0x49d   :  { %11611 = vst [vmem:[#allocation122_spill] sm:$0xff] %v9915_v56  ;;  %11612 = vst [vmem:[#allocation123_spill] sm:$0xff] %v9917_v30  ;;  %3998 = vmatprep.mubr.f32.mxu1 %v11614_v11  ;;  %4458 = vmatprep.mubr.f32.mxu0 %v11570_v58  ;;  %v9929_v30 = vpack.c.bf16 %v5202_v41, %v5201_v48  ;;  %v5204_v58 = vld [vmem:[#allocation13 + $0x328] sm:$0xff]  ;;  %v5125_v41 = vld [vmem:[#allocation13 + $0xb0] sm:$0xff] }
 0x49e   :  { %6899 = vmatpush1.bf16.msra.mxu1 %v6898_v24  ;;  %v6901_v24 = vpack.c.bf16 %v5126_v33, %v5125_v41  ;;  %v5208_v41 = vld [vmem:[#allocation13 + $0x348] sm:$0xff] }
 0x49f   :  { %v9923_v7 = vpop.f32.mrb[60].mxu1  ;;  %v9925_v0 = vpop.f32.mrb[234].mxu0  ;;  %11617 = vst [vmem:[#allocation124_spill] sm:$0xff] %v9929_v30  ;;  %7016 = vmatpush1.bf16.msra.mxu0 %v9929_v30  ;;  %6900 = vmatprep.subr.bf16.mxu1 %v11535_v2  ;;  %v5127_v30 = vld [vmem:[#allocation13 + $0xc0] sm:$0xff] }
 0x4a0   :  { %11615 = vst [vmem:[#allocation98_spill] sm:$0xff] %v9923_v7  ;;  %11616 = vst [vmem:[#allocation99_spill] sm:$0xff] %v9925_v0  ;;  %v9931_v18 = vpop.f32.mrb[61].mxu1  ;;  %v9933_v56 = vpop.f32.mrb[235].mxu0  ;;  %3999 = vmatmul.mubr.f32.gmra.mrb[102].mxu1 %v9376_v40  ;;  %4459 = vmatmul.mubr.f32.gmra.mrb[20].mxu0 %v11575_v38  ;;  %v9949_v38 = vpack.c.bf16 %v5204_v58, %v5203_v6  ;;  %v5206_v7 = vld [vmem:[#allocation13 + $0x338] sm:$0xff]  ;;  %v11627_v6 = vld [vmem:[#allocation100_spill] sm:$0xff] }
 0x4a1   :  { %11618 = vst [vmem:[#allocation125_spill] sm:$0xff] %v9931_v18  ;;  %11619 = vst [vmem:[#allocation126_spill] sm:$0xff] %v9933_v56  ;;  %4004 = vmatprep.mubr.f32.mxu1 %v9382_v27  ;;  %4464 = vmatprep.mubr.f32.mxu0 %v11576_v49  ;;  %v5205_v49 = vld [vmem:[#allocation13 + $0x330] sm:$0xff]  ;;  %v5207_v58 = vld [vmem:[#allocation13 + $0x340] sm:$0xff] }
 0x4a2   :  { %11624 = vst [vmem:[#allocation131_spill] sm:$0xff] %v9949_v38  ;;  %7017 = vmatprep.subr.bf16.mxu0 %v11535_v2  ;;  %6902 = vmatpush1.bf16.msra.mxu1 %v6901_v24 }
 0x4a3   :  { %v9939_v0 = vpop.f32.mrb[62].mxu1  ;;  %v9941_v22 = vpop.f32.mrb[236].mxu0  ;;  %7019 = vmatpush1.bf16.msra.mxu0 %v9949_v38  ;;  %6903 = vmatprep.subr.bf16.mxu1 %v11535_v2 }
 0x4a4   :  { %11620 = vst [vmem:[#allocation127_spill] sm:$0xff] %v9939_v0  ;;  %11621 = vst [vmem:[#allocation128_spill] sm:$0xff] %v9941_v22  ;;  %v9944_v48 = vpop.f32.mrb[63].mxu1  ;;  %v9946_v56 = vpop.f32.mrb[237].mxu0  ;;  %4005 = vmatmul.mubr.f32.gmra.mrb[104].mxu1 %v9386_v61  ;;  %4465 = vmatmul.mubr.f32.gmra.mrb[22].mxu0 %v11581_v44  ;;  %v5128_v0 = vld [vmem:[#allocation13 + $0xc8] sm:$0xff]  ;;  %v9962_v44 = vpack.c.bf16 %v5206_v7, %v5205_v49  ;;  %v11632_v49 = vld [vmem:[#allocation102_spill] sm:$0xff] }
 0x4a5   :  { %11622 = vst [vmem:[#allocation129_spill] sm:$0xff] %v9944_v48  ;;  %11623 = vst [vmem:[#allocation130_spill] sm:$0xff] %v9946_v56  ;;  %4010 = vmatprep.mubr.f32.mxu1 %v9392_v17  ;;  %4470 = vmatprep.mubr.f32.mxu0 %v11582_v50  ;;  %v11629_v50 = vld [vmem:[#allocation101_spill] sm:$0xff]  ;;  %v6904_v33 = vpack.c.bf16 %v5128_v0, %v5127_v30 }
 0x4a6   :  { %11628 = vst [vmem:[#allocation100_spill] sm:$0xff] %v9962_v44  ;;  %v5130_v48 = vld [vmem:[#allocation13 + $0xd8] sm:$0xff]  ;;  %7020 = vmatprep.subr.bf16.mxu0 %v11535_v2  ;;  %v5209_v30 = vld [vmem:[#allocation13 + $0x350] sm:$0xff] }
 0x4a7   :  { %v9954_v22 = vpop.f32.mrb[238].mxu0  ;;  %7022 = vmatpush1.bf16.msra.mxu0 %v9962_v44  ;;  %v5210_v0 = vld [vmem:[#allocation13 + $0x358] sm:$0xff]  ;;  %6905 = vmatpush1.bf16.msra.mxu1 %v6904_v33  ;;  %v5133_v33 = vld [vmem:[#allocation13 + $0xf0] sm:$0xff] }
 0x4a8   :  { %11625 = vst [vmem:[#allocation132_spill] sm:$0xff] %v9954_v22  ;;  %v9958_v56 = vpop.f32.mrb[239].mxu0  ;;  %4011 = vmatmul.mubr.f32.gmra.mrb[106].mxu1 %v11627_v6  ;;  %4471 = vmatmul.mubr.f32.gmra.mrb[24].mxu0 %v11587_v62  ;;  %v9975_v62 = vpack.c.bf16 %v5208_v41, %v5207_v58  ;;  %v5134_v44 = vld [vmem:[#allocation13 + $0xf8] sm:$0xff] }
 0x4a9   :  { %11626 = vst [vmem:[#allocation133_spill] sm:$0xff] %v9958_v56  ;;  %4016 = vmatprep.mubr.f32.mxu1 %v11629_v50  ;;  %4476 = vmatprep.mubr.f32.mxu0 %v11588_v59  ;;  %v5129_v56 = vld [vmem:[#allocation13 + $0xd0] sm:$0xff]  ;;  %v11634_v59 = vld [vmem:[#allocation103_spill] sm:$0xff] }
 0x4aa   :  { %11633 = vst [vmem:[#allocation102_spill] sm:$0xff] %v9975_v62  ;;  %v6907_v24 = vpack.c.bf16 %v5130_v48, %v5129_v56  ;;  %6906 = vmatprep.subr.bf16.mxu1 %v11535_v2  ;;  %7023 = vmatprep.subr.bf16.mxu0 %v11535_v2  ;;  %v5212_v56 = vld [vmem:[#allocation13 + $0x368] sm:$0xff] }
 0x4ab   :  { %v9967_v22 = vpop.f32.mrb[240].mxu0  ;;  %7025 = vmatpush1.bf16.msra.mxu0 %v9975_v62 }
 0x4ac   :  { %11630 = vst [vmem:[#allocation101_spill] sm:$0xff] %v9967_v22  ;;  %v9971_v7 = vpop.f32.mrb[241].mxu0  ;;  %4017 = vmatmul.mubr.f32.gmra.mrb[108].mxu1 %v11632_v49  ;;  %4477 = vmatmul.mubr.f32.gmra.mrb[26].mxu0 %v11591_v25  ;;  %v5131_v22 = vld [vmem:[#allocation13 + $0xe0] sm:$0xff]  ;;  %v9988_v25 = vpack.c.bf16 %v5210_v0, %v5209_v30  ;;  %v11640_v0 = vld [vmem:[#allocation104_spill] sm:$0xff] }
 0x4ad   :  { %11631 = vst [vmem:[#allocation134_spill] sm:$0xff] %v9971_v7  ;;  %4022 = vmatprep.mubr.f32.mxu1 %v11634_v59  ;;  %4482 = vmatprep.mubr.f32.mxu0 %v9322_v26  ;;  %v5132_v7 = vld [vmem:[#allocation13 + $0xe8] sm:$0xff]  ;;  %v5211_v26 = vld [vmem:[#allocation13 + $0x360] sm:$0xff] }
 0x4ae   :  { %11637 = vst [vmem:[#allocation136_spill] sm:$0xff] %v9988_v25  ;;  %6908 = vmatpush1.bf16.msra.mxu1 %v6907_v24  ;;  %v6910_v48 = vpack.c.bf16 %v5132_v7, %v5131_v22  ;;  %7026 = vmatprep.subr.bf16.mxu0 %v11535_v2  ;;  %v5213_v22 = vld [vmem:[#allocation13 + $0x370] sm:$0xff]  ;;  %v5214_v7 = vld [vmem:[#allocation13 + $0x378] sm:$0xff]  ;;  %v6913_v24 = vpack.c.bf16 %v5134_v44, %v5133_v33  ;;  %v5216_v44 = vld [vmem:[#allocation13 + $0x388] sm:$0xff] }
 0x4af   :  { %v9980_v38 = vpop.f32.mrb[242].mxu0  ;;  %6909 = vmatprep.subr.bf16.mxu1 %v11535_v2  ;;  %7028 = vmatpush1.bf16.msra.mxu0 %v9988_v25  ;;  %v10035_v25 = vld [vmem:[#allocation11] sm:$0xff] }
 0x4b0   :  { %11635 = vst [vmem:[#allocation103_spill] sm:$0xff] %v9980_v38  ;;  %v9984_v58 = vpop.f32.mrb[243].mxu0  ;;  %4023 = vmatmul.mubr.f32.gmra.mrb[110].mxu1 %v9416_v36  ;;  %4483 = vmatmul.mubr.f32.gmra.mrb[28].mxu0 %v9326_v46  ;;  %v10001_v46 = vpack.c.bf16 %v5212_v56, %v5211_v26  ;;  %v11645_v26 = vld [vmem:[#allocation106_spill] sm:$0xff]  ;;  %v11647_v56 = vld [vmem:[#allocation107_spill] sm:$0xff]  ;;  %11654 = vst [vmem:[#allocation141_spill] sm:$0xff] %v10035_v25 }
 0x4b1   :  { %11636 = vst [vmem:[#allocation135_spill] sm:$0xff] %v9984_v58  ;;  %4028 = vmatprep.mubr.f32.mxu1 %v9422_v55  ;;  %4488 = vmatprep.mubr.f32.mxu0 %v9332_v23  ;;  %v11642_v23 = vld [vmem:[#allocation105_spill] sm:$0xff]  ;;  %v5135_v38 = vld [vmem:[#allocation13 + $0x100] sm:$0xff] }
 0x4b2   :  { %11641 = vst [vmem:[#allocation104_spill] sm:$0xff] %v10001_v46  ;;  %6911 = vmatpush1.bf16.msra.mxu1 %v6910_v48  ;;  %7029 = vmatprep.subr.bf16.mxu0 %v11535_v2 }
 0x4b3   :  { %v9993_v41 = vpop.f32.mrb[244].mxu0  ;;  %6912 = vmatprep.subr.bf16.mxu1 %v11535_v2  ;;  %7031 = vmatpush1.bf16.msra.mxu0 %v10001_v46  ;;  %v11650_v46 = vld [vmem:[#allocation108_spill] sm:$0xff] }
 0x4b4   :  { %11638 = vst [vmem:[#allocation137_spill] sm:$0xff] %v9993_v41  ;;  %v9997_v30 = vpop.f32.mrb[245].mxu0  ;;  %4029 = vmatmul.mubr.f32.gmra.mrb[112].mxu1 %v11640_v0  ;;  %4489 = vmatmul.mubr.f32.gmra.mrb[30].mxu0 %v9336_v15  ;;  %v10014_v15 = vpack.c.bf16 %v5214_v7, %v5213_v22  ;;  %v11652_v22 = vld [vmem:[#allocation109_spill] sm:$0xff] }
 0x4b5   :  { %11639 = vst [vmem:[#allocation138_spill] sm:$0xff] %v9997_v30  ;;  %4034 = vmatprep.mubr.f32.mxu1 %v11642_v23  ;;  %4494 = vmatprep.mubr.f32.mxu0 %v9342_v10  ;;  %v5215_v10 = vld [vmem:[#allocation13 + $0x380] sm:$0xff]  ;;  %v5218_v7 = vld [vmem:[#allocation13 + $0x398] sm:$0xff] }
 0x4b6   :  { %11646 = vst [vmem:[#allocation106_spill] sm:$0xff] %v10014_v15  ;;  %6914 = vmatpush1.bf16.msra.mxu1 %v6913_v24  ;;  %7032 = vmatprep.subr.bf16.mxu0 %v11535_v2 }
 0x4b7   :  { %v10006_v62 = vpop.f32.mrb[246].mxu0  ;;  %6915 = vmatprep.subr.bf16.mxu1 %v11535_v2  ;;  %7034 = vmatpush1.bf16.msra.mxu0 %v10014_v15  ;;  %v11659_v15 = vld [vmem:[#allocation25_spill] sm:$0xff] }
 0x4b8   :  { %11643 = vst [vmem:[#allocation105_spill] sm:$0xff] %v10006_v62  ;;  %v10010_v41 = vpop.f32.mrb[247].mxu0  ;;  %4035 = vmatmul.mubr.f32.gmra.mrb[114].mxu1 %v11645_v26  ;;  %4495 = vmatmul.mubr.f32.gmra.mrb[32].mxu0 %v9346_v32  ;;  %v10027_v32 = vpack.c.bf16 %v5216_v44, %v5215_v10  ;;  %v5219_v44 = vld [vmem:[#allocation13 + $0x3a0] sm:$0xff] }
 0x4b9   :  { %11644 = vst [vmem:[#allocation139_spill] sm:$0xff] %v10010_v41  ;;  %4040 = vmatprep.mubr.f32.mxu1 %v11647_v56  ;;  %4500 = vmatprep.mubr.f32.mxu0 %v9352_v16  ;;  %v5217_v16 = vld [vmem:[#allocation13 + $0x390] sm:$0xff] }
 0x4ba   :  { %11651 = vst [vmem:[#allocation108_spill] sm:$0xff] %v10027_v32  ;;  %7035 = vmatprep.subr.bf16.mxu0 %v11535_v2  ;;  %v10041_v10 = vpack.c.bf16 %v5218_v7, %v5217_v16  ;;  %v11662_v16 = vld [vmem:[#allocation112_spill] sm:$0xff]  ;;  %v11664_v7 = vld [vmem:[#allocation113_spill] sm:$0xff] }
 0x4bb   :  { %v10019_v48 = vpop.f32.mrb[248].mxu0  ;;  %7037 = vmatpush1.bf16.msra.mxu0 %v10027_v32  ;;  %v5222_v32 = vld [vmem:[#allocation13 + $0x3b8] sm:$0xff]  ;;  %v11665_v41 = vld [vmem:[#allocation24_spill] sm:$0xff] }
 0x4bc   :  { %11648 = vst [vmem:[#allocation107_spill] sm:$0xff] %v10019_v48  ;;  %v10023_v33 = vpop.f32.mrb[249].mxu0  ;;  %4041 = vmatmul.mubr.f32.gmra.mrb[116].mxu1 %v11650_v46  ;;  %4501 = vmatmul.mubr.f32.gmra.mrb[34].mxu0 %v11607_v31  ;;  %v11658_v31 = vld [vmem:[#allocation111_spill] sm:$0xff] }
 0x4bd   :  { %11649 = vst [vmem:[#allocation140_spill] sm:$0xff] %v10023_v33  ;;  %4046 = vmatprep.mubr.f32.mxu1 %v11652_v22  ;;  %4506 = vmatprep.mubr.f32.mxu0 %v11608_v19  ;;  %v11656_v33 = vld [vmem:[#allocation110_spill] sm:$0xff]  ;;  %v5220_v19 = vld [vmem:[#allocation13 + $0x3a8] sm:$0xff] }
 0x4be   :  { %11657 = vst [vmem:[#allocation110_spill] sm:$0xff] %v10041_v10  ;;  %7038 = vmatprep.subr.bf16.mxu0 %v11535_v2 }
 0x4bf   :  { %v10033_v24 = vpop.f32.mrb[250].mxu0  ;;  %7040 = vmatpush1.bf16.msra.mxu0 %v10041_v10 }
 0x4c0   :  { %11653 = vst [vmem:[#allocation109_spill] sm:$0xff] %v10033_v24  ;;  %v10037_v48 = vpop.f32.mrb[251].mxu0  ;;  %4047 = vmatmul.mubr.f32.gmra.mrb[118].mxu1 %v11656_v33  ;;  %4507 = vmatmul.mubr.f32.gmra.mrb[36].mxu0 %v11613_v28  ;;  %v10049_v24 = vrot.slane %v10035_v25, %v11659_v15  ;;  %v10057_v28 = vpack.c.bf16 %v5220_v19, %v5219_v44 }
 0x4c1   :  { %11655 = vst [vmem:[#allocation142_spill] sm:$0xff] %v10037_v48  ;;  %4052 = vmatprep.mubr.f32.mxu1 %v11658_v31  ;;  %4512 = vmatprep.mubr.f32.mxu0 %v11614_v11  ;;  %v5221_v11 = vld [vmem:[#allocation13 + $0x3b0] sm:$0xff]  ;;  %v10063_v15 = vrot.slane %v10035_v25, %v11665_v41  ;;  %v11670_v41 = vld [vmem:[#allocation115_spill] sm:$0xff] }
 0x4c2   :  { %11663 = vst [vmem:[#allocation112_spill] sm:$0xff] %v10057_v28  ;;  %7041 = vmatprep.subr.bf16.mxu0 %v11535_v2  ;;  %v10075_v19 = vpack.c.bf16 %v5222_v32, %v5221_v11  ;;  %v11673_v32 = vld [vmem:[#allocation117_spill] sm:$0xff]  ;;  %v5228_v25 = vld [vmem:[#allocation13 + $0x3e8] sm:$0xff] }
 0x4c3   :  { %v10051_v48 = vpop.f32.mrb[252].mxu0  ;;  %7043 = vmatpush1.bf16.msra.mxu0 %v10057_v28  ;;  %v7091_v30 = vadd.f32 %v9586_v52, %v10063_v15  ;;  %v11671_v28 = vld [vmem:[#allocation116_spill] sm:$0xff]  ;;  %v5226_v52 = vld [vmem:[#allocation13 + $0x3d8] sm:$0xff] }
 0x4c4   :  { %11660 = vst [vmem:[#allocation111_spill] sm:$0xff] %v10051_v48  ;;  %v10053_v62 = vpop.f32.mrb[253].mxu0  ;;  %4053 = vmatmul.mubr.f32.gmra.mrb[120].mxu1 %v11662_v16  ;;  %4513 = vmatmul.mubr.f32.gmra.mrb[38].mxu0 %v9376_v40  ;;  %v7092_v48 = vadd.f32 %v9588_v54, %v10049_v24  ;;  %v11668_v40 = vld [vmem:[#allocation114_spill] sm:$0xff]  ;;  %v5225_v11 = vld [vmem:[#allocation13 + $0x3d0] sm:$0xff] }
 0x4c5   :  { %11661 = vst [vmem:[#allocation25_spill] sm:$0xff] %v10053_v62  ;;  %4058 = vmatprep.mubr.f32.mxu1 %v11664_v7  ;;  %4518 = vmatprep.mubr.f32.mxu0 %v9382_v27  ;;  %11669 = vst [vmem:[#allocation114_spill] sm:$0xff] %v10075_v19  ;;  %v5223_v27 = vld [vmem:[#allocation13 + $0x3c0] sm:$0xff]  ;;  %v5224_v62 = vld [vmem:[#allocation13 + $0x3c8] sm:$0xff] }
 0x4c6   :  { %7044 = vmatprep.subr.bf16.mxu0 %v11535_v2  ;;  %v4592_v54 = vmul.f32 0.2, %v7092_v48 }
 0x4c7   :  { %v10069_v10 = vpop.f32.mrb[254].mxu0  ;;  %7046 = vmatpush1.bf16.msra.mxu0 %v10075_v19  ;;  %v10099_v19 = vpack.c.bf16 %v5226_v52, %v5225_v11  ;;  %v5137_v11 = vld [vmem:[#allocation13 + $0x110] sm:$0xff]  ;;  %v5138_v52 = vld [vmem:[#allocation13 + $0x118] sm:$0xff] }
 0x4c8   :  { %11666 = vst [vmem:[#allocation113_spill] sm:$0xff] %v10069_v10  ;;  %v10071_v44 = vpop.f32.mrb[255].mxu0  ;;  %4059 = vmatmul.mubr.f32.gmra.mrb[122].mxu1 %v11668_v40  ;;  %4519 = vmatmul.mubr.f32.gmra.mrb[40].mxu0 %v9386_v61  ;;  %v7094_v10 = vadd.f32 %v9596_v5, %v10049_v24  ;;  %v10087_v61 = vpack.c.bf16 %v5224_v62, %v5223_v27  ;;  %v5136_v5 = vld [vmem:[#allocation13 + $0x108] sm:$0xff] }
 0x4c9   :  { %11667 = vst [vmem:[#allocation24_spill] sm:$0xff] %v10071_v44  ;;  %4064 = vmatprep.mubr.f32.mxu1 %v11670_v41  ;;  %4524 = vmatprep.mubr.f32.mxu0 %v9392_v17  ;;  %v4591_v44 = vmul.f32 0.2, %v7091_v30  ;;  %v7093_v17 = vadd.f32 %v9594_v35, %v10063_v15  ;;  %v4848_v58 = vmax.f32 %v7092_v48, %v4592_v54  ;;  %11675 = vst [vmem:[#allocation116_spill] sm:$0xff] %v10099_v19 }
 0x4ca   :  { %11672 = vst [vmem:[#allocation115_spill] sm:$0xff] %v10087_v61  ;;  %7047 = vmatprep.subr.bf16.mxu0 %v11535_v2  ;;  %v7096_v62 = vadd.f32 %v9604_v9, %v10049_v24  ;;  %v4600_v27 = vmul.f32 0.2, %v7094_v10  ;;  %v6916_v35 = vpack.c.bf16 %v5136_v5, %v5135_v38  ;;  %v7095_v48 = vadd.f32 %v9602_v60, %v10063_v15  ;;  %v5229_v60 = vld [vmem:[#allocation13 + $0x3f0] sm:$0xff]  ;;  %v5140_v5 = vld [vmem:[#allocation13 + $0x128] sm:$0xff] }
 0x4cb   :  { %7049 = vmatpush1.bf16.msra.mxu0 %v10087_v61  ;;  %v4847_v18 = vmax.f32 %v7091_v30, %v4591_v44  ;;  %v4599_v20 = vmul.f32 0.2, %v7093_v17  ;;  %v7098_v54 = vadd.f32 %v9612_v21, %v10049_v24  ;;  %v7097_v44 = vadd.f32 %v9610_v57, %v10063_v15 }
 0x4cc   :  { %4065 = vmatmul.mubr.f32.gmra.mrb[124].mxu1 %v11671_v28  ;;  %4525 = vmatmul.mubr.f32.gmra.mrb[42].mxu0 %v11627_v6  ;;  %v11674_v6 = vld [vmem:[#allocation118_spill] sm:$0xff]  ;;  %v4608_v9 = vmul.f32 0.2, %v7096_v62  ;;  %v4607_v30 = vmul.f32 0.2, %v7095_v48  ;;  %v6919_v21 = vpack.c.bf16 %v5138_v52, %v5137_v11  ;;  %v7104_v11 = vadd.f32 %v9637_v34, %v10049_v24  ;;  %v11679_v34 = vld [vmem:[#allocation28_spill] sm:$0xff] }
 0x4cd   :  { %4070 = vmatprep.mubr.f32.mxu1 %v11673_v32  ;;  %4530 = vmatprep.mubr.f32.mxu0 %v11629_v50  ;;  %v5227_v50 = vld [vmem:[#allocation13 + $0x3e0] sm:$0xff]  ;;  %v4615_v57 = vmul.f32 0.2, %v7097_v44 }
 0x4ce   :  { %7050 = vmatprep.subr.bf16.mxu0 %v11535_v2  ;;  %v10109_v38 = vpack.c.bf16 %v5228_v25, %v5227_v50  ;;  %v7100_v25 = vadd.f32 %v9621_v3, %v10049_v24  ;;  %v5141_v50 = vld [vmem:[#allocation13 + $0x130] sm:$0xff]  ;;  %v5143_v52 = vld [vmem:[#allocation13 + $0x140] sm:$0xff] }
 0x4cf   :  { %7052 = vmatpush1.bf16.msra.mxu0 %v10099_v19 }
 0x4d0   :  { %4071 = vmatmul.mubr.f32.gmra.mrb[126].mxu1 %v11674_v6  ;;  %4531 = vmatmul.mubr.f32.gmra.mrb[44].mxu0 %v11632_v49  ;;  %v4856_v49 = vmax.f32 %v7094_v10, %v4600_v27  ;;  %11676 = vst [vmem:[#allocation117_spill] sm:$0xff] %v10109_v38  ;;  %v4864_v10 = vmax.f32 %v7096_v62, %v4608_v9  ;;  %v4624_v27 = vmul.f32 0.2, %v7100_v25  ;;  %v5142_v9 = vld [vmem:[#allocation13 + $0x138] sm:$0xff] }
 0x4d1   :  { %5302 = vmatprep.mubr.f32.mxu1 %v4848_v58  ;;  %4536 = vmatprep.mubr.f32.mxu0 %v11634_v59  ;;  %v5230_v58 = vld [vmem:[#allocation13 + $0x3f8] sm:$0xff]  ;;  %v4855_v59 = vmax.f32 %v7093_v17, %v4599_v20  ;;  %v7099_v17 = vadd.f32 %v9618_v53, %v10063_v15  ;;  %v4871_v53 = vmax.f32 %v7097_v44, %v4615_v57 }
 0x4d2   :  { %7053 = vmatprep.subr.bf16.mxu0 %v11535_v2  ;;  %v10120_v20 = vpack.c.bf16 %v5230_v58, %v5229_v60  ;;  %v7106_v44 = vadd.f32 %v11679_v34, %v10049_v24  ;;  %v11681_v57 = vld [vmem:[#allocation30_spill] sm:$0xff] }
 0x4d3   :  { %7055 = vmatpush1.bf16.msra.mxu0 %v10109_v38 }
 0x4d4   :  { %5303 = vmatmul.mubr.f32.vlgmr.msra.gmra.mrb[128].mxu1 %v4847_v18  ;;  %4537 = vmatmul.mubr.f32.gmra.mrb[46].mxu0 %v9416_v36  ;;  %v4616_v18 = vmul.f32 0.2, %v7098_v54  ;;  %v5139_v36 = vld [vmem:[#allocation13 + $0x120] sm:$0xff]  ;;  %11677 = vst [vmem:[#allocation118_spill] sm:$0xff] %v10120_v20 }
 0x4d5   :  { %6917 = vmatpush1.bf16.msra.mxu1 %v6916_v35  ;;  %4542 = vmatprep.mubr.f32.mxu0 %v9422_v55  ;;  %v4863_v55 = vmax.f32 %v7095_v48, %v4607_v30  ;;  %v6922_v3 = vpack.c.bf16 %v5140_v5, %v5139_v36  ;;  %v7102_v35 = vadd.f32 %v9629_v13, %v10049_v24  ;;  %v4640_v30 = vmul.f32 0.2, %v7104_v11 }
 0x4d6   :  { %5307 = vmatprep.mubr.f32.mxu1 %v4856_v49  ;;  %6918 = vmatprep.subr.bf16.mxu1 %v11535_v2  ;;  %v4872_v62 = vmax.f32 %v7098_v54, %v4616_v18  ;;  %v6925_v13 = vpack.c.bf16 %v5142_v9, %v5141_v50  ;;  %v4880_v48 = vmax.f32 %v7100_v25, %v4624_v27  ;;  %v5144_v49 = vld [vmem:[#allocation13 + $0x148] sm:$0xff] }
 0x4d7   :  { %7056 = vmatprep.subr.bf16.mxu0 %v11535_v2  ;;  %v4632_v54 = vmul.f32 0.2, %v7102_v35  ;;  %v6928_v58 = vpack.c.bf16 %v5144_v49, %v5143_v52  ;;  %v11680_v25 = vld [vmem:[#allocation27_spill] sm:$0xff]  ;;  %v4896_v5 = vmax.f32 %v7104_v11, %v4640_v30 }
 0x4d8   :  { %5308 = vmatmul.mubr.f32.gmra.mrb[130].mxu1 %v4855_v59  ;;  %4543 = vmatmul.mubr.f32.gmra.mrb[48].mxu0 %v11640_v0  ;;  %v4623_v0 = vmul.f32 0.2, %v7099_v17  ;;  %v11684_v11 = vld [vmem:[#allocation31_spill] sm:$0xff] }
 0x4d9   :  { %5312 = vmatprep.mubr.f32.mxu1 %v4864_v10  ;;  %4548 = vmatprep.mubr.f32.mxu0 %v11642_v23  ;;  %v7101_v23 = vadd.f32 %v9627_v37, %v10063_v15  ;;  %v11678_v37 = vld [vmem:[#allocation26_spill] sm:$0xff]  ;;  %v4888_v59 = vmax.f32 %v7102_v35, %v4632_v54  ;;  %v11682_v35 = vld [vmem:[#allocation29_spill] sm:$0xff]  ;;  %v11686_v30 = vld [vmem:[#allocation35_spill] sm:$0xff] }
 0x4da   :  { %6920 = vmatpush1.bf16.msra.mxu1 %v6919_v21  ;;  %7058 = vmatpush1.bf16.msra.mxu0 %v10120_v20  ;;  %v5145_v21 = vld [vmem:[#allocation13 + $0x150] sm:$0xff]  ;;  %v5146_v10 = vld [vmem:[#allocation13 + $0x158] sm:$0xff] }
 0x4db   :  { %6921 = vmatprep.subr.bf16.mxu1 %v11535_v2  ;;  %v4631_v60 = vmul.f32 0.2, %v7101_v23  ;;  %v6931_v36 = vpack.c.bf16 %v5146_v10, %v5145_v21  ;;  %v11687_v10 = vld [vmem:[#allocation41_spill] sm:$0xff] }
 0x4dc   :  { %5313 = vmatmul.mubr.f32.gmra.mrb[132].mxu1 %v4863_v55  ;;  %4549 = vmatmul.mubr.f32.gmra.mrb[50].mxu0 %v11645_v26  ;;  %v4879_v26 = vmax.f32 %v7099_v17, %v4623_v0  ;;  %v4648_v55 = vmul.f32 0.2, %v7106_v44  ;;  %v7108_v17 = vadd.f32 %v11681_v57, %v10049_v24  ;;  %v11683_v0 = vld [vmem:[#allocation33_spill] sm:$0xff] }
 0x4dd   :  { %5317 = vmatprep.mubr.f32.mxu1 %v4872_v62  ;;  %4554 = vmatprep.mubr.f32.mxu0 %v11647_v56  ;;  %v7103_v56 = vadd.f32 %v11678_v37, %v10063_v15  ;;  %v5148_v62 = vld [vmem:[#allocation13 + $0x168] sm:$0xff] }
 0x4de   :  { %6923 = vmatpush1.bf16.msra.mxu1 %v6922_v3  ;;  %v5147_v3 = vld [vmem:[#allocation13 + $0x160] sm:$0xff]  ;;  %v4904_v9 = vmax.f32 %v7106_v44, %v4648_v55 }
 0x4df   :  { %6924 = vmatprep.subr.bf16.mxu1 %v11535_v2  ;;  %v4639_v18 = vmul.f32 0.2, %v7103_v56  ;;  %v6934_v50 = vpack.c.bf16 %v5148_v62, %v5147_v3  ;;  %v5155_v3 = vld [vmem:[#allocation13 + $0x1a0] sm:$0xff]  ;;  %v5156_v62 = vld [vmem:[#allocation13 + $0x1a8] sm:$0xff] }
 0x4e0   :  { %5318 = vmatmul.mubr.f32.gmra.mrb[134].mxu1 %v4871_v53  ;;  %4555 = vmatmul.mubr.f32.gmra.mrb[52].mxu0 %v11650_v46  ;;  %v4887_v46 = vmax.f32 %v7101_v23, %v4631_v60  ;;  %v4656_v53 = vmul.f32 0.2, %v7108_v17  ;;  %v7110_v23 = vadd.f32 %v11683_v0, %v10049_v24  ;;  %v11685_v60 = vld [vmem:[#allocation37_spill] sm:$0xff] }
 0x4e1   :  { %5322 = vmatprep.mubr.f32.mxu1 %v4880_v48  ;;  %4560 = vmatprep.mubr.f32.mxu0 %v11652_v22  ;;  %v7105_v22 = vadd.f32 %v11680_v25, %v10063_v15  ;;  %v5150_v48 = vld [vmem:[#allocation13 + $0x178] sm:$0xff]  ;;  %v7112_v37 = vadd.f32 %v11685_v60, %v10049_v24  ;;  %v5159_v60 = vld [vmem:[#allocation13 + $0x1c0] sm:$0xff] }
 0x4e2   :  { %6926 = vmatpush1.bf16.msra.mxu1 %v6925_v13  ;;  %v5149_v13 = vld [vmem:[#allocation13 + $0x170] sm:$0xff]  ;;  %v4912_v49 = vmax.f32 %v7108_v17, %v4656_v53  ;;  %v5154_v25 = vld [vmem:[#allocation13 + $0x198] sm:$0xff]  ;;  %v7116_v17 = vadd.f32 %v9700_v12, %v10049_v24 }
 0x4e3   :  { %6927 = vmatprep.subr.bf16.mxu1 %v11535_v2  ;;  %v4647_v27 = vmul.f32 0.2, %v7105_v22  ;;  %v6937_v52 = vpack.c.bf16 %v5150_v48, %v5149_v13  ;;  %v4672_v21 = vmul.f32 0.2, %v7112_v37  ;;  %v11690_v53 = vld [vmem:[#allocation48_spill] sm:$0xff] }
 0x4e4   :  { %5323 = vmatmul.mubr.f32.gmra.mrb[136].mxu1 %v4879_v26  ;;  %4561 = vmatmul.mubr.f32.gmra.mrb[54].mxu0 %v11656_v33  ;;  %v4895_v33 = vmax.f32 %v7103_v56, %v4639_v18  ;;  %v4664_v26 = vmul.f32 0.2, %v7110_v23  ;;  %v5151_v56 = vld [vmem:[#allocation13 + $0x180] sm:$0xff]  ;;  %v5153_v18 = vld [vmem:[#allocation13 + $0x190] sm:$0xff]  ;;  %v7118_v0 = vadd.f32 %v11690_v53, %v10049_v24 }
 0x4e5   :  { %5327 = vmatprep.mubr.f32.mxu1 %v4888_v59  ;;  %4566 = vmatprep.mubr.f32.mxu0 %v11658_v31  ;;  %v7107_v31 = vadd.f32 %v11682_v35, %v10063_v15  ;;  %v4928_v55 = vmax.f32 %v7112_v37, %v4672_v21  ;;  %v5157_v12 = vld [vmem:[#allocation13 + $0x1b0] sm:$0xff]  ;;  %v5160_v37 = vld [vmem:[#allocation13 + $0x1c8] sm:$0xff] }
 0x4e6   :  { %6929 = vmatpush1.bf16.msra.mxu1 %v6928_v58  ;;  %v5152_v58 = vld [vmem:[#allocation13 + $0x188] sm:$0xff]  ;;  %v4920_v44 = vmax.f32 %v7110_v23, %v4664_v26  ;;  %v5158_v23 = vld [vmem:[#allocation13 + $0x1b8] sm:$0xff]  ;;  %v5161_v21 = vld [vmem:[#allocation13 + $0x1d0] sm:$0xff] }
 0x4e7   :  { %6930 = vmatprep.subr.bf16.mxu1 %v11535_v2  ;;  %v4655_v54 = vmul.f32 0.2, %v7107_v31  ;;  %v6940_v34 = vpack.c.bf16 %v5152_v58, %v5151_v56 }
 0x4e8   :  { %5328 = vmatmul.mubr.f32.gmra.mrb[138].mxu1 %v4887_v46  ;;  %4567 = vmatmul.mubr.f32.gmra.mrb[56].mxu0 %v11662_v16  ;;  %v4903_v16 = vmax.f32 %v7105_v22, %v4647_v27  ;;  %v7114_v46 = vadd.f32 %v11687_v10, %v10049_v24  ;;  %v11689_v27 = vld [vmem:[#allocation43_spill] sm:$0xff]  ;;  %v5162_v10 = vld [vmem:[#allocation13 + $0x1d8] sm:$0xff] }
 0x4e9   :  { %5332 = vmatprep.mubr.f32.mxu1 %v4896_v5  ;;  %4572 = vmatprep.mubr.f32.mxu0 %v11664_v7  ;;  %v7109_v7 = vadd.f32 %v11684_v11, %v10063_v15  ;;  %v6943_v5 = vpack.c.bf16 %v5154_v25, %v5153_v18  ;;  %v7115_v35 = vadd.f32 %v11689_v27, %v10063_v15  ;;  %v5166_v27 = vld [vmem:[#allocation13 + $0x1f8] sm:$0xff] }
 0x4ea   :  { %6932 = vmatpush1.bf16.msra.mxu1 %v6931_v36  ;;  %v11688_v36 = vld [vmem:[#allocation39_spill] sm:$0xff]  ;;  %v4680_v57 = vmul.f32 0.2, %v7114_v46  ;;  %v6949_v11 = vpack.c.bf16 %v5158_v23, %v5157_v12  ;;  %v7121_v25 = vadd.f32 %v9733_v63, %v10063_v15  ;;  %v7128_v12 = vadd.f32 %v9775_v14, %v10049_v24 }
 0x4eb   :  { %6933 = vmatprep.subr.bf16.mxu1 %v11535_v2  ;;  %v4663_v59 = vmul.f32 0.2, %v7109_v7  ;;  %v4687_v48 = vmul.f32 0.2, %v7115_v35 }
 0x4ec   :  { %5333 = vmatmul.mubr.f32.gmra.mrb[140].mxu1 %v4895_v33  ;;  %4573 = vmatmul.mubr.f32.gmra.mrb[58].mxu0 %v11668_v40  ;;  %v4911_v40 = vmax.f32 %v7107_v31, %v4655_v54  ;;  %v6946_v31 = vpack.c.bf16 %v5156_v62, %v5155_v3 }
 0x4ed   :  { %5337 = vmatprep.mubr.f32.mxu1 %v4904_v9  ;;  %4578 = vmatprep.mubr.f32.mxu0 %v11670_v41  ;;  %v7111_v41 = vadd.f32 %v11686_v30, %v10063_v15  ;;  %v4688_v9 = vmul.f32 0.2, %v7116_v17  ;;  %v4943_v56 = vmax.f32 %v7115_v35, %v4687_v48  ;;  %v6952_v30 = vpack.c.bf16 %v5160_v37, %v5159_v60 }
 0x4ee   :  { %6935 = vmatpush1.bf16.msra.mxu1 %v6934_v50  ;;  %v4936_v50 = vmax.f32 %v7114_v46, %v4680_v57  ;;  %v4711_v57 = vmul.f32 0.2, %v7121_v25 }
 0x4ef   :  { %6936 = vmatprep.subr.bf16.mxu1 %v11535_v2  ;;  %v4671_v22 = vmul.f32 0.2, %v7111_v41 }
 0x4f0   :  { %5338 = vmatmul.mubr.f32.gmra.mrb[142].mxu1 %v4903_v16  ;;  %4579 = vmatmul.mubr.f32.gmra.mrb[60].mxu0 %v11671_v28  ;;  %v4919_v28 = vmax.f32 %v7109_v7, %v4663_v59  ;;  %v11691_v16 = vld [vmem:[#allocation46_spill] sm:$0xff]  ;;  %v4944_v7 = vmax.f32 %v7116_v17, %v4688_v9  ;;  %v11694_v17 = vld [vmem:[#allocation56_spill] sm:$0xff]  ;;  %v4967_v35 = vmax.f32 %v7121_v25, %v4711_v57 }
 0x4f1   :  { %5342 = vmatprep.mubr.f32.mxu1 %v4912_v49  ;;  %4584 = vmatprep.mubr.f32.mxu0 %v11673_v32  ;;  %v7113_v32 = vadd.f32 %v11688_v36, %v10063_v15  ;;  %v7117_v54 = vadd.f32 %v11691_v16, %v10063_v15  ;;  %v11692_v49 = vld [vmem:[#allocation52_spill] sm:$0xff]  ;;  %v7123_v3 = vadd.f32 %v11694_v17, %v10063_v15  ;;  %v4736_v16 = vmul.f32 0.2, %v7128_v12 }
 0x4f2   :  { %6938 = vmatpush1.bf16.msra.mxu1 %v6937_v52  ;;  %v4696_v52 = vmul.f32 0.2, %v7118_v0  ;;  %v7120_v26 = vadd.f32 %v11692_v49, %v10049_v24 }
 0x4f3   :  { %6939 = vmatprep.subr.bf16.mxu1 %v11535_v2  ;;  %v4679_v33 = vmul.f32 0.2, %v7113_v32  ;;  %v4695_v58 = vmul.f32 0.2, %v7117_v54 }
 0x4f4   :  { %5343 = vmatmul.mubr.f32.gmra.mrb[144].mxu1 %v4911_v40  ;;  %4585 = vmatmul.mubr.f32.gmra.mrb[62].mxu0 %v11674_v6  ;;  %v4927_v6 = vmax.f32 %v7111_v41, %v4671_v22  ;;  %v11693_v40 = vld [vmem:[#allocation50_spill] sm:$0xff]  ;;  %v4952_v41 = vmax.f32 %v7118_v0, %v4696_v52  ;;  %v4992_v52 = vmax.f32 %v7128_v12, %v4736_v16 }
 0x4f5   :  { %5347 = vmatprep.mubr.f32.mxu1 %v4920_v44  ;;  %v4935_v13 = vmax.f32 %v7113_v32, %v4679_v33  ;;  %v7119_v59 = vadd.f32 %v11693_v40, %v10063_v15  ;;  %v7122_v44 = vadd.f32 %v9737_v8, %v10049_v24  ;;  %v4951_v46 = vmax.f32 %v7117_v54, %v4695_v58  ;;  %v5163_v8 = vld [vmem:[#allocation13 + $0x1e0] sm:$0xff] }
 0x4f6   :  { %6941 = vmatpush1.bf16.msra.mxu1 %v6940_v34  ;;  %v4704_v34 = vmul.f32 0.2, %v7120_v26  ;;  %v7124_v32 = vadd.f32 %v9750_v47, %v10049_v24  ;;  %v7126_v33 = vadd.f32 %v9762_v45, %v10049_v24  ;;  %v5165_v47 = vld [vmem:[#allocation13 + $0x1f0] sm:$0xff]  ;;  %v7142_v12 = vadd.f32 %v9862_v29, %v10049_v24 }
 0x4f7   :  { %6942 = vmatprep.subr.bf16.mxu1 %v11535_v2  ;;  %v4703_v18 = vmul.f32 0.2, %v7119_v59  ;;  %v4712_v36 = vmul.f32 0.2, %v7122_v44  ;;  %v6961_v9 = vpack.c.bf16 %v5166_v27, %v5165_v47  ;;  %v7140_v47 = vadd.f32 %v9850_v43, %v10049_v24 }
 0x4f8   :  { %5348 = vmatmul.mubr.f32.gmra.mrb[146].mxu1 %v4919_v28  ;;  %v6955_v28 = vpack.c.bf16 %v5162_v10, %v5161_v21  ;;  %v4960_v22 = vmax.f32 %v7120_v26, %v4704_v34  ;;  %v4728_v0 = vmul.f32 0.2, %v7126_v33  ;;  %v11696_v26 = vld [vmem:[#allocation68_spill] sm:$0xff] }
 0x4f9   :  { %5352 = vmatprep.mubr.f32.mxu1 %v4928_v55  ;;  %v4959_v55 = vmax.f32 %v7119_v59, %v4703_v18  ;;  %v4968_v62 = vmax.f32 %v7122_v44, %v4712_v36  ;;  %v11698_v59 = vld [vmem:[#allocation72_spill] sm:$0xff]  ;;  %v11699_v44 = vld [vmem:[#allocation70_spill] sm:$0xff] }
 0x4fa   :  { %6944 = vmatpush1.bf16.msra.mxu1 %v6943_v5  ;;  %v5164_v5 = vld [vmem:[#allocation13 + $0x1e8] sm:$0xff]  ;;  %v4984_v48 = vmax.f32 %v7126_v33, %v4728_v0  ;;  %v7133_v21 = vadd.f32 %v11699_v44, %v10063_v15  ;;  %v11701_v36 = vld [vmem:[#allocation74_spill] sm:$0xff]  ;;  %v4784_v0 = vmul.f32 0.2, %v7140_v47 }
 0x4fb   :  { %6945 = vmatprep.subr.bf16.mxu1 %v11535_v2  ;;  %v6958_v63 = vpack.c.bf16 %v5164_v5, %v5163_v8  ;;  %v11700_v18 = vld [vmem:[#allocation76_spill] sm:$0xff] }
 0x4fc   :  { %5353 = vmatmul.mubr.f32.gmra.mrb[148].mxu1 %v4927_v6  ;;  %v4720_v6 = vmul.f32 0.2, %v7124_v32  ;;  %v7136_v25 = vadd.f32 %v11700_v18, %v10049_v24  ;;  %v5040_v16 = vmax.f32 %v7140_v47, %v4784_v0  ;;  %v11713_v0 = vld [vmem:[#allocation98_spill] sm:$0xff] }
 0x4fd   :  { %5357 = vmatprep.mubr.f32.mxu1 %v4936_v50  ;;  %v7125_v50 = vadd.f32 %v9758_v4, %v10063_v15  ;;  %v7130_v4 = vadd.f32 %v9787_v42, %v10049_v24  ;;  %v11697_v42 = vld [vmem:[#allocation66_spill] sm:$0xff] }
 0x4fe   :  { %6947 = vmatpush1.bf16.msra.mxu1 %v6946_v31  ;;  %v4719_v31 = vmul.f32 0.2, %v7123_v3  ;;  %v4976_v53 = vmax.f32 %v7124_v32, %v4720_v6  ;;  %v7135_v32 = vadd.f32 %v11701_v36, %v10063_v15  ;;  %v4768_v5 = vmul.f32 0.2, %v7136_v25 }
 0x4ff   :  { %6948 = vmatprep.subr.bf16.mxu1 %v11535_v2  ;;  %v4727_v23 = vmul.f32 0.2, %v7125_v50  ;;  %v4744_v49 = vmul.f32 0.2, %v7130_v4 }
 0x500   :  { %5358 = vmatmul.mubr.f32.gmra.mrb[150].mxu1 %v4935_v13  ;;  %v4975_v45 = vmax.f32 %v7123_v3, %v4719_v31  ;;  %v7127_v13 = vadd.f32 %v9770_v39, %v10063_v15  ;;  %v7132_v39 = vadd.f32 %v11696_v26, %v10049_v24  ;;  %v4767_v3 = vmul.f32 0.2, %v7135_v32 }
 0x501   :  { %5362 = vmatprep.mubr.f32.mxu1 %v4944_v7  ;;  %v4983_v14 = vmax.f32 %v7125_v50, %v4727_v23  ;;  %v5000_v58 = vmax.f32 %v7130_v4, %v4744_v49  ;;  %v5024_v6 = vmax.f32 %v7136_v25, %v4768_v5  ;;  %v4792_v4 = vmul.f32 0.2, %v7142_v12  ;;  %v11709_v25 = vld [vmem:[#allocation94_spill] sm:$0xff] }
 0x502   :  { %6950 = vmatpush1.bf16.msra.mxu1 %v6949_v11  ;;  %v4735_v54 = vmul.f32 0.2, %v7127_v13  ;;  %v11695_v11 = vld [vmem:[#allocation63_spill] sm:$0xff]  ;;  %v4752_v40 = vmul.f32 0.2, %v7132_v39  ;;  %v5023_v31 = vmax.f32 %v7135_v32, %v4767_v3  ;;  %v11710_v32 = vld [vmem:[#allocation122_spill] sm:$0xff] }
 0x503   :  { %6951 = vmatprep.subr.bf16.mxu1 %v11535_v2  ;;  %v7129_v7 = vadd.f32 %v11695_v11, %v10063_v15  ;;  %v5048_v26 = vmax.f32 %v7142_v12, %v4792_v4  ;;  %v11711_v3 = vld [vmem:[#allocation96_spill] sm:$0xff]  ;;  %v7151_v12 = vadd.f32 %v11713_v0, %v10063_v15 }
 0x504   :  { %5363 = vmatmul.mubr.f32.gmra.mrb[152].mxu1 %v4943_v56  ;;  %v4991_v60 = vmax.f32 %v7127_v13, %v4735_v54  ;;  %v7131_v56 = vadd.f32 %v11697_v42, %v10063_v15  ;;  %v5008_v10 = vmax.f32 %v7132_v39, %v4752_v40  ;;  %v11707_v40 = vld [vmem:[#allocation90_spill] sm:$0xff] }
 0x505   :  { %5367 = vmatprep.mubr.f32.mxu1 %v4952_v41  ;;  %v4743_v37 = vmul.f32 0.2, %v7129_v7 }
 0x506   :  { %6953 = vmatpush1.bf16.msra.mxu1 %v6952_v30  ;;  %v7134_v30 = vadd.f32 %v11698_v59, %v10049_v24  ;;  %v4751_v34 = vmul.f32 0.2, %v7131_v56  ;;  %v7145_v59 = vadd.f32 %v11707_v40, %v10063_v15  ;;  %v11720_v40 = vld [vmem:[#allocation34_spill] sm:$0xff] }
 0x507   :  { %6954 = vmatprep.subr.bf16.mxu1 %v11535_v2  ;;  %v4999_v41 = vmax.f32 %v7129_v7, %v4743_v37 }
 0x508   :  { %5368 = vmatmul.mubr.f32.gmra.mrb[154].mxu1 %v4951_v46  ;;  %v4760_v46 = vmul.f32 0.2, %v7134_v30  ;;  %v4807_v18 = vmul.f32 0.2, %v7145_v59 }
 0x509   :  { %5372 = vmatprep.mubr.f32.mxu1 %v4960_v22  ;;  %v4759_v22 = vmul.f32 0.2, %v7133_v21 }
 0x50a   :  { %6956 = vmatpush1.bf16.msra.mxu1 %v6955_v28  ;;  %v5007_v28 = vmax.f32 %v7131_v56, %v4751_v34  ;;  %v5016_v8 = vmax.f32 %v7134_v30, %v4760_v46  ;;  %v11708_v34 = vld [vmem:[#allocation120_spill] sm:$0xff] }
 0x50b   :  { %6957 = vmatprep.subr.bf16.mxu1 %v11535_v2  ;;  %v5015_v17 = vmax.f32 %v7133_v21, %v4759_v22  ;;  %v7148_v44 = vadd.f32 %v11708_v34, %v10049_v24 }
 0x50c   :  { %5373 = vmatmul.mubr.f32.gmra.mrb[156].mxu1 %v4959_v55  ;;  %v11702_v55 = vld [vmem:[#allocation80_spill] sm:$0xff] }
 0x50d   :  { %5377 = vmatprep.mubr.f32.mxu1 %v4968_v62  ;;  %v7138_v57 = vadd.f32 %v11702_v55, %v10049_v24  ;;  %v4816_v36 = vmul.f32 0.2, %v7148_v44 }
 0x50e   :  { %6959 = vmatpush1.bf16.msra.mxu1 %v6958_v63  ;;  %v11703_v63 = vld [vmem:[#allocation78_spill] sm:$0xff] }
 0x50f   :  { %6960 = vmatprep.subr.bf16.mxu1 %v11535_v2  ;;  %v7137_v62 = vadd.f32 %v11703_v63, %v10063_v15  ;;  %v4776_v33 = vmul.f32 0.2, %v7138_v57  ;;  %v7149_v63 = vadd.f32 %v11711_v3, %v10063_v15 }
 0x510   :  { %5378 = vmatmul.mubr.f32.gmra.mrb[158].mxu1 %v4967_v35 }
 0x511   :  { %5382 = vmatprep.mubr.f32.mxu1 %v4976_v53  ;;  %v4775_v50 = vmul.f32 0.2, %v7137_v62  ;;  %v5032_v53 = vmax.f32 %v7138_v57, %v4776_v33  ;;  %v5063_v57 = vmax.f32 %v7145_v59, %v4807_v18  ;;  %v11712_v33 = vld [vmem:[#allocation125_spill] sm:$0xff]  ;;  %v11722_v18 = vld [vmem:[#allocation32_spill] sm:$0xff] }
 0x512   :  { %6962 = vmatpush1.bf16.msra.mxu1 %v6961_v9  ;;  %v7139_v9 = vadd.f32 %v9845_v51, %v10063_v15  ;;  %v11704_v51 = vld [vmem:[#allocation88_spill] sm:$0xff]  ;;  %v7152_v47 = vadd.f32 %v11712_v33, %v10049_v24 }
 0x513   :  { %6963 = vmatprep.subr.bf16.mxu1 %v11535_v2  ;;  %v5031_v43 = vmax.f32 %v7137_v62, %v4775_v50  ;;  %v5072_v62 = vmax.f32 %v7148_v44, %v4816_v36 }
 0x514   :  { %5383 = vmatmul.mubr.f32.gmra.mrb[160].mxu1 %v4975_v45  ;;  %v4783_v13 = vmul.f32 0.2, %v7139_v9 }
 0x515   :  { %5387 = vmatprep.mubr.f32.mxu1 %v4984_v48  ;;  %v7141_v48 = vadd.f32 %v9858_v1, %v10063_v15  ;;  %v11706_v1 = vld [vmem:[#allocation92_spill] sm:$0xff] }
 0x516   :  { %v5039_v29 = vmax.f32 %v7139_v9, %v4783_v13 }
 0x517   :  { %v4791_v7 = vmul.f32 0.2, %v7141_v48 }
 0x518   :  { %5388 = vmatmul.mubr.f32.gmra.mrb[162].mxu1 %v4983_v14  ;;  %v7144_v14 = vadd.f32 %v11704_v51, %v10049_v24  ;;  %v4832_v51 = vmul.f32 0.2, %v7152_v47 }
 0x519   :  { %5392 = vmatprep.mubr.f32.mxu1 %v4992_v52  ;;  %v11705_v52 = vld [vmem:[#allocation86_spill] sm:$0xff]  ;;  %v5047_v56 = vmax.f32 %v7141_v48, %v4791_v7  ;;  %v11716_v48 = vld [vmem:[#allocation141_spill] sm:$0xff] }
 0x51a   :  { %v7143_v49 = vadd.f32 %v11705_v52, %v10063_v15  ;;  %v4800_v39 = vmul.f32 0.2, %v7144_v14 }
 0x51c   :  { %5393 = vmatmul.mubr.f32.gmra.mrb[164].mxu1 %v4991_v60  ;;  %v7146_v60 = vadd.f32 %v11706_v1, %v10049_v24  ;;  %v5056_v30 = vmax.f32 %v7144_v14, %v4800_v39  ;;  %v11717_v14 = vld [vmem:[#allocation129_spill] sm:$0xff] }
 0x51d   :  { %5397 = vmatprep.mubr.f32.mxu1 %v5000_v58  ;;  %v4799_v58 = vmul.f32 0.2, %v7143_v49 }
 0x51f   :  { %v5055_v46 = vmax.f32 %v7143_v49, %v4799_v58 }
 0x520   :  { %5398 = vmatmul.mubr.f32.gmra.mrb[166].mxu1 %v4999_v41  ;;  %v4808_v41 = vmul.f32 0.2, %v7146_v60 }
 0x521   :  { %5402 = vmatprep.mubr.f32.mxu1 %v5008_v10 }
 0x522   :  { %v5064_v22 = vmax.f32 %v7146_v60, %v4808_v41  ;;  %v4831_v60 = vmul.f32 0.2, %v7151_v12 }
 0x524   :  { %5403 = vmatmul.mubr.f32.gmra.mrb[168].mxu1 %v5007_v28  ;;  %v7147_v28 = vadd.f32 %v11709_v25, %v10063_v15 }
 0x525   :  { %5407 = vmatprep.mubr.f32.mxu1 %v5016_v8  ;;  %v7150_v8 = vadd.f32 %v11710_v32, %v10049_v24  ;;  %v11723_v32 = vld [vmem:[#allocation38_spill] sm:$0xff] }
 0x527   :  { %v10234_v27 = vpop.f32.mrb[64].mxu1 }
 0x528   :  { %v10236_v35 = vpop.f32.mrb[65].mxu1  ;;  %5408 = vmatmul.mubr.f32.gmra.mrb[170].mxu1 %v5015_v17  ;;  %v4815_v17 = vmul.f32 0.2, %v7147_v28 }
 0x529   :  { %5412 = vmatprep.mubr.f32.mxu1 %v5024_v6  ;;  %v4824_v6 = vmul.f32 0.2, %v7150_v8 }
 0x52a   :  { %v5071_v9 = vmax.f32 %v7147_v28, %v4815_v17 }
 0x52b   :  { %v10242_v45 = vpop.f32.mrb[66].mxu1  ;;  %v5080_v4 = vmax.f32 %v7150_v8, %v4824_v6 }
 0x52c   :  { %v10244_v23 = vpop.f32.mrb[67].mxu1  ;;  %5413 = vmatmul.mubr.f32.gmra.mrb[172].mxu1 %v5023_v31 }
 0x52d   :  { %5417 = vmatprep.mubr.f32.mxu1 %v5032_v53  ;;  %v4823_v53 = vmul.f32 0.2, %v7149_v63 }
 0x52f   :  { %v10250_v54 = vpop.f32.mrb[68].mxu1  ;;  %v5079_v1 = vmax.f32 %v7149_v63, %v4823_v53 }
 0x530   :  { %v10252_v11 = vpop.f32.mrb[69].mxu1  ;;  %5418 = vmatmul.mubr.f32.gmra.mrb[174].mxu1 %v5031_v43  ;;  %v11714_v43 = vld [vmem:[#allocation23_spill] sm:$0xff] }
 0x531   :  { %5422 = vmatprep.mubr.f32.mxu1 %v5040_v16  ;;  %v11715_v13 = vsub.s32 3, %v11714_v43  ;;  %v11718_v49 = vsub.s32 2, %v11714_v43  ;;  %v2521_v39 = vsub.s32 6, %v11714_v43 }
 0x533   :  { %v10258_v37 = vpop.f32.mrb[70].mxu1  ;;  %v10291_v16 = vrot.slane %v11716_v48, %v11715_v13  ;;  %v5168_v13 = vld [vmem:[#allocation13 + $0x208] sm:$0xff] }
 0x534   :  { %v10260_v42 = vpop.f32.mrb[71].mxu1  ;;  %5423 = vmatmul.mubr.f32.gmra.mrb[176].mxu1 %v5039_v29  ;;  %v7154_v29 = vadd.f32 %v11717_v14, %v10049_v24  ;;  %v2525_v24 = vsub.s32 7, %v11714_v43 }
 0x535   :  { %5427 = vmatprep.mubr.f32.mxu1 %v5048_v26  ;;  %v10302_v26 = vrot.slane %v11716_v48, %v11718_v49  ;;  %v7156_v59 = vadd.f32 %v11720_v40, %v10291_v16  ;;  %v7158_v8 = vadd.f32 %v11723_v32, %v10291_v16 }
 0x536   :  { %v4840_v41 = vmul.f32 0.2, %v7154_v29 }
 0x537   :  { %v10266_v21 = vpop.f32.mrb[72].mxu1  ;;  %v7155_v25 = vadd.f32 %v11722_v18, %v10302_v26  ;;  %v4594_v36 = vmul.f32 0.2, %v7156_v59 }
 0x538   :  { %v10268_v10 = vpop.f32.mrb[73].mxu1  ;;  %5428 = vmatmul.mubr.f32.gmra.mrb[178].mxu1 %v5047_v56  ;;  %v11719_v56 = vld [vmem:[#allocation127_spill] sm:$0xff] }
 0x539   :  { %5432 = vmatprep.mubr.f32.mxu1 %v5056_v30  ;;  %v7153_v58 = vadd.f32 %v11719_v56, %v10063_v15  ;;  %v5088_v30 = vmax.f32 %v7152_v47, %v4832_v51  ;;  %v5087_v15 = vmax.f32 %v7151_v12, %v4831_v60  ;;  %v5167_v12 = vld [vmem:[#allocation13 + $0x200] sm:$0xff] }
 0x53a   :  { %v11725_v51 = vld [vmem:[#allocation42_spill] sm:$0xff] }
 0x53b   :  { %v10274_v5 = vpop.f32.mrb[74].mxu1  ;;  %v4839_v28 = vmul.f32 0.2, %v7153_v58  ;;  %v7160_v14 = vadd.f32 %v11725_v51, %v10291_v16 }
 0x53c   :  { %v10276_v55 = vpop.f32.mrb[75].mxu1  ;;  %5433 = vmatmul.mubr.f32.gmra.mrb[180].mxu1 %v5055_v46  ;;  %v10315_v46 = vrot.slane %v11716_v48, %v2521_v39 }
 0x53d   :  { %5437 = vmatprep.mubr.f32.mxu1 %v5064_v22  ;;  %v10320_v22 = vrot.slane %v11716_v48, %v2525_v24  ;;  %v5095_v53 = vmax.f32 %v7153_v58, %v4839_v28  ;;  %v4850_v48 = vmax.f32 %v7156_v59, %v4594_v36  ;;  %v11726_v58 = vld [vmem:[#allocation40_spill] sm:$0xff]  ;;  %v4610_v28 = vmul.f32 0.2, %v7160_v14  ;;  %v11727_v36 = vld [vmem:[#allocation45_spill] sm:$0xff] }
 0x53e   :  { %11721 = vst [vmem:[#allocation26_spill] sm:$0xff] %v10315_v46  ;;  %v10343_v24 = vadd.f32 %v11726_v58, %v10302_v26  ;;  %v10349_v32 = vadd.f32 %v11727_v36, %v10291_v16  ;;  %v5172_v36 = vld [vmem:[#allocation13 + $0x228] sm:$0xff] }
 0x53f   :  { %v10282_v31 = vpop.f32.mrb[76].mxu1 }
 0x540   :  { %v10284_v50 = vpop.f32.mrb[77].mxu1  ;;  %5438 = vmatmul.mubr.f32.gmra.mrb[182].mxu1 %v5063_v57  ;;  %v5096_v57 = vmax.f32 %v7154_v29, %v4840_v41 }
 0x541   :  { %5442 = vmatprep.mubr.f32.mxu1 %v5072_v62  ;;  %v11724_v62 = vld [vmem:[#allocation36_spill] sm:$0xff] }
 0x542   :  { %v10330_v6 = vadd.f32 %v11724_v62, %v10302_v26  ;;  %v5170_v62 = vld [vmem:[#allocation13 + $0x218] sm:$0xff] }
 0x543   :  { %v10295_v7 = vpop.f32.mrb[78].mxu1 }
 0x544   :  { %v10297_v52 = vpop.f32.mrb[79].mxu1  ;;  %5443 = vmatmul.mubr.f32.gmra.mrb[184].mxu1 %v5071_v9  ;;  %v4593_v9 = vmul.f32 0.2, %v7155_v25  ;;  %v4601_v56 = vmul.f32 0.2, %v10330_v6 }
 0x545   :  { %5447 = vmatprep.mubr.f32.mxu1 %v5080_v4  ;;  %v4602_v4 = vmul.f32 0.2, %v7158_v8 }
 0x546   :  { %v4849_v41 = vmax.f32 %v7155_v25, %v4593_v9  ;;  %v4857_v25 = vmax.f32 %v10330_v6, %v4601_v56  ;;  %v4609_v9 = vmul.f32 0.2, %v10343_v24  ;;  %v11729_v6 = vld [vmem:[#allocation49_spill] sm:$0xff] }
 0x547   :  { %v10310_v34 = vpop.f32.mrb[80].mxu1  ;;  %v10366_v56 = vadd.f32 %v11729_v6, %v10291_v16 }
 0x548   :  { %v10312_v44 = vpop.f32.mrb[81].mxu1  ;;  %5448 = vmatmul.mubr.f32.gmra.mrb[186].mxu1 %v5079_v1 }
 0x549   :  { %5452 = vmatprep.mubr.f32.mxu1 %v5088_v30  ;;  %v6964_v30 = vpack.c.bf16 %v5168_v13, %v5167_v12 }
 0x54b   :  { %v10324_v17 = vpop.f32.mrb[82].mxu1  ;;  %v4400_v3 = vpop.f32.mrb[0].mxu0 }
 0x54c   :  { %v10326_v63 = vpop.f32.mrb[83].mxu1  ;;  %5453 = vmatmul.mubr.f32.gmra.mrb[188].mxu1 %v5087_v15  ;;  %v7283_v33 = vadd.f32 %v4400_v3, %v10315_v46  ;;  %v4402_v47 = vpop.f32.mrb[1].mxu0  ;;  %v5169_v3 = vld [vmem:[#allocation13 + $0x210] sm:$0xff] }
 0x54d   :  { %5457 = vmatprep.mubr.f32.mxu1 %v5096_v57  ;;  %v7284_v0 = vadd.f32 %v4402_v47, %v10320_v22  ;;  %v4858_v47 = vmax.f32 %v7158_v8, %v4602_v4  ;;  %v6967_v4 = vpack.c.bf16 %v5170_v62, %v5169_v3  ;;  %v11730_v3 = vld [vmem:[#allocation47_spill] sm:$0xff] }
 0x54e   :  { %v4597_v49 = vmul.f32 0.2, %v7283_v33  ;;  %v10377_v62 = vadd.f32 %v11730_v3, %v10302_v26 }
 0x54f   :  { %v10336_v29 = vpop.f32.mrb[84].mxu1  ;;  %v4598_v39 = vmul.f32 0.2, %v7284_v0  ;;  %v4406_v1 = vpop.f32.mrb[2].mxu0 }
 0x550   :  { %v10338_v60 = vpop.f32.mrb[85].mxu1  ;;  %5458 = vmatmul.mubr.f32.gmra.mrb[190].mxu1 %v5095_v53  ;;  %v7285_v40 = vadd.f32 %v4406_v1, %v10315_v46  ;;  %v4408_v59 = vpop.f32.mrb[3].mxu0  ;;  %v4853_v53 = vmax.f32 %v7283_v33, %v4597_v49  ;;  %v4866_v49 = vmax.f32 %v7160_v14, %v4610_v28  ;;  %v4865_v14 = vmax.f32 %v10343_v24, %v4609_v9  ;;  %v11731_v9 = vld [vmem:[#allocation53_spill] sm:$0xff] }
 0x551   :  { %5527 = vmatprep.mubr.f32.mxu1 %v4850_v48  ;;  %v4854_v18 = vmax.f32 %v7284_v0, %v4598_v39  ;;  %v7286_v15 = vadd.f32 %v4408_v59, %v10320_v22  ;;  %v11728_v0 = vld [vmem:[#allocation44_spill] sm:$0xff]  ;;  %v4618_v59 = vmul.f32 0.2, %v10349_v32  ;;  %v4626_v24 = vmul.f32 0.2, %v10366_v56 }
 0x552   :  { %v4605_v51 = vmul.f32 0.2, %v7285_v40  ;;  %v10359_v13 = vadd.f32 %v11728_v0, %v10302_v26 }
 0x553   :  { %v10351_v57 = vpop.f32.mrb[86].mxu1  ;;  %v4606_v1 = vmul.f32 0.2, %v7286_v15  ;;  %v4412_v58 = vpop.f32.mrb[4].mxu0  ;;  %5977 = vmatprep.mubr.f32.mxu0 %v4854_v18  ;;  %v5171_v18 = vld [vmem:[#allocation13 + $0x220] sm:$0xff] }
 0x554   :  { %v10353_v12 = vpop.f32.mrb[87].mxu1  ;;  %5528 = vmatmul.mubr.f32.vlgmr.msra.gmra.mrb[128].mxu1 %v4849_v41  ;;  %v7287_v48 = vadd.f32 %v4412_v58, %v10315_v46  ;;  %v4414_v39 = vpop.f32.mrb[5].mxu0  ;;  %5978 = vmatmul.mubr.f32.vlgmr.msra.gmra.mrb[64].mxu0 %v4853_v53  ;;  %v4617_v28 = vmul.f32 0.2, %v10359_v13 }
 0x555   :  { %6965 = vmatpush1.bf16.msra.mxu1 %v6964_v30  ;;  %v4862_v8 = vmax.f32 %v7286_v15, %v4606_v1  ;;  %v7288_v33 = vadd.f32 %v4414_v39, %v10320_v22  ;;  %5532 = vmatprep.mubr.f32.mxu1 %v4858_v47  ;;  %v4861_v30 = vmax.f32 %v7285_v40, %v4605_v51 }
 0x556   :  { %6966 = vmatprep.subr.bf16.mxu1 %v11535_v2  ;;  %v4613_v15 = vmul.f32 0.2, %v7287_v48  ;;  %v6970_v39 = vpack.c.bf16 %v5172_v36, %v5171_v18  ;;  %v11732_v18 = vld [vmem:[#allocation51_spill] sm:$0xff] }
 0x557   :  { %v10368_v41 = vpop.f32.mrb[88].mxu1  ;;  %v4614_v1 = vmul.f32 0.2, %v7288_v33  ;;  %v4418_v58 = vpop.f32.mrb[6].mxu0  ;;  %5982 = vmatprep.mubr.f32.mxu0 %v4862_v8  ;;  %v10385_v8 = vadd.f32 %v11731_v9, %v10291_v16  ;;  %v10396_v36 = vadd.f32 %v11732_v18, %v10302_v26 }
 0x558   :  { %v10371_v47 = vpop.f32.mrb[89].mxu1  ;;  %5533 = vmatmul.mubr.f32.gmra.mrb[130].mxu1 %v4857_v25  ;;  %v7289_v53 = vadd.f32 %v4418_v58, %v10315_v46  ;;  %v4420_v0 = vpop.f32.mrb[7].mxu0  ;;  %5983 = vmatmul.mubr.f32.gmra.mrb[66].mxu0 %v4861_v30  ;;  %v4874_v25 = vmax.f32 %v10349_v32, %v4618_v59  ;;  %v5173_v58 = vld [vmem:[#allocation13 + $0x230] sm:$0xff]  ;;  %v4873_v32 = vmax.f32 %v10359_v13, %v4617_v28  ;;  %v4625_v59 = vmul.f32 0.2, %v10377_v62  ;;  %v11733_v28 = vld [vmem:[#allocation55_spill] sm:$0xff] }
 0x559   :  { %5537 = vmatprep.mubr.f32.mxu1 %v4866_v49  ;;  %v4870_v40 = vmax.f32 %v7288_v33, %v4614_v1  ;;  %v7290_v51 = vadd.f32 %v4420_v0, %v10320_v22  ;;  %6968 = vmatpush1.bf16.msra.mxu1 %v6967_v4  ;;  %v5174_v49 = vld [vmem:[#allocation13 + $0x238] sm:$0xff]  ;;  %v4869_v33 = vmax.f32 %v7287_v48, %v4613_v15  ;;  %v4634_v13 = vmul.f32 0.2, %v10385_v8 }
 0x55a   :  { %6969 = vmatprep.subr.bf16.mxu1 %v11535_v2  ;;  %v4621_v1 = vmul.f32 0.2, %v7289_v53  ;;  %v10404_v20 = vadd.f32 %v11733_v28, %v10291_v16 }
 0x55b   :  { %v10387_v6 = vpop.f32.mrb[90].mxu1  ;;  %v4622_v3 = vmul.f32 0.2, %v7290_v51  ;;  %v4424_v30 = vpop.f32.mrb[8].mxu0  ;;  %5987 = vmatprep.mubr.f32.mxu0 %v4870_v40  ;;  %v6973_v40 = vpack.c.bf16 %v5174_v49, %v5173_v58  ;;  %v11735_v58 = vld [vmem:[#allocation54_spill] sm:$0xff] }
 0x55c   :  { %v10390_v4 = vpop.f32.mrb[91].mxu1  ;;  %5538 = vmatmul.mubr.f32.gmra.mrb[132].mxu1 %v4865_v14  ;;  %v7291_v0 = vadd.f32 %v4424_v30, %v10315_v46  ;;  %v4426_v9 = vpop.f32.mrb[9].mxu0  ;;  %5988 = vmatmul.mubr.f32.gmra.mrb[68].mxu0 %v4869_v33  ;;  %v4882_v14 = vmax.f32 %v10366_v56, %v4626_v24  ;;  %v5175_v30 = vld [vmem:[#allocation13 + $0x240] sm:$0xff]  ;;  %v4881_v56 = vmax.f32 %v10377_v62, %v4625_v59  ;;  %v4633_v24 = vmul.f32 0.2, %v10396_v36 }
 0x55d   :  { %5542 = vmatprep.mubr.f32.mxu1 %v4874_v25  ;;  %v4878_v48 = vmax.f32 %v7290_v51, %v4622_v3  ;;  %v7292_v15 = vadd.f32 %v4426_v9, %v10320_v22  ;;  %6971 = vmatpush1.bf16.msra.mxu1 %v6970_v39  ;;  %v5176_v25 = vld [vmem:[#allocation13 + $0x248] sm:$0xff]  ;;  %v4877_v51 = vmax.f32 %v7289_v53, %v4621_v1  ;;  %v4642_v62 = vmul.f32 0.2, %v10404_v20  ;;  %v11736_v59 = vld [vmem:[#allocation58_spill] sm:$0xff] }
 0x55e   :  { %6972 = vmatprep.subr.bf16.mxu1 %v11535_v2  ;;  %v4629_v3 = vmul.f32 0.2, %v7291_v0  ;;  %v10415_v49 = vadd.f32 %v11735_v58, %v10302_v26  ;;  %v10423_v19 = vadd.f32 %v11736_v59, %v10291_v16 }
 0x55f   :  { %v10406_v18 = vpop.f32.mrb[92].mxu1  ;;  %v4630_v9 = vmul.f32 0.2, %v7292_v15  ;;  %v4430_v33 = vpop.f32.mrb[10].mxu0  ;;  %5992 = vmatprep.mubr.f32.mxu0 %v4878_v48  ;;  %v6976_v48 = vpack.c.bf16 %v5176_v25, %v5175_v30  ;;  %v11739_v30 = vld [vmem:[#allocation57_spill] sm:$0xff] }
 0x560   :  { %11734 = vst [vmem:[#allocation28_spill] sm:$0xff] %v10406_v18  ;;  %v10409_v39 = vpop.f32.mrb[93].mxu1  ;;  %5543 = vmatmul.mubr.f32.gmra.mrb[134].mxu1 %v4873_v32  ;;  %v7293_v28 = vadd.f32 %v4430_v33, %v10315_v46  ;;  %v4432_v38 = vpop.f32.mrb[11].mxu0  ;;  %5993 = vmatmul.mubr.f32.gmra.mrb[70].mxu0 %v4877_v51  ;;  %v4890_v32 = vmax.f32 %v10385_v8, %v4634_v13  ;;  %v5177_v33 = vld [vmem:[#allocation13 + $0x250] sm:$0xff]  ;;  %v4641_v13 = vmul.f32 0.2, %v10415_v49 }
 0x561   :  { %5547 = vmatprep.mubr.f32.mxu1 %v4882_v14  ;;  %v4886_v53 = vmax.f32 %v7292_v15, %v4630_v9  ;;  %v7294_v1 = vadd.f32 %v4432_v38, %v10320_v22  ;;  %6974 = vmatpush1.bf16.msra.mxu1 %v6973_v40  ;;  %v5178_v14 = vld [vmem:[#allocation13 + $0x258] sm:$0xff]  ;;  %v4885_v15 = vmax.f32 %v7291_v0, %v4629_v3 }
 0x562   :  { %6975 = vmatprep.subr.bf16.mxu1 %v11535_v2  ;;  %v4637_v9 = vmul.f32 0.2, %v7293_v28  ;;  %v4889_v8 = vmax.f32 %v10396_v36, %v4633_v24  ;;  %v10434_v25 = vadd.f32 %v11739_v30, %v10302_v26  ;;  %v4650_v36 = vmul.f32 0.2, %v10423_v19  ;;  %v11740_v24 = vld [vmem:[#allocation60_spill] sm:$0xff] }
 0x563   :  { %v10425_v58 = vpop.f32.mrb[94].mxu1  ;;  %v4638_v38 = vmul.f32 0.2, %v7294_v1  ;;  %v4436_v51 = vpop.f32.mrb[12].mxu0  ;;  %5997 = vmatprep.mubr.f32.mxu0 %v4886_v53  ;;  %v6979_v53 = vpack.c.bf16 %v5178_v14, %v5177_v33  ;;  %v10442_v61 = vadd.f32 %v11740_v24, %v10291_v16  ;;  %v11743_v33 = vld [vmem:[#allocation59_spill] sm:$0xff] }
 0x564   :  { %11737 = vst [vmem:[#allocation27_spill] sm:$0xff] %v10425_v58  ;;  %v10428_v40 = vpop.f32.mrb[95].mxu1  ;;  %5548 = vmatmul.mubr.f32.gmra.mrb[136].mxu1 %v4881_v56  ;;  %v7295_v59 = vadd.f32 %v4436_v51, %v10315_v46  ;;  %v4438_v58 = vpop.f32.mrb[13].mxu0  ;;  %5998 = vmatmul.mubr.f32.gmra.mrb[72].mxu0 %v4885_v15  ;;  %v4898_v56 = vmax.f32 %v10404_v20, %v4642_v62  ;;  %v5179_v51 = vld [vmem:[#allocation13 + $0x260] sm:$0xff]  ;;  %v4649_v62 = vmul.f32 0.2, %v10434_v25 }
 0x565   :  { %11738 = vst [vmem:[#allocation30_spill] sm:$0xff] %v10428_v40  ;;  %5552 = vmatprep.mubr.f32.mxu1 %v4890_v32  ;;  %v4894_v0 = vmax.f32 %v7294_v1, %v4638_v38  ;;  %v7296_v3 = vadd.f32 %v4438_v58, %v10320_v22  ;;  %6977 = vmatpush1.bf16.msra.mxu1 %v6976_v48  ;;  %v5180_v32 = vld [vmem:[#allocation13 + $0x268] sm:$0xff] }
 0x566   :  { %6978 = vmatprep.subr.bf16.mxu1 %v11535_v2  ;;  %v4893_v1 = vmax.f32 %v7293_v28, %v4637_v9  ;;  %v4645_v38 = vmul.f32 0.2, %v7295_v59  ;;  %v4897_v20 = vmax.f32 %v10415_v49, %v4641_v13  ;;  %v10453_v14 = vadd.f32 %v11743_v33, %v10302_v26  ;;  %v11744_v13 = vld [vmem:[#allocation62_spill] sm:$0xff] }
 0x567   :  { %v10444_v30 = vpop.f32.mrb[96].mxu1  ;;  %v4646_v58 = vmul.f32 0.2, %v7296_v3  ;;  %v4442_v15 = vpop.f32.mrb[14].mxu0  ;;  %6002 = vmatprep.mubr.f32.mxu0 %v4894_v0  ;;  %v6982_v0 = vpack.c.bf16 %v5180_v32, %v5179_v51  ;;  %v4658_v49 = vmul.f32 0.2, %v10442_v61 }
 0x568   :  { %11741 = vst [vmem:[#allocation29_spill] sm:$0xff] %v10444_v30  ;;  %v10447_v48 = vpop.f32.mrb[97].mxu1  ;;  %5553 = vmatmul.mubr.f32.gmra.mrb[138].mxu1 %v4889_v8  ;;  %v7297_v24 = vadd.f32 %v4442_v15, %v10315_v46  ;;  %v4444_v30 = vpop.f32.mrb[15].mxu0  ;;  %6003 = vmatmul.mubr.f32.gmra.mrb[74].mxu0 %v4893_v1  ;;  %v4906_v8 = vmax.f32 %v10423_v19, %v4650_v36  ;;  %v5181_v15 = vld [vmem:[#allocation13 + $0x270] sm:$0xff]  ;;  %v4657_v36 = vmul.f32 0.2, %v10453_v14 }
 0x569   :  { %11742 = vst [vmem:[#allocation33_spill] sm:$0xff] %v10447_v48  ;;  %5557 = vmatprep.mubr.f32.mxu1 %v4898_v56  ;;  %v4902_v28 = vmax.f32 %v7296_v3, %v4646_v58  ;;  %v7298_v9 = vadd.f32 %v4444_v30, %v10320_v22  ;;  %6980 = vmatpush1.bf16.msra.mxu1 %v6979_v53  ;;  %v5182_v56 = vld [vmem:[#allocation13 + $0x278] sm:$0xff] }
 0x56a   :  { %v10461_v48 = vadd.f32 %v11744_v13, %v10291_v16  ;;  %6981 = vmatprep.subr.bf16.mxu1 %v11535_v2  ;;  %v4901_v3 = vmax.f32 %v7295_v59, %v4645_v38  ;;  %v4653_v58 = vmul.f32 0.2, %v7297_v24  ;;  %v4905_v19 = vmax.f32 %v10434_v25, %v4649_v62  ;;  %v11747_v51 = vld [vmem:[#allocation61_spill] sm:$0xff] }
 0x56b   :  { %v10463_v33 = vpop.f32.mrb[98].mxu1  ;;  %v4654_v30 = vmul.f32 0.2, %v7298_v9  ;;  %v4448_v1 = vpop.f32.mrb[16].mxu0  ;;  %6007 = vmatprep.mubr.f32.mxu0 %v4902_v28  ;;  %v10472_v32 = vadd.f32 %v11747_v51, %v10302_v26  ;;  %v6985_v28 = vpack.c.bf16 %v5182_v56, %v5181_v15  ;;  %v11748_v62 = vld [vmem:[#allocation65_spill] sm:$0xff]  ;;  %v11751_v15 = vld [vmem:[#allocation64_spill] sm:$0xff] }
 0x56c   :  { %11745 = vst [vmem:[#allocation31_spill] sm:$0xff] %v10463_v33  ;;  %v10466_v53 = vpop.f32.mrb[99].mxu1  ;;  %5558 = vmatmul.mubr.f32.gmra.mrb[140].mxu1 %v4897_v20  ;;  %v7299_v13 = vadd.f32 %v4448_v1, %v10315_v46  ;;  %v4450_v33 = vpop.f32.mrb[17].mxu0  ;;  %6008 = vmatmul.mubr.f32.gmra.mrb[76].mxu0 %v4901_v3  ;;  %v4914_v20 = vmax.f32 %v10442_v61, %v4658_v49  ;;  %v4666_v25 = vmul.f32 0.2, %v10461_v48  ;;  %v5183_v1 = vld [vmem:[#allocation13 + $0x280] sm:$0xff] }
 0x56d   :  { %11746 = vst [vmem:[#allocation37_spill] sm:$0xff] %v10466_v53  ;;  %5562 = vmatprep.mubr.f32.mxu1 %v4906_v8  ;;  %v4910_v59 = vmax.f32 %v7298_v9, %v4654_v30  ;;  %v7300_v38 = vadd.f32 %v4450_v33, %v10320_v22  ;;  %6983 = vmatpush1.bf16.msra.mxu1 %v6982_v0  ;;  %v5184_v8 = vld [vmem:[#allocation13 + $0x288] sm:$0xff]  ;;  %v4665_v49 = vmul.f32 0.2, %v10472_v32 }
 0x56e   :  { %v10480_v53 = vadd.f32 %v11748_v62, %v10291_v16  ;;  %6984 = vmatprep.subr.bf16.mxu1 %v11535_v2  ;;  %v4909_v9 = vmax.f32 %v7297_v24, %v4653_v58  ;;  %v4661_v30 = vmul.f32 0.2, %v7299_v13  ;;  %v4913_v61 = vmax.f32 %v10453_v14, %v4657_v36  ;;  %v11752_v36 = vld [vmem:[#allocation69_spill] sm:$0xff] }
 0x56f   :  { %v10482_v51 = vpop.f32.mrb[100].mxu1  ;;  %v4662_v33 = vmul.f32 0.2, %v7300_v38  ;;  %v4454_v3 = vpop.f32.mrb[18].mxu0  ;;  %6012 = vmatprep.mubr.f32.mxu0 %v4910_v59  ;;  %v10491_v56 = vadd.f32 %v11751_v15, %v10302_v26  ;;  %v6988_v59 = vpack.c.bf16 %v5184_v8, %v5183_v1  ;;  %v11755_v1 = vld [vmem:[#allocation67_spill] sm:$0xff] }
 0x570   :  { %11749 = vst [vmem:[#allocation35_spill] sm:$0xff] %v10482_v51  ;;  %v10485_v0 = vpop.f32.mrb[101].mxu1  ;;  %5563 = vmatmul.mubr.f32.gmra.mrb[142].mxu1 %v4905_v19  ;;  %v7301_v62 = vadd.f32 %v4454_v3, %v10315_v46  ;;  %v4456_v51 = vpop.f32.mrb[19].mxu0  ;;  %6013 = vmatmul.mubr.f32.gmra.mrb[78].mxu0 %v4909_v9  ;;  %v4922_v19 = vmax.f32 %v10461_v48, %v4666_v25  ;;  %v4674_v14 = vmul.f32 0.2, %v10480_v53  ;;  %v5185_v3 = vld [vmem:[#allocation13 + $0x290] sm:$0xff] }
 0x571   :  { %11750 = vst [vmem:[#allocation41_spill] sm:$0xff] %v10485_v0  ;;  %5567 = vmatprep.mubr.f32.mxu1 %v4914_v20  ;;  %v4918_v24 = vmax.f32 %v7300_v38, %v4662_v33  ;;  %v7302_v58 = vadd.f32 %v4456_v51, %v10320_v22  ;;  %6986 = vmatpush1.bf16.msra.mxu1 %v6985_v28  ;;  %v5186_v20 = vld [vmem:[#allocation13 + $0x298] sm:$0xff]  ;;  %v4673_v25 = vmul.f32 0.2, %v10491_v56 }
 0x572   :  { %v10499_v0 = vadd.f32 %v11752_v36, %v10291_v16  ;;  %6987 = vmatprep.subr.bf16.mxu1 %v11535_v2  ;;  %v4917_v38 = vmax.f32 %v7299_v13, %v4661_v30  ;;  %v4669_v33 = vmul.f32 0.2, %v7301_v62  ;;  %v4921_v48 = vmax.f32 %v10472_v32, %v4665_v49  ;;  %v11756_v49 = vld [vmem:[#allocation73_spill] sm:$0xff] }
 0x573   :  { %v10501_v15 = vpop.f32.mrb[102].mxu1  ;;  %v4670_v51 = vmul.f32 0.2, %v7302_v58  ;;  %v4460_v9 = vpop.f32.mrb[20].mxu0  ;;  %6017 = vmatprep.mubr.f32.mxu0 %v4918_v24  ;;  %v10510_v8 = vadd.f32 %v11755_v1, %v10302_v26  ;;  %v6991_v24 = vpack.c.bf16 %v5186_v20, %v5185_v3  ;;  %v11759_v3 = vld [vmem:[#allocation71_spill] sm:$0xff] }
 0x574   :  { %11753 = vst [vmem:[#allocation39_spill] sm:$0xff] %v10501_v15  ;;  %v10504_v28 = vpop.f32.mrb[103].mxu1  ;;  %5568 = vmatmul.mubr.f32.gmra.mrb[144].mxu1 %v4913_v61  ;;  %v7303_v36 = vadd.f32 %v4460_v9, %v10315_v46  ;;  %v4462_v15 = vpop.f32.mrb[21].mxu0  ;;  %6018 = vmatmul.mubr.f32.gmra.mrb[80].mxu0 %v4917_v38  ;;  %v4930_v61 = vmax.f32 %v10480_v53, %v4674_v14  ;;  %v4682_v32 = vmul.f32 0.2, %v10499_v0  ;;  %v5187_v9 = vld [vmem:[#allocation13 + $0x2a0] sm:$0xff] }
 0x575   :  { %11754 = vst [vmem:[#allocation43_spill] sm:$0xff] %v10504_v28  ;;  %5572 = vmatprep.mubr.f32.mxu1 %v4922_v19  ;;  %v4926_v13 = vmax.f32 %v7302_v58, %v4670_v51  ;;  %v7304_v30 = vadd.f32 %v4462_v15, %v10320_v22  ;;  %6989 = vmatpush1.bf16.msra.mxu1 %v6988_v59  ;;  %v5188_v19 = vld [vmem:[#allocation13 + $0x2a8] sm:$0xff]  ;;  %v4681_v14 = vmul.f32 0.2, %v10510_v8 }
 0x576   :  { %v10518_v28 = vadd.f32 %v11756_v49, %v10291_v16  ;;  %6990 = vmatprep.subr.bf16.mxu1 %v11535_v2  ;;  %v4925_v58 = vmax.f32 %v7301_v62, %v4669_v33  ;;  %v4677_v51 = vmul.f32 0.2, %v7303_v36  ;;  %v4929_v53 = vmax.f32 %v10491_v56, %v4673_v25  ;;  %v11760_v25 = vld [vmem:[#allocation77_spill] sm:$0xff] }
 0x577   :  { %v10520_v1 = vpop.f32.mrb[104].mxu1  ;;  %v4678_v15 = vmul.f32 0.2, %v7304_v30  ;;  %v4466_v38 = vpop.f32.mrb[22].mxu0  ;;  %6022 = vmatprep.mubr.f32.mxu0 %v4926_v13  ;;  %v10529_v20 = vadd.f32 %v11759_v3, %v10302_v26  ;;  %v6994_v13 = vpack.c.bf16 %v5188_v19, %v5187_v9  ;;  %v11763_v9 = vld [vmem:[#allocation75_spill] sm:$0xff] }
 0x578   :  { %11757 = vst [vmem:[#allocation48_spill] sm:$0xff] %v10520_v1  ;;  %v10523_v59 = vpop.f32.mrb[105].mxu1  ;;  %5573 = vmatmul.mubr.f32.gmra.mrb[146].mxu1 %v4921_v48  ;;  %v7305_v49 = vadd.f32 %v4466_v38, %v10315_v46  ;;  %v4468_v1 = vpop.f32.mrb[23].mxu0  ;;  %6023 = vmatmul.mubr.f32.gmra.mrb[82].mxu0 %v4925_v58  ;;  %v4938_v48 = vmax.f32 %v10499_v0, %v4682_v32  ;;  %v4690_v56 = vmul.f32 0.2, %v10518_v28  ;;  %v5189_v38 = vld [vmem:[#allocation13 + $0x2b0] sm:$0xff] }
 0x579   :  { %11758 = vst [vmem:[#allocation46_spill] sm:$0xff] %v10523_v59  ;;  %5577 = vmatprep.mubr.f32.mxu1 %v4930_v61  ;;  %v4934_v62 = vmax.f32 %v7304_v30, %v4678_v15  ;;  %v7306_v33 = vadd.f32 %v4468_v1, %v10320_v22  ;;  %6992 = vmatpush1.bf16.msra.mxu1 %v6991_v24  ;;  %v5190_v61 = vld [vmem:[#allocation13 + $0x2b8] sm:$0xff]  ;;  %v4689_v32 = vmul.f32 0.2, %v10529_v20 }
 0x57a   :  { %v10537_v59 = vadd.f32 %v11760_v25, %v10291_v16  ;;  %6993 = vmatprep.subr.bf16.mxu1 %v11535_v2  ;;  %v4933_v30 = vmax.f32 %v7303_v36, %v4677_v51  ;;  %v4685_v15 = vmul.f32 0.2, %v7305_v49  ;;  %v4937_v0 = vmax.f32 %v10510_v8, %v4681_v14  ;;  %v11764_v14 = vld [vmem:[#allocation81_spill] sm:$0xff] }
 0x57b   :  { %v10539_v3 = vpop.f32.mrb[106].mxu1  ;;  %v4686_v1 = vmul.f32 0.2, %v7306_v33  ;;  %v4472_v58 = vpop.f32.mrb[24].mxu0  ;;  %6027 = vmatprep.mubr.f32.mxu0 %v4934_v62  ;;  %v10548_v19 = vadd.f32 %v11763_v9, %v10302_v26  ;;  %v6997_v62 = vpack.c.bf16 %v5190_v61, %v5189_v38  ;;  %v11767_v38 = vld [vmem:[#allocation79_spill] sm:$0xff] }
 0x57c   :  { %11761 = vst [vmem:[#allocation52_spill] sm:$0xff] %v10539_v3  ;;  %v10542_v24 = vpop.f32.mrb[107].mxu1  ;;  %5578 = vmatmul.mubr.f32.gmra.mrb[148].mxu1 %v4929_v53  ;;  %v7307_v25 = vadd.f32 %v4472_v58, %v10315_v46  ;;  %v4474_v3 = vpop.f32.mrb[25].mxu0  ;;  %6028 = vmatmul.mubr.f32.gmra.mrb[84].mxu0 %v4933_v30  ;;  %v4946_v53 = vmax.f32 %v10518_v28, %v4690_v56  ;;  %v4698_v8 = vmul.f32 0.2, %v10537_v59  ;;  %v5191_v58 = vld [vmem:[#allocation13 + $0x2c0] sm:$0xff] }
 0x57d   :  { %11762 = vst [vmem:[#allocation50_spill] sm:$0xff] %v10542_v24  ;;  %5582 = vmatprep.mubr.f32.mxu1 %v4938_v48  ;;  %v4942_v36 = vmax.f32 %v7306_v33, %v4686_v1  ;;  %v7308_v51 = vadd.f32 %v4474_v3, %v10320_v22  ;;  %6995 = vmatpush1.bf16.msra.mxu1 %v6994_v13  ;;  %v5192_v48 = vld [vmem:[#allocation13 + $0x2c8] sm:$0xff]  ;;  %v4697_v56 = vmul.f32 0.2, %v10548_v19 }
 0x57e   :  { %v10556_v24 = vadd.f32 %v11764_v14, %v10291_v16  ;;  %6996 = vmatprep.subr.bf16.mxu1 %v11535_v2  ;;  %v4941_v33 = vmax.f32 %v7305_v49, %v4685_v15  ;;  %v4693_v1 = vmul.f32 0.2, %v7307_v25  ;;  %v4945_v28 = vmax.f32 %v10529_v20, %v4689_v32  ;;  %v11768_v32 = vld [vmem:[#allocation83_spill] sm:$0xff] }
 0x57f   :  { %v10558_v9 = vpop.f32.mrb[108].mxu1  ;;  %v4694_v3 = vmul.f32 0.2, %v7308_v51  ;;  %v4478_v30 = vpop.f32.mrb[26].mxu0  ;;  %6032 = vmatprep.mubr.f32.mxu0 %v4942_v36  ;;  %v10567_v61 = vadd.f32 %v11767_v38, %v10302_v26  ;;  %v7000_v36 = vpack.c.bf16 %v5192_v48, %v5191_v58  ;;  %v11771_v58 = vld [vmem:[#allocation82_spill] sm:$0xff] }
 0x580   :  { %11765 = vst [vmem:[#allocation56_spill] sm:$0xff] %v10558_v9  ;;  %v10561_v13 = vpop.f32.mrb[109].mxu1  ;;  %5583 = vmatmul.mubr.f32.gmra.mrb[150].mxu1 %v4937_v0  ;;  %v7309_v14 = vadd.f32 %v4478_v30, %v10315_v46  ;;  %v4480_v9 = vpop.f32.mrb[27].mxu0  ;;  %6033 = vmatmul.mubr.f32.gmra.mrb[86].mxu0 %v4941_v33  ;;  %v4954_v0 = vmax.f32 %v10537_v59, %v4698_v8  ;;  %v4706_v20 = vmul.f32 0.2, %v10556_v24  ;;  %v5193_v30 = vld [vmem:[#allocation13 + $0x2d0] sm:$0xff] }
 0x581   :  { %11766 = vst [vmem:[#allocation63_spill] sm:$0xff] %v10561_v13  ;;  %5587 = vmatprep.mubr.f32.mxu1 %v4946_v53  ;;  %v4950_v49 = vmax.f32 %v7308_v51, %v4694_v3  ;;  %v7310_v15 = vadd.f32 %v4480_v9, %v10320_v22  ;;  %6998 = vmatpush1.bf16.msra.mxu1 %v6997_v62  ;;  %v5194_v53 = vld [vmem:[#allocation13 + $0x2d8] sm:$0xff]  ;;  %v4705_v8 = vmul.f32 0.2, %v10567_v61 }
 0x582   :  { %v10575_v13 = vadd.f32 %v11768_v32, %v10291_v16  ;;  %6999 = vmatprep.subr.bf16.mxu1 %v11535_v2  ;;  %v4949_v51 = vmax.f32 %v7307_v25, %v4693_v1  ;;  %v4701_v3 = vmul.f32 0.2, %v7309_v14  ;;  %v4953_v59 = vmax.f32 %v10548_v19, %v4697_v56  ;;  %v11772_v56 = vld [vmem:[#allocation85_spill] sm:$0xff] }
 0x583   :  { %v10577_v38 = vpop.f32.mrb[110].mxu1  ;;  %v4702_v9 = vmul.f32 0.2, %v7310_v15  ;;  %v4484_v33 = vpop.f32.mrb[28].mxu0  ;;  %6037 = vmatprep.mubr.f32.mxu0 %v4950_v49  ;;  %v10586_v48 = vadd.f32 %v11771_v58, %v10302_v26  ;;  %v7003_v49 = vpack.c.bf16 %v5194_v53, %v5193_v30  ;;  %v11775_v30 = vld [vmem:[#allocation84_spill] sm:$0xff] }
 0x584   :  { %11769 = vst [vmem:[#allocation68_spill] sm:$0xff] %v10577_v38  ;;  %v10580_v62 = vpop.f32.mrb[111].mxu1  ;;  %5588 = vmatmul.mubr.f32.gmra.mrb[152].mxu1 %v4945_v28  ;;  %v7311_v32 = vadd.f32 %v4484_v33, %v10315_v46  ;;  %v4486_v38 = vpop.f32.mrb[29].mxu0  ;;  %6038 = vmatmul.mubr.f32.gmra.mrb[88].mxu0 %v4949_v51  ;;  %v4962_v28 = vmax.f32 %v10556_v24, %v4706_v20  ;;  %v4714_v19 = vmul.f32 0.2, %v10575_v13  ;;  %v5195_v33 = vld [vmem:[#allocation13 + $0x2e0] sm:$0xff] }
 0x585   :  { %11770 = vst [vmem:[#allocation66_spill] sm:$0xff] %v10580_v62  ;;  %5592 = vmatprep.mubr.f32.mxu1 %v4954_v0  ;;  %v4958_v25 = vmax.f32 %v7310_v15, %v4702_v9  ;;  %v7312_v1 = vadd.f32 %v4486_v38, %v10320_v22  ;;  %7001 = vmatpush1.bf16.msra.mxu1 %v7000_v36  ;;  %v5196_v0 = vld [vmem:[#allocation13 + $0x2e8] sm:$0xff]  ;;  %v4713_v20 = vmul.f32 0.2, %v10586_v48 }
 0x586   :  { %v10594_v62 = vadd.f32 %v11772_v56, %v10291_v16  ;;  %7002 = vmatprep.subr.bf16.mxu1 %v11535_v2  ;;  %v4957_v15 = vmax.f32 %v7309_v14, %v4701_v3  ;;  %v4709_v9 = vmul.f32 0.2, %v7311_v32  ;;  %v4961_v24 = vmax.f32 %v10567_v61, %v4705_v8  ;;  %v11776_v8 = vld [vmem:[#allocation89_spill] sm:$0xff] }
 0x587   :  { %v10596_v58 = vpop.f32.mrb[112].mxu1  ;;  %v4710_v38 = vmul.f32 0.2, %v7312_v1  ;;  %v4490_v51 = vpop.f32.mrb[30].mxu0  ;;  %6042 = vmatprep.mubr.f32.mxu0 %v4958_v25  ;;  %v10605_v53 = vadd.f32 %v11775_v30, %v10302_v26  ;;  %v7006_v25 = vpack.c.bf16 %v5196_v0, %v5195_v33  ;;  %v5198_v30 = vld [vmem:[#allocation13 + $0x2f8] sm:$0xff] }
 0x588   :  { %11773 = vst [vmem:[#allocation72_spill] sm:$0xff] %v10596_v58  ;;  %v10599_v36 = vpop.f32.mrb[113].mxu1  ;;  %5593 = vmatmul.mubr.f32.gmra.mrb[154].mxu1 %v4953_v59  ;;  %v7313_v56 = vadd.f32 %v4490_v51, %v10315_v46  ;;  %v4492_v58 = vpop.f32.mrb[31].mxu0  ;;  %6043 = vmatmul.mubr.f32.gmra.mrb[90].mxu0 %v4957_v15  ;;  %v4970_v59 = vmax.f32 %v10575_v13, %v4714_v19  ;;  %v4722_v61 = vmul.f32 0.2, %v10594_v62  ;;  %v5197_v51 = vld [vmem:[#allocation13 + $0x2f0] sm:$0xff] }
 0x589   :  { %11774 = vst [vmem:[#allocation70_spill] sm:$0xff] %v10599_v36  ;;  %5597 = vmatprep.mubr.f32.mxu1 %v4962_v28  ;;  %v4966_v14 = vmax.f32 %v7312_v1, %v4710_v38  ;;  %v7314_v3 = vadd.f32 %v4492_v58, %v10320_v22  ;;  %7004 = vmatpush1.bf16.msra.mxu1 %v7003_v49  ;;  %v11779_v19 = vld [vmem:[#allocation87_spill] sm:$0xff] }
 0x58a   :  { %v7190_v36 = vadd.f32 %v11776_v8, %v10291_v16  ;;  %7005 = vmatprep.subr.bf16.mxu1 %v11535_v2  ;;  %v4965_v28 = vmax.f32 %v7311_v32, %v4709_v9  ;;  %v4717_v1 = vmul.f32 0.2, %v7313_v56  ;;  %v4969_v13 = vmax.f32 %v10586_v48, %v4713_v20  ;;  %v11780_v48 = vld [vmem:[#allocation93_spill] sm:$0xff] }
 0x58b   :  { %v10613_v40 = vpop.f32.mrb[114].mxu1  ;;  %v4718_v38 = vmul.f32 0.2, %v7314_v3  ;;  %v4496_v58 = vpop.f32.mrb[32].mxu0  ;;  %6047 = vmatprep.mubr.f32.mxu0 %v4966_v14  ;;  %v10621_v33 = vadd.f32 %v11779_v19, %v10302_v26  ;;  %v4721_v8 = vmul.f32 0.2, %v10605_v53  ;;  %v7009_v14 = vpack.c.bf16 %v5198_v30, %v5197_v51 }
 0x58c   :  { %11777 = vst [vmem:[#allocation76_spill] sm:$0xff] %v10613_v40  ;;  %v10616_v49 = vpop.f32.mrb[115].mxu1  ;;  %5598 = vmatmul.mubr.f32.gmra.mrb[156].mxu1 %v4961_v24  ;;  %v7315_v0 = vadd.f32 %v4496_v58, %v10315_v46  ;;  %v4498_v15 = vpop.f32.mrb[33].mxu0  ;;  %6048 = vmatmul.mubr.f32.gmra.mrb[92].mxu0 %v4965_v28  ;;  %v4978_v24 = vmax.f32 %v10594_v62, %v4722_v61  ;;  %v4730_v40 = vmul.f32 0.2, %v7190_v36 }
 0x58d   :  { %11778 = vst [vmem:[#allocation74_spill] sm:$0xff] %v10616_v49  ;;  %5602 = vmatprep.mubr.f32.mxu1 %v4970_v59  ;;  %v4974_v32 = vmax.f32 %v7314_v3, %v4718_v38  ;;  %v7316_v9 = vadd.f32 %v4498_v15, %v10320_v22  ;;  %7007 = vmatpush1.bf16.msra.mxu1 %v7006_v25  ;;  %v11782_v25 = vld [vmem:[#allocation91_spill] sm:$0xff]  ;;  %v4729_v28 = vmul.f32 0.2, %v10621_v33 }
 0x58e   :  { %v7192_v20 = vadd.f32 %v11780_v48, %v10291_v16  ;;  %7008 = vmatprep.subr.bf16.mxu1 %v11535_v2  ;;  %v4973_v58 = vmax.f32 %v7313_v56, %v4717_v1  ;;  %v4725_v59 = vmul.f32 0.2, %v7315_v0  ;;  %v7191_v51 = vadd.f32 %v11782_v25, %v10302_v26 }
 0x58f   :  { %v10629_v19 = vpop.f32.mrb[116].mxu1  ;;  %v4726_v49 = vmul.f32 0.2, %v7316_v9  ;;  %v4502_v18 = vpop.f32.mrb[34].mxu0  ;;  %6052 = vmatprep.mubr.f32.mxu0 %v4974_v32  ;;  %v4977_v30 = vmax.f32 %v10605_v53, %v4721_v8  ;;  %v4986_v1 = vmax.f32 %v7190_v36, %v4730_v40  ;;  %v4985_v36 = vmax.f32 %v10621_v33, %v4729_v28 }
 0x590   :  { %11781 = vst [vmem:[#allocation80_spill] sm:$0xff] %v10629_v19  ;;  %v10632_v3 = vpop.f32.mrb[117].mxu1  ;;  %5603 = vmatmul.mubr.f32.gmra.mrb[158].mxu1 %v4969_v13  ;;  %v7317_v62 = vadd.f32 %v4502_v18, %v10315_v46  ;;  %v4504_v61 = vpop.f32.mrb[35].mxu0  ;;  %6053 = vmatmul.mubr.f32.gmra.mrb[94].mxu0 %v4973_v58  ;;  %v4738_v15 = vmul.f32 0.2, %v7192_v20  ;;  %v11783_v13 = vld [vmem:[#allocation121_spill] sm:$0xff]  ;;  %v4981_v18 = vmax.f32 %v7315_v0, %v4725_v59 }
 0x591   :  { %5607 = vmatprep.mubr.f32.mxu1 %v4978_v24  ;;  %v4982_v38 = vmax.f32 %v7316_v9, %v4726_v49  ;;  %v7318_v56 = vadd.f32 %v4504_v61, %v10320_v22  ;;  %7010 = vmatpush1.bf16.msra.mxu1 %v7009_v14  ;;  %v7194_v32 = vadd.f32 %v11783_v13, %v10291_v16  ;;  %v4737_v49 = vmul.f32 0.2, %v7191_v51  ;;  %v11786_v14 = vld [vmem:[#allocation95_spill] sm:$0xff] }
 0x592   :  { %7059 = vmatprep.subr.bf16.mxu1 %v11535_v2  ;;  %v4733_v24 = vmul.f32 0.2, %v7317_v62  ;;  %v7193_v58 = vadd.f32 %v11786_v14, %v10302_v26  ;;  %v4994_v59 = vmax.f32 %v7192_v20, %v4738_v15  ;;  %v11789_v15 = vld [vmem:[#allocation97_spill] sm:$0xff] }
 0x593   :  { %v10642_v48 = vpop.f32.mrb[118].mxu1  ;;  %v4734_v25 = vmul.f32 0.2, %v7318_v56  ;;  %v4508_v53 = vpop.f32.mrb[36].mxu0  ;;  %6057 = vmatprep.mubr.f32.mxu0 %v4982_v38  ;;  %v4746_v13 = vmul.f32 0.2, %v7194_v32  ;;  %v4993_v28 = vmax.f32 %v7191_v51, %v4737_v49 }
 0x594   :  { %11784 = vst [vmem:[#allocation78_spill] sm:$0xff] %v10642_v48  ;;  %v10645_v8 = vpop.f32.mrb[119].mxu1  ;;  %5608 = vmatmul.mubr.f32.gmra.mrb[160].mxu1 %v4977_v30  ;;  %v7319_v9 = vadd.f32 %v4508_v53, %v10315_v46  ;;  %v4510_v40 = vpop.f32.mrb[37].mxu0  ;;  %6058 = vmatmul.mubr.f32.gmra.mrb[96].mxu0 %v4981_v18  ;;  %v11787_v38 = vld [vmem:[#allocation123_spill] sm:$0xff]  ;;  %v4745_v20 = vmul.f32 0.2, %v7193_v58  ;;  %v7195_v18 = vadd.f32 %v11789_v15, %v10302_v26 }
 0x595   :  { %11785 = vst [vmem:[#allocation88_spill] sm:$0xff] %v10645_v8  ;;  %5612 = vmatprep.mubr.f32.mxu1 %v4986_v1  ;;  %v4990_v61 = vmax.f32 %v7318_v56, %v4734_v25  ;;  %v7320_v0 = vadd.f32 %v4510_v40, %v10320_v22  ;;  %v7196_v48 = vadd.f32 %v11787_v38, %v10291_v16 }
 0x596   :  { %v4989_v8 = vmax.f32 %v7317_v62, %v4733_v24  ;;  %v4741_v53 = vmul.f32 0.2, %v7319_v9  ;;  %v5002_v62 = vmax.f32 %v7194_v32, %v4746_v13  ;;  %v4753_v32 = vmul.f32 0.2, %v7195_v18 }
 0x597   :  { %v10654_v30 = vpop.f32.mrb[120].mxu1  ;;  %v4742_v19 = vmul.f32 0.2, %v7320_v0  ;;  %v4514_v1 = vpop.f32.mrb[38].mxu0  ;;  %6062 = vmatprep.mubr.f32.mxu0 %v4990_v61  ;;  %v4754_v24 = vmul.f32 0.2, %v7196_v48 }
 0x598   :  { %11788 = vst [vmem:[#allocation86_spill] sm:$0xff] %v10654_v30  ;;  %v10656_v33 = vpop.f32.mrb[121].mxu1  ;;  %5613 = vmatmul.mubr.f32.gmra.mrb[162].mxu1 %v4985_v36  ;;  %v7321_v56 = vadd.f32 %v4514_v1, %v10315_v46  ;;  %v4516_v25 = vpop.f32.mrb[39].mxu0  ;;  %6063 = vmatmul.mubr.f32.gmra.mrb[98].mxu0 %v4989_v8  ;;  %v11790_v61 = vld [vmem:[#allocation126_spill] sm:$0xff]  ;;  %v4997_v51 = vmax.f32 %v7319_v9, %v4741_v53 }
 0x599   :  { %5617 = vmatprep.mubr.f32.mxu1 %v4994_v59  ;;  %v4998_v40 = vmax.f32 %v7320_v0, %v4742_v19  ;;  %v7322_v14 = vadd.f32 %v4516_v25, %v10320_v22  ;;  %v7198_v38 = vadd.f32 %v11790_v61, %v10291_v16  ;;  %v5001_v8 = vmax.f32 %v7193_v58, %v4745_v20  ;;  %v11793_v0 = vld [vmem:[#allocation99_spill] sm:$0xff]  ;;  %v11794_v53 = vld [vmem:[#allocation130_spill] sm:$0xff] }
 0x59a   :  { %v4749_v49 = vmul.f32 0.2, %v7321_v56  ;;  %v7197_v13 = vadd.f32 %v11793_v0, %v10302_v26  ;;  %v5010_v15 = vmax.f32 %v7196_v48, %v4754_v24  ;;  %v7200_v61 = vadd.f32 %v11794_v53, %v10291_v16  ;;  %v11797_v48 = vld [vmem:[#allocation128_spill] sm:$0xff] }
 0x59b   :  { %v10664_v30 = vpop.f32.mrb[122].mxu1  ;;  %v4750_v36 = vmul.f32 0.2, %v7322_v14  ;;  %v10666_v1 = vpop.f32.mrb[40].mxu0  ;;  %6067 = vmatprep.mubr.f32.mxu0 %v4998_v40  ;;  %v4762_v9 = vmul.f32 0.2, %v7198_v38  ;;  %v5009_v20 = vmax.f32 %v7195_v18, %v4753_v32 }
 0x59c   :  { %11791 = vst [vmem:[#allocation92_spill] sm:$0xff] %v10666_v1  ;;  %v10668_v59 = vpop.f32.mrb[123].mxu1  ;;  %5618 = vmatmul.mubr.f32.gmra.mrb[164].mxu1 %v4993_v28  ;;  %v10670_v19 = vpop.f32.mrb[41].mxu0  ;;  %6068 = vmatmul.mubr.f32.gmra.mrb[100].mxu0 %v4997_v51  ;;  %v5005_v40 = vmax.f32 %v7321_v56, %v4749_v49  ;;  %v4770_v51 = vmul.f32 0.2, %v7200_v61 }
 0x59d   :  { %11792 = vst [vmem:[#allocation90_spill] sm:$0xff] %v10670_v19  ;;  %5622 = vmatprep.mubr.f32.mxu1 %v5002_v62  ;;  %v5006_v25 = vmax.f32 %v7322_v14, %v4750_v36  ;;  %v4761_v14 = vmul.f32 0.2, %v7197_v13  ;;  %v7199_v62 = vadd.f32 %v11797_v48, %v10302_v26  ;;  %v5018_v24 = vmax.f32 %v7198_v38, %v4762_v9  ;;  %v11798_v36 = vld [vmem:[#allocation133_spill] sm:$0xff] }
 0x59e   :  { %v7202_v56 = vadd.f32 %v11798_v36, %v10291_v16  ;;  %v5026_v38 = vmax.f32 %v7200_v61, %v4770_v51 }
 0x59f   :  { %v10676_v1 = vpop.f32.mrb[124].mxu1  ;;  %v10678_v46 = vpop.f32.mrb[42].mxu0  ;;  %6072 = vmatprep.mubr.f32.mxu0 %v5006_v25  ;;  %v5017_v18 = vmax.f32 %v7197_v13, %v4761_v14  ;;  %v4769_v32 = vmul.f32 0.2, %v7199_v62 }
 0x5a0   :  { %11795 = vst [vmem:[#allocation120_spill] sm:$0xff] %v10678_v46  ;;  %v10680_v28 = vpop.f32.mrb[125].mxu1  ;;  %5623 = vmatmul.mubr.f32.gmra.mrb[166].mxu1 %v5001_v8  ;;  %v10682_v58 = vpop.f32.mrb[43].mxu0  ;;  %6073 = vmatmul.mubr.f32.gmra.mrb[102].mxu0 %v5005_v40  ;;  %v4778_v9 = vmul.f32 0.2, %v7202_v56  ;;  %v11802_v40 = vld [vmem:[#allocation134_spill] sm:$0xff] }
 0x5a1   :  { %11796 = vst [vmem:[#allocation94_spill] sm:$0xff] %v10682_v58  ;;  %5627 = vmatprep.mubr.f32.mxu1 %v5010_v15  ;;  %v11801_v15 = vld [vmem:[#allocation132_spill] sm:$0xff]  ;;  %v7204_v48 = vadd.f32 %v11802_v40, %v10291_v16 }
 0x5a2   :  { %v7201_v53 = vadd.f32 %v11801_v15, %v10302_v26  ;;  %v5034_v14 = vmax.f32 %v7202_v56, %v4778_v9  ;;  %v11806_v15 = vld [vmem:[#allocation135_spill] sm:$0xff] }
 0x5a3   :  { %v10688_v49 = vpop.f32.mrb[126].mxu1  ;;  %v10690_v0 = vpop.f32.mrb[44].mxu0  ;;  %v7206_v61 = vadd.f32 %v11806_v15, %v10291_v16 }
 0x5a4   :  { %11799 = vst [vmem:[#allocation122_spill] sm:$0xff] %v10690_v0  ;;  %v10692_v25 = vpop.f32.mrb[127].mxu1  ;;  %5628 = vmatmul.mubr.f32.gmra.mrb[168].mxu1 %v5009_v20  ;;  %v10694_v8 = vpop.f32.mrb[45].mxu0  ;;  %v5025_v20 = vmax.f32 %v7199_v62, %v4769_v32  ;;  %v4777_v46 = vmul.f32 0.2, %v7201_v53 }
 0x5a5   :  { %11800 = vst [vmem:[#allocation96_spill] sm:$0xff] %v10694_v8  ;;  %5632 = vmatprep.mubr.f32.mxu1 %v5018_v24  ;;  %v11805_v24 = vld [vmem:[#allocation101_spill] sm:$0xff]  ;;  %v4786_v8 = vmul.f32 0.2, %v7204_v48 }
 0x5a6   :  { %v7203_v13 = vadd.f32 %v11805_v24, %v10302_v26  ;;  %v11810_v24 = vld [vmem:[#allocation138_spill] sm:$0xff] }
 0x5a7   :  { %v10700_v36 = vpop.f32.mrb[46].mxu0  ;;  %v5042_v32 = vmax.f32 %v7204_v48, %v4786_v8  ;;  %v7208_v56 = vadd.f32 %v11810_v24, %v10291_v16 }
 0x5a8   :  { %11803 = vst [vmem:[#allocation125_spill] sm:$0xff] %v10700_v36  ;;  %5633 = vmatmul.mubr.f32.gmra.mrb[170].mxu1 %v5017_v18  ;;  %v10702_v0 = vpop.f32.mrb[47].mxu0  ;;  %v5033_v18 = vmax.f32 %v7201_v53, %v4777_v46  ;;  %v4785_v36 = vmul.f32 0.2, %v7203_v13 }
 0x5a9   :  { %11804 = vst [vmem:[#allocation98_spill] sm:$0xff] %v10702_v0  ;;  %5637 = vmatprep.mubr.f32.mxu1 %v5026_v38  ;;  %v11809_v38 = vld [vmem:[#allocation103_spill] sm:$0xff]  ;;  %v4794_v0 = vmul.f32 0.2, %v7206_v61 }
 0x5aa   :  { %v7205_v62 = vadd.f32 %v11809_v38, %v10302_v26  ;;  %v11814_v38 = vld [vmem:[#allocation139_spill] sm:$0xff] }
 0x5ab   :  { %v10708_v51 = vpop.f32.mrb[48].mxu0  ;;  %v5050_v53 = vmax.f32 %v7206_v61, %v4794_v0  ;;  %v7210_v8 = vadd.f32 %v11814_v38, %v10291_v16 }
 0x5ac   :  { %11807 = vst [vmem:[#allocation23_spill] sm:$0xff] %v10708_v51  ;;  %5638 = vmatmul.mubr.f32.gmra.mrb[172].mxu1 %v5025_v20  ;;  %v10710_v40 = vpop.f32.mrb[49].mxu0  ;;  %v5041_v20 = vmax.f32 %v7203_v13, %v4785_v36  ;;  %v4793_v51 = vmul.f32 0.2, %v7205_v62 }
 0x5ad   :  { %11808 = vst [vmem:[#allocation141_spill] sm:$0xff] %v10710_v40  ;;  %5642 = vmatprep.mubr.f32.mxu1 %v5034_v14  ;;  %v11813_v14 = vld [vmem:[#allocation137_spill] sm:$0xff]  ;;  %v4802_v40 = vmul.f32 0.2, %v7208_v56 }
 0x5ae   :  { %v7207_v46 = vadd.f32 %v11813_v14, %v10302_v26  ;;  %v11818_v14 = vld [vmem:[#allocation140_spill] sm:$0xff] }
 0x5af   :  { %v10716_v9 = vpop.f32.mrb[50].mxu0  ;;  %v5058_v13 = vmax.f32 %v7208_v56, %v4802_v40  ;;  %v7212_v0 = vadd.f32 %v11818_v14, %v10291_v16 }
 0x5b0   :  { %11811 = vst [vmem:[#allocation129_spill] sm:$0xff] %v10716_v9  ;;  %5643 = vmatmul.mubr.f32.gmra.mrb[174].mxu1 %v5033_v18  ;;  %v10718_v15 = vpop.f32.mrb[51].mxu0  ;;  %v5049_v18 = vmax.f32 %v7205_v62, %v4793_v51  ;;  %v4801_v9 = vmul.f32 0.2, %v7207_v46 }
 0x5b1   :  { %11812 = vst [vmem:[#allocation127_spill] sm:$0xff] %v10718_v15  ;;  %5647 = vmatprep.mubr.f32.mxu1 %v5042_v32  ;;  %v11817_v32 = vld [vmem:[#allocation105_spill] sm:$0xff]  ;;  %v4810_v15 = vmul.f32 0.2, %v7210_v8 }
 0x5b2   :  { %v7209_v36 = vadd.f32 %v11817_v32, %v10302_v26  ;;  %v11822_v32 = vld [vmem:[#allocation142_spill] sm:$0xff] }
 0x5b3   :  { %v10724_v48 = vpop.f32.mrb[52].mxu0  ;;  %v5066_v62 = vmax.f32 %v7210_v8, %v4810_v15  ;;  %v7214_v40 = vadd.f32 %v11822_v32, %v10291_v16  ;;  %v2517_v8 = vsub.s32 5, %v11714_v43 }
 0x5b4   :  { %11815 = vst [vmem:[#allocation34_spill] sm:$0xff] %v10724_v48  ;;  %5648 = vmatmul.mubr.f32.gmra.mrb[176].mxu1 %v5041_v20  ;;  %v10726_v24 = vpop.f32.mrb[53].mxu0  ;;  %v5057_v20 = vmax.f32 %v7207_v46, %v4801_v9  ;;  %v4809_v48 = vmul.f32 0.2, %v7209_v36 }
 0x5b5   :  { %11816 = vst [vmem:[#allocation32_spill] sm:$0xff] %v10726_v24  ;;  %5652 = vmatprep.mubr.f32.mxu1 %v5050_v53  ;;  %v11821_v53 = vld [vmem:[#allocation107_spill] sm:$0xff]  ;;  %v4818_v24 = vmul.f32 0.2, %v7212_v0 }
 0x5b6   :  { %v7211_v51 = vadd.f32 %v11821_v53, %v10302_v26  ;;  %v11826_v53 = vld [vmem:[#allocation25_spill] sm:$0xff] }
 0x5b7   :  { %v10732_v61 = vpop.f32.mrb[54].mxu0  ;;  %v5074_v46 = vmax.f32 %v7212_v0, %v4818_v24  ;;  %v7216_v15 = vadd.f32 %v11826_v53, %v10291_v16 }
 0x5b8   :  { %11819 = vst [vmem:[#allocation38_spill] sm:$0xff] %v10732_v61  ;;  %5653 = vmatmul.mubr.f32.gmra.mrb[178].mxu1 %v5049_v18  ;;  %v10734_v38 = vpop.f32.mrb[55].mxu0  ;;  %v5065_v18 = vmax.f32 %v7209_v36, %v4809_v48  ;;  %v4817_v61 = vmul.f32 0.2, %v7211_v51  ;;  %v11828_v48 = vld [vmem:[#allocation111_spill] sm:$0xff] }
 0x5b9   :  { %11820 = vst [vmem:[#allocation36_spill] sm:$0xff] %v10734_v38  ;;  %5657 = vmatprep.mubr.f32.mxu1 %v5058_v13  ;;  %v11825_v13 = vld [vmem:[#allocation109_spill] sm:$0xff]  ;;  %v4826_v38 = vmul.f32 0.2, %v7214_v40  ;;  %v7215_v36 = vadd.f32 %v11828_v48, %v10302_v26  ;;  %v4834_v0 = vmul.f32 0.2, %v7216_v15 }
 0x5ba   :  { %v7213_v9 = vadd.f32 %v11825_v13, %v10302_v26  ;;  %v2513_v13 = vsub.s32 4, %v11714_v43 }
 0x5bb   :  { %v10740_v56 = vpop.f32.mrb[56].mxu0  ;;  %v5082_v24 = vmax.f32 %v7214_v40, %v4826_v38  ;;  %v5090_v38 = vmax.f32 %v7216_v15, %v4834_v0 }
 0x5bc   :  { %11823 = vst [vmem:[#allocation42_spill] sm:$0xff] %v10740_v56  ;;  %5658 = vmatmul.mubr.f32.gmra.mrb[180].mxu1 %v5057_v20  ;;  %v10742_v14 = vpop.f32.mrb[57].mxu0  ;;  %v5073_v20 = vmax.f32 %v7211_v51, %v4817_v61  ;;  %v11829_v56 = vld [vmem:[#allocation24_spill] sm:$0xff]  ;;  %v4833_v51 = vmul.f32 0.2, %v7215_v36 }
 0x5bd   :  { %11824 = vst [vmem:[#allocation40_spill] sm:$0xff] %v10742_v14  ;;  %5662 = vmatprep.mubr.f32.mxu1 %v5066_v62  ;;  %v4825_v62 = vmul.f32 0.2, %v7213_v9  ;;  %v7218_v53 = vadd.f32 %v11829_v56, %v10291_v16  ;;  %v7830_v14 = vld [vmem:[#allocation11] sm:$0xff] }
 0x5be   :  { %v10758_v19 = vrot.slane %v7830_v14, %v2517_v8  ;;  %v10766_v43 = vrot.slane %v7830_v14, %v2513_v13 }
 0x5bf   :  { %v10749_v58 = vpop.f32.mrb[58].mxu0  ;;  %v5081_v61 = vmax.f32 %v7213_v9, %v4825_v62  ;;  %v4842_v40 = vmul.f32 0.2, %v7218_v53 }
 0x5c0   :  { %11827 = vst [vmem:[#allocation45_spill] sm:$0xff] %v10749_v58  ;;  %5663 = vmatmul.mubr.f32.gmra.mrb[182].mxu1 %v5065_v18  ;;  %v10751_v32 = vpop.f32.mrb[59].mxu0  ;;  %v7220_v16 = vadd.f32 %v10236_v35, %v10758_v19  ;;  %v7219_v9 = vadd.f32 %v10234_v27, %v10766_v43  ;;  %v7222_v14 = vadd.f32 %v10244_v23, %v10758_v19 }
 0x5c1   :  { %5667 = vmatprep.mubr.f32.mxu1 %v5074_v46  ;;  %v11830_v46 = vld [vmem:[#allocation113_spill] sm:$0xff]  ;;  %v5098_v62 = vmax.f32 %v7218_v53, %v4842_v40  ;;  %v7221_v13 = vadd.f32 %v10242_v45, %v10766_v43 }
 0x5c2   :  { %v7217_v48 = vadd.f32 %v11830_v46, %v10302_v26  ;;  %v4596_v26 = vmul.f32 0.2, %v7220_v16  ;;  %v4595_v35 = vmul.f32 0.2, %v7219_v9 }
 0x5c3   :  { %v10760_v58 = vpop.f32.mrb[60].mxu0  ;;  %v4603_v53 = vmul.f32 0.2, %v7221_v13 }
 0x5c4   :  { %5668 = vmatmul.mubr.f32.gmra.mrb[184].mxu1 %v5073_v20  ;;  %v10762_v18 = vpop.f32.mrb[61].mxu0  ;;  %v5089_v20 = vmax.f32 %v7215_v36, %v4833_v51  ;;  %v4852_v0 = vmax.f32 %v7220_v16, %v4596_v26  ;;  %v7224_v36 = vadd.f32 %v10252_v11, %v10758_v19  ;;  %v4851_v27 = vmax.f32 %v7219_v9, %v4595_v35 }
 0x5c5   :  { %5672 = vmatprep.mubr.f32.mxu1 %v5082_v24  ;;  %v4841_v24 = vmul.f32 0.2, %v7217_v48  ;;  %v7223_v51 = vadd.f32 %v10250_v54, %v10766_v43  ;;  %v4859_v45 = vmax.f32 %v7221_v13, %v4603_v53  ;;  %v7225_v11 = vadd.f32 %v10258_v37, %v10766_v43 }
 0x5c6   :  { %v4612_v46 = vmul.f32 0.2, %v7224_v36  ;;  %v7228_v54 = vadd.f32 %v10268_v10, %v10758_v19  ;;  %v7229_v13 = vadd.f32 %v10274_v5, %v10766_v43  ;;  %v7231_v53 = vadd.f32 %v10282_v31, %v10766_v43 }
 0x5c7   :  { %v10770_v56 = vpop.f32.mrb[62].mxu0  ;;  %v5097_v15 = vmax.f32 %v7217_v48, %v4841_v24  ;;  %v7226_v48 = vadd.f32 %v10260_v42, %v10758_v19  ;;  %v4611_v40 = vmul.f32 0.2, %v7223_v51  ;;  %v11832_v24 = vld [vmem:[#allocation124_spill] sm:$0xff]  ;;  %v4619_v9 = vmul.f32 0.2, %v7225_v11 }
 0x5c8   :  { %5673 = vmatmul.mubr.f32.gmra.mrb[186].mxu1 %v5081_v61  ;;  %v10772_v8 = vpop.f32.mrb[63].mxu0  ;;  %v4604_v61 = vmul.f32 0.2, %v7222_v14  ;;  %v4868_v16 = vmax.f32 %v7224_v36, %v4612_v46  ;;  %v4628_v37 = vmul.f32 0.2, %v7228_v54  ;;  %v11834_v36 = vld [vmem:[#allocation100_spill] sm:$0xff] }
 0x5c9   :  { %5677 = vmatprep.mubr.f32.mxu1 %v5090_v38  ;;  %v11831_v38 = vld [vmem:[#allocation119_spill] sm:$0xff]  ;;  %v4867_v42 = vmax.f32 %v7223_v51, %v4611_v40  ;;  %v4875_v10 = vmax.f32 %v7225_v11, %v4619_v9  ;;  %v11835_v46 = vld [vmem:[#allocation102_spill] sm:$0xff]  ;;  %v7236_v40 = vadd.f32 %v10312_v44, %v10758_v19  ;;  %v11836_v11 = vld [vmem:[#allocation136_spill] sm:$0xff] }
 0x5ca   :  { %v4860_v23 = vmax.f32 %v7222_v14, %v4604_v61  ;;  %v7230_v14 = vadd.f32 %v10276_v55, %v10758_v19  ;;  %v7232_v61 = vadd.f32 %v10284_v50, %v10758_v19 }
 0x5cc   :  { %5678 = vmatmul.mubr.f32.gmra.mrb[188].mxu1 %v5089_v20  ;;  %v4620_v20 = vmul.f32 0.2, %v7226_v48  ;;  %v4644_v5 = vmul.f32 0.2, %v7232_v61 }
 0x5cd   :  { %5682 = vmatprep.mubr.f32.mxu1 %v5098_v62  ;;  %v7227_v62 = vadd.f32 %v10266_v21, %v10766_v43  ;;  %v4636_v21 = vmul.f32 0.2, %v7230_v14 }
 0x5ce   :  { %v4876_v26 = vmax.f32 %v7226_v48, %v4620_v20  ;;  %v4643_v48 = vmul.f32 0.2, %v7231_v53  ;;  %v7235_v20 = vadd.f32 %v10310_v34, %v10766_v43 }
 0x5cf   :  { %v4627_v35 = vmul.f32 0.2, %v7227_v62  ;;  %v4892_v51 = vmax.f32 %v7230_v14, %v4636_v21  ;;  %v11838_v14 = vld [vmem:[#allocation106_spill] sm:$0xff] }
 0x5d0   :  { %5683 = vmatmul.mubr.f32.gmra.mrb[190].mxu1 %v5097_v15  ;;  %v11833_v15 = vld [vmem:[#allocation131_spill] sm:$0xff]  ;;  %v4659_v9 = vmul.f32 0.2, %v7235_v20 }
 0x5d1   :  { %5752 = vmatprep.mubr.f32.mxu1 %v4852_v0  ;;  %v4884_v0 = vmax.f32 %v7228_v54, %v4628_v37  ;;  %v4883_v55 = vmax.f32 %v7227_v62, %v4627_v35  ;;  %v7237_v62 = vadd.f32 %v10324_v17, %v10766_v43  ;;  %v7240_v37 = vadd.f32 %v10338_v60, %v10758_v19 }
 0x5d3   :  { %v4676_v17 = vmul.f32 0.2, %v7240_v37 }
 0x5d4   :  { %5753 = vmatmul.mubr.f32.vlgmr.msra.gmra.mrb[128].mxu1 %v4851_v27  ;;  %v4635_v27 = vmul.f32 0.2, %v7229_v13 }
 0x5d5   :  { %7075 = vmatpush1.bf16.msra.mxu1 %v11831_v38  ;;  %5757 = vmatprep.mubr.f32.mxu1 %v4860_v23  ;;  %v7234_v23 = vadd.f32 %v10297_v52, %v10758_v19  ;;  %v7233_v38 = vadd.f32 %v10295_v7, %v10766_v43  ;;  %v4899_v52 = vmax.f32 %v7231_v53, %v4643_v48  ;;  %v4660_v7 = vmul.f32 0.2, %v7236_v40 }
 0x5d6   :  { %7060 = vmatprep.subr.bf16.mxu1 %v11535_v2  ;;  %v4891_v50 = vmax.f32 %v7229_v13, %v4635_v27  ;;  %v7242_v13 = vadd.f32 %v10353_v12, %v10758_v19  ;;  %v11840_v27 = vld [vmem:[#allocation110_spill] sm:$0xff]  ;;  %v7245_v48 = vadd.f32 %v10387_v6, %v10766_v43 }
 0x5d7   :  { %v4652_v31 = vmul.f32 0.2, %v7234_v23 }
 0x5d8   :  { %5758 = vmatmul.mubr.f32.gmra.mrb[130].mxu1 %v4859_v45  ;;  %v4900_v45 = vmax.f32 %v7232_v61, %v4644_v5  ;;  %v7241_v61 = vadd.f32 %v10351_v57, %v10766_v43 }
 0x5d9   :  { %5762 = vmatprep.mubr.f32.mxu1 %v4868_v16  ;;  %7076 = vmatpush1.bf16.msra.mxu1 %v11832_v24  ;;  %v4651_v16 = vmul.f32 0.2, %v7233_v38  ;;  %v4908_v54 = vmax.f32 %v7234_v23, %v4652_v31  ;;  %v7238_v24 = vadd.f32 %v10326_v63, %v10758_v19  ;;  %v4915_v63 = vmax.f32 %v7235_v20, %v4659_v9  ;;  %v11842_v31 = vld [vmem:[#allocation114_spill] sm:$0xff] }
 0x5da   :  { %7061 = vmatprep.subr.bf16.mxu1 %v11535_v2  ;;  %v4683_v53 = vmul.f32 0.2, %v7241_v61  ;;  %v7246_v23 = vadd.f32 %v10390_v4, %v10758_v19  ;;  %v11844_v20 = vld [vmem:[#allocation30_spill] sm:$0xff] }
 0x5db   :  { %v4907_v44 = vmax.f32 %v7233_v38, %v4651_v16  ;;  %v4668_v34 = vmul.f32 0.2, %v7238_v24 }
 0x5dc   :  { %5763 = vmatmul.mubr.f32.gmra.mrb[132].mxu1 %v4867_v42  ;;  %v11837_v42 = vld [vmem:[#allocation104_spill] sm:$0xff] }
 0x5dd   :  { %5767 = vmatprep.mubr.f32.mxu1 %v4876_v26  ;;  %7077 = vmatpush1.bf16.msra.mxu1 %v11833_v15  ;;  %v4916_v26 = vmax.f32 %v7236_v40, %v4660_v7  ;;  %v4667_v15 = vmul.f32 0.2, %v7237_v62  ;;  %v4924_v35 = vmax.f32 %v7238_v24, %v4668_v34  ;;  %v4699_v40 = vmul.f32 0.2, %v7245_v48  ;;  %v11845_v7 = vld [vmem:[#allocation115_spill] sm:$0xff] }
 0x5de   :  { %7062 = vmatprep.subr.bf16.mxu1 %v11535_v2 }
 0x5df   :  { %v4923_v60 = vmax.f32 %v7237_v62, %v4667_v15  ;;  %v11849_v15 = vld [vmem:[#allocation29_spill] sm:$0xff] }
 0x5e0   :  { %5768 = vmatmul.mubr.f32.gmra.mrb[134].mxu1 %v4875_v10  ;;  %v7239_v10 = vadd.f32 %v10336_v29, %v10766_v43  ;;  %v4684_v29 = vmul.f32 0.2, %v7242_v13 }
 0x5e1   :  { %5772 = vmatprep.mubr.f32.mxu1 %v4884_v0  ;;  %7078 = vmatpush1.bf16.msra.mxu1 %v11834_v36  ;;  %v11839_v0 = vld [vmem:[#allocation108_spill] sm:$0xff]  ;;  %v4932_v36 = vmax.f32 %v7240_v37, %v4676_v17 }
 0x5e2   :  { %7063 = vmatprep.subr.bf16.mxu1 %v11535_v2  ;;  %v4675_v21 = vmul.f32 0.2, %v7239_v10  ;;  %v4940_v5 = vmax.f32 %v7242_v13, %v4684_v29  ;;  %v11848_v37 = vld [vmem:[#allocation116_spill] sm:$0xff]  ;;  %v11850_v13 = vld [vmem:[#allocation37_spill] sm:$0xff] }
 0x5e4   :  { %5773 = vmatmul.mubr.f32.gmra.mrb[136].mxu1 %v4883_v55  ;;  %v7244_v55 = vadd.f32 %v10371_v47, %v10758_v19  ;;  %v4931_v12 = vmax.f32 %v7239_v10, %v4675_v21  ;;  %v4939_v47 = vmax.f32 %v7241_v61, %v4683_v53  ;;  %v7251_v10 = vadd.f32 %v11849_v15, %v10766_v43 }
 0x5e5   :  { %5777 = vmatprep.mubr.f32.mxu1 %v4892_v51  ;;  %7079 = vmatpush1.bf16.msra.mxu1 %v11835_v46  ;;  %v7243_v51 = vadd.f32 %v10368_v41, %v10766_v43  ;;  %v11841_v46 = vld [vmem:[#allocation112_spill] sm:$0xff]  ;;  %v4700_v41 = vmul.f32 0.2, %v7246_v23 }
 0x5e6   :  { %7064 = vmatprep.subr.bf16.mxu1 %v11535_v2  ;;  %v4692_v57 = vmul.f32 0.2, %v7244_v55  ;;  %v4723_v61 = vmul.f32 0.2, %v7251_v10 }
 0x5e7   :  { %v4956_v16 = vmax.f32 %v7246_v23, %v4700_v41  ;;  %v11855_v23 = vld [vmem:[#allocation35_spill] sm:$0xff] }
 0x5e8   :  { %5778 = vmatmul.mubr.f32.gmra.mrb[138].mxu1 %v4891_v50  ;;  %v4691_v50 = vmul.f32 0.2, %v7243_v51  ;;  %v4948_v38 = vmax.f32 %v7244_v55, %v4692_v57 }
 0x5e9   :  { %5782 = vmatprep.mubr.f32.mxu1 %v4900_v45  ;;  %7080 = vmatpush1.bf16.msra.mxu1 %v11836_v11  ;;  %v7248_v45 = vadd.f32 %v10409_v39, %v10758_v19  ;;  %v11843_v11 = vld [vmem:[#allocation28_spill] sm:$0xff]  ;;  %v4955_v39 = vmax.f32 %v7245_v48, %v4699_v40  ;;  %v11856_v48 = vld [vmem:[#allocation43_spill] sm:$0xff] }
 0x5ea   :  { %7065 = vmatprep.subr.bf16.mxu1 %v11535_v2  ;;  %v4947_v4 = vmax.f32 %v7243_v51, %v4691_v50  ;;  %v11854_v51 = vld [vmem:[#allocation118_spill] sm:$0xff] }
 0x5eb   :  { %v4708_v6 = vmul.f32 0.2, %v7248_v45 }
 0x5ec   :  { %5783 = vmatmul.mubr.f32.gmra.mrb[140].mxu1 %v4899_v52  ;;  %v7247_v52 = vadd.f32 %v11843_v11, %v10766_v43  ;;  %v11858_v11 = vld [vmem:[#allocation46_spill] sm:$0xff] }
 0x5ed   :  { %5787 = vmatprep.mubr.f32.mxu1 %v4908_v54  ;;  %7081 = vmatpush1.bf16.msra.mxu1 %v11837_v42  ;;  %v7250_v54 = vadd.f32 %v11844_v20, %v10758_v19  ;;  %v11846_v42 = vld [vmem:[#allocation27_spill] sm:$0xff]  ;;  %v4964_v9 = vmax.f32 %v7248_v45, %v4708_v6  ;;  %v11859_v20 = vld [vmem:[#allocation48_spill] sm:$0xff] }
 0x5ee   :  { %7066 = vmatprep.subr.bf16.mxu1 %v11535_v2  ;;  %v4707_v24 = vmul.f32 0.2, %v7247_v52  ;;  %v11857_v45 = vld [vmem:[#allocation39_spill] sm:$0xff] }
 0x5ef   :  { %v4716_v62 = vmul.f32 0.2, %v7250_v54 }
 0x5f0   :  { %5788 = vmatmul.mubr.f32.gmra.mrb[142].mxu1 %v4907_v44  ;;  %v7249_v44 = vadd.f32 %v11846_v42, %v10766_v43 }
 0x5f1   :  { %5792 = vmatprep.mubr.f32.mxu1 %v4916_v26  ;;  %7082 = vmatpush1.bf16.msra.mxu1 %v11838_v14  ;;  %v11847_v26 = vld [vmem:[#allocation33_spill] sm:$0xff]  ;;  %v4963_v14 = vmax.f32 %v7247_v52, %v4707_v24  ;;  %v7260_v52 = vadd.f32 %v11858_v11, %v10758_v19  ;;  %v11860_v24 = vld [vmem:[#allocation50_spill] sm:$0xff] }
 0x5f2   :  { %7067 = vmatprep.subr.bf16.mxu1 %v11535_v2  ;;  %v7252_v34 = vadd.f32 %v11847_v26, %v10758_v19  ;;  %v7262_v42 = vadd.f32 %v11860_v24, %v10758_v19  ;;  %v11870_v24 = vld [vmem:[#allocation80_spill] sm:$0xff] }
 0x5f4   :  { %5793 = vmatmul.mubr.f32.gmra.mrb[144].mxu1 %v4915_v63  ;;  %v4715_v63 = vmul.f32 0.2, %v7249_v44  ;;  %v4724_v17 = vmul.f32 0.2, %v7252_v34 }
 0x5f5   :  { %5797 = vmatprep.mubr.f32.mxu1 %v4924_v35  ;;  %7083 = vmatpush1.bf16.msra.mxu1 %v11839_v0  ;;  %v4972_v35 = vmax.f32 %v7250_v54, %v4716_v62  ;;  %v7254_v0 = vadd.f32 %v11850_v13, %v10758_v19  ;;  %v7259_v54 = vadd.f32 %v11859_v20, %v10766_v43  ;;  %v11861_v62 = vld [vmem:[#allocation52_spill] sm:$0xff] }
 0x5f6   :  { %7068 = vmatprep.subr.bf16.mxu1 %v11535_v2  ;;  %v4971_v21 = vmax.f32 %v7249_v44, %v4715_v63  ;;  %v4980_v55 = vmax.f32 %v7252_v34, %v4724_v17  ;;  %v7261_v26 = vadd.f32 %v11861_v62, %v10766_v43  ;;  %v7272_v20 = vadd.f32 %v10632_v3, %v10758_v19 }
 0x5f8   :  { %5798 = vmatmul.mubr.f32.gmra.mrb[146].mxu1 %v4923_v60  ;;  %v11851_v60 = vld [vmem:[#allocation117_spill] sm:$0xff]  ;;  %v4804_v62 = vmul.f32 0.2, %v7272_v20 }
 0x5f9   :  { %5802 = vmatprep.mubr.f32.mxu1 %v4932_v36  ;;  %7084 = vmatpush1.bf16.msra.mxu1 %v11840_v27  ;;  %v11852_v36 = vld [vmem:[#allocation31_spill] sm:$0xff]  ;;  %v4732_v27 = vmul.f32 0.2, %v7254_v0 }
 0x5fa   :  { %7069 = vmatprep.subr.bf16.mxu1 %v11535_v2  ;;  %v7253_v29 = vadd.f32 %v11852_v36, %v10766_v43 }
 0x5fc   :  { %5803 = vmatmul.mubr.f32.gmra.mrb[148].mxu1 %v4931_v12  ;;  %v11853_v12 = vld [vmem:[#allocation41_spill] sm:$0xff]  ;;  %v4731_v57 = vmul.f32 0.2, %v7253_v29 }
 0x5fd   :  { %5807 = vmatprep.mubr.f32.mxu1 %v4940_v5  ;;  %7085 = vmatpush1.bf16.msra.mxu1 %v11841_v46  ;;  %v7256_v53 = vadd.f32 %v11853_v12, %v10758_v19  ;;  %v4979_v5 = vmax.f32 %v7251_v10, %v4723_v61  ;;  %v7255_v46 = vadd.f32 %v11855_v23, %v10766_v43  ;;  %v4763_v10 = vmul.f32 0.2, %v7261_v26 }
 0x5fe   :  { %7070 = vmatprep.subr.bf16.mxu1 %v11535_v2 }
 0x5ff   :  { %v4740_v50 = vmul.f32 0.2, %v7256_v53  ;;  %v4739_v41 = vmul.f32 0.2, %v7255_v46  ;;  %v5019_v61 = vmax.f32 %v7261_v26, %v4763_v10  ;;  %v11871_v26 = vld [vmem:[#allocation88_spill] sm:$0xff] }
 0x600   :  { %5808 = vmatmul.mubr.f32.gmra.mrb[150].mxu1 %v4939_v47  ;;  %v4988_v47 = vmax.f32 %v7254_v0, %v4732_v27 }
 0x601   :  { %5812 = vmatprep.mubr.f32.mxu1 %v4948_v38  ;;  %7086 = vmatpush1.bf16.msra.mxu1 %v11842_v31  ;;  %v7258_v38 = vadd.f32 %v11856_v48, %v10758_v19  ;;  %v7257_v31 = vadd.f32 %v11857_v45, %v10766_v43 }
 0x602   :  { %7071 = vmatprep.subr.bf16.mxu1 %v11535_v2 }
 0x603   :  { %v4748_v40 = vmul.f32 0.2, %v7258_v38  ;;  %v4747_v6 = vmul.f32 0.2, %v7257_v31 }
 0x604   :  { %5813 = vmatmul.mubr.f32.gmra.mrb[152].mxu1 %v4947_v4  ;;  %v4996_v4 = vmax.f32 %v7256_v53, %v4740_v50  ;;  %v11866_v53 = vld [vmem:[#allocation70_spill] sm:$0xff] }
 0x605   :  { %5817 = vmatprep.mubr.f32.mxu1 %v4956_v16  ;;  %7087 = vmatpush1.bf16.msra.mxu1 %v11845_v7  ;;  %v4995_v16 = vmax.f32 %v7255_v46, %v4739_v41  ;;  %v5004_v7 = vmax.f32 %v7258_v38, %v4748_v40  ;;  %v5003_v44 = vmax.f32 %v7257_v31, %v4747_v6  ;;  %v11867_v46 = vld [vmem:[#allocation72_spill] sm:$0xff] }
 0x606   :  { %7072 = vmatprep.subr.bf16.mxu1 %v11535_v2  ;;  %v11869_v40 = vld [vmem:[#allocation76_spill] sm:$0xff] }
 0x607   :  { %v7269_v11 = vadd.f32 %v11869_v40, %v10766_v43 }
 0x608   :  { %5818 = vmatmul.mubr.f32.gmra.mrb[154].mxu1 %v4955_v39  ;;  %v4756_v39 = vmul.f32 0.2, %v7260_v52 }
 0x609   :  { %5822 = vmatprep.mubr.f32.mxu1 %v4964_v9  ;;  %7088 = vmatpush1.bf16.msra.mxu1 %v11848_v37  ;;  %v4755_v9 = vmul.f32 0.2, %v7259_v54  ;;  %v4764_v37 = vmul.f32 0.2, %v7262_v42 }
 0x60a   :  { %7073 = vmatprep.subr.bf16.mxu1 %v11535_v2  ;;  %v5012_v34 = vmax.f32 %v7260_v52, %v4756_v39  ;;  %v4795_v39 = vmul.f32 0.2, %v7269_v11 }
 0x60b   :  { %v5011_v15 = vmax.f32 %v7259_v54, %v4755_v9  ;;  %v5020_v13 = vmax.f32 %v7262_v42, %v4764_v37  ;;  %v7271_v42 = vadd.f32 %v11870_v24, %v10766_v43 }
 0x60c   :  { %5823 = vmatmul.mubr.f32.gmra.mrb[156].mxu1 %v4963_v14  ;;  %v11862_v14 = vld [vmem:[#allocation63_spill] sm:$0xff]  ;;  %v5051_v3 = vmax.f32 %v7269_v11, %v4795_v39 }
 0x60d   :  { %5827 = vmatprep.mubr.f32.mxu1 %v4972_v35  ;;  %7089 = vmatpush1.bf16.msra.mxu1 %v11851_v60  ;;  %v7264_v63 = vadd.f32 %v11862_v14, %v10758_v19  ;;  %v11863_v35 = vld [vmem:[#allocation56_spill] sm:$0xff]  ;;  %v11864_v60 = vld [vmem:[#allocation66_spill] sm:$0xff]  ;;  %v4803_v14 = vmul.f32 0.2, %v7271_v42 }
 0x60e   :  { %7074 = vmatprep.subr.bf16.mxu1 %v11535_v2  ;;  %v4987_v2 = vmax.f32 %v7253_v29, %v4731_v57  ;;  %v7263_v17 = vadd.f32 %v11863_v35, %v10766_v43  ;;  %v11865_v29 = vld [vmem:[#allocation68_spill] sm:$0xff]  ;;  %v5060_v35 = vmax.f32 %v7272_v20, %v4804_v62 }
 0x60f   :  { %v4772_v0 = vmul.f32 0.2, %v7264_v63 }
 0x610   :  { %5828 = vmatmul.mubr.f32.gmra.mrb[158].mxu1 %v4971_v21  ;;  %v7266_v21 = vadd.f32 %v11864_v60, %v10758_v19  ;;  %v4771_v36 = vmul.f32 0.2, %v7263_v17  ;;  %v5059_v60 = vmax.f32 %v7271_v42, %v4803_v14  ;;  %v11878_v14 = vld [vmem:[#allocation120_spill] sm:$0xff] }
 0x611   :  { %5832 = vmatprep.mubr.f32.mxu1 %v4980_v55  ;;  %7090 = vmatpush1.bf16.msra.mxu1 %v11854_v51  ;;  %v7265_v55 = vadd.f32 %v11865_v29, %v10766_v43  ;;  %v5028_v27 = vmax.f32 %v7264_v63, %v4772_v0  ;;  %v7268_v51 = vadd.f32 %v11866_v53, %v10758_v19  ;;  %v11872_v63 = vld [vmem:[#allocation78_spill] sm:$0xff] }
 0x612   :  { %v4780_v12 = vmul.f32 0.2, %v7266_v21  ;;  %v5027_v57 = vmax.f32 %v7263_v17, %v4771_v36 }
 0x613   :  { %v4779_v23 = vmul.f32 0.2, %v7265_v55  ;;  %v4788_v38 = vmul.f32 0.2, %v7268_v51 }
 0x614   :  { %5833 = vmatmul.mubr.f32.gmra.mrb[160].mxu1 %v4979_v5  ;;  %v5036_v48 = vmax.f32 %v7266_v21, %v4780_v12  ;;  %v7278_v12 = vadd.f32 %v10668_v59, %v10758_v19 }
 0x615   :  { %5837 = vmatprep.mubr.f32.mxu1 %v4988_v47  ;;  %v7267_v47 = vadd.f32 %v11867_v46, %v10766_v43  ;;  %v5035_v31 = vmax.f32 %v7265_v55, %v4779_v23 }
 0x618   :  { %5838 = vmatmul.mubr.f32.gmra.mrb[162].mxu1 %v4987_v2  ;;  %v11868_v2 = vld [vmem:[#allocation74_spill] sm:$0xff] }
 0x619   :  { %5842 = vmatprep.mubr.f32.mxu1 %v4996_v4  ;;  %v7270_v41 = vadd.f32 %v11868_v2, %v10758_v19  ;;  %v4787_v4 = vmul.f32 0.2, %v7267_v47  ;;  %v7279_v2 = vadd.f32 %v10676_v1, %v10766_v43 }
 0x61b   :  { %v4796_v6 = vmul.f32 0.2, %v7270_v41  ;;  %v4835_v11 = vmul.f32 0.2, %v7279_v2 }
 0x61c   :  { %5843 = vmatmul.mubr.f32.gmra.mrb[164].mxu1 %v4995_v16  ;;  %v5044_v16 = vmax.f32 %v7268_v51, %v4788_v38 }
 0x61d   :  { %5847 = vmatprep.mubr.f32.mxu1 %v5004_v7  ;;  %v5043_v7 = vmax.f32 %v7267_v47, %v4787_v4  ;;  %v5052_v9 = vmax.f32 %v7270_v41, %v4796_v6  ;;  %v4828_v47 = vmul.f32 0.2, %v7278_v12  ;;  %v11874_v6 = vld [vmem:[#allocation90_spill] sm:$0xff]  ;;  %v5091_v42 = vmax.f32 %v7279_v2, %v4835_v11 }
 0x61e   :  { %v7324_v20 = vadd.f32 %v11874_v6, %v10320_v22 }
 0x620   :  { %5848 = vmatmul.mubr.f32.gmra.mrb[166].mxu1 %v5003_v44  ;;  %v4758_v62 = vmul.f32 0.2, %v7324_v20 }
 0x621   :  { %5852 = vmatprep.mubr.f32.mxu1 %v5012_v34  ;;  %v7274_v34 = vadd.f32 %v11871_v26, %v10758_v19  ;;  %v11877_v26 = vld [vmem:[#allocation94_spill] sm:$0xff] }
 0x623   :  { %v4812_v17 = vmul.f32 0.2, %v7274_v34 }
 0x624   :  { %5853 = vmatmul.mubr.f32.gmra.mrb[168].mxu1 %v5011_v15  ;;  %v7273_v15 = vadd.f32 %v11872_v63, %v10766_v43 }
 0x625   :  { %5857 = vmatprep.mubr.f32.mxu1 %v5020_v13  ;;  %v7276_v13 = vadd.f32 %v10656_v33, %v10758_v19  ;;  %v5068_v55 = vmax.f32 %v7274_v34, %v4812_v17 }
 0x626   :  { %v4811_v21 = vmul.f32 0.2, %v7273_v15 }
 0x627   :  { %v10901_v5 = vpop.f32.mrb[64].mxu0 }
 0x628   :  { %5858 = vmatmul.mubr.f32.gmra.mrb[170].mxu1 %v5019_v61  ;;  %v5981_v50 = vpop.f32.mrb[65].mxu0  ;;  %v11873_v61 = vld [vmem:[#allocation86_spill] sm:$0xff]  ;;  %v5067_v33 = vmax.f32 %v7273_v15, %v4811_v21 }
 0x629   :  { %5862 = vmatprep.mubr.f32.mxu1 %v5028_v27  ;;  %v7275_v36 = vadd.f32 %v11873_v61, %v10766_v43  ;;  %v4820_v27 = vmul.f32 0.2, %v7276_v13  ;;  %v7280_v50 = vadd.f32 %v10680_v28, %v10758_v19 }
 0x62b   :  { %v10907_v45 = vpop.f32.mrb[66].mxu0  ;;  %v4819_v51 = vmul.f32 0.2, %v7275_v36  ;;  %v5076_v46 = vmax.f32 %v7276_v13, %v4820_v27  ;;  %v4836_v4 = vmul.f32 0.2, %v7280_v50  ;;  %v11879_v13 = vld [vmem:[#allocation96_spill] sm:$0xff] }
 0x62c   :  { %5863 = vmatmul.mubr.f32.gmra.mrb[172].mxu1 %v5027_v57  ;;  %v5986_v52 = vpop.f32.mrb[67].mxu0  ;;  %v7277_v57 = vadd.f32 %v10664_v30, %v10766_v43  ;;  %v7282_v30 = vadd.f32 %v10692_v25, %v10758_v19  ;;  %v11875_v19 = vld [vmem:[#allocation26_spill] sm:$0xff]  ;;  %v11876_v25 = vld [vmem:[#allocation92_spill] sm:$0xff] }
 0x62d   :  { %5867 = vmatprep.mubr.f32.mxu1 %v5036_v48  ;;  %v5075_v59 = vmax.f32 %v7275_v36, %v4819_v51  ;;  %v7281_v52 = vadd.f32 %v10688_v49, %v10766_v43  ;;  %v5092_v1 = vmax.f32 %v7280_v50, %v4836_v4  ;;  %v7323_v24 = vadd.f32 %v11876_v25, %v11875_v19  ;;  %v11881_v51 = vld [vmem:[#allocation98_spill] sm:$0xff]  ;;  %v11882_v50 = vld [vmem:[#allocation125_spill] sm:$0xff] }
 0x62e   :  { %v4827_v38 = vmul.f32 0.2, %v7277_v57  ;;  %v7326_v49 = vadd.f32 %v11877_v26, %v10320_v22  ;;  %v7325_v63 = vadd.f32 %v11878_v14, %v11875_v19 }
 0x62f   :  { %v10913_v54 = vpop.f32.mrb[68].mxu0 }
 0x630   :  { %5868 = vmatmul.mubr.f32.gmra.mrb[174].mxu1 %v5035_v31  ;;  %v5991_v44 = vpop.f32.mrb[69].mxu0  ;;  %v5084_v31 = vmax.f32 %v7278_v12, %v4828_v47  ;;  %v5083_v28 = vmax.f32 %v7277_v57, %v4827_v38  ;;  %v4766_v17 = vmul.f32 0.2, %v7326_v49  ;;  %v4765_v36 = vmul.f32 0.2, %v7325_v63 }
 0x631   :  { %5872 = vmatprep.mubr.f32.mxu1 %v5044_v16  ;;  %v4843_v44 = vmul.f32 0.2, %v7281_v52  ;;  %v7330_v57 = vadd.f32 %v11881_v51, %v10320_v22 }
 0x632   :  { %v5022_v12 = vmax.f32 %v7326_v49, %v4766_v17 }
 0x633   :  { %v10919_v37 = vpop.f32.mrb[70].mxu0  ;;  %v5099_v15 = vmax.f32 %v7281_v52, %v4843_v44  ;;  %v11884_v52 = vld [vmem:[#allocation23_spill] sm:$0xff] }
 0x634   :  { %5873 = vmatmul.mubr.f32.gmra.mrb[176].mxu1 %v5043_v7  ;;  %v5996_v10 = vpop.f32.mrb[71].mxu0  ;;  %v4844_v7 = vmul.f32 0.2, %v7282_v30 }
 0x635   :  { %5877 = vmatprep.mubr.f32.mxu1 %v5052_v9 }
 0x636   :  { %v5100_v43 = vmax.f32 %v7282_v30, %v4844_v7  ;;  %v11885_v7 = vld [vmem:[#allocation127_spill] sm:$0xff] }
 0x637   :  { %v10925_v0 = vpop.f32.mrb[72].mxu0  ;;  %v7334_v25 = vadd.f32 %v11885_v7, %v10320_v22  ;;  %v11893_v7 = vld [vmem:[#allocation45_spill] sm:$0xff] }
 0x638   :  { %5878 = vmatmul.mubr.f32.gmra.mrb[178].mxu1 %v5051_v3  ;;  %v6001_v29 = vpop.f32.mrb[73].mxu0  ;;  %v4757_v3 = vmul.f32 0.2, %v7323_v24 }
 0x639   :  { %5882 = vmatprep.mubr.f32.mxu1 %v5060_v35  ;;  %v5014_v35 = vmax.f32 %v7324_v20, %v4758_v62  ;;  %v11880_v29 = vld [vmem:[#allocation122_spill] sm:$0xff] }
 0x63a   :  { %v5013_v61 = vmax.f32 %v7323_v24, %v4757_v3  ;;  %v11887_v3 = vld [vmem:[#allocation32_spill] sm:$0xff] }
 0x63b   :  { %v10931_v53 = vpop.f32.mrb[74].mxu0  ;;  %v7336_v14 = vadd.f32 %v11887_v3, %v10320_v22 }
 0x63c   :  { %5883 = vmatmul.mubr.f32.gmra.mrb[180].mxu1 %v5059_v60  ;;  %v6006_v23 = vpop.f32.mrb[75].mxu0  ;;  %v7328_v60 = vadd.f32 %v11879_v13, %v10320_v22 }
 0x63d   :  { %5887 = vmatprep.mubr.f32.mxu1 %v5068_v55  ;;  %v7327_v55 = vadd.f32 %v11880_v29, %v11875_v19 }
 0x63f   :  { %v10937_v48 = vpop.f32.mrb[76].mxu0  ;;  %v4773_v47 = vmul.f32 0.2, %v7327_v55 }
 0x640   :  { %5888 = vmatmul.mubr.f32.gmra.mrb[182].mxu1 %v5067_v33  ;;  %v6011_v41 = vpop.f32.mrb[77].mxu0  ;;  %v4774_v33 = vmul.f32 0.2, %v7328_v60 }
 0x641   :  { %5892 = vmatprep.mubr.f32.mxu1 %v5076_v46  ;;  %v5021_v46 = vmax.f32 %v7325_v63, %v4765_v36  ;;  %v4782_v41 = vmul.f32 0.2, %v7330_v57  ;;  %v11889_v36 = vld [vmem:[#allocation36_spill] sm:$0xff] }
 0x642   :  { %v5030_v2 = vmax.f32 %v7328_v60, %v4774_v33  ;;  %v7338_v29 = vadd.f32 %v11889_v36, %v10320_v22  ;;  %v11890_v33 = vld [vmem:[#allocation38_spill] sm:$0xff] }
 0x643   :  { %v10943_v40 = vpop.f32.mrb[78].mxu0  ;;  %v5038_v20 = vmax.f32 %v7330_v57, %v4782_v41  ;;  %v7337_v51 = vadd.f32 %v11890_v33, %v11875_v19 }
 0x644   :  { %5893 = vmatmul.mubr.f32.gmra.mrb[184].mxu1 %v5075_v59  ;;  %v6016_v16 = vpop.f32.mrb[79].mxu0  ;;  %v7329_v59 = vadd.f32 %v11882_v50, %v11875_v19  ;;  %v11891_v50 = vld [vmem:[#allocation40_spill] sm:$0xff] }
 0x645   :  { %5897 = vmatprep.mubr.f32.mxu1 %v5084_v31  ;;  %v11883_v31 = vld [vmem:[#allocation141_spill] sm:$0xff]  ;;  %v7331_v16 = vadd.f32 %v11884_v52, %v11875_v19  ;;  %v4813_v41 = vmul.f32 0.2, %v7337_v51 }
 0x646   :  { %v7332_v4 = vadd.f32 %v11883_v31, %v10320_v22  ;;  %v4781_v11 = vmul.f32 0.2, %v7329_v59  ;;  %v11892_v31 = vld [vmem:[#allocation42_spill] sm:$0xff] }
 0x647   :  { %v10949_v39 = vpop.f32.mrb[80].mxu0  ;;  %v4789_v44 = vmul.f32 0.2, %v7331_v16 }
 0x648   :  { %5898 = vmatmul.mubr.f32.gmra.mrb[186].mxu1 %v5083_v28  ;;  %v6021_v9 = vpop.f32.mrb[81].mxu0  ;;  %v5029_v28 = vmax.f32 %v7327_v55, %v4773_v47  ;;  %v4814_v47 = vmul.f32 0.2, %v7338_v29 }
 0x649   :  { %5902 = vmatprep.mubr.f32.mxu1 %v5092_v1  ;;  %v4790_v1 = vmul.f32 0.2, %v7332_v4  ;;  %v11886_v9 = vld [vmem:[#allocation129_spill] sm:$0xff] }
 0x64a   :  { %v7333_v62 = vadd.f32 %v11886_v9, %v11875_v19 }
 0x64b   :  { %v10955_v34 = vpop.f32.mrb[82].mxu0  ;;  %v5046_v49 = vmax.f32 %v7332_v4, %v4790_v1  ;;  %v7339_v4 = vadd.f32 %v11892_v31, %v11875_v19 }
 0x64c   :  { %5903 = vmatmul.mubr.f32.gmra.mrb[188].mxu1 %v5091_v42  ;;  %v6026_v10 = vpop.f32.mrb[83].mxu0  ;;  %v5037_v42 = vmax.f32 %v7329_v59, %v4781_v11  ;;  %v7340_v59 = vadd.f32 %v11891_v50, %v10320_v22  ;;  %v5070_v11 = vmax.f32 %v7338_v29, %v4814_v47 }
 0x64d   :  { %5907 = vmatprep.mubr.f32.mxu1 %v5100_v43  ;;  %v4798_v43 = vmul.f32 0.2, %v7334_v25  ;;  %v4797_v10 = vmul.f32 0.2, %v7333_v62  ;;  %v4821_v1 = vmul.f32 0.2, %v7339_v4 }
 0x64e   :  { %v4822_v52 = vmul.f32 0.2, %v7340_v59 }
 0x64f   :  { %v10961_v21 = vpop.f32.mrb[84].mxu0  ;;  %v5054_v60 = vmax.f32 %v7334_v25, %v4798_v43  ;;  %v7341_v25 = vadd.f32 %v11893_v7, %v11875_v19  ;;  %v7343_v43 = vadd.f32 %v10760_v58, %v11875_v19 }
 0x650   :  { %5908 = vmatmul.mubr.f32.gmra.mrb[190].mxu1 %v5099_v15  ;;  %v6031_v27 = vpop.f32.mrb[85].mxu0  ;;  %v5045_v15 = vmax.f32 %v7331_v16, %v4789_v44  ;;  %v7342_v16 = vadd.f32 %v10751_v32, %v10320_v22  ;;  %v5078_v44 = vmax.f32 %v7340_v59, %v4822_v52  ;;  %v5077_v32 = vmax.f32 %v7339_v4, %v4821_v1 }
 0x651   :  { %6077 = vmatprep.mubr.f32.mxu1 %v5014_v35  ;;  %v11888_v35 = vld [vmem:[#allocation34_spill] sm:$0xff]  ;;  %v5053_v27 = vmax.f32 %v7333_v62, %v4797_v10  ;;  %v7344_v62 = vadd.f32 %v10762_v18, %v10320_v22  ;;  %v7346_v10 = vadd.f32 %v10772_v8, %v10320_v22 }
 0x652   :  { %v7335_v17 = vadd.f32 %v11888_v35, %v11875_v19  ;;  %v4830_v9 = vmul.f32 0.2, %v7342_v16  ;;  %v11019_v8 = vld [vmem:[#allocation14] ss:$0 sm:$0xff] }
 0x653   :  { %v10967_v23 = vpop.f32.mrb[86].mxu0  ;;  %v4846_v36 = vmul.f32 0.2, %v7346_v10 }
 0x654   :  { %6078 = vmatmul.mubr.f32.vlgmr.msra.gmra.mrb[168].mxu1 %v5013_v61  ;;  %v6036_v38 = vpop.f32.mrb[87].mxu0  ;;  %v4806_v61 = vmul.f32 0.2, %v7336_v14 }
 0x655   :  { %6082 = vmatprep.mubr.f32.mxu1 %v5022_v12  ;;  %v4805_v12 = vmul.f32 0.2, %v7335_v17 }
 0x657   :  { %v10973_v30 = vpop.f32.mrb[88].mxu0 }
 0x658   :  { %6083 = vmatmul.mubr.f32.gmra.mrb[170].mxu1 %v5021_v46  ;;  %v6041_v6 = vpop.f32.mrb[89].mxu0  ;;  %v5062_v46 = vmax.f32 %v7336_v14, %v4806_v61  ;;  %v5086_v14 = vmax.f32 %v7342_v16, %v4830_v9 }
 0x659   :  { %6087 = vmatprep.mubr.f32.mxu1 %v5030_v2  ;;  %v5061_v2 = vmax.f32 %v7335_v17, %v4805_v12  ;;  %v4837_v17 = vmul.f32 0.2, %v7343_v43 }
 0x65b   :  { %v10979_v24 = vpop.f32.mrb[90].mxu0  ;;  %v5093_v58 = vmax.f32 %v7343_v43, %v4837_v17 }
 0x65c   :  { %6088 = vmatmul.mubr.f32.gmra.mrb[172].mxu1 %v5029_v28  ;;  %v6046_v26 = vpop.f32.mrb[91].mxu0 }
 0x65d   :  { %6092 = vmatprep.mubr.f32.mxu1 %v5038_v20  ;;  %v5069_v20 = vmax.f32 %v7337_v51, %v4813_v41 }
 0x65f   :  { %v10985_v63 = vpop.f32.mrb[92].mxu0 }
 0x660   :  { %6093 = vmatmul.mubr.f32.gmra.mrb[174].mxu1 %v5037_v42  ;;  %v6051_v13 = vpop.f32.mrb[93].mxu0 }
 0x661   :  { %6097 = vmatprep.mubr.f32.mxu1 %v5046_v49  ;;  %v4829_v49 = vmul.f32 0.2, %v7341_v25  ;;  %v7345_v13 = vadd.f32 %v10770_v56, %v11875_v19 }
 0x663   :  { %v10991_v55 = vpop.f32.mrb[94].mxu0  ;;  %v5085_v18 = vmax.f32 %v7341_v25, %v4829_v49  ;;  %v4845_v29 = vmul.f32 0.2, %v7345_v13 }
 0x664   :  { %6098 = vmatmul.mubr.f32.gmra.mrb[176].mxu1 %v5045_v15  ;;  %v6056_v57 = vpop.f32.mrb[95].mxu0  ;;  %v4838_v15 = vmul.f32 0.2, %v7344_v62 }
 0x665   :  { %6102 = vmatprep.mubr.f32.mxu1 %v5054_v60  ;;  %v5101_v22 = vmax.f32 %v7345_v13, %v4845_v29 }
 0x666   :  { %v5094_v61 = vmax.f32 %v7344_v62, %v4838_v15 }
 0x667   :  { %v10997_v38 = vpop.f32.mrb[96].mxu0 }
 0x668   :  { %6103 = vmatmul.mubr.f32.gmra.mrb[178].mxu1 %v5053_v27  ;;  %v6061_v28 = vpop.f32.mrb[97].mxu0  ;;  %v5102_v27 = vmax.f32 %v7346_v10, %v4846_v36 }
 0x669   :  { %6107 = vmatprep.mubr.f32.mxu1 %v5062_v46 }
 0x66b   :  { %v11003_v6 = vpop.f32.mrb[98].mxu0 }
 0x66c   :  { %6108 = vmatmul.mubr.f32.gmra.mrb[180].mxu1 %v5061_v2  ;;  %v6066_v42 = vpop.f32.mrb[99].mxu0 }
 0x66d   :  { %6112 = vmatprep.mubr.f32.mxu1 %v5070_v11 }
 0x66f   :  { %v11009_v26 = vpop.f32.mrb[100].mxu0 }
 0x670   :  { %6113 = vmatmul.mubr.f32.gmra.mrb[182].mxu1 %v5069_v20  ;;  %v6071_v3 = vpop.f32.mrb[101].mxu0 }
 0x671   :  { %6117 = vmatprep.mubr.f32.mxu1 %v5078_v44 }
 0x673   :  { %v11015_v35 = vpop.f32.mrb[102].mxu0 }
 0x674   :  { %6118 = vmatmul.mubr.f32.gmra.mrb[184].mxu1 %v5077_v32  ;;  %v6076_v60 = vpop.f32.mrb[103].mxu0 }
 0x675   :  { %6122 = vmatprep.mubr.f32.mxu1 %v5086_v14 }
 0x678   :  { %6123 = vmatmul.mubr.f32.gmra.mrb[186].mxu1 %v5085_v18 }
 0x679   :  { %6127 = vmatprep.mubr.f32.mxu1 %v5094_v61 }
 0x67c   :  { %6128 = vmatmul.mubr.f32.gmra.mrb[188].mxu1 %v5093_v58 }
 0x67d   :  { %6132 = vmatprep.mubr.f32.mxu1 %v5102_v27 }
 0x680   :  { %6133 = vmatmul.mubr.f32.gmra.mrb[190].mxu1 %v5101_v22 }
 0x6a7   :  { %v5754_v12 = vpop.f32.mrb[128].mxu1 }
 0x6a8   :  { %v7347_v33 = vadd.f32 %v11019_v8, %v5754_v12  ;;  %v5756_v51 = vpop.f32.mrb[129].mxu1 }
 0x6aa   :  { %v7348_v56 = vadd.f32 %v7347_v33, %v10901_v5 }
 0x6ab   :  { %v5759_v19 = vpop.f32.mrb[130].mxu1 }
 0x6ac   :  { %6138 = vst [vmem:[#allocation16] sm:$0xff] %v7348_v56  ;;  %v7349_v57 = vadd.f32 %v11019_v8, %v5759_v19  ;;  %v5761_v46 = vpop.f32.mrb[131].mxu1 }
 0x6ae   :  { %v7350_v47 = vadd.f32 %v7349_v57, %v10907_v45 }
 0x6af   :  { %v5764_v50 = vpop.f32.mrb[132].mxu1 }
 0x6b0   :  { %6139 = vst [vmem:[#allocation16 + $0x8] sm:$0xff] %v7350_v47  ;;  %v7351_v59 = vadd.f32 %v11019_v8, %v5764_v50  ;;  %v5766_v2 = vpop.f32.mrb[133].mxu1 }
 0x6b2   :  { %v7352_v41 = vadd.f32 %v7351_v59, %v10913_v54 }
 0x6b3   :  { %v5769_v31 = vpop.f32.mrb[134].mxu1 }
 0x6b4   :  { %6140 = vst [vmem:[#allocation16 + $0x10] sm:$0xff] %v7352_v41  ;;  %v7353_v4 = vadd.f32 %v11019_v8, %v5769_v31  ;;  %v5771_v28 = vpop.f32.mrb[135].mxu1 }
 0x6b6   :  { %v7354_v5 = vadd.f32 %v7353_v4, %v10919_v37 }
 0x6b7   :  { %v5774_v11 = vpop.f32.mrb[136].mxu1 }
 0x6b8   :  { %6141 = vst [vmem:[#allocation16 + $0x18] sm:$0xff] %v7354_v5  ;;  %v7355_v52 = vadd.f32 %v11019_v8, %v5774_v11  ;;  %v5776_v16 = vpop.f32.mrb[137].mxu1 }
 0x6ba   :  { %v7356_v45 = vadd.f32 %v7355_v52, %v10925_v0 }
 0x6bb   :  { %v5779_v20 = vpop.f32.mrb[138].mxu1 }
 0x6bc   :  { %6142 = vst [vmem:[#allocation16 + $0x20] sm:$0xff] %v7356_v45  ;;  %v7357_v1 = vadd.f32 %v11019_v8, %v5779_v20  ;;  %v5781_v7 = vpop.f32.mrb[139].mxu1 }
 0x6be   :  { %v7358_v54 = vadd.f32 %v7357_v1, %v10931_v53 }
 0x6bf   :  { %v5784_v25 = vpop.f32.mrb[140].mxu1 }
 0x6c0   :  { %6143 = vst [vmem:[#allocation16 + $0x28] sm:$0xff] %v7358_v54  ;;  %v7359_v42 = vadd.f32 %v11019_v8, %v5784_v25  ;;  %v5786_v44 = vpop.f32.mrb[141].mxu1 }
 0x6c2   :  { %v7360_v37 = vadd.f32 %v7359_v42, %v10937_v48 }
 0x6c3   :  { %v5789_v9 = vpop.f32.mrb[142].mxu1 }
 0x6c4   :  { %6144 = vst [vmem:[#allocation16 + $0x30] sm:$0xff] %v7360_v37  ;;  %v7361_v62 = vadd.f32 %v11019_v8, %v5789_v9  ;;  %v5791_v32 = vpop.f32.mrb[143].mxu1 }
 0x6c6   :  { %v7362_v0 = vadd.f32 %v7361_v62, %v10943_v40 }
 0x6c7   :  { %v5794_v49 = vpop.f32.mrb[144].mxu1 }
 0x6c8   :  { %6145 = vst [vmem:[#allocation16 + $0x38] sm:$0xff] %v7362_v0  ;;  %v7363_v43 = vadd.f32 %v11019_v8, %v5794_v49  ;;  %v5796_v3 = vpop.f32.mrb[145].mxu1 }
 0x6ca   :  { %v7364_v53 = vadd.f32 %v7363_v43, %v10949_v39 }
 0x6cb   :  { %v5799_v14 = vpop.f32.mrb[146].mxu1 }
 0x6cc   :  { %6146 = vst [vmem:[#allocation16 + $0x40] sm:$0xff] %v7364_v53  ;;  %v7365_v15 = vadd.f32 %v11019_v8, %v5799_v14  ;;  %v5801_v10 = vpop.f32.mrb[147].mxu1 }
 0x6ce   :  { %v7366_v48 = vadd.f32 %v7365_v15, %v10955_v34 }
 0x6cf   :  { %v5804_v18 = vpop.f32.mrb[148].mxu1 }
 0x6d0   :  { %6147 = vst [vmem:[#allocation16 + $0x48] sm:$0xff] %v7366_v48  ;;  %v7367_v17 = vadd.f32 %v11019_v8, %v5804_v18  ;;  %v5806_v13 = vpop.f32.mrb[149].mxu1 }
 0x6d2   :  { %v7368_v40 = vadd.f32 %v7367_v17, %v10961_v21 }
 0x6d3   :  { %v5809_v60 = vpop.f32.mrb[150].mxu1 }
 0x6d4   :  { %6148 = vst [vmem:[#allocation16 + $0x50] sm:$0xff] %v7368_v40  ;;  %v7369_v61 = vadd.f32 %v11019_v8, %v5809_v60  ;;  %v5811_v36 = vpop.f32.mrb[151].mxu1 }
 0x6d6   :  { %v7370_v39 = vadd.f32 %v7369_v61, %v10967_v23 }
 0x6d7   :  { %v5814_v58 = vpop.f32.mrb[152].mxu1 }
 0x6d8   :  { %6149 = vst [vmem:[#allocation16 + $0x58] sm:$0xff] %v7370_v39  ;;  %v7371_v29 = vadd.f32 %v11019_v8, %v5814_v58  ;;  %v5816_v27 = vpop.f32.mrb[153].mxu1 }
 0x6da   :  { %v7372_v34 = vadd.f32 %v7371_v29, %v10973_v30 }
 0x6db   :  { %v5819_v22 = vpop.f32.mrb[154].mxu1 }
 0x6dc   :  { %6150 = vst [vmem:[#allocation16 + $0x60] sm:$0xff] %v7372_v34  ;;  %v7373_v12 = vadd.f32 %v11019_v8, %v5819_v22  ;;  %v5821_v33 = vpop.f32.mrb[155].mxu1 }
 0x6de   :  { %v7374_v21 = vadd.f32 %v7373_v12, %v10979_v24 }
 0x6df   :  { %v5824_v51 = vpop.f32.mrb[156].mxu1 }
 0x6e0   :  { %6151 = vst [vmem:[#allocation16 + $0x68] sm:$0xff] %v7374_v21  ;;  %v7375_v56 = vadd.f32 %v11019_v8, %v5824_v51  ;;  %v5826_v19 = vpop.f32.mrb[157].mxu1 }
 0x6e2   :  { %v7376_v23 = vadd.f32 %v7375_v56, %v10985_v63 }
 0x6e3   :  { %v5829_v57 = vpop.f32.mrb[158].mxu1 }
 0x6e4   :  { %6152 = vst [vmem:[#allocation16 + $0x70] sm:$0xff] %v7376_v23  ;;  %v7377_v46 = vadd.f32 %v11019_v8, %v5829_v57  ;;  %v5831_v47 = vpop.f32.mrb[159].mxu1 }
 0x6e6   :  { %v7378_v30 = vadd.f32 %v7377_v46, %v10991_v55 }
 0x6e7   :  { %v5834_v50 = vpop.f32.mrb[160].mxu1 }
 0x6e8   :  { %6153 = vst [vmem:[#allocation16 + $0x78] sm:$0xff] %v7378_v30  ;;  %v7379_v59 = vadd.f32 %v11019_v8, %v5834_v50  ;;  %v5836_v2 = vpop.f32.mrb[161].mxu1 }
 0x6ea   :  { %v7380_v24 = vadd.f32 %v7379_v59, %v10997_v38 }
 0x6eb   :  { %v5839_v41 = vpop.f32.mrb[162].mxu1 }
 0x6ec   :  { %6154 = vst [vmem:[#allocation16 + $0x80] sm:$0xff] %v7380_v24  ;;  %v7381_v31 = vadd.f32 %v11019_v8, %v5839_v41  ;;  %v5841_v4 = vpop.f32.mrb[163].mxu1 }
 0x6ee   :  { %v7382_v63 = vadd.f32 %v7381_v31, %v11003_v6 }
 0x6ef   :  { %v5844_v28 = vpop.f32.mrb[164].mxu1 }
 0x6f0   :  { %6155 = vst [vmem:[#allocation16 + $0x88] sm:$0xff] %v7382_v63  ;;  %v7383_v5 = vadd.f32 %v11019_v8, %v5844_v28  ;;  %v5846_v11 = vpop.f32.mrb[165].mxu1 }
 0x6f2   :  { %v7384_v55 = vadd.f32 %v7383_v5, %v11009_v26 }
 0x6f3   :  { %v5849_v52 = vpop.f32.mrb[166].mxu1 }
 0x6f4   :  { %6156 = vst [vmem:[#allocation16 + $0x90] sm:$0xff] %v7384_v55  ;;  %v7385_v16 = vadd.f32 %v11019_v8, %v5849_v52  ;;  %v5851_v45 = vpop.f32.mrb[167].mxu1 }
 0x6f6   :  { %v7386_v38 = vadd.f32 %v7385_v16, %v11015_v35 }
 0x6f8   :  { %6157 = vst [vmem:[#allocation16 + $0x98] sm:$0xff] %v7386_v38 }
 0x727   :  { %v6079_v20 = vpop.f32.mrb[168].mxu1 }
 0x728   :  { %v7387_v1 = vadd.f32 %v11019_v8, %v6079_v20  ;;  %v6081_v7 = vpop.f32.mrb[169].mxu1 }
 0x72a   :  { %6158 = vst [vmem:[#allocation16 + $0xa0] sm:$0xff] %v7387_v1 }
 0x72b   :  { %v6084_v6 = vpop.f32.mrb[170].mxu1 }
 0x72c   :  { %v7388_v54 = vadd.f32 %v11019_v8, %v6084_v6  ;;  %v6086_v25 = vpop.f32.mrb[171].mxu1 }
 0x72e   :  { %6159 = vst [vmem:[#allocation16 + $0xa8] sm:$0xff] %v7388_v54 }
 0x72f   :  { %v6089_v42 = vpop.f32.mrb[172].mxu1 }
 0x730   :  { %v7389_v26 = vadd.f32 %v11019_v8, %v6089_v42  ;;  %v6091_v44 = vpop.f32.mrb[173].mxu1 }
 0x732   :  { %6160 = vst [vmem:[#allocation16 + $0xb0] sm:$0xff] %v7389_v26 }
 0x733   :  { %v6094_v37 = vpop.f32.mrb[174].mxu1 }
 0x734   :  { %v7390_v9 = vadd.f32 %v11019_v8, %v6094_v37  ;;  %v6096_v35 = vpop.f32.mrb[175].mxu1 }
 0x736   :  { %6161 = vst [vmem:[#allocation16 + $0xb8] sm:$0xff] %v7390_v9 }
 0x737   :  { %v6099_v62 = vpop.f32.mrb[176].mxu1 }
 0x738   :  { %v7391_v32 = vadd.f32 %v11019_v8, %v6099_v62  ;;  %v6101_v0 = vpop.f32.mrb[177].mxu1 }
 0x73a   :  { %6162 = vst [vmem:[#allocation16 + $0xc0] sm:$0xff] %v7391_v32 }
 0x73b   :  { %v6104_v49 = vpop.f32.mrb[178].mxu1 }
 0x73c   :  { %v7392_v43 = vadd.f32 %v11019_v8, %v6104_v49  ;;  %v6106_v3 = vpop.f32.mrb[179].mxu1 }
 0x73e   :  { %6163 = vst [vmem:[#allocation16 + $0xc8] sm:$0xff] %v7392_v43 }
 0x73f   :  { %v6109_v53 = vpop.f32.mrb[180].mxu1 }
 0x740   :  { %v7393_v14 = vadd.f32 %v11019_v8, %v6109_v53  ;;  %v6111_v15 = vpop.f32.mrb[181].mxu1 }
 0x742   :  { %6164 = vst [vmem:[#allocation16 + $0xd0] sm:$0xff] %v7393_v14 }
 0x743   :  { %v6114_v10 = vpop.f32.mrb[182].mxu1 }
 0x744   :  { %v7394_v48 = vadd.f32 %v11019_v8, %v6114_v10  ;;  %v6116_v18 = vpop.f32.mrb[183].mxu1 }
 0x746   :  { %6165 = vst [vmem:[#allocation16 + $0xd8] sm:$0xff] %v7394_v48 }
 0x747   :  { %v6119_v17 = vpop.f32.mrb[184].mxu1 }
 0x748   :  { %v7395_v13 = vadd.f32 %v11019_v8, %v6119_v17  ;;  %v6121_v40 = vpop.f32.mrb[185].mxu1 }
 0x74a   :  { %6166 = vst [vmem:[#allocation16 + $0xe0] sm:$0xff] %v7395_v13 }
 0x74b   :  { %v6124_v60 = vpop.f32.mrb[186].mxu1 }
 0x74c   :  { %v7396_v61 = vadd.f32 %v11019_v8, %v6124_v60  ;;  %v6126_v36 = vpop.f32.mrb[187].mxu1 }
 0x74e   :  { %6167 = vst [vmem:[#allocation16 + $0xe8] sm:$0xff] %v7396_v61 }
 0x74f   :  { %v6129_v39 = vpop.f32.mrb[188].mxu1 }
 0x750   :  { %v7397_v58 = vadd.f32 %v11019_v8, %v6129_v39  ;;  %v6131_v29 = vpop.f32.mrb[189].mxu1 }
 0x752   :  { %6168 = vst [vmem:[#allocation16 + $0xf0] sm:$0xff] %v7397_v58 }
 0x753   :  { %v6134_v27 = vpop.f32.mrb[190].mxu1 }
 0x754   :  { %v7398_v34 = vadd.f32 %v11019_v8, %v6134_v27  ;;  %v6136_v22 = vpop.f32.mrb[191].mxu1 }
 0x756   :  { %6169 = vst [vmem:[#allocation16 + $0xf8] sm:$0xff] %v7398_v34 }
 0x757   :  { %8018 = shalt.err (!%p8015_p12)
}
 0x758   :  { %s8019_s4 = scalar_lea.hbm %s11098_s10, 4096 }
 0x759   :  { %p8020_p13 = scmp.ne.s32.totalorder %s11098_s10, %s8019_s4  ;;  %p8023_p0 = scmp.lt.u32.totalorder %s8019_s4, %s11098_s10 }
 0x75b   :  { %p8025_p1 = pnand %p8023_p0, %p8020_p13 }
 0x75d   :  { %8028 = shalt.err (!%p8025_p1)
}
 0x75e   :  { %6181 = dma.vmem_to_hbm [thread:$0]  %s6176_s7, 4096, %s11098_s10, [#allocation4], %s8054_s6, %s8054_s6, %s8055_s30  }
 0x75f   :  { %8039 = dma.done.wait [#allocation4], 4096  }
 0x760   :  { %8040 = vsyncadd [#allocation4], 4294963200 }
 0x761   :  { %6185 = vsyncpa [#allocation3], 1 }
 0x762   :  { %6186 = vsyncpa [#allocation6], 1 }
 0x763   :  { %6187 = vsyncpa [#allocation9], 1 }
 0x764   :  { %6188 = vsyncpa [#allocation12], 1 }
 0x765   :  { %6189 = vsyncpa [#allocation15], 1 }
 0x766   :  { %6190 = vsyncpa [#allocation4], 1 }

</bundles_post_ra>
